<compile_context>
chip_gen: v5e
topology: v5e:2x2
jax: 0.10.0
libtpu: 0.0.40
codegen_flags: <defaults>
</compile_context>

<pallas_src>
import functools

import jax
import jax.numpy as jnp
from jax import lax
from jax.experimental import pallas as pl
from jax.experimental.pallas import tpu as pltpu

INPUT_DIM = 40      # fixed by the module (input_size=40)
EMBEDDING_DIM = 32  # hidden size E
N_LAYERS = 1        # module-level global `n_layers` in the original code
HP = 128            # padded per-gate lane width (= one TPU lane tile)


def _round_up(x, m):
    return (x + m - 1) // m * m


def bilstm_kernel(x_ref, wih_ref, whh_ref, b_ref, out_ref,
                  xgf_scr, xgb_scr, hf_scr, hb_scr):
    """Bidirectional single-layer LSTM over one batch tile.

    x_ref   : (T, bB, F)          time-major input tile
    wih_ref : (F, 8*HP)           fused fwd+bwd input->gate weights, gate-padded
    whh_ref : (2, HP, 4*HP)       hidden->gate weights, gate-padded, rows >= H zero
    b_ref   : (1, 8*HP)           combined bias (b_ih + b_hh), gate-padded
    out_ref : (T, bB, H)          h_forward(t) + h_backward(t)
    xgf_scr : (T, bB, 4*HP) VMEM  forward-direction input projections
    xgb_scr : (T, bB, 4*HP) VMEM  backward-direction input projections
    hf_scr  : (T, bB, HP)   VMEM  forward hidden outputs (lanes >= H stay zero)
    hb_scr  : (T, bB, HP)   VMEM  backward hidden outputs
    """
    T, bB, F = x_ref.shape
    H = out_ref.shape[2]
    G = 4 * HP

    # One fused MXU matmul for both directions' input projections.
    x2d = x_ref[...].reshape(T * bB, F)
    xg = jnp.dot(x2d, wih_ref[...], preferred_element_type=jnp.float32)
    xg = xg.reshape(T, bB, 2 * G) + b_ref[...]
    xgf_scr[...] = xg[:, :, :G]
    xgb_scr[...] = xg[:, :, G:]

    def lstm_step(xg_t, h, c, whh):
        # gates: (bB, 4*HP) — PyTorch gate order [i, f, g, o], one 128-lane
        # block per gate. Pad lanes of h/c stay exactly zero through the
        # recurrence (zero weight rows/cols + zero bias in pad positions).
        g = xg_t + jnp.dot(h, whh, preferred_element_type=jnp.float32)
        i_g = jax.nn.sigmoid(g[:, 0 * HP:1 * HP])
        f_g = jax.nn.sigmoid(g[:, 1 * HP:2 * HP])
        g_g = jnp.tanh(g[:, 2 * HP:3 * HP])
        o_g = jax.nn.sigmoid(g[:, 3 * HP:4 * HP])
        c_new = f_g * c + i_g * g_g
        h_new = o_g * jnp.tanh(c_new)
        return h_new, c_new

    zeros = jnp.zeros((bB, HP), jnp.float32)

    def body(s, carry):
        h_f, c_f, h_b, c_b = carry
        tb = T - 1 - s
        # Two independent recurrent chains interleaved in a single step.
        h_f, c_f = lstm_step(xgf_scr[s], h_f, c_f, whh_ref[0])
        h_b, c_b = lstm_step(xgb_scr[tb], h_b, c_b, whh_ref[1])
        hf_scr[s] = h_f
        hb_scr[tb] = h_b
        return (h_f, c_f, h_b, c_b)

    lax.fori_loop(0, T, body, (zeros, zeros, zeros, zeros), unroll=True)

    # Single bulk store of the directional sum (only lanes < H are kept).
    out_ref[...] = (hf_scr[...] + hb_scr[...])[:, :, :H].astype(out_ref.dtype)


def sentence_rnn_forward(x, wih_p, whh_p, b_p, *, embedding_dim):
    """x: (B, T, 40) float32 -> (B, T, embedding_dim) float32."""
    B, T, F = x.shape
    H = embedding_dim
    G = 4 * HP

    x_tm = jnp.transpose(x, (1, 0, 2)).astype(jnp.float32)  # (T, B, F)

    # Tile the batch: pad to a multiple of the batch block (>= 8 sublanes).
    block_b = min(_round_up(B, 8), 128)
    B_pad = _round_up(B, block_b)
    if B_pad != B:
        x_tm = jnp.pad(x_tm, ((0, 0), (0, B_pad - B), (0, 0)))

    out_tm = pl.pallas_call(
        bilstm_kernel,
        out_shape=jax.ShapeDtypeStruct((T, B_pad, H), jnp.float32),
        grid_spec=pltpu.PrefetchScalarGridSpec(
            num_scalar_prefetch=0,
            grid=(B_pad // block_b,),
            in_specs=[
                pl.BlockSpec((T, block_b, F), lambda i: (0, i, 0)),
                pl.BlockSpec((F, 2 * G), lambda i: (0, 0)),
                pl.BlockSpec((2, HP, G), lambda i: (0, 0, 0)),
                pl.BlockSpec((1, 2 * G), lambda i: (0, 0)),
            ],
            out_specs=pl.BlockSpec((T, block_b, H), lambda i: (0, i, 0)),
            scratch_shapes=[
                pltpu.VMEM((T, block_b, G), jnp.float32),
                pltpu.VMEM((T, block_b, G), jnp.float32),
                pltpu.VMEM((T, block_b, HP), jnp.float32),
                pltpu.VMEM((T, block_b, HP), jnp.float32),
            ],
        ),
        compiler_params=pltpu.CompilerParams(
            dimension_semantics=("parallel",)),
    )(x_tm, wih_p, whh_p, b_p)

    out_tm = out_tm[:, :B, :] if B_pad != B else out_tm
    return jnp.transpose(out_tm, (1, 0, 2))  # (B, T, H)


def lstm_reference(x, wih, whh, b, *, embedding_dim):
    """Pure-JAX reference (lax.scan) matching PyTorch bi-LSTM + dir-sum."""
    H = embedding_dim
    xs = jnp.transpose(x, (1, 0, 2))  # (T, B, F)
    B = x.shape[0]

    def run(d, reverse):
        seq = xs[::-1] if reverse else xs

        def step(carry, xt):
            h, c = carry
            g = xt @ wih[d] + h @ whh[d] + b[d][0]
            i = jax.nn.sigmoid(g[:, :H])
            f = jax.nn.sigmoid(g[:, H:2 * H])
            gg = jnp.tanh(g[:, 2 * H:3 * H])
            o = jax.nn.sigmoid(g[:, 3 * H:])
            c = f * c + i * gg
            h = o * jnp.tanh(c)
            return (h, c), h

        init = (jnp.zeros((B, H), jnp.float32), jnp.zeros((B, H), jnp.float32))
        _, hs = lax.scan(step, init, seq)
        if reverse:
            hs = hs[::-1]
        return jnp.transpose(hs, (1, 0, 2))

    return run(0, False) + run(1, True)


def init_params(key, input_dim, embedding_dim):
    """Deterministic LSTM params, PyTorch-style uniform(-1/sqrt(H), 1/sqrt(H))."""
    H = embedding_dim
    k = 1.0 / jnp.sqrt(jnp.float32(H))
    keys = jax.random.split(key, 8)
    # Stored already transposed for x @ W: (dir, in, 4H), gate order [i, f, g, o]
    wih = jnp.stack([
        jax.random.uniform(keys[0], (input_dim, 4 * H), jnp.float32, -k, k),
        jax.random.uniform(keys[1], (input_dim, 4 * H), jnp.float32, -k, k),
    ])
    whh = jnp.stack([
        jax.random.uniform(keys[2], (H, 4 * H), jnp.float32, -k, k),
        jax.random.uniform(keys[3], (H, 4 * H), jnp.float32, -k, k),
    ])
    b_ih = jnp.stack([
        jax.random.uniform(keys[4], (4 * H,), jnp.float32, -k, k),
        jax.random.uniform(keys[5], (4 * H,), jnp.float32, -k, k),
    ])
    b_hh = jnp.stack([
        jax.random.uniform(keys[6], (4 * H,), jnp.float32, -k, k),
        jax.random.uniform(keys[7], (4 * H,), jnp.float32, -k, k),
    ])
    b = (b_ih + b_hh)[:, None, :]  # (2, 1, 4H)
    return wih, whh, b


def pack_params(wih, whh, b, *, embedding_dim):
    """Pad raw params into the gate-per-128-lane kernel layout (zeros elsewhere).

    Gate g of direction d lives in lanes [d*4*HP + g*HP, d*4*HP + g*HP + H).
    whh rows >= H are zero so the 128-lane-padded hidden state needs no slicing.
    """
    H = embedding_dim
    F = wih.shape[1]
    wih_p = jnp.zeros((F, 2 * 4 * HP), jnp.float32)
    whh_p = jnp.zeros((2, HP, 4 * HP), jnp.float32)
    b_p = jnp.zeros((1, 2 * 4 * HP), jnp.float32)
    for d in range(2):
        for g in range(4):
            col = d * 4 * HP + g * HP
            wih_p = wih_p.at[:, col:col + H].set(wih[d, :, g * H:(g + 1) * H])
            b_p = b_p.at[0, col:col + H].set(b[d, 0, g * H:(g + 1) * H])
            whh_p = whh_p.at[d, :H, g * HP:g * HP + H].set(
                whh[d, :, g * H:(g + 1) * H])
    return wih_p, whh_p, b_p


if __name__ == "__main__":
    root = jax.random.PRNGKey(0)
    kx, kp = jax.random.split(root)

    B, T = 2, 8
    x = jax.random.normal(kx, (B, T, INPUT_DIM), jnp.float32)
    wih, whh, b = init_params(kp, INPUT_DIM, EMBEDDING_DIM)
    wih_p, whh_p, b_p = pack_params(wih, whh, b, embedding_dim=EMBEDDING_DIM)

    fwd = jax.jit(functools.partial(sentence_rnn_forward,
                                    embedding_dim=EMBEDDING_DIM))
    out = fwd(x, wih_p, whh_p, b_p)
    jax.block_until_ready(out)

    ref = lstm_reference(x, wih, whh, b, embedding_dim=EMBEDDING_DIM)
    assert out.shape == (B, T, EMBEDDING_DIM)
    assert jnp.allclose(out, ref, rtol=1e-4, atol=1e-4), (
        "max abs err = %e" % float(jnp.max(jnp.abs(out - ref))))

    print("KERNEL_OK")
</pallas_src>

<mosaic_0001>
module attributes {stable_mosaic.version = 11 : i64} {
  func.func @bilstm_kernel(%arg0: i32, %arg1: memref<8x8x40xf32, #tpu.memory_space<vmem>>, %arg2: memref<40x1024xf32, #tpu.memory_space<vmem>>, %arg3: memref<2x128x512xf32, #tpu.memory_space<vmem>>, %arg4: memref<1x1024xf32, #tpu.memory_space<vmem>>, %arg5: memref<8x8x32xf32, #tpu.memory_space<vmem>>, %arg6: memref<8x8x512xf32, #tpu.memory_space<vmem>>, %arg7: memref<8x8x512xf32, #tpu.memory_space<vmem>>, %arg8: memref<8x8x128xf32, #tpu.memory_space<vmem>>, %arg9: memref<8x8x128xf32, #tpu.memory_space<vmem>>) attributes {dimension_semantics = [#tpu.dimension_semantics<parallel>], iteration_bounds = array<i64: 1>, scalar_prefetch = 0 : i64, scratch_operands = 4 : i64, tpu.core_type = #tpu.core_type<tc>, window_params = [{transform_indices = @transform_0, window_bounds = array<i64: 8, 8, 40>}, {pipeline_mode = #tpu.pipeline_mode<synchronous>, transform_indices = @transform_1, window_bounds = array<i64: 40, 1024>}, {pipeline_mode = #tpu.pipeline_mode<synchronous>, transform_indices = @transform_2, window_bounds = array<i64: 2, 128, 512>}, {pipeline_mode = #tpu.pipeline_mode<synchronous>, transform_indices = @transform_3, window_bounds = array<i64: 1, 1024>}, {transform_indices = @transform_4, window_bounds = array<i64: 8, 8, 32>}]} {
    %c0 = arith.constant 0 : index
    %c0_0 = arith.constant 0 : index
    %c0_1 = arith.constant 0 : index
    %0 = vector.load %arg1[%c0, %c0_0, %c0_1] : memref<8x8x40xf32, #tpu.memory_space<vmem>>, vector<8x8x40xf32>
    %1 = vector.shape_cast %0 : vector<8x8x40xf32> to vector<64x40xf32>
    %c0_2 = arith.constant 0 : index
    %c0_3 = arith.constant 0 : index
    %2 = vector.load %arg2[%c0_2, %c0_3] : memref<40x1024xf32, #tpu.memory_space<vmem>>, vector<40x1024xf32>
    %cst = arith.constant dense<0.000000e+00> : vector<64x1024xf32>
    %3 = tpu.matmul %1, %2, %cst {dimension_numbers = #tpu.dot_dimension_numbers<[1], [0], [0], [1], [0, 0, 1, 1], [], []>} : vector<64x40xf32>, vector<40x1024xf32>, vector<64x1024xf32> -> vector<64x1024xf32>
    %4 = vector.shape_cast %3 : vector<64x1024xf32> to vector<8x8x1024xf32>
    %c0_4 = arith.constant 0 : index
    %c0_5 = arith.constant 0 : index
    %5 = vector.load %arg4[%c0_4, %c0_5] : memref<1x1024xf32, #tpu.memory_space<vmem>>, vector<1x1024xf32>
    %6 = vector.shape_cast %5 : vector<1x1024xf32> to vector<1x1x1024xf32>
    %7 = vector.broadcast %6 : vector<1x1x1024xf32> to vector<8x8x1024xf32>
    %8 = arith.addf %4, %7 : vector<8x8x1024xf32>
    %9 = vector.extract_strided_slice %8 {offsets = [0, 0, 0], sizes = [8, 8, 512], strides = [1, 1, 1]} : vector<8x8x1024xf32> to vector<8x8x512xf32>
    %c0_6 = arith.constant 0 : index
    %c0_7 = arith.constant 0 : index
    %c0_8 = arith.constant 0 : index
    %10 = vector.load %arg6[%c0_6, %c0_7, %c0_8] : memref<8x8x512xf32, #tpu.memory_space<vmem>>, vector<8x8x512xf32>
    tpu.vector_store %arg6[%c0_6, %c0_7, %c0_8], %9 {strides = array<i32>} : memref<8x8x512xf32, #tpu.memory_space<vmem>>, vector<8x8x512xf32>,
    %11 = vector.extract_strided_slice %8 {offsets = [0, 0, 512], sizes = [8, 8, 512], strides = [1, 1, 1]} : vector<8x8x1024xf32> to vector<8x8x512xf32>
    %c0_9 = arith.constant 0 : index
    %c0_10 = arith.constant 0 : index
    %c0_11 = arith.constant 0 : index
    %12 = vector.load %arg7[%c0_9, %c0_10, %c0_11] : memref<8x8x512xf32, #tpu.memory_space<vmem>>, vector<8x8x512xf32>
    tpu.vector_store %arg7[%c0_9, %c0_10, %c0_11], %11 {strides = array<i32>} : memref<8x8x512xf32, #tpu.memory_space<vmem>>, vector<8x8x512xf32>,
    %cst_12 = arith.constant 0.000000e+00 : f32
    %13 = vector.broadcast %cst_12 : f32 to vector<8x128xf32>
    %c0_i32 = arith.constant 0 : i32
    %c7_i32 = arith.constant 7 : i32
    %14 = arith.subi %c7_i32, %c0_i32 : i32
    %15 = arith.index_cast %c0_i32 : i32 to index
    %c0_13 = arith.constant 0 : index
    %c0_14 = arith.constant 0 : index
    %16 = vector.load %arg6[%15, %c0_13, %c0_14] : memref<8x8x512xf32, #tpu.memory_space<vmem>>, vector<1x8x512xf32>
    %17 = vector.shape_cast %16 : vector<1x8x512xf32> to vector<8x512xf32>
    %c0_15 = arith.constant 0 : index
    %c0_16 = arith.constant 0 : index
    %c0_17 = arith.constant 0 : index
    %18 = vector.load %arg3[%c0_15, %c0_16, %c0_17] : memref<2x128x512xf32, #tpu.memory_space<vmem>>, vector<1x128x512xf32>
    %19 = vector.shape_cast %18 : vector<1x128x512xf32> to vector<128x512xf32>
    %cst_18 = arith.constant dense<0.000000e+00> : vector<8x512xf32>
    %20 = tpu.matmul %13, %19, %cst_18 {dimension_numbers = #tpu.dot_dimension_numbers<[1], [0], [0], [1], [0, 0, 1, 1], [], []>} : vector<8x128xf32>, vector<128x512xf32>, vector<8x512xf32> -> vector<8x512xf32>
    %21 = arith.addf %17, %20 : vector<8x512xf32>
    %22 = vector.extract_strided_slice %21 {offsets = [0, 0], sizes = [8, 128], strides = [1, 1]} : vector<8x512xf32> to vector<8x128xf32>
    %23 = arith.negf %22 : vector<8x128xf32>
    %24 = math.exp %23 : vector<8x128xf32>
    %cst_19 = arith.constant 1.000000e+00 : f32
    %25 = vector.broadcast %cst_19 : f32 to vector<8x128xf32>
    %26 = arith.addf %25, %24 : vector<8x128xf32>
    %27 = arith.divf %25, %26 : vector<8x128xf32>
    %28 = vector.extract_strided_slice %21 {offsets = [0, 128], sizes = [8, 128], strides = [1, 1]} : vector<8x512xf32> to vector<8x128xf32>
    %29 = arith.negf %28 : vector<8x128xf32>
    %30 = math.exp %29 : vector<8x128xf32>
    %cst_20 = arith.constant 1.000000e+00 : f32
    %31 = vector.broadcast %cst_20 : f32 to vector<8x128xf32>
    %32 = arith.addf %31, %30 : vector<8x128xf32>
    %33 = arith.divf %31, %32 : vector<8x128xf32>
    %34 = vector.extract_strided_slice %21 {offsets = [0, 256], sizes = [8, 128], strides = [1, 1]} : vector<8x512xf32> to vector<8x128xf32>
    %35 = math.tanh %34 : vector<8x128xf32>
    %36 = vector.extract_strided_slice %21 {offsets = [0, 384], sizes = [8, 128], strides = [1, 1]} : vector<8x512xf32> to vector<8x128xf32>
    %37 = arith.negf %36 : vector<8x128xf32>
    %38 = math.exp %37 : vector<8x128xf32>
    %cst_21 = arith.constant 1.000000e+00 : f32
    %39 = vector.broadcast %cst_21 : f32 to vector<8x128xf32>
    %40 = arith.addf %39, %38 : vector<8x128xf32>
    %41 = arith.divf %39, %40 : vector<8x128xf32>
    %42 = arith.mulf %33, %13 : vector<8x128xf32>
    %43 = arith.mulf %27, %35 : vector<8x128xf32>
    %44 = arith.addf %42, %43 : vector<8x128xf32>
    %45 = math.tanh %44 : vector<8x128xf32>
    %46 = arith.mulf %41, %45 : vector<8x128xf32>
    %47 = arith.index_cast %14 : i32 to index
    %c0_22 = arith.constant 0 : index
    %c0_23 = arith.constant 0 : index
    %48 = vector.load %arg7[%47, %c0_22, %c0_23] : memref<8x8x512xf32, #tpu.memory_space<vmem>>, vector<1x8x512xf32>
    %49 = vector.shape_cast %48 : vector<1x8x512xf32> to vector<8x512xf32>
    %c1 = arith.constant 1 : index
    %c0_24 = arith.constant 0 : index
    %c0_25 = arith.constant 0 : index
    %50 = vector.load %arg3[%c1, %c0_24, %c0_25] : memref<2x128x512xf32, #tpu.memory_space<vmem>>, vector<1x128x512xf32>
    %51 = vector.shape_cast %50 : vector<1x128x512xf32> to vector<128x512xf32>
    %cst_26 = arith.constant dense<0.000000e+00> : vector<8x512xf32>
    %52 = tpu.matmul %13, %51, %cst_26 {dimension_numbers = #tpu.dot_dimension_numbers<[1], [0], [0], [1], [0, 0, 1, 1], [], []>} : vector<8x128xf32>, vector<128x512xf32>, vector<8x512xf32> -> vector<8x512xf32>
    %53 = arith.addf %49, %52 : vector<8x512xf32>
    %54 = vector.extract_strided_slice %53 {offsets = [0, 0], sizes = [8, 128], strides = [1, 1]} : vector<8x512xf32> to vector<8x128xf32>
    %55 = arith.negf %54 : vector<8x128xf32>
    %56 = math.exp %55 : vector<8x128xf32>
    %cst_27 = arith.constant 1.000000e+00 : f32
    %57 = vector.broadcast %cst_27 : f32 to vector<8x128xf32>
    %58 = arith.addf %57, %56 : vector<8x128xf32>
    %59 = arith.divf %57, %58 : vector<8x128xf32>
    %60 = vector.extract_strided_slice %53 {offsets = [0, 128], sizes = [8, 128], strides = [1, 1]} : vector<8x512xf32> to vector<8x128xf32>
    %61 = arith.negf %60 : vector<8x128xf32>
    %62 = math.exp %61 : vector<8x128xf32>
    %cst_28 = arith.constant 1.000000e+00 : f32
    %63 = vector.broadcast %cst_28 : f32 to vector<8x128xf32>
    %64 = arith.addf %63, %62 : vector<8x128xf32>
    %65 = arith.divf %63, %64 : vector<8x128xf32>
    %66 = vector.extract_strided_slice %53 {offsets = [0, 256], sizes = [8, 128], strides = [1, 1]} : vector<8x512xf32> to vector<8x128xf32>
    %67 = math.tanh %66 : vector<8x128xf32>
    %68 = vector.extract_strided_slice %53 {offsets = [0, 384], sizes = [8, 128], strides = [1, 1]} : vector<8x512xf32> to vector<8x128xf32>
    %69 = arith.negf %68 : vector<8x128xf32>
    %70 = math.exp %69 : vector<8x128xf32>
    %cst_29 = arith.constant 1.000000e+00 : f32
    %71 = vector.broadcast %cst_29 : f32 to vector<8x128xf32>
    %72 = arith.addf %71, %70 : vector<8x128xf32>
    %73 = arith.divf %71, %72 : vector<8x128xf32>
    %74 = arith.mulf %65, %13 : vector<8x128xf32>
    %75 = arith.mulf %59, %67 : vector<8x128xf32>
    %76 = arith.addf %74, %75 : vector<8x128xf32>
    %77 = math.tanh %76 : vector<8x128xf32>
    %78 = arith.mulf %73, %77 : vector<8x128xf32>
    %79 = arith.index_cast %c0_i32 : i32 to index
    %c0_30 = arith.constant 0 : index
    %c0_31 = arith.constant 0 : index
    %80 = vector.load %arg8[%79, %c0_30, %c0_31] : memref<8x8x128xf32, #tpu.memory_space<vmem>>, vector<1x8x128xf32>
    %81 = vector.shape_cast %80 : vector<1x8x128xf32> to vector<8x128xf32>
    %82 = vector.shape_cast %46 : vector<8x128xf32> to vector<1x8x128xf32>
    tpu.vector_store %arg8[%79, %c0_30, %c0_31], %82 {strides = array<i32>} : memref<8x8x128xf32, #tpu.memory_space<vmem>>, vector<1x8x128xf32>,
    %83 = arith.index_cast %14 : i32 to index
    %c0_32 = arith.constant 0 : index
    %c0_33 = arith.constant 0 : index
    %84 = vector.load %arg9[%83, %c0_32, %c0_33] : memref<8x8x128xf32, #tpu.memory_space<vmem>>, vector<1x8x128xf32>
    %85 = vector.shape_cast %84 : vector<1x8x128xf32> to vector<8x128xf32>
    %86 = vector.shape_cast %78 : vector<8x128xf32> to vector<1x8x128xf32>
    tpu.vector_store %arg9[%83, %c0_32, %c0_33], %86 {strides = array<i32>} : memref<8x8x128xf32, #tpu.memory_space<vmem>>, vector<1x8x128xf32>,
    %c1_i32 = arith.constant 1 : i32
    %c7_i32_34 = arith.constant 7 : i32
    %87 = arith.subi %c7_i32_34, %c1_i32 : i32
    %88 = arith.index_cast %c1_i32 : i32 to index
    %c0_35 = arith.constant 0 : index
    %c0_36 = arith.constant 0 : index
    %89 = vector.load %arg6[%88, %c0_35, %c0_36] : memref<8x8x512xf32, #tpu.memory_space<vmem>>, vector<1x8x512xf32>
    %90 = vector.shape_cast %89 : vector<1x8x512xf32> to vector<8x512xf32>
    %c0_37 = arith.constant 0 : index
    %c0_38 = arith.constant 0 : index
    %c0_39 = arith.constant 0 : index
    %91 = vector.load %arg3[%c0_37, %c0_38, %c0_39] : memref<2x128x512xf32, #tpu.memory_space<vmem>>, vector<1x128x512xf32>
    %92 = vector.shape_cast %91 : vector<1x128x512xf32> to vector<128x512xf32>
    %cst_40 = arith.constant dense<0.000000e+00> : vector<8x512xf32>
    %93 = tpu.matmul %46, %92, %cst_40 {dimension_numbers = #tpu.dot_dimension_numbers<[1], [0], [0], [1], [0, 0, 1, 1], [], []>} : vector<8x128xf32>, vector<128x512xf32>, vector<8x512xf32> -> vector<8x512xf32>
    %94 = arith.addf %90, %93 : vector<8x512xf32>
    %95 = vector.extract_strided_slice %94 {offsets = [0, 0], sizes = [8, 128], strides = [1, 1]} : vector<8x512xf32> to vector<8x128xf32>
    %96 = arith.negf %95 : vector<8x128xf32>
    %97 = math.exp %96 : vector<8x128xf32>
    %cst_41 = arith.constant 1.000000e+00 : f32
    %98 = vector.broadcast %cst_41 : f32 to vector<8x128xf32>
    %99 = arith.addf %98, %97 : vector<8x128xf32>
    %100 = arith.divf %98, %99 : vector<8x128xf32>
    %101 = vector.extract_strided_slice %94 {offsets = [0, 128], sizes = [8, 128], strides = [1, 1]} : vector<8x512xf32> to vector<8x128xf32>
    %102 = arith.negf %101 : vector<8x128xf32>
    %103 = math.exp %102 : vector<8x128xf32>
    %cst_42 = arith.constant 1.000000e+00 : f32
    %104 = vector.broadcast %cst_42 : f32 to vector<8x128xf32>
    %105 = arith.addf %104, %103 : vector<8x128xf32>
    %106 = arith.divf %104, %105 : vector<8x128xf32>
    %107 = vector.extract_strided_slice %94 {offsets = [0, 256], sizes = [8, 128], strides = [1, 1]} : vector<8x512xf32> to vector<8x128xf32>
    %108 = math.tanh %107 : vector<8x128xf32>
    %109 = vector.extract_strided_slice %94 {offsets = [0, 384], sizes = [8, 128], strides = [1, 1]} : vector<8x512xf32> to vector<8x128xf32>
    %110 = arith.negf %109 : vector<8x128xf32>
    %111 = math.exp %110 : vector<8x128xf32>
    %cst_43 = arith.constant 1.000000e+00 : f32
    %112 = vector.broadcast %cst_43 : f32 to vector<8x128xf32>
    %113 = arith.addf %112, %111 : vector<8x128xf32>
    %114 = arith.divf %112, %113 : vector<8x128xf32>
    %115 = arith.mulf %106, %44 : vector<8x128xf32>
    %116 = arith.mulf %100, %108 : vector<8x128xf32>
    %117 = arith.addf %115, %116 : vector<8x128xf32>
    %118 = math.tanh %117 : vector<8x128xf32>
    %119 = arith.mulf %114, %118 : vector<8x128xf32>
    %120 = arith.index_cast %87 : i32 to index
    %c0_44 = arith.constant 0 : index
    %c0_45 = arith.constant 0 : index
    %121 = vector.load %arg7[%120, %c0_44, %c0_45] : memref<8x8x512xf32, #tpu.memory_space<vmem>>, vector<1x8x512xf32>
    %122 = vector.shape_cast %121 : vector<1x8x512xf32> to vector<8x512xf32>
    %c1_46 = arith.constant 1 : index
    %c0_47 = arith.constant 0 : index
    %c0_48 = arith.constant 0 : index
    %123 = vector.load %arg3[%c1_46, %c0_47, %c0_48] : memref<2x128x512xf32, #tpu.memory_space<vmem>>, vector<1x128x512xf32>
    %124 = vector.shape_cast %123 : vector<1x128x512xf32> to vector<128x512xf32>
    %cst_49 = arith.constant dense<0.000000e+00> : vector<8x512xf32>
    %125 = tpu.matmul %78, %124, %cst_49 {dimension_numbers = #tpu.dot_dimension_numbers<[1], [0], [0], [1], [0, 0, 1, 1], [], []>} : vector<8x128xf32>, vector<128x512xf32>, vector<8x512xf32> -> vector<8x512xf32>
    %126 = arith.addf %122, %125 : vector<8x512xf32>
    %127 = vector.extract_strided_slice %126 {offsets = [0, 0], sizes = [8, 128], strides = [1, 1]} : vector<8x512xf32> to vector<8x128xf32>
    %128 = arith.negf %127 : vector<8x128xf32>
    %129 = math.exp %128 : vector<8x128xf32>
    %cst_50 = arith.constant 1.000000e+00 : f32
    %130 = vector.broadcast %cst_50 : f32 to vector<8x128xf32>
    %131 = arith.addf %130, %129 : vector<8x128xf32>
    %132 = arith.divf %130, %131 : vector<8x128xf32>
    %133 = vector.extract_strided_slice %126 {offsets = [0, 128], sizes = [8, 128], strides = [1, 1]} : vector<8x512xf32> to vector<8x128xf32>
    %134 = arith.negf %133 : vector<8x128xf32>
    %135 = math.exp %134 : vector<8x128xf32>
    %cst_51 = arith.constant 1.000000e+00 : f32
    %136 = vector.broadcast %cst_51 : f32 to vector<8x128xf32>
    %137 = arith.addf %136, %135 : vector<8x128xf32>
    %138 = arith.divf %136, %137 : vector<8x128xf32>
    %139 = vector.extract_strided_slice %126 {offsets = [0, 256], sizes = [8, 128], strides = [1, 1]} : vector<8x512xf32> to vector<8x128xf32>
    %140 = math.tanh %139 : vector<8x128xf32>
    %141 = vector.extract_strided_slice %126 {offsets = [0, 384], sizes = [8, 128], strides = [1, 1]} : vector<8x512xf32> to vector<8x128xf32>
    %142 = arith.negf %141 : vector<8x128xf32>
    %143 = math.exp %142 : vector<8x128xf32>
    %cst_52 = arith.constant 1.000000e+00 : f32
    %144 = vector.broadcast %cst_52 : f32 to vector<8x128xf32>
    %145 = arith.addf %144, %143 : vector<8x128xf32>
    %146 = arith.divf %144, %145 : vector<8x128xf32>
    %147 = arith.mulf %138, %76 : vector<8x128xf32>
    %148 = arith.mulf %132, %140 : vector<8x128xf32>
    %149 = arith.addf %147, %148 : vector<8x128xf32>
    %150 = math.tanh %149 : vector<8x128xf32>
    %151 = arith.mulf %146, %150 : vector<8x128xf32>
    %152 = arith.index_cast %c1_i32 : i32 to index
    %c0_53 = arith.constant 0 : index
    %c0_54 = arith.constant 0 : index
    %153 = vector.load %arg8[%152, %c0_53, %c0_54] : memref<8x8x128xf32, #tpu.memory_space<vmem>>, vector<1x8x128xf32>
    %154 = vector.shape_cast %153 : vector<1x8x128xf32> to vector<8x128xf32>
    %155 = vector.shape_cast %119 : vector<8x128xf32> to vector<1x8x128xf32>
    tpu.vector_store %arg8[%152, %c0_53, %c0_54], %155 {strides = array<i32>} : memref<8x8x128xf32, #tpu.memory_space<vmem>>, vector<1x8x128xf32>,
    %156 = arith.index_cast %87 : i32 to index
    %c0_55 = arith.constant 0 : index
    %c0_56 = arith.constant 0 : index
    %157 = vector.load %arg9[%156, %c0_55, %c0_56] : memref<8x8x128xf32, #tpu.memory_space<vmem>>, vector<1x8x128xf32>
    %158 = vector.shape_cast %157 : vector<1x8x128xf32> to vector<8x128xf32>
    %159 = vector.shape_cast %151 : vector<8x128xf32> to vector<1x8x128xf32>
    tpu.vector_store %arg9[%156, %c0_55, %c0_56], %159 {strides = array<i32>} : memref<8x8x128xf32, #tpu.memory_space<vmem>>, vector<1x8x128xf32>,
    %c2_i32 = arith.constant 2 : i32
    %c7_i32_57 = arith.constant 7 : i32
    %160 = arith.subi %c7_i32_57, %c2_i32 : i32
    %161 = arith.index_cast %c2_i32 : i32 to index
    %c0_58 = arith.constant 0 : index
    %c0_59 = arith.constant 0 : index
    %162 = vector.load %arg6[%161, %c0_58, %c0_59] : memref<8x8x512xf32, #tpu.memory_space<vmem>>, vector<1x8x512xf32>
    %163 = vector.shape_cast %162 : vector<1x8x512xf32> to vector<8x512xf32>
    %c0_60 = arith.constant 0 : index
    %c0_61 = arith.constant 0 : index
    %c0_62 = arith.constant 0 : index
    %164 = vector.load %arg3[%c0_60, %c0_61, %c0_62] : memref<2x128x512xf32, #tpu.memory_space<vmem>>, vector<1x128x512xf32>
    %165 = vector.shape_cast %164 : vector<1x128x512xf32> to vector<128x512xf32>
    %cst_63 = arith.constant dense<0.000000e+00> : vector<8x512xf32>
    %166 = tpu.matmul %119, %165, %cst_63 {dimension_numbers = #tpu.dot_dimension_numbers<[1], [0], [0], [1], [0, 0, 1, 1], [], []>} : vector<8x128xf32>, vector<128x512xf32>, vector<8x512xf32> -> vector<8x512xf32>
    %167 = arith.addf %163, %166 : vector<8x512xf32>
    %168 = vector.extract_strided_slice %167 {offsets = [0, 0], sizes = [8, 128], strides = [1, 1]} : vector<8x512xf32> to vector<8x128xf32>
    %169 = arith.negf %168 : vector<8x128xf32>
    %170 = math.exp %169 : vector<8x128xf32>
    %cst_64 = arith.constant 1.000000e+00 : f32
    %171 = vector.broadcast %cst_64 : f32 to vector<8x128xf32>
    %172 = arith.addf %171, %170 : vector<8x128xf32>
    %173 = arith.divf %171, %172 : vector<8x128xf32>
    %174 = vector.extract_strided_slice %167 {offsets = [0, 128], sizes = [8, 128], strides = [1, 1]} : vector<8x512xf32> to vector<8x128xf32>
    %175 = arith.negf %174 : vector<8x128xf32>
    %176 = math.exp %175 : vector<8x128xf32>
    %cst_65 = arith.constant 1.000000e+00 : f32
    %177 = vector.broadcast %cst_65 : f32 to vector<8x128xf32>
    %178 = arith.addf %177, %176 : vector<8x128xf32>
    %179 = arith.divf %177, %178 : vector<8x128xf32>
    %180 = vector.extract_strided_slice %167 {offsets = [0, 256], sizes = [8, 128], strides = [1, 1]} : vector<8x512xf32> to vector<8x128xf32>
    %181 = math.tanh %180 : vector<8x128xf32>
    %182 = vector.extract_strided_slice %167 {offsets = [0, 384], sizes = [8, 128], strides = [1, 1]} : vector<8x512xf32> to vector<8x128xf32>
    %183 = arith.negf %182 : vector<8x128xf32>
    %184 = math.exp %183 : vector<8x128xf32>
    %cst_66 = arith.constant 1.000000e+00 : f32
    %185 = vector.broadcast %cst_66 : f32 to vector<8x128xf32>
    %186 = arith.addf %185, %184 : vector<8x128xf32>
    %187 = arith.divf %185, %186 : vector<8x128xf32>
    %188 = arith.mulf %179, %117 : vector<8x128xf32>
    %189 = arith.mulf %173, %181 : vector<8x128xf32>
    %190 = arith.addf %188, %189 : vector<8x128xf32>
    %191 = math.tanh %190 : vector<8x128xf32>
    %192 = arith.mulf %187, %191 : vector<8x128xf32>
    %193 = arith.index_cast %160 : i32 to index
    %c0_67 = arith.constant 0 : index
    %c0_68 = arith.constant 0 : index
    %194 = vector.load %arg7[%193, %c0_67, %c0_68] : memref<8x8x512xf32, #tpu.memory_space<vmem>>, vector<1x8x512xf32>
    %195 = vector.shape_cast %194 : vector<1x8x512xf32> to vector<8x512xf32>
    %c1_69 = arith.constant 1 : index
    %c0_70 = arith.constant 0 : index
    %c0_71 = arith.constant 0 : index
    %196 = vector.load %arg3[%c1_69, %c0_70, %c0_71] : memref<2x128x512xf32, #tpu.memory_space<vmem>>, vector<1x128x512xf32>
    %197 = vector.shape_cast %196 : vector<1x128x512xf32> to vector<128x512xf32>
    %cst_72 = arith.constant dense<0.000000e+00> : vector<8x512xf32>
    %198 = tpu.matmul %151, %197, %cst_72 {dimension_numbers = #tpu.dot_dimension_numbers<[1], [0], [0], [1], [0, 0, 1, 1], [], []>} : vector<8x128xf32>, vector<128x512xf32>, vector<8x512xf32> -> vector<8x512xf32>
    %199 = arith.addf %195, %198 : vector<8x512xf32>
    %200 = vector.extract_strided_slice %199 {offsets = [0, 0], sizes = [8, 128], strides = [1, 1]} : vector<8x512xf32> to vector<8x128xf32>
    %201 = arith.negf %200 : vector<8x128xf32>
    %202 = math.exp %201 : vector<8x128xf32>
    %cst_73 = arith.constant 1.000000e+00 : f32
    %203 = vector.broadcast %cst_73 : f32 to vector<8x128xf32>
    %204 = arith.addf %203, %202 : vector<8x128xf32>
    %205 = arith.divf %203, %204 : vector<8x128xf32>
    %206 = vector.extract_strided_slice %199 {offsets = [0, 128], sizes = [8, 128], strides = [1, 1]} : vector<8x512xf32> to vector<8x128xf32>
    %207 = arith.negf %206 : vector<8x128xf32>
    %208 = math.exp %207 : vector<8x128xf32>
    %cst_74 = arith.constant 1.000000e+00 : f32
    %209 = vector.broadcast %cst_74 : f32 to vector<8x128xf32>
    %210 = arith.addf %209, %208 : vector<8x128xf32>
    %211 = arith.divf %209, %210 : vector<8x128xf32>
    %212 = vector.extract_strided_slice %199 {offsets = [0, 256], sizes = [8, 128], strides = [1, 1]} : vector<8x512xf32> to vector<8x128xf32>
    %213 = math.tanh %212 : vector<8x128xf32>
    %214 = vector.extract_strided_slice %199 {offsets = [0, 384], sizes = [8, 128], strides = [1, 1]} : vector<8x512xf32> to vector<8x128xf32>
    %215 = arith.negf %214 : vector<8x128xf32>
    %216 = math.exp %215 : vector<8x128xf32>
    %cst_75 = arith.constant 1.000000e+00 : f32
    %217 = vector.broadcast %cst_75 : f32 to vector<8x128xf32>
    %218 = arith.addf %217, %216 : vector<8x128xf32>
    %219 = arith.divf %217, %218 : vector<8x128xf32>
    %220 = arith.mulf %211, %149 : vector<8x128xf32>
    %221 = arith.mulf %205, %213 : vector<8x128xf32>
    %222 = arith.addf %220, %221 : vector<8x128xf32>
    %223 = math.tanh %222 : vector<8x128xf32>
    %224 = arith.mulf %219, %223 : vector<8x128xf32>
    %225 = arith.index_cast %c2_i32 : i32 to index
    %c0_76 = arith.constant 0 : index
    %c0_77 = arith.constant 0 : index
    %226 = vector.load %arg8[%225, %c0_76, %c0_77] : memref<8x8x128xf32, #tpu.memory_space<vmem>>, vector<1x8x128xf32>
    %227 = vector.shape_cast %226 : vector<1x8x128xf32> to vector<8x128xf32>
    %228 = vector.shape_cast %192 : vector<8x128xf32> to vector<1x8x128xf32>
    tpu.vector_store %arg8[%225, %c0_76, %c0_77], %228 {strides = array<i32>} : memref<8x8x128xf32, #tpu.memory_space<vmem>>, vector<1x8x128xf32>,
    %229 = arith.index_cast %160 : i32 to index
    %c0_78 = arith.constant 0 : index
    %c0_79 = arith.constant 0 : index
    %230 = vector.load %arg9[%229, %c0_78, %c0_79] : memref<8x8x128xf32, #tpu.memory_space<vmem>>, vector<1x8x128xf32>
    %231 = vector.shape_cast %230 : vector<1x8x128xf32> to vector<8x128xf32>
    %232 = vector.shape_cast %224 : vector<8x128xf32> to vector<1x8x128xf32>
    tpu.vector_store %arg9[%229, %c0_78, %c0_79], %232 {strides = array<i32>} : memref<8x8x128xf32, #tpu.memory_space<vmem>>, vector<1x8x128xf32>,
    %c3_i32 = arith.constant 3 : i32
    %c7_i32_80 = arith.constant 7 : i32
    %233 = arith.subi %c7_i32_80, %c3_i32 : i32
    %234 = arith.index_cast %c3_i32 : i32 to index
    %c0_81 = arith.constant 0 : index
    %c0_82 = arith.constant 0 : index
    %235 = vector.load %arg6[%234, %c0_81, %c0_82] : memref<8x8x512xf32, #tpu.memory_space<vmem>>, vector<1x8x512xf32>
    %236 = vector.shape_cast %235 : vector<1x8x512xf32> to vector<8x512xf32>
    %c0_83 = arith.constant 0 : index
    %c0_84 = arith.constant 0 : index
    %c0_85 = arith.constant 0 : index
    %237 = vector.load %arg3[%c0_83, %c0_84, %c0_85] : memref<2x128x512xf32, #tpu.memory_space<vmem>>, vector<1x128x512xf32>
    %238 = vector.shape_cast %237 : vector<1x128x512xf32> to vector<128x512xf32>
    %cst_86 = arith.constant dense<0.000000e+00> : vector<8x512xf32>
    %239 = tpu.matmul %192, %238, %cst_86 {dimension_numbers = #tpu.dot_dimension_numbers<[1], [0], [0], [1], [0, 0, 1, 1], [], []>} : vector<8x128xf32>, vector<128x512xf32>, vector<8x512xf32> -> vector<8x512xf32>
    %240 = arith.addf %236, %239 : vector<8x512xf32>
    %241 = vector.extract_strided_slice %240 {offsets = [0, 0], sizes = [8, 128], strides = [1, 1]} : vector<8x512xf32> to vector<8x128xf32>
    %242 = arith.negf %241 : vector<8x128xf32>
    %243 = math.exp %242 : vector<8x128xf32>
    %cst_87 = arith.constant 1.000000e+00 : f32
    %244 = vector.broadcast %cst_87 : f32 to vector<8x128xf32>
    %245 = arith.addf %244, %243 : vector<8x128xf32>
    %246 = arith.divf %244, %245 : vector<8x128xf32>
    %247 = vector.extract_strided_slice %240 {offsets = [0, 128], sizes = [8, 128], strides = [1, 1]} : vector<8x512xf32> to vector<8x128xf32>
    %248 = arith.negf %247 : vector<8x128xf32>
    %249 = math.exp %248 : vector<8x128xf32>
    %cst_88 = arith.constant 1.000000e+00 : f32
    %250 = vector.broadcast %cst_88 : f32 to vector<8x128xf32>
    %251 = arith.addf %250, %249 : vector<8x128xf32>
    %252 = arith.divf %250, %251 : vector<8x128xf32>
    %253 = vector.extract_strided_slice %240 {offsets = [0, 256], sizes = [8, 128], strides = [1, 1]} : vector<8x512xf32> to vector<8x128xf32>
    %254 = math.tanh %253 : vector<8x128xf32>
    %255 = vector.extract_strided_slice %240 {offsets = [0, 384], sizes = [8, 128], strides = [1, 1]} : vector<8x512xf32> to vector<8x128xf32>
    %256 = arith.negf %255 : vector<8x128xf32>
    %257 = math.exp %256 : vector<8x128xf32>
    %cst_89 = arith.constant 1.000000e+00 : f32
    %258 = vector.broadcast %cst_89 : f32 to vector<8x128xf32>
    %259 = arith.addf %258, %257 : vector<8x128xf32>
    %260 = arith.divf %258, %259 : vector<8x128xf32>
    %261 = arith.mulf %252, %190 : vector<8x128xf32>
    %262 = arith.mulf %246, %254 : vector<8x128xf32>
    %263 = arith.addf %261, %262 : vector<8x128xf32>
    %264 = math.tanh %263 : vector<8x128xf32>
    %265 = arith.mulf %260, %264 : vector<8x128xf32>
    %266 = arith.index_cast %233 : i32 to index
    %c0_90 = arith.constant 0 : index
    %c0_91 = arith.constant 0 : index
    %267 = vector.load %arg7[%266, %c0_90, %c0_91] : memref<8x8x512xf32, #tpu.memory_space<vmem>>, vector<1x8x512xf32>
    %268 = vector.shape_cast %267 : vector<1x8x512xf32> to vector<8x512xf32>
    %c1_92 = arith.constant 1 : index
    %c0_93 = arith.constant 0 : index
    %c0_94 = arith.constant 0 : index
    %269 = vector.load %arg3[%c1_92, %c0_93, %c0_94] : memref<2x128x512xf32, #tpu.memory_space<vmem>>, vector<1x128x512xf32>
    %270 = vector.shape_cast %269 : vector<1x128x512xf32> to vector<128x512xf32>
    %cst_95 = arith.constant dense<0.000000e+00> : vector<8x512xf32>
    %271 = tpu.matmul %224, %270, %cst_95 {dimension_numbers = #tpu.dot_dimension_numbers<[1], [0], [0], [1], [0, 0, 1, 1], [], []>} : vector<8x128xf32>, vector<128x512xf32>, vector<8x512xf32> -> vector<8x512xf32>
    %272 = arith.addf %268, %271 : vector<8x512xf32>
    %273 = vector.extract_strided_slice %272 {offsets = [0, 0], sizes = [8, 128], strides = [1, 1]} : vector<8x512xf32> to vector<8x128xf32>
    %274 = arith.negf %273 : vector<8x128xf32>
    %275 = math.exp %274 : vector<8x128xf32>
    %cst_96 = arith.constant 1.000000e+00 : f32
    %276 = vector.broadcast %cst_96 : f32 to vector<8x128xf32>
    %277 = arith.addf %276, %275 : vector<8x128xf32>
    %278 = arith.divf %276, %277 : vector<8x128xf32>
    %279 = vector.extract_strided_slice %272 {offsets = [0, 128], sizes = [8, 128], strides = [1, 1]} : vector<8x512xf32> to vector<8x128xf32>
    %280 = arith.negf %279 : vector<8x128xf32>
    %281 = math.exp %280 : vector<8x128xf32>
    %cst_97 = arith.constant 1.000000e+00 : f32
    %282 = vector.broadcast %cst_97 : f32 to vector<8x128xf32>
    %283 = arith.addf %282, %281 : vector<8x128xf32>
    %284 = arith.divf %282, %283 : vector<8x128xf32>
    %285 = vector.extract_strided_slice %272 {offsets = [0, 256], sizes = [8, 128], strides = [1, 1]} : vector<8x512xf32> to vector<8x128xf32>
    %286 = math.tanh %285 : vector<8x128xf32>
    %287 = vector.extract_strided_slice %272 {offsets = [0, 384], sizes = [8, 128], strides = [1, 1]} : vector<8x512xf32> to vector<8x128xf32>
    %288 = arith.negf %287 : vector<8x128xf32>
    %289 = math.exp %288 : vector<8x128xf32>
    %cst_98 = arith.constant 1.000000e+00 : f32
    %290 = vector.broadcast %cst_98 : f32 to vector<8x128xf32>
    %291 = arith.addf %290, %289 : vector<8x128xf32>
    %292 = arith.divf %290, %291 : vector<8x128xf32>
    %293 = arith.mulf %284, %222 : vector<8x128xf32>
    %294 = arith.mulf %278, %286 : vector<8x128xf32>
    %295 = arith.addf %293, %294 : vector<8x128xf32>
    %296 = math.tanh %295 : vector<8x128xf32>
    %297 = arith.mulf %292, %296 : vector<8x128xf32>
    %298 = arith.index_cast %c3_i32 : i32 to index
    %c0_99 = arith.constant 0 : index
    %c0_100 = arith.constant 0 : index
    %299 = vector.load %arg8[%298, %c0_99, %c0_100] : memref<8x8x128xf32, #tpu.memory_space<vmem>>, vector<1x8x128xf32>
    %300 = vector.shape_cast %299 : vector<1x8x128xf32> to vector<8x128xf32>
    %301 = vector.shape_cast %265 : vector<8x128xf32> to vector<1x8x128xf32>
    tpu.vector_store %arg8[%298, %c0_99, %c0_100], %301 {strides = array<i32>} : memref<8x8x128xf32, #tpu.memory_space<vmem>>, vector<1x8x128xf32>,
    %302 = arith.index_cast %233 : i32 to index
    %c0_101 = arith.constant 0 : index
    %c0_102 = arith.constant 0 : index
    %303 = vector.load %arg9[%302, %c0_101, %c0_102] : memref<8x8x128xf32, #tpu.memory_space<vmem>>, vector<1x8x128xf32>
    %304 = vector.shape_cast %303 : vector<1x8x128xf32> to vector<8x128xf32>
    %305 = vector.shape_cast %297 : vector<8x128xf32> to vector<1x8x128xf32>
    tpu.vector_store %arg9[%302, %c0_101, %c0_102], %305 {strides = array<i32>} : memref<8x8x128xf32, #tpu.memory_space<vmem>>, vector<1x8x128xf32>,
    %c4_i32 = arith.constant 4 : i32
    %c7_i32_103 = arith.constant 7 : i32
    %306 = arith.subi %c7_i32_103, %c4_i32 : i32
    %307 = arith.index_cast %c4_i32 : i32 to index
    %c0_104 = arith.constant 0 : index
    %c0_105 = arith.constant 0 : index
    %308 = vector.load %arg6[%307, %c0_104, %c0_105] : memref<8x8x512xf32, #tpu.memory_space<vmem>>, vector<1x8x512xf32>
    %309 = vector.shape_cast %308 : vector<1x8x512xf32> to vector<8x512xf32>
    %c0_106 = arith.constant 0 : index
    %c0_107 = arith.constant 0 : index
    %c0_108 = arith.constant 0 : index
    %310 = vector.load %arg3[%c0_106, %c0_107, %c0_108] : memref<2x128x512xf32, #tpu.memory_space<vmem>>, vector<1x128x512xf32>
    %311 = vector.shape_cast %310 : vector<1x128x512xf32> to vector<128x512xf32>
    %cst_109 = arith.constant dense<0.000000e+00> : vector<8x512xf32>
    %312 = tpu.matmul %265, %311, %cst_109 {dimension_numbers = #tpu.dot_dimension_numbers<[1], [0], [0], [1], [0, 0, 1, 1], [], []>} : vector<8x128xf32>, vector<128x512xf32>, vector<8x512xf32> -> vector<8x512xf32>
    %313 = arith.addf %309, %312 : vector<8x512xf32>
    %314 = vector.extract_strided_slice %313 {offsets = [0, 0], sizes = [8, 128], strides = [1, 1]} : vector<8x512xf32> to vector<8x128xf32>
    %315 = arith.negf %314 : vector<8x128xf32>
    %316 = math.exp %315 : vector<8x128xf32>
    %cst_110 = arith.constant 1.000000e+00 : f32
    %317 = vector.broadcast %cst_110 : f32 to vector<8x128xf32>
    %318 = arith.addf %317, %316 : vector<8x128xf32>
    %319 = arith.divf %317, %318 : vector<8x128xf32>
    %320 = vector.extract_strided_slice %313 {offsets = [0, 128], sizes = [8, 128], strides = [1, 1]} : vector<8x512xf32> to vector<8x128xf32>
    %321 = arith.negf %320 : vector<8x128xf32>
    %322 = math.exp %321 : vector<8x128xf32>
    %cst_111 = arith.constant 1.000000e+00 : f32
    %323 = vector.broadcast %cst_111 : f32 to vector<8x128xf32>
    %324 = arith.addf %323, %322 : vector<8x128xf32>
    %325 = arith.divf %323, %324 : vector<8x128xf32>
    %326 = vector.extract_strided_slice %313 {offsets = [0, 256], sizes = [8, 128], strides = [1, 1]} : vector<8x512xf32> to vector<8x128xf32>
    %327 = math.tanh %326 : vector<8x128xf32>
    %328 = vector.extract_strided_slice %313 {offsets = [0, 384], sizes = [8, 128], strides = [1, 1]} : vector<8x512xf32> to vector<8x128xf32>
    %329 = arith.negf %328 : vector<8x128xf32>
    %330 = math.exp %329 : vector<8x128xf32>
    %cst_112 = arith.constant 1.000000e+00 : f32
    %331 = vector.broadcast %cst_112 : f32 to vector<8x128xf32>
    %332 = arith.addf %331, %330 : vector<8x128xf32>
    %333 = arith.divf %331, %332 : vector<8x128xf32>
    %334 = arith.mulf %325, %263 : vector<8x128xf32>
    %335 = arith.mulf %319, %327 : vector<8x128xf32>
    %336 = arith.addf %334, %335 : vector<8x128xf32>
    %337 = math.tanh %336 : vector<8x128xf32>
    %338 = arith.mulf %333, %337 : vector<8x128xf32>
    %339 = arith.index_cast %306 : i32 to index
    %c0_113 = arith.constant 0 : index
    %c0_114 = arith.constant 0 : index
    %340 = vector.load %arg7[%339, %c0_113, %c0_114] : memref<8x8x512xf32, #tpu.memory_space<vmem>>, vector<1x8x512xf32>
    %341 = vector.shape_cast %340 : vector<1x8x512xf32> to vector<8x512xf32>
    %c1_115 = arith.constant 1 : index
    %c0_116 = arith.constant 0 : index
    %c0_117 = arith.constant 0 : index
    %342 = vector.load %arg3[%c1_115, %c0_116, %c0_117] : memref<2x128x512xf32, #tpu.memory_space<vmem>>, vector<1x128x512xf32>
    %343 = vector.shape_cast %342 : vector<1x128x512xf32> to vector<128x512xf32>
    %cst_118 = arith.constant dense<0.000000e+00> : vector<8x512xf32>
    %344 = tpu.matmul %297, %343, %cst_118 {dimension_numbers = #tpu.dot_dimension_numbers<[1], [0], [0], [1], [0, 0, 1, 1], [], []>} : vector<8x128xf32>, vector<128x512xf32>, vector<8x512xf32> -> vector<8x512xf32>
    %345 = arith.addf %341, %344 : vector<8x512xf32>
    %346 = vector.extract_strided_slice %345 {offsets = [0, 0], sizes = [8, 128], strides = [1, 1]} : vector<8x512xf32> to vector<8x128xf32>
    %347 = arith.negf %346 : vector<8x128xf32>
    %348 = math.exp %347 : vector<8x128xf32>
    %cst_119 = arith.constant 1.000000e+00 : f32
    %349 = vector.broadcast %cst_119 : f32 to vector<8x128xf32>
    %350 = arith.addf %349, %348 : vector<8x128xf32>
    %351 = arith.divf %349, %350 : vector<8x128xf32>
    %352 = vector.extract_strided_slice %345 {offsets = [0, 128], sizes = [8, 128], strides = [1, 1]} : vector<8x512xf32> to vector<8x128xf32>
    %353 = arith.negf %352 : vector<8x128xf32>
    %354 = math.exp %353 : vector<8x128xf32>
    %cst_120 = arith.constant 1.000000e+00 : f32
    %355 = vector.broadcast %cst_120 : f32 to vector<8x128xf32>
    %356 = arith.addf %355, %354 : vector<8x128xf32>
    %357 = arith.divf %355, %356 : vector<8x128xf32>
    %358 = vector.extract_strided_slice %345 {offsets = [0, 256], sizes = [8, 128], strides = [1, 1]} : vector<8x512xf32> to vector<8x128xf32>
    %359 = math.tanh %358 : vector<8x128xf32>
    %360 = vector.extract_strided_slice %345 {offsets = [0, 384], sizes = [8, 128], strides = [1, 1]} : vector<8x512xf32> to vector<8x128xf32>
    %361 = arith.negf %360 : vector<8x128xf32>
    %362 = math.exp %361 : vector<8x128xf32>
    %cst_121 = arith.constant 1.000000e+00 : f32
    %363 = vector.broadcast %cst_121 : f32 to vector<8x128xf32>
    %364 = arith.addf %363, %362 : vector<8x128xf32>
    %365 = arith.divf %363, %364 : vector<8x128xf32>
    %366 = arith.mulf %357, %295 : vector<8x128xf32>
    %367 = arith.mulf %351, %359 : vector<8x128xf32>
    %368 = arith.addf %366, %367 : vector<8x128xf32>
    %369 = math.tanh %368 : vector<8x128xf32>
    %370 = arith.mulf %365, %369 : vector<8x128xf32>
    %371 = arith.index_cast %c4_i32 : i32 to index
    %c0_122 = arith.constant 0 : index
    %c0_123 = arith.constant 0 : index
    %372 = vector.load %arg8[%371, %c0_122, %c0_123] : memref<8x8x128xf32, #tpu.memory_space<vmem>>, vector<1x8x128xf32>
    %373 = vector.shape_cast %372 : vector<1x8x128xf32> to vector<8x128xf32>
    %374 = vector.shape_cast %338 : vector<8x128xf32> to vector<1x8x128xf32>
    tpu.vector_store %arg8[%371, %c0_122, %c0_123], %374 {strides = array<i32>} : memref<8x8x128xf32, #tpu.memory_space<vmem>>, vector<1x8x128xf32>,
    %375 = arith.index_cast %306 : i32 to index
    %c0_124 = arith.constant 0 : index
    %c0_125 = arith.constant 0 : index
    %376 = vector.load %arg9[%375, %c0_124, %c0_125] : memref<8x8x128xf32, #tpu.memory_space<vmem>>, vector<1x8x128xf32>
    %377 = vector.shape_cast %376 : vector<1x8x128xf32> to vector<8x128xf32>
    %378 = vector.shape_cast %370 : vector<8x128xf32> to vector<1x8x128xf32>
    tpu.vector_store %arg9[%375, %c0_124, %c0_125], %378 {strides = array<i32>} : memref<8x8x128xf32, #tpu.memory_space<vmem>>, vector<1x8x128xf32>,
    %c5_i32 = arith.constant 5 : i32
    %c7_i32_126 = arith.constant 7 : i32
    %379 = arith.subi %c7_i32_126, %c5_i32 : i32
    %380 = arith.index_cast %c5_i32 : i32 to index
    %c0_127 = arith.constant 0 : index
    %c0_128 = arith.constant 0 : index
    %381 = vector.load %arg6[%380, %c0_127, %c0_128] : memref<8x8x512xf32, #tpu.memory_space<vmem>>, vector<1x8x512xf32>
    %382 = vector.shape_cast %381 : vector<1x8x512xf32> to vector<8x512xf32>
    %c0_129 = arith.constant 0 : index
    %c0_130 = arith.constant 0 : index
    %c0_131 = arith.constant 0 : index
    %383 = vector.load %arg3[%c0_129, %c0_130, %c0_131] : memref<2x128x512xf32, #tpu.memory_space<vmem>>, vector<1x128x512xf32>
    %384 = vector.shape_cast %383 : vector<1x128x512xf32> to vector<128x512xf32>
    %cst_132 = arith.constant dense<0.000000e+00> : vector<8x512xf32>
    %385 = tpu.matmul %338, %384, %cst_132 {dimension_numbers = #tpu.dot_dimension_numbers<[1], [0], [0], [1], [0, 0, 1, 1], [], []>} : vector<8x128xf32>, vector<128x512xf32>, vector<8x512xf32> -> vector<8x512xf32>
    %386 = arith.addf %382, %385 : vector<8x512xf32>
    %387 = vector.extract_strided_slice %386 {offsets = [0, 0], sizes = [8, 128], strides = [1, 1]} : vector<8x512xf32> to vector<8x128xf32>
    %388 = arith.negf %387 : vector<8x128xf32>
    %389 = math.exp %388 : vector<8x128xf32>
    %cst_133 = arith.constant 1.000000e+00 : f32
    %390 = vector.broadcast %cst_133 : f32 to vector<8x128xf32>
    %391 = arith.addf %390, %389 : vector<8x128xf32>
    %392 = arith.divf %390, %391 : vector<8x128xf32>
    %393 = vector.extract_strided_slice %386 {offsets = [0, 128], sizes = [8, 128], strides = [1, 1]} : vector<8x512xf32> to vector<8x128xf32>
    %394 = arith.negf %393 : vector<8x128xf32>
    %395 = math.exp %394 : vector<8x128xf32>
    %cst_134 = arith.constant 1.000000e+00 : f32
    %396 = vector.broadcast %cst_134 : f32 to vector<8x128xf32>
    %397 = arith.addf %396, %395 : vector<8x128xf32>
    %398 = arith.divf %396, %397 : vector<8x128xf32>
    %399 = vector.extract_strided_slice %386 {offsets = [0, 256], sizes = [8, 128], strides = [1, 1]} : vector<8x512xf32> to vector<8x128xf32>
    %400 = math.tanh %399 : vector<8x128xf32>
    %401 = vector.extract_strided_slice %386 {offsets = [0, 384], sizes = [8, 128], strides = [1, 1]} : vector<8x512xf32> to vector<8x128xf32>
    %402 = arith.negf %401 : vector<8x128xf32>
    %403 = math.exp %402 : vector<8x128xf32>
    %cst_135 = arith.constant 1.000000e+00 : f32
    %404 = vector.broadcast %cst_135 : f32 to vector<8x128xf32>
    %405 = arith.addf %404, %403 : vector<8x128xf32>
    %406 = arith.divf %404, %405 : vector<8x128xf32>
    %407 = arith.mulf %398, %336 : vector<8x128xf32>
    %408 = arith.mulf %392, %400 : vector<8x128xf32>
    %409 = arith.addf %407, %408 : vector<8x128xf32>
    %410 = math.tanh %409 : vector<8x128xf32>
    %411 = arith.mulf %406, %410 : vector<8x128xf32>
    %412 = arith.index_cast %379 : i32 to index
    %c0_136 = arith.constant 0 : index
    %c0_137 = arith.constant 0 : index
    %413 = vector.load %arg7[%412, %c0_136, %c0_137] : memref<8x8x512xf32, #tpu.memory_space<vmem>>, vector<1x8x512xf32>
    %414 = vector.shape_cast %413 : vector<1x8x512xf32> to vector<8x512xf32>
    %c1_138 = arith.constant 1 : index
    %c0_139 = arith.constant 0 : index
    %c0_140 = arith.constant 0 : index
    %415 = vector.load %arg3[%c1_138, %c0_139, %c0_140] : memref<2x128x512xf32, #tpu.memory_space<vmem>>, vector<1x128x512xf32>
    %416 = vector.shape_cast %415 : vector<1x128x512xf32> to vector<128x512xf32>
    %cst_141 = arith.constant dense<0.000000e+00> : vector<8x512xf32>
    %417 = tpu.matmul %370, %416, %cst_141 {dimension_numbers = #tpu.dot_dimension_numbers<[1], [0], [0], [1], [0, 0, 1, 1], [], []>} : vector<8x128xf32>, vector<128x512xf32>, vector<8x512xf32> -> vector<8x512xf32>
    %418 = arith.addf %414, %417 : vector<8x512xf32>
    %419 = vector.extract_strided_slice %418 {offsets = [0, 0], sizes = [8, 128], strides = [1, 1]} : vector<8x512xf32> to vector<8x128xf32>
    %420 = arith.negf %419 : vector<8x128xf32>
    %421 = math.exp %420 : vector<8x128xf32>
    %cst_142 = arith.constant 1.000000e+00 : f32
    %422 = vector.broadcast %cst_142 : f32 to vector<8x128xf32>
    %423 = arith.addf %422, %421 : vector<8x128xf32>
    %424 = arith.divf %422, %423 : vector<8x128xf32>
    %425 = vector.extract_strided_slice %418 {offsets = [0, 128], sizes = [8, 128], strides = [1, 1]} : vector<8x512xf32> to vector<8x128xf32>
    %426 = arith.negf %425 : vector<8x128xf32>
    %427 = math.exp %426 : vector<8x128xf32>
    %cst_143 = arith.constant 1.000000e+00 : f32
    %428 = vector.broadcast %cst_143 : f32 to vector<8x128xf32>
    %429 = arith.addf %428, %427 : vector<8x128xf32>
    %430 = arith.divf %428, %429 : vector<8x128xf32>
    %431 = vector.extract_strided_slice %418 {offsets = [0, 256], sizes = [8, 128], strides = [1, 1]} : vector<8x512xf32> to vector<8x128xf32>
    %432 = math.tanh %431 : vector<8x128xf32>
    %433 = vector.extract_strided_slice %418 {offsets = [0, 384], sizes = [8, 128], strides = [1, 1]} : vector<8x512xf32> to vector<8x128xf32>
    %434 = arith.negf %433 : vector<8x128xf32>
    %435 = math.exp %434 : vector<8x128xf32>
    %cst_144 = arith.constant 1.000000e+00 : f32
    %436 = vector.broadcast %cst_144 : f32 to vector<8x128xf32>
    %437 = arith.addf %436, %435 : vector<8x128xf32>
    %438 = arith.divf %436, %437 : vector<8x128xf32>
    %439 = arith.mulf %430, %368 : vector<8x128xf32>
    %440 = arith.mulf %424, %432 : vector<8x128xf32>
    %441 = arith.addf %439, %440 : vector<8x128xf32>
    %442 = math.tanh %441 : vector<8x128xf32>
    %443 = arith.mulf %438, %442 : vector<8x128xf32>
    %444 = arith.index_cast %c5_i32 : i32 to index
    %c0_145 = arith.constant 0 : index
    %c0_146 = arith.constant 0 : index
    %445 = vector.load %arg8[%444, %c0_145, %c0_146] : memref<8x8x128xf32, #tpu.memory_space<vmem>>, vector<1x8x128xf32>
    %446 = vector.shape_cast %445 : vector<1x8x128xf32> to vector<8x128xf32>
    %447 = vector.shape_cast %411 : vector<8x128xf32> to vector<1x8x128xf32>
    tpu.vector_store %arg8[%444, %c0_145, %c0_146], %447 {strides = array<i32>} : memref<8x8x128xf32, #tpu.memory_space<vmem>>, vector<1x8x128xf32>,
    %448 = arith.index_cast %379 : i32 to index
    %c0_147 = arith.constant 0 : index
    %c0_148 = arith.constant 0 : index
    %449 = vector.load %arg9[%448, %c0_147, %c0_148] : memref<8x8x128xf32, #tpu.memory_space<vmem>>, vector<1x8x128xf32>
    %450 = vector.shape_cast %449 : vector<1x8x128xf32> to vector<8x128xf32>
    %451 = vector.shape_cast %443 : vector<8x128xf32> to vector<1x8x128xf32>
    tpu.vector_store %arg9[%448, %c0_147, %c0_148], %451 {strides = array<i32>} : memref<8x8x128xf32, #tpu.memory_space<vmem>>, vector<1x8x128xf32>,
    %c6_i32 = arith.constant 6 : i32
    %c7_i32_149 = arith.constant 7 : i32
    %452 = arith.subi %c7_i32_149, %c6_i32 : i32
    %453 = arith.index_cast %c6_i32 : i32 to index
    %c0_150 = arith.constant 0 : index
    %c0_151 = arith.constant 0 : index
    %454 = vector.load %arg6[%453, %c0_150, %c0_151] : memref<8x8x512xf32, #tpu.memory_space<vmem>>, vector<1x8x512xf32>
    %455 = vector.shape_cast %454 : vector<1x8x512xf32> to vector<8x512xf32>
    %c0_152 = arith.constant 0 : index
    %c0_153 = arith.constant 0 : index
    %c0_154 = arith.constant 0 : index
    %456 = vector.load %arg3[%c0_152, %c0_153, %c0_154] : memref<2x128x512xf32, #tpu.memory_space<vmem>>, vector<1x128x512xf32>
    %457 = vector.shape_cast %456 : vector<1x128x512xf32> to vector<128x512xf32>
    %cst_155 = arith.constant dense<0.000000e+00> : vector<8x512xf32>
    %458 = tpu.matmul %411, %457, %cst_155 {dimension_numbers = #tpu.dot_dimension_numbers<[1], [0], [0], [1], [0, 0, 1, 1], [], []>} : vector<8x128xf32>, vector<128x512xf32>, vector<8x512xf32> -> vector<8x512xf32>
    %459 = arith.addf %455, %458 : vector<8x512xf32>
    %460 = vector.extract_strided_slice %459 {offsets = [0, 0], sizes = [8, 128], strides = [1, 1]} : vector<8x512xf32> to vector<8x128xf32>
    %461 = arith.negf %460 : vector<8x128xf32>
    %462 = math.exp %461 : vector<8x128xf32>
    %cst_156 = arith.constant 1.000000e+00 : f32
    %463 = vector.broadcast %cst_156 : f32 to vector<8x128xf32>
    %464 = arith.addf %463, %462 : vector<8x128xf32>
    %465 = arith.divf %463, %464 : vector<8x128xf32>
    %466 = vector.extract_strided_slice %459 {offsets = [0, 128], sizes = [8, 128], strides = [1, 1]} : vector<8x512xf32> to vector<8x128xf32>
    %467 = arith.negf %466 : vector<8x128xf32>
    %468 = math.exp %467 : vector<8x128xf32>
    %cst_157 = arith.constant 1.000000e+00 : f32
    %469 = vector.broadcast %cst_157 : f32 to vector<8x128xf32>
    %470 = arith.addf %469, %468 : vector<8x128xf32>
    %471 = arith.divf %469, %470 : vector<8x128xf32>
    %472 = vector.extract_strided_slice %459 {offsets = [0, 256], sizes = [8, 128], strides = [1, 1]} : vector<8x512xf32> to vector<8x128xf32>
    %473 = math.tanh %472 : vector<8x128xf32>
    %474 = vector.extract_strided_slice %459 {offsets = [0, 384], sizes = [8, 128], strides = [1, 1]} : vector<8x512xf32> to vector<8x128xf32>
    %475 = arith.negf %474 : vector<8x128xf32>
    %476 = math.exp %475 : vector<8x128xf32>
    %cst_158 = arith.constant 1.000000e+00 : f32
    %477 = vector.broadcast %cst_158 : f32 to vector<8x128xf32>
    %478 = arith.addf %477, %476 : vector<8x128xf32>
    %479 = arith.divf %477, %478 : vector<8x128xf32>
    %480 = arith.mulf %471, %409 : vector<8x128xf32>
    %481 = arith.mulf %465, %473 : vector<8x128xf32>
    %482 = arith.addf %480, %481 : vector<8x128xf32>
    %483 = math.tanh %482 : vector<8x128xf32>
    %484 = arith.mulf %479, %483 : vector<8x128xf32>
    %485 = arith.index_cast %452 : i32 to index
    %c0_159 = arith.constant 0 : index
    %c0_160 = arith.constant 0 : index
    %486 = vector.load %arg7[%485, %c0_159, %c0_160] : memref<8x8x512xf32, #tpu.memory_space<vmem>>, vector<1x8x512xf32>
    %487 = vector.shape_cast %486 : vector<1x8x512xf32> to vector<8x512xf32>
    %c1_161 = arith.constant 1 : index
    %c0_162 = arith.constant 0 : index
    %c0_163 = arith.constant 0 : index
    %488 = vector.load %arg3[%c1_161, %c0_162, %c0_163] : memref<2x128x512xf32, #tpu.memory_space<vmem>>, vector<1x128x512xf32>
    %489 = vector.shape_cast %488 : vector<1x128x512xf32> to vector<128x512xf32>
    %cst_164 = arith.constant dense<0.000000e+00> : vector<8x512xf32>
    %490 = tpu.matmul %443, %489, %cst_164 {dimension_numbers = #tpu.dot_dimension_numbers<[1], [0], [0], [1], [0, 0, 1, 1], [], []>} : vector<8x128xf32>, vector<128x512xf32>, vector<8x512xf32> -> vector<8x512xf32>
    %491 = arith.addf %487, %490 : vector<8x512xf32>
    %492 = vector.extract_strided_slice %491 {offsets = [0, 0], sizes = [8, 128], strides = [1, 1]} : vector<8x512xf32> to vector<8x128xf32>
    %493 = arith.negf %492 : vector<8x128xf32>
    %494 = math.exp %493 : vector<8x128xf32>
    %cst_165 = arith.constant 1.000000e+00 : f32
    %495 = vector.broadcast %cst_165 : f32 to vector<8x128xf32>
    %496 = arith.addf %495, %494 : vector<8x128xf32>
    %497 = arith.divf %495, %496 : vector<8x128xf32>
    %498 = vector.extract_strided_slice %491 {offsets = [0, 128], sizes = [8, 128], strides = [1, 1]} : vector<8x512xf32> to vector<8x128xf32>
    %499 = arith.negf %498 : vector<8x128xf32>
    %500 = math.exp %499 : vector<8x128xf32>
    %cst_166 = arith.constant 1.000000e+00 : f32
    %501 = vector.broadcast %cst_166 : f32 to vector<8x128xf32>
    %502 = arith.addf %501, %500 : vector<8x128xf32>
    %503 = arith.divf %501, %502 : vector<8x128xf32>
    %504 = vector.extract_strided_slice %491 {offsets = [0, 256], sizes = [8, 128], strides = [1, 1]} : vector<8x512xf32> to vector<8x128xf32>
    %505 = math.tanh %504 : vector<8x128xf32>
    %506 = vector.extract_strided_slice %491 {offsets = [0, 384], sizes = [8, 128], strides = [1, 1]} : vector<8x512xf32> to vector<8x128xf32>
    %507 = arith.negf %506 : vector<8x128xf32>
    %508 = math.exp %507 : vector<8x128xf32>
    %cst_167 = arith.constant 1.000000e+00 : f32
    %509 = vector.broadcast %cst_167 : f32 to vector<8x128xf32>
    %510 = arith.addf %509, %508 : vector<8x128xf32>
    %511 = arith.divf %509, %510 : vector<8x128xf32>
    %512 = arith.mulf %503, %441 : vector<8x128xf32>
    %513 = arith.mulf %497, %505 : vector<8x128xf32>
    %514 = arith.addf %512, %513 : vector<8x128xf32>
    %515 = math.tanh %514 : vector<8x128xf32>
    %516 = arith.mulf %511, %515 : vector<8x128xf32>
    %517 = arith.index_cast %c6_i32 : i32 to index
    %c0_168 = arith.constant 0 : index
    %c0_169 = arith.constant 0 : index
    %518 = vector.load %arg8[%517, %c0_168, %c0_169] : memref<8x8x128xf32, #tpu.memory_space<vmem>>, vector<1x8x128xf32>
    %519 = vector.shape_cast %518 : vector<1x8x128xf32> to vector<8x128xf32>
    %520 = vector.shape_cast %484 : vector<8x128xf32> to vector<1x8x128xf32>
    tpu.vector_store %arg8[%517, %c0_168, %c0_169], %520 {strides = array<i32>} : memref<8x8x128xf32, #tpu.memory_space<vmem>>, vector<1x8x128xf32>,
    %521 = arith.index_cast %452 : i32 to index
    %c0_170 = arith.constant 0 : index
    %c0_171 = arith.constant 0 : index
    %522 = vector.load %arg9[%521, %c0_170, %c0_171] : memref<8x8x128xf32, #tpu.memory_space<vmem>>, vector<1x8x128xf32>
    %523 = vector.shape_cast %522 : vector<1x8x128xf32> to vector<8x128xf32>
    %524 = vector.shape_cast %516 : vector<8x128xf32> to vector<1x8x128xf32>
    tpu.vector_store %arg9[%521, %c0_170, %c0_171], %524 {strides = array<i32>} : memref<8x8x128xf32, #tpu.memory_space<vmem>>, vector<1x8x128xf32>,
    %c7_i32_172 = arith.constant 7 : i32
    %c7_i32_173 = arith.constant 7 : i32
    %525 = arith.subi %c7_i32_173, %c7_i32_172 : i32
    %526 = arith.index_cast %c7_i32_172 : i32 to index
    %c0_174 = arith.constant 0 : index
    %c0_175 = arith.constant 0 : index
    %527 = vector.load %arg6[%526, %c0_174, %c0_175] : memref<8x8x512xf32, #tpu.memory_space<vmem>>, vector<1x8x512xf32>
    %528 = vector.shape_cast %527 : vector<1x8x512xf32> to vector<8x512xf32>
    %c0_176 = arith.constant 0 : index
    %c0_177 = arith.constant 0 : index
    %c0_178 = arith.constant 0 : index
    %529 = vector.load %arg3[%c0_176, %c0_177, %c0_178] : memref<2x128x512xf32, #tpu.memory_space<vmem>>, vector<1x128x512xf32>
    %530 = vector.shape_cast %529 : vector<1x128x512xf32> to vector<128x512xf32>
    %cst_179 = arith.constant dense<0.000000e+00> : vector<8x512xf32>
    %531 = tpu.matmul %484, %530, %cst_179 {dimension_numbers = #tpu.dot_dimension_numbers<[1], [0], [0], [1], [0, 0, 1, 1], [], []>} : vector<8x128xf32>, vector<128x512xf32>, vector<8x512xf32> -> vector<8x512xf32>
    %532 = arith.addf %528, %531 : vector<8x512xf32>
    %533 = vector.extract_strided_slice %532 {offsets = [0, 0], sizes = [8, 128], strides = [1, 1]} : vector<8x512xf32> to vector<8x128xf32>
    %534 = arith.negf %533 : vector<8x128xf32>
    %535 = math.exp %534 : vector<8x128xf32>
    %cst_180 = arith.constant 1.000000e+00 : f32
    %536 = vector.broadcast %cst_180 : f32 to vector<8x128xf32>
    %537 = arith.addf %536, %535 : vector<8x128xf32>
    %538 = arith.divf %536, %537 : vector<8x128xf32>
    %539 = vector.extract_strided_slice %532 {offsets = [0, 128], sizes = [8, 128], strides = [1, 1]} : vector<8x512xf32> to vector<8x128xf32>
    %540 = arith.negf %539 : vector<8x128xf32>
    %541 = math.exp %540 : vector<8x128xf32>
    %cst_181 = arith.constant 1.000000e+00 : f32
    %542 = vector.broadcast %cst_181 : f32 to vector<8x128xf32>
    %543 = arith.addf %542, %541 : vector<8x128xf32>
    %544 = arith.divf %542, %543 : vector<8x128xf32>
    %545 = vector.extract_strided_slice %532 {offsets = [0, 256], sizes = [8, 128], strides = [1, 1]} : vector<8x512xf32> to vector<8x128xf32>
    %546 = math.tanh %545 : vector<8x128xf32>
    %547 = vector.extract_strided_slice %532 {offsets = [0, 384], sizes = [8, 128], strides = [1, 1]} : vector<8x512xf32> to vector<8x128xf32>
    %548 = arith.negf %547 : vector<8x128xf32>
    %549 = math.exp %548 : vector<8x128xf32>
    %cst_182 = arith.constant 1.000000e+00 : f32
    %550 = vector.broadcast %cst_182 : f32 to vector<8x128xf32>
    %551 = arith.addf %550, %549 : vector<8x128xf32>
    %552 = arith.divf %550, %551 : vector<8x128xf32>
    %553 = arith.mulf %544, %482 : vector<8x128xf32>
    %554 = arith.mulf %538, %546 : vector<8x128xf32>
    %555 = arith.addf %553, %554 : vector<8x128xf32>
    %556 = math.tanh %555 : vector<8x128xf32>
    %557 = arith.mulf %552, %556 : vector<8x128xf32>
    %558 = arith.index_cast %525 : i32 to index
    %c0_183 = arith.constant 0 : index
    %c0_184 = arith.constant 0 : index
    %559 = vector.load %arg7[%558, %c0_183, %c0_184] : memref<8x8x512xf32, #tpu.memory_space<vmem>>, vector<1x8x512xf32>
    %560 = vector.shape_cast %559 : vector<1x8x512xf32> to vector<8x512xf32>
    %c1_185 = arith.constant 1 : index
    %c0_186 = arith.constant 0 : index
    %c0_187 = arith.constant 0 : index
    %561 = vector.load %arg3[%c1_185, %c0_186, %c0_187] : memref<2x128x512xf32, #tpu.memory_space<vmem>>, vector<1x128x512xf32>
    %562 = vector.shape_cast %561 : vector<1x128x512xf32> to vector<128x512xf32>
    %cst_188 = arith.constant dense<0.000000e+00> : vector<8x512xf32>
    %563 = tpu.matmul %516, %562, %cst_188 {dimension_numbers = #tpu.dot_dimension_numbers<[1], [0], [0], [1], [0, 0, 1, 1], [], []>} : vector<8x128xf32>, vector<128x512xf32>, vector<8x512xf32> -> vector<8x512xf32>
    %564 = arith.addf %560, %563 : vector<8x512xf32>
    %565 = vector.extract_strided_slice %564 {offsets = [0, 0], sizes = [8, 128], strides = [1, 1]} : vector<8x512xf32> to vector<8x128xf32>
    %566 = arith.negf %565 : vector<8x128xf32>
    %567 = math.exp %566 : vector<8x128xf32>
    %cst_189 = arith.constant 1.000000e+00 : f32
    %568 = vector.broadcast %cst_189 : f32 to vector<8x128xf32>
    %569 = arith.addf %568, %567 : vector<8x128xf32>
    %570 = arith.divf %568, %569 : vector<8x128xf32>
    %571 = vector.extract_strided_slice %564 {offsets = [0, 128], sizes = [8, 128], strides = [1, 1]} : vector<8x512xf32> to vector<8x128xf32>
    %572 = arith.negf %571 : vector<8x128xf32>
    %573 = math.exp %572 : vector<8x128xf32>
    %cst_190 = arith.constant 1.000000e+00 : f32
    %574 = vector.broadcast %cst_190 : f32 to vector<8x128xf32>
    %575 = arith.addf %574, %573 : vector<8x128xf32>
    %576 = arith.divf %574, %575 : vector<8x128xf32>
    %577 = vector.extract_strided_slice %564 {offsets = [0, 256], sizes = [8, 128], strides = [1, 1]} : vector<8x512xf32> to vector<8x128xf32>
    %578 = math.tanh %577 : vector<8x128xf32>
    %579 = vector.extract_strided_slice %564 {offsets = [0, 384], sizes = [8, 128], strides = [1, 1]} : vector<8x512xf32> to vector<8x128xf32>
    %580 = arith.negf %579 : vector<8x128xf32>
    %581 = math.exp %580 : vector<8x128xf32>
    %cst_191 = arith.constant 1.000000e+00 : f32
    %582 = vector.broadcast %cst_191 : f32 to vector<8x128xf32>
    %583 = arith.addf %582, %581 : vector<8x128xf32>
    %584 = arith.divf %582, %583 : vector<8x128xf32>
    %585 = arith.mulf %576, %514 : vector<8x128xf32>
    %586 = arith.mulf %570, %578 : vector<8x128xf32>
    %587 = arith.addf %585, %586 : vector<8x128xf32>
    %588 = math.tanh %587 : vector<8x128xf32>
    %589 = arith.mulf %584, %588 : vector<8x128xf32>
    %590 = arith.index_cast %c7_i32_172 : i32 to index
    %c0_192 = arith.constant 0 : index
    %c0_193 = arith.constant 0 : index
    %591 = vector.load %arg8[%590, %c0_192, %c0_193] : memref<8x8x128xf32, #tpu.memory_space<vmem>>, vector<1x8x128xf32>
    %592 = vector.shape_cast %591 : vector<1x8x128xf32> to vector<8x128xf32>
    %593 = vector.shape_cast %557 : vector<8x128xf32> to vector<1x8x128xf32>
    tpu.vector_store %arg8[%590, %c0_192, %c0_193], %593 {strides = array<i32>} : memref<8x8x128xf32, #tpu.memory_space<vmem>>, vector<1x8x128xf32>,
    %594 = arith.index_cast %525 : i32 to index
    %c0_194 = arith.constant 0 : index
    %c0_195 = arith.constant 0 : index
    %595 = vector.load %arg9[%594, %c0_194, %c0_195] : memref<8x8x128xf32, #tpu.memory_space<vmem>>, vector<1x8x128xf32>
    %596 = vector.shape_cast %595 : vector<1x8x128xf32> to vector<8x128xf32>
    %597 = vector.shape_cast %589 : vector<8x128xf32> to vector<1x8x128xf32>
    tpu.vector_store %arg9[%594, %c0_194, %c0_195], %597 {strides = array<i32>} : memref<8x8x128xf32, #tpu.memory_space<vmem>>, vector<1x8x128xf32>,
    %c8_i32 = arith.constant 8 : i32
    %c0_196 = arith.constant 0 : index
    %c0_197 = arith.constant 0 : index
    %c0_198 = arith.constant 0 : index
    %598 = vector.load %arg8[%c0_196, %c0_197, %c0_198] : memref<8x8x128xf32, #tpu.memory_space<vmem>>, vector<8x8x128xf32>
    %c0_199 = arith.constant 0 : index
    %c0_200 = arith.constant 0 : index
    %c0_201 = arith.constant 0 : index
    %599 = vector.load %arg9[%c0_199, %c0_200, %c0_201] : memref<8x8x128xf32, #tpu.memory_space<vmem>>, vector<8x8x128xf32>
    %600 = arith.addf %598, %599 : vector<8x8x128xf32>
    %601 = vector.extract_strided_slice %600 {offsets = [0, 0, 0], sizes = [8, 8, 32], strides = [1, 1, 1]} : vector<8x8x128xf32> to vector<8x8x32xf32>
    %c0_202 = arith.constant 0 : index
    %c0_203 = arith.constant 0 : index
    %c0_204 = arith.constant 0 : index
    %602 = vector.load %arg5[%c0_202, %c0_203, %c0_204] : memref<8x8x32xf32, #tpu.memory_space<vmem>>, vector<8x8x32xf32>
    tpu.vector_store %arg5[%c0_202, %c0_203, %c0_204], %601 {strides = array<i32>} : memref<8x8x32xf32, #tpu.memory_space<vmem>>, vector<8x8x32xf32>,
    return
  }
  func.func @transform_0(%arg0: i32) -> (i32, i32, i32) {
    %c0_i32 = arith.constant 0 : i32
    %c0_i32_0 = arith.constant 0 : i32
    %c0_i32_1 = arith.constant 0 : i32
    return %c0_i32, %arg0, %c0_i32_0 : i32, i32, i32
  }
  func.func @transform_1(%arg0: i32) -> (i32, i32) {
    %c0_i32 = arith.constant 0 : i32
    %c0_i32_0 = arith.constant 0 : i32
    %c0_i32_1 = arith.constant 0 : i32
    return %c0_i32, %c0_i32_0 : i32, i32
  }
  func.func @transform_2(%arg0: i32) -> (i32, i32, i32) {
    %c0_i32 = arith.constant 0 : i32
    %c0_i32_0 = arith.constant 0 : i32
    %c0_i32_1 = arith.constant 0 : i32
    %c0_i32_2 = arith.constant 0 : i32
    return %c0_i32, %c0_i32_0, %c0_i32_1 : i32, i32, i32
  }
  func.func @transform_3(%arg0: i32) -> (i32, i32) {
    %c0_i32 = arith.constant 0 : i32
    %c0_i32_0 = arith.constant 0 : i32
    %c0_i32_1 = arith.constant 0 : i32
    return %c0_i32, %c0_i32_0 : i32, i32
  }
  func.func @transform_4(%arg0: i32) -> (i32, i32, i32) {
    %c0_i32 = arith.constant 0 : i32
    %c0_i32_0 = arith.constant 0 : i32
    %c0_i32_1 = arith.constant 0 : i32
    return %c0_i32, %arg0, %c0_i32_0 : i32, i32, i32
  }
}

</mosaic_0001>

<bundles_post_ra>
// kernel: sentence_rnn_forward.1
= control target key start
LH: loop header
LB: loop body
LE: loop exit
PB: predicated region body
PF: predicated region fallthrough
CT: control target
= control target key end

     0   :  { %9 = vsyncpa [#allocation7], 0  ;;  %s7618_s0 = inlined_call_operand.vmem [shape: f32[8,8,40], index: 0, kind: input, shape index: {}]   ;;  %s7619_s1 = inlined_call_operand.hbm [shape: f32[40,1024], index: 1, kind: input, shape index: {}]   ;;  %s7620_s2 = inlined_call_operand.hbm [shape: f32[2,128,512], index: 2, kind: input, shape index: {}]   ;;  %s7621_s3 = inlined_call_operand.vmem [shape: f32[1,1024], index: 3, kind: input, shape index: {}]   ;;  %s7622_s4 = inlined_call_operand.vmem [shape: f32[8,8,32], index: 4, kind: output, shape index: {}]  }
   0x1   :  { %s17_s17 = sshll.u32 %s7619_s1, 4  ;;  %s18_s17 = int_to_ptr.hbm [resolvable:$true] %s17_s17 }
   0x2   :  { %10 = vsyncpa [#allocation9], 0  ;;  %s4547_s18 = smov [#allocation6]   ;;  %s30_s22 = sshll.u32 %s7620_s2, 4  ;;  %s31_s22 = int_to_ptr.hbm [resolvable:$true] %s30_s22 }
   0x3   :  { %s19_s19 = sshll.u32 %s4547_s18, 4  ;;  %s4548_s23 = smov 1024   ;;  %s20_s19 = int_to_ptr.vmem [resolvable:$true] %s19_s19 }
   0x4   :  { %s4549_s24 = smov 64   ;;  %s4550_s25 = smov [#allocation8]  }
   0x5   :  { %25 = dma.hbm_to_vmem [thread:$0]  %s18_s17, 5120, %s20_s19, [#allocation7], %s4548_s23, %s4548_s23, %s4549_s24  }
   0x6   :  { %s32_s26 = sshll.u32 %s4550_s25, 4  ;;  %s4551_s27 = smov 512   ;;  %s33_s26 = int_to_ptr.vmem [resolvable:$true] %s32_s26 }
   0x7   :  { %s4552_s28 = smov 32  }
   0x8   :  { %38 = dma.hbm_to_vmem [thread:$0]  %s31_s22, 16384, %s33_s26, [#allocation9], %s4551_s27, %s4551_s27, %s4552_s28  }
   0x9   :  { %4543 = dma.done.wait [#allocation7], 5120  }
   0xa   :  { %4544 = vsyncadd [#allocation7], 4294962176 }
   0xb   :  { %4545 = dma.done.wait [#allocation9], 16384  }
   0xc   :  { %4546 = vsyncadd [#allocation9], 4294950912  ;;  %v89_v0 = vld [vmem:[#allocation6 + $0x100] sm:$0xff]  ;;  %v90_v1 = vld [vmem:[#allocation6 + $0x108] sm:$0xff]  ;;  %vm97_vm0 = vcmask 326656  }
   0xd   :  { %v91_v2 = vld [vmem:[#allocation6 + $0x110] sm:$0xff]  ;;  %133 = vmatpush.msra.mxu0 %v89_v0  ;;  %174 = vmatpush.msra.mxu1 %v90_v1  ;;  %v92_v3 = vld [vmem:[#allocation6 + $0x118] sm:$0xff]  ;;  %v81_v4 = vld [vmem:[#allocation6 + $0xc0] sm:$0xff] }
   0xe   :  { %v82_v5 = vld [vmem:[#allocation6 + $0xc8] sm:$0xff]  ;;  %215 = vmatpush.msra.mxu2 %v91_v2  ;;  %256 = vmatpush.msra.mxu3 %v92_v3  ;;  %v83_v6 = vld [vmem:[#allocation6 + $0xd0] sm:$0xff]  ;;  %v84_v7 = vld [vmem:[#allocation6 + $0xd8] sm:$0xff] }
   0xf   :  { %v73_v8 = vld [vmem:[#allocation6 + $0x80] sm:$0xff]  ;;  %134 = vmatpush.msra.mxu0 %v81_v4  ;;  %175 = vmatpush.msra.mxu1 %v82_v5  ;;  %v74_v9 = vld [vmem:[#allocation6 + $0x88] sm:$0xff]  ;;  %v75_v10 = vld [vmem:[#allocation6 + $0x90] sm:$0xff] }
  0x10   :  { %v76_v11 = vld [vmem:[#allocation6 + $0x98] sm:$0xff]  ;;  %216 = vmatpush.msra.mxu2 %v83_v6  ;;  %257 = vmatpush.msra.mxu3 %v84_v7  ;;  %v65_v12 = vld [vmem:[#allocation6 + $0x40] sm:$0xff]  ;;  %v66_v13 = vld [vmem:[#allocation6 + $0x48] sm:$0xff] }
  0x11   :  { %135 = vmatpush.msra.mxu0 %v73_v8  ;;  %176 = vmatpush.msra.mxu1 %v74_v9  ;;  %v67_v14 = vld [vmem:[#allocation6 + $0x50] sm:$0xff]  ;;  %v68_v15 = vld [vmem:[#allocation6 + $0x58] sm:$0xff]  ;;  %v57_v16 = vld [vmem:[#allocation6] sm:$0xff] }
  0x12   :  { %217 = vmatpush.msra.mxu2 %v75_v10  ;;  %258 = vmatpush.msra.mxu3 %v76_v11  ;;  %v58_v17 = vld [vmem:[#allocation6 + $0x8] sm:$0xff]  ;;  %v59_v18 = vld [vmem:[#allocation6 + $0x10] sm:$0xff]  ;;  %v60_v19 = vld [vmem:[#allocation6 + $0x18] sm:$0xff] }
  0x13   :  { %136 = vmatpush.msra.mxu0 %v65_v12  ;;  %177 = vmatpush.msra.mxu1 %v66_v13  ;;  %v4588_v20 = vld [vmem:[%s7618_s0] sm:$0xff]  ;;  %v94_v22 = vld [vmem:[#allocation6 + $0x128] sm:$0xff]  ;;  %v96_v23 = vld [vmem:[#allocation6 + $0x138] sm:$0xff] }
  0x14   :  { %218 = vmatpush.msra.mxu2 %v67_v14  ;;  %259 = vmatpush.msra.mxu3 %v68_v15  ;;  %v93_v21 = vld [vmem:[#allocation6 + $0x120] sm:$0xff]  ;;  %v95_v24 = vld [vmem:[#allocation6 + $0x130] sm:$0xff]  ;;  %v86_v26 = vld [vmem:[#allocation6 + $0xe8] sm:$0xff] }
  0x15   :  { %137 = vmatpush.msra.mxu0 %v57_v16  ;;  %178 = vmatpush.msra.mxu1 %v58_v17  ;;  %v85_v25 = vld [vmem:[#allocation6 + $0xe0] sm:$0xff]  ;;  %v88_v27 = vld [vmem:[#allocation6 + $0xf8] sm:$0xff]  ;;  %v87_v28 = vld [vmem:[#allocation6 + $0xf0] sm:$0xff] }
  0x16   :  { %219 = vmatpush.msra.mxu2 %v59_v18  ;;  %260 = vmatpush.msra.mxu3 %v60_v19  ;;  %v77_v29 = vld [vmem:[#allocation6 + $0xa0] sm:$0xff]  ;;  %v78_v30 = vld [vmem:[#allocation6 + $0xa8] sm:$0xff]  ;;  %v80_v31 = vld [vmem:[#allocation6 + $0xb8] sm:$0xff] }
  0x17   :  { %4120 = vmatmul.msk.f32.vlgmr.msra.gmra.mxu0 %vm97_vm0, %v4588_v20  ;;  %4128 = vmatmul.msk.f32.vlgmr.msra.gmra.mxu1 %vm97_vm0, %v4588_v20  ;;  %v4601_v32 = vld [vmem:[%s7618_s0 + $0x8] sm:$0xff]  ;;  %v69_v33 = vld [vmem:[#allocation6 + $0x60] sm:$0xff]  ;;  %v79_v35 = vld [vmem:[#allocation6 + $0xb0] sm:$0xff] }
  0x18   :  { %4136 = vmatmul.msk.f32.vlgmr.msra.gmra.mxu2 %vm97_vm0, %v4588_v20  ;;  %4144 = vmatmul.msk.f32.vlgmr.msra.gmra.mxu3 %vm97_vm0, %v4588_v20  ;;  %v70_v34 = vld [vmem:[#allocation6 + $0x68] sm:$0xff]  ;;  %v72_v36 = vld [vmem:[#allocation6 + $0x78] sm:$0xff]  ;;  %v4614_v37 = vld [vmem:[%s7618_s0 + $0x10] sm:$0xff] }
  0x19   :  { %297 = vmatpush.msrb.mxu0 %v93_v21  ;;  %338 = vmatpush.msrb.mxu1 %v94_v22  ;;  %v61_v38 = vld [vmem:[#allocation6 + $0x20] sm:$0xff]  ;;  %v62_v39 = vld [vmem:[#allocation6 + $0x28] sm:$0xff]  ;;  %v71_v40 = vld [vmem:[#allocation6 + $0x70] sm:$0xff] }
  0x1a   :  { %420 = vmatpush.msrb.mxu3 %v96_v23  ;;  %379 = vmatpush.msrb.mxu2 %v95_v24  ;;  %v4627_v41 = vld [vmem:[%s7618_s0 + $0x18] sm:$0xff]  ;;  %v63_v43 = vld [vmem:[#allocation6 + $0x30] sm:$0xff]  ;;  %v4640_v44 = vld [vmem:[%s7618_s0 + $0x20] sm:$0xff] }
  0x1b   :  { %298 = vmatpush.msrb.mxu0 %v85_v25  ;;  %339 = vmatpush.msrb.mxu1 %v86_v26  ;;  %v64_v42 = vld [vmem:[#allocation6 + $0x38] sm:$0xff]  ;;  %v4650_v45 = vld [vmem:[#allocation8 + $0x1e0] sm:$0xff]  ;;  %v4652_v46 = vld [vmem:[#allocation8 + $0x1e8] sm:$0xff] }
  0x1c   :  { %421 = vmatpush.msrb.mxu3 %v88_v27  ;;  %380 = vmatpush.msrb.mxu2 %v87_v28  ;;  %v4654_v47 = vld [vmem:[#allocation8 + $0x1c0] sm:$0xff]  ;;  %v4658_v48 = vld [vmem:[#allocation8 + $0x1c8] sm:$0xff]  ;;  %v4660_v49 = vld [vmem:[#allocation8 + $0x1f8] sm:$0xff] }
  0x1d   :  { %299 = vmatpush.msrb.mxu0 %v77_v29  ;;  %340 = vmatpush.msrb.mxu1 %v78_v30  ;;  %v4668_v50 = vld [vmem:[%s7618_s0 + $0x28] sm:$0xff]  ;;  %v4678_v51 = vld [vmem:[#allocation8 + $0x1a0] sm:$0xff]  ;;  %v4682_v53 = vld [vmem:[#allocation8 + $0x1d8] sm:$0xff] }
  0x1e   :  { %422 = vmatpush.msrb.mxu3 %v80_v31  ;;  %381 = vmatpush.msrb.mxu2 %v79_v35  ;;  %v4680_v52 = vld [vmem:[#allocation8 + $0x1a8] sm:$0xff]  ;;  %v4686_v54 = vld [vmem:[#allocation8 + $0x1f0] sm:$0xff]  ;;  %v4688_v55 = vld [vmem:[#allocation8 + $0x180] sm:$0xff] }
  0x1f   :  { %4121 = vmatmul.msk.f32.gmra.mxu0 %vm97_vm0, %v4601_v32  ;;  %4129 = vmatmul.msk.f32.gmra.mxu1 %vm97_vm0, %v4601_v32  ;;  %v4690_v56 = vld [vmem:[#allocation8 + $0x188] sm:$0xff]  ;;  %v4694_v57 = vld [vmem:[#allocation8 + $0x1d0] sm:$0xff]  ;;  %v4696_v58 = vld [vmem:[#allocation8 + $0x1b8] sm:$0xff] }
  0x20   :  { %4137 = vmatmul.msk.f32.gmra.mxu2 %vm97_vm0, %v4601_v32  ;;  %4145 = vmatmul.msk.f32.gmra.mxu3 %vm97_vm0, %v4601_v32  ;;  %v4700_v59 = vld [vmem:[#allocation8 + $0x1b0] sm:$0xff]  ;;  %v4714_v61 = vld [vmem:[#allocation8 + $0x198] sm:$0xff]  ;;  %v4720_v62 = vld [vmem:[#allocation8 + $0x160] sm:$0xff] }
  0x21   :  { %300 = vmatpush.msrb.mxu0 %v69_v33  ;;  %341 = vmatpush.msrb.mxu1 %v70_v34  ;;  %v4705_v60 = vld [vmem:[%s7618_s0 + $0x30] sm:$0xff]  ;;  %v4722_v63 = vld [vmem:[#allocation8 + $0x168] sm:$0xff]  ;;  %v4728_v1 = vld [vmem:[#allocation8 + $0x178] sm:$0xff] }
  0x22   :  { %423 = vmatpush.msrb.mxu3 %v72_v36  ;;  %382 = vmatpush.msrb.mxu2 %v71_v40  ;;  %v4724_v0 = vld [vmem:[#allocation8 + $0x190] sm:$0xff]  ;;  %v4732_v3 = vld [vmem:[#allocation8 + $0x140] sm:$0xff]  ;;  %v4736_v4 = vld [vmem:[#allocation8 + $0x148] sm:$0xff] }
  0x23   :  { %301 = vmatpush.msrb.mxu0 %v61_v38  ;;  %342 = vmatpush.msrb.mxu1 %v62_v39  ;;  %v4730_v2 = vld [vmem:[#allocation8 + $0x170] sm:$0xff]  ;;  %v4738_v5 = vld [vmem:[#allocation8 + $0x158] sm:$0xff]  ;;  %v4744_v7 = vld [vmem:[#allocation8 + $0x120] sm:$0xff] }
  0x24   :  { %424 = vmatpush.msrb.mxu3 %v64_v42  ;;  %383 = vmatpush.msrb.mxu2 %v63_v43  ;;  %v4742_v6 = vld [vmem:[#allocation8 + $0x150] sm:$0xff]  ;;  %v4746_v8 = vld [vmem:[#allocation8 + $0x128] sm:$0xff]  ;;  %v4751_v9 = vld [vmem:[%s7618_s0 + $0x38] sm:$0xff] }
  0x25   :  { %664 = vmatpush.msra.mxu0 %v4650_v45  ;;  %684 = vmatpush.msra.mxu1 %v4652_v46  ;;  %v4759_v10 = vld [vmem:[#allocation8 + $0x138] sm:$0xff]  ;;  %v4761_v11 = vld [vmem:[#allocation8 + $0x130] sm:$0xff]  ;;  %v4767_v12 = vld [vmem:[#allocation8 + $0x100] sm:$0xff] }
  0x26   :  { %724 = vmatpush.msra.mxu3 %v4660_v49  ;;  %704 = vmatpush.msra.mxu2 %v4686_v54  ;;  %v4769_v13 = vld [vmem:[#allocation8 + $0x108] sm:$0xff]  ;;  %v4775_v14 = vld [vmem:[#allocation8 + $0x118] sm:$0xff]  ;;  %v4777_v15 = vld [vmem:[#allocation8 + $0x110] sm:$0xff] }
  0x27   :  { %4122 = vmatmul.msk.f32.gmra.mxu0 %vm97_vm0, %v4614_v37  ;;  %4130 = vmatmul.msk.f32.gmra.mxu1 %vm97_vm0, %v4614_v37  ;;  %v4781_v16 = vld [vmem:[#allocation8 + $0xe0] sm:$0xff]  ;;  %v4783_v17 = vld [vmem:[#allocation8 + $0xe8] sm:$0xff]  ;;  %v4787_v18 = vld [vmem:[#allocation8 + $0xf8] sm:$0xff] }
  0x28   :  { %4138 = vmatmul.msk.f32.gmra.mxu2 %vm97_vm0, %v4614_v37  ;;  %4146 = vmatmul.msk.f32.gmra.mxu3 %vm97_vm0, %v4614_v37  ;;  %v4789_v19 = vld [vmem:[#allocation8 + $0xf0] sm:$0xff]  ;;  %v4793_v21 = vld [vmem:[#allocation8 + $0xc0] sm:$0xff]  ;;  %v4795_v22 = vld [vmem:[#allocation8 + $0xc8] sm:$0xff] }
  0x29   :  { %665 = vmatpush.msra.mxu0 %v4654_v47  ;;  %685 = vmatpush.msra.mxu1 %v4658_v48  ;;  %v4803_v23 = vld [vmem:[#allocation8 + $0xd8] sm:$0xff]  ;;  %v4805_v24 = vld [vmem:[#allocation8 + $0xd0] sm:$0xff]  ;;  %v4811_v25 = vld [vmem:[#allocation8 + $0xa0] sm:$0xff] }
  0x2a   :  { %725 = vmatpush.msra.mxu3 %v4682_v53  ;;  %705 = vmatpush.msra.mxu2 %v4694_v57  ;;  %v4813_v26 = vld [vmem:[#allocation8 + $0xa8] sm:$0xff]  ;;  %v4819_v27 = vld [vmem:[#allocation8 + $0xb8] sm:$0xff]  ;;  %v4821_v28 = vld [vmem:[#allocation8 + $0xb0] sm:$0xff] }
  0x2b   :  { %666 = vmatpush.msra.mxu0 %v4678_v51  ;;  %686 = vmatpush.msra.mxu1 %v4680_v52  ;;  %v4825_v29 = vld [vmem:[#allocation8 + $0x80] sm:$0xff]  ;;  %v4827_v30 = vld [vmem:[#allocation8 + $0x88] sm:$0xff]  ;;  %v4831_v31 = vld [vmem:[#allocation8 + $0x98] sm:$0xff] }
  0x2c   :  { %726 = vmatpush.msra.mxu3 %v4696_v58  ;;  %706 = vmatpush.msra.mxu2 %v4700_v59  ;;  %7838 = vst [vmem:[#allocation12_spill] sm:$0xff] %v4827_v30  ;;  %v4833_v33 = vld [vmem:[#allocation8 + $0x90] sm:$0xff]  ;;  %v4839_v34 = vld [vmem:[#allocation8 + $0x68] sm:$0xff]  ;;  %v4847_v35 = vld [vmem:[#allocation8 + $0x78] sm:$0xff] }
  0x2d   :  { %667 = vmatpush.msra.mxu0 %v4688_v55  ;;  %687 = vmatpush.msra.mxu1 %v4690_v56  ;;  %7839 = vst [vmem:[#allocation13_spill] sm:$0xff] %v4831_v31  ;;  %v4849_v36 = vld [vmem:[#allocation8 + $0x70] sm:$0xff]  ;;  %v608_v38 = vld [vmem:[#allocation8 + $0x40] sm:$0xff]  ;;  %v609_v39 = vld [vmem:[#allocation8 + $0x48] sm:$0xff] }
  0x2e   :  { %727 = vmatpush.msra.mxu3 %v4714_v61  ;;  %707 = vmatpush.msra.mxu2 %v4724_v0  ;;  %7840 = vst [vmem:[#allocation14_spill] sm:$0xff] %v4833_v33  ;;  %v611_v40 = vld [vmem:[#allocation8 + $0x58] sm:$0xff]  ;;  %v610_v42 = vld [vmem:[#allocation8 + $0x50] sm:$0xff]  ;;  %v604_v43 = vld [vmem:[#allocation8 + $0x20] sm:$0xff] }
  0x2f   :  { %4123 = vmatmul.msk.f32.gmra.mxu0 %vm97_vm0, %v4627_v41  ;;  %4131 = vmatmul.msk.f32.gmra.mxu1 %vm97_vm0, %v4627_v41  ;;  %7842 = vst [vmem:[#allocation16_spill] sm:$0xff] %v4839_v34 }
  0x30   :  { %4139 = vmatmul.msk.f32.gmra.mxu2 %vm97_vm0, %v4627_v41  ;;  %4147 = vmatmul.msk.f32.gmra.mxu3 %vm97_vm0, %v4627_v41  ;;  %7843 = vst [vmem:[#allocation17_spill] sm:$0xff] %v4847_v35 }
  0x31   :  { %668 = vmatpush.msra.mxu0 %v4720_v62  ;;  %688 = vmatpush.msra.mxu1 %v4722_v63  ;;  %7844 = vst [vmem:[#allocation18_spill] sm:$0xff] %v4849_v36 }
  0x32   :  { %728 = vmatpush.msra.mxu3 %v4728_v1  ;;  %708 = vmatpush.msra.mxu2 %v4730_v2 }
  0x33   :  { %669 = vmatpush.msra.mxu0 %v4732_v3  ;;  %689 = vmatpush.msra.mxu1 %v4736_v4 }
  0x34   :  { %729 = vmatpush.msra.mxu3 %v4738_v5  ;;  %709 = vmatpush.msra.mxu2 %v4742_v6 }
  0x35   :  { %670 = vmatpush.msra.mxu0 %v4744_v7  ;;  %690 = vmatpush.msra.mxu1 %v4746_v8 }
  0x36   :  { %730 = vmatpush.msra.mxu3 %v4759_v10  ;;  %710 = vmatpush.msra.mxu2 %v4761_v11 }
  0x37   :  { %4124 = vmatmul.msk.f32.gmra.mxu0 %vm97_vm0, %v4640_v44  ;;  %4132 = vmatmul.msk.f32.gmra.mxu1 %vm97_vm0, %v4640_v44 }
  0x38   :  { %4140 = vmatmul.msk.f32.gmra.mxu2 %vm97_vm0, %v4640_v44  ;;  %4148 = vmatmul.msk.f32.gmra.mxu3 %vm97_vm0, %v4640_v44 }
  0x39   :  { %671 = vmatpush.msra.mxu0 %v4767_v12  ;;  %691 = vmatpush.msra.mxu1 %v4769_v13 }
  0x3a   :  { %731 = vmatpush.msra.mxu3 %v4775_v14  ;;  %711 = vmatpush.msra.mxu2 %v4777_v15 }
  0x3b   :  { %672 = vmatpush.msra.mxu0 %v4781_v16  ;;  %692 = vmatpush.msra.mxu1 %v4783_v17 }
  0x3c   :  { %732 = vmatpush.msra.mxu3 %v4787_v18  ;;  %712 = vmatpush.msra.mxu2 %v4789_v19 }
  0x3d   :  { %673 = vmatpush.msra.mxu0 %v4793_v21  ;;  %693 = vmatpush.msra.mxu1 %v4795_v22 }
  0x3e   :  { %733 = vmatpush.msra.mxu3 %v4803_v23  ;;  %713 = vmatpush.msra.mxu2 %v4805_v24 }
  0x3f   :  { %4125 = vmatmul.msk.f32.gmra.mxu0 %vm97_vm0, %v4668_v50  ;;  %4133 = vmatmul.msk.f32.gmra.mxu1 %vm97_vm0, %v4668_v50 }
  0x40   :  { %4141 = vmatmul.msk.f32.gmra.mxu2 %vm97_vm0, %v4668_v50  ;;  %4149 = vmatmul.msk.f32.gmra.mxu3 %vm97_vm0, %v4668_v50 }
  0x41   :  { %674 = vmatpush.msra.mxu0 %v4811_v25  ;;  %694 = vmatpush.msra.mxu1 %v4813_v26 }
  0x42   :  { %734 = vmatpush.msra.mxu3 %v4819_v27  ;;  %714 = vmatpush.msra.mxu2 %v4821_v28 }
  0x43   :  { %675 = vmatpush.msra.mxu0 %v4825_v29  ;;  %695 = vmatpush.msra.mxu1 %v4827_v30  ;;  %v601_v30 = vld [vmem:[#allocation8 + $0x8] sm:$0xff] }
  0x44   :  { %735 = vmatpush.msra.mxu3 %v4831_v31  ;;  %715 = vmatpush.msra.mxu2 %v4833_v33  ;;  %v606_v31 = vld [vmem:[#allocation8 + $0x30] sm:$0xff]  ;;  %v600_v33 = vld [vmem:[#allocation8] sm:$0xff] }
  0x45   :  { %696 = vmatpush.msra.mxu1 %v4839_v34  ;;  %v605_v34 = vld [vmem:[#allocation8 + $0x28] sm:$0xff] }
  0x46   :  { %736 = vmatpush.msra.mxu3 %v4847_v35  ;;  %716 = vmatpush.msra.mxu2 %v4849_v36  ;;  %v602_v35 = vld [vmem:[#allocation8 + $0x10] sm:$0xff] }
  0x47   :  { %4126 = vmatmul.msk.f32.gmra.mxu0 %vm97_vm0, %v4705_v60  ;;  %4134 = vmatmul.msk.f32.gmra.mxu1 %vm97_vm0, %v4705_v60  ;;  %v871_v36 = vld [vmem:[#allocation8 + $0x3b0] sm:$0xff] }
  0x48   :  { %4142 = vmatmul.msk.f32.gmra.mxu2 %vm97_vm0, %v4705_v60  ;;  %4150 = vmatmul.msk.f32.gmra.mxu3 %vm97_vm0, %v4705_v60 }
  0x49   :  { %697 = vmatpush.msra.mxu1 %v609_v39  ;;  %737 = vmatpush.msra.mxu3 %v611_v40  ;;  %v878_v39 = vld [vmem:[#allocation8 + $0x3e8] sm:$0xff]  ;;  %v875_v40 = vld [vmem:[#allocation8 + $0x3d0] sm:$0xff] }
  0x4a   :  { %717 = vmatpush.msra.mxu2 %v610_v42  ;;  %v869_v42 = vld [vmem:[#allocation8 + $0x3a0] sm:$0xff] }
  0x4b   :  { %698 = vmatpush.msra.mxu1 %v605_v34  ;;  %v876_v34 = vld [vmem:[#allocation8 + $0x3d8] sm:$0xff] }
  0x4c   :  { %718 = vmatpush.msra.mxu2 %v606_v31  ;;  %v879_v31 = vld [vmem:[#allocation8 + $0x3f0] sm:$0xff] }
  0x4d   :  { %699 = vmatpush.msra.mxu1 %v601_v30  ;;  %v873_v30 = vld [vmem:[#allocation8 + $0x3c0] sm:$0xff] }
  0x4e   :  { %719 = vmatpush.msra.mxu2 %v602_v35  ;;  %v865_v35 = vld [vmem:[#allocation8 + $0x380] sm:$0xff] }
  0x4f   :  { %4127 = vmatmul.msk.f32.gmra.mxu0 %vm97_vm0, %v4751_v9  ;;  %4135 = vmatmul.msk.f32.gmra.mxu1 %vm97_vm0, %v4751_v9 }
  0x50   :  { %4143 = vmatmul.msk.f32.gmra.mxu2 %vm97_vm0, %v4751_v9  ;;  %4151 = vmatmul.msk.f32.gmra.mxu3 %vm97_vm0, %v4751_v9 }
  0x57   :  { %4152 = vmatmul.msk.f32.vlgmr.msrb.gmra.mxu0 %vm97_vm0, %v4588_v20  ;;  %4160 = vmatmul.msk.f32.vlgmr.msrb.gmra.mxu1 %vm97_vm0, %v4588_v20 }
  0x58   :  { %4168 = vmatmul.msk.f32.vlgmr.msrb.gmra.mxu2 %vm97_vm0, %v4588_v20  ;;  %4176 = vmatmul.msk.f32.vlgmr.msrb.gmra.mxu3 %vm97_vm0, %v4588_v20  ;;  %v4837_v20 = vld [vmem:[#allocation8 + $0x60] sm:$0xff] }
  0x59   :  { %7841 = vst [vmem:[#allocation15_spill] sm:$0xff] %v4837_v20  ;;  %676 = vmatpush.msra.mxu0 %v4837_v20  ;;  %v607_v20 = vld [vmem:[#allocation8 + $0x38] sm:$0xff]  ;;  %901 = vmatpush.msrb.mxu1 %v878_v39  ;;  %v867_v39 = vld [vmem:[#allocation8 + $0x390] sm:$0xff] }
  0x5a   :  { %738 = vmatpush.msra.mxu3 %v607_v20  ;;  %v880_v20 = vld [vmem:[#allocation8 + $0x3f8] sm:$0xff]  ;;  %921 = vmatpush.msrb.mxu2 %v879_v31  ;;  %v862_v31 = vld [vmem:[#allocation8 + $0x368] sm:$0xff] }
  0x5b   :  { %677 = vmatpush.msra.mxu0 %v608_v38  ;;  %v877_v38 = vld [vmem:[#allocation8 + $0x3e0] sm:$0xff] }
  0x5c   :  { %922 = vmatpush.msrb.mxu2 %v875_v40  ;;  %v858_v40 = vld [vmem:[#allocation8 + $0x348] sm:$0xff] }
  0x5d   :  { %678 = vmatpush.msra.mxu0 %v604_v43  ;;  %v870_v43 = vld [vmem:[#allocation8 + $0x3a8] sm:$0xff] }
  0x5e   :  { %923 = vmatpush.msrb.mxu2 %v871_v36  ;;  %v853_v36 = vld [vmem:[#allocation8 + $0x320] sm:$0xff] }
  0x5f   :  { %4153 = vmatmul.msk.f32.gmra.mxu0 %vm97_vm0, %v4601_v32  ;;  %4161 = vmatmul.msk.f32.gmra.mxu1 %vm97_vm0, %v4601_v32 }
  0x60   :  { %4169 = vmatmul.msk.f32.gmra.mxu2 %vm97_vm0, %v4601_v32  ;;  %4177 = vmatmul.msk.f32.gmra.mxu3 %vm97_vm0, %v4601_v32  ;;  %v603_v32 = vld [vmem:[#allocation8 + $0x18] sm:$0xff] }
  0x61   :  { %679 = vmatpush.msra.mxu0 %v600_v33  ;;  %739 = vmatpush.msra.mxu3 %v603_v32  ;;  %v874_v33 = vld [vmem:[#allocation8 + $0x3c8] sm:$0xff] }
  0x62   :  { %902 = vmatpush.msrb.mxu1 %v874_v33  ;;  %v866_v32 = vld [vmem:[#allocation8 + $0x388] sm:$0xff]  ;;  %v863_v33 = vld [vmem:[#allocation8 + $0x370] sm:$0xff]  ;;  %924 = vmatpush.msrb.mxu2 %v867_v39  ;;  %v852_v39 = vld [vmem:[#allocation8 + $0x318] sm:$0xff] }
  0x63   :  { %881 = vmatpush.msrb.mxu0 %v877_v38  ;;  %941 = vmatpush.msrb.mxu3 %v880_v20  ;;  %v868_v38 = vld [vmem:[#allocation8 + $0x398] sm:$0xff]  ;;  %v861_v20 = vld [vmem:[#allocation8 + $0x360] sm:$0xff] }
  0x64   :  { %903 = vmatpush.msrb.mxu1 %v870_v43  ;;  %925 = vmatpush.msrb.mxu2 %v863_v33  ;;  %v854_v43 = vld [vmem:[#allocation8 + $0x328] sm:$0xff]  ;;  %v847_v33 = vld [vmem:[#allocation8 + $0x2f0] sm:$0xff] }
  0x65   :  { %882 = vmatpush.msrb.mxu0 %v873_v30  ;;  %942 = vmatpush.msrb.mxu3 %v876_v34  ;;  %v864_v30 = vld [vmem:[#allocation8 + $0x378] sm:$0xff]  ;;  %v857_v34 = vld [vmem:[#allocation8 + $0x340] sm:$0xff] }
  0x66   :  { %904 = vmatpush.msrb.mxu1 %v866_v32  ;;  %v849_v32 = vld [vmem:[#allocation8 + $0x300] sm:$0xff] }
  0x67   :  { %4154 = vmatmul.msk.f32.gmra.mxu0 %vm97_vm0, %v4614_v37  ;;  %4162 = vmatmul.msk.f32.gmra.mxu1 %vm97_vm0, %v4614_v37 }
  0x68   :  { %4170 = vmatmul.msk.f32.gmra.mxu2 %vm97_vm0, %v4614_v37  ;;  %4178 = vmatmul.msk.f32.gmra.mxu3 %vm97_vm0, %v4614_v37  ;;  %v872_v37 = vld [vmem:[#allocation8 + $0x3b8] sm:$0xff] }
  0x69   :  { %883 = vmatpush.msrb.mxu0 %v869_v42  ;;  %943 = vmatpush.msrb.mxu3 %v872_v37  ;;  %v859_v42 = vld [vmem:[#allocation8 + $0x350] sm:$0xff]  ;;  %v856_v37 = vld [vmem:[#allocation8 + $0x338] sm:$0xff] }
  0x6a   :  { %905 = vmatpush.msrb.mxu1 %v862_v31  ;;  %926 = vmatpush.msrb.mxu2 %v859_v42  ;;  %v845_v31 = vld [vmem:[#allocation8 + $0x2e0] sm:$0xff]  ;;  %v843_v42 = vld [vmem:[#allocation8 + $0x2d0] sm:$0xff] }
  0x6b   :  { %884 = vmatpush.msrb.mxu0 %v865_v35  ;;  %944 = vmatpush.msrb.mxu3 %v868_v38  ;;  %v855_v35 = vld [vmem:[#allocation8 + $0x330] sm:$0xff]  ;;  %v850_v38 = vld [vmem:[#allocation8 + $0x308] sm:$0xff] }
  0x6c   :  { %906 = vmatpush.msrb.mxu1 %v858_v40  ;;  %927 = vmatpush.msrb.mxu2 %v855_v35  ;;  %v842_v40 = vld [vmem:[#allocation8 + $0x2c8] sm:$0xff]  ;;  %v4893_v35 = vld [vmem:[#allocation8 + $0x2b0] sm:$0xff] }
  0x6d   :  { %885 = vmatpush.msrb.mxu0 %v861_v20  ;;  %945 = vmatpush.msrb.mxu3 %v864_v30  ;;  %v851_v20 = vld [vmem:[#allocation8 + $0x310] sm:$0xff]  ;;  %v846_v30 = vld [vmem:[#allocation8 + $0x2e8] sm:$0xff] }
  0x6e   :  { %907 = vmatpush.msrb.mxu1 %v854_v43  ;;  %928 = vmatpush.msrb.mxu2 %v851_v20  ;;  %v838_v43 = vld [vmem:[#allocation8 + $0x2a8] sm:$0xff]  ;;  %v829_v20 = vld [vmem:[#allocation8 + $0x260] sm:$0xff] }
  0x6f   :  { %4155 = vmatmul.msk.f32.gmra.mxu0 %vm97_vm0, %v4627_v41  ;;  %4163 = vmatmul.msk.f32.gmra.mxu1 %vm97_vm0, %v4627_v41 }
  0x70   :  { %4171 = vmatmul.msk.f32.gmra.mxu2 %vm97_vm0, %v4627_v41  ;;  %4179 = vmatmul.msk.f32.gmra.mxu3 %vm97_vm0, %v4627_v41  ;;  %v860_v41 = vld [vmem:[#allocation8 + $0x358] sm:$0xff] }
  0x71   :  { %886 = vmatpush.msrb.mxu0 %v857_v34  ;;  %946 = vmatpush.msrb.mxu3 %v860_v41  ;;  %v841_v34 = vld [vmem:[#allocation8 + $0x2c0] sm:$0xff]  ;;  %v844_v41 = vld [vmem:[#allocation8 + $0x2d8] sm:$0xff] }
  0x72   :  { %908 = vmatpush.msrb.mxu1 %v850_v38  ;;  %929 = vmatpush.msrb.mxu2 %v847_v33  ;;  %v834_v38 = vld [vmem:[#allocation8 + $0x288] sm:$0xff]  ;;  %v4907_v33 = vld [vmem:[#allocation8 + $0x240] sm:$0xff] }
  0x73   :  { %887 = vmatpush.msrb.mxu0 %v853_v36  ;;  %947 = vmatpush.msrb.mxu3 %v856_v37  ;;  %v837_v36 = vld [vmem:[#allocation8 + $0x2a0] sm:$0xff]  ;;  %v840_v37 = vld [vmem:[#allocation8 + $0x2b8] sm:$0xff] }
  0x74   :  { %909 = vmatpush.msrb.mxu1 %v846_v30  ;;  %930 = vmatpush.msrb.mxu2 %v843_v42  ;;  %v832_v30 = vld [vmem:[#allocation8 + $0x278] sm:$0xff]  ;;  %v4913_v42 = vld [vmem:[#allocation8 + $0x220] sm:$0xff] }
  0x75   :  { %888 = vmatpush.msrb.mxu0 %v849_v32  ;;  %948 = vmatpush.msrb.mxu3 %v852_v39  ;;  %v833_v32 = vld [vmem:[#allocation8 + $0x280] sm:$0xff]  ;;  %v4896_v39 = vld [vmem:[#allocation8 + $0x290] sm:$0xff] }
  0x76   :  { %910 = vmatpush.msrb.mxu1 %v842_v40  ;;  %931 = vmatpush.msrb.mxu2 %v4893_v35  ;;  %v828_v40 = vld [vmem:[#allocation8 + $0x258] sm:$0xff] }
  0x77   :  { %4156 = vmatmul.msk.f32.gmra.mxu0 %vm97_vm0, %v4640_v44  ;;  %4164 = vmatmul.msk.f32.gmra.mxu1 %vm97_vm0, %v4640_v44 }
  0x78   :  { %4172 = vmatmul.msk.f32.gmra.mxu2 %vm97_vm0, %v4640_v44  ;;  %4180 = vmatmul.msk.f32.gmra.mxu3 %vm97_vm0, %v4640_v44  ;;  %v848_v44 = vld [vmem:[#allocation8 + $0x2f8] sm:$0xff] }
  0x79   :  { %889 = vmatpush.msrb.mxu0 %v845_v31  ;;  %949 = vmatpush.msrb.mxu3 %v848_v44  ;;  %v830_v31 = vld [vmem:[#allocation8 + $0x268] sm:$0xff]  ;;  %v831_v44 = vld [vmem:[#allocation8 + $0x270] sm:$0xff] }
  0x7a   :  { %911 = vmatpush.msrb.mxu1 %v838_v43  ;;  %932 = vmatpush.msrb.mxu2 %v4896_v39  ;;  %v4924_v43 = vld [vmem:[#allocation8 + $0x230] sm:$0xff] }
  0x7b   :  { %890 = vmatpush.msrb.mxu0 %v841_v34  ;;  %950 = vmatpush.msrb.mxu3 %v844_v41  ;;  %v4909_v34 = vld [vmem:[#allocation8 + $0x248] sm:$0xff]  ;;  %v4911_v41 = vld [vmem:[#allocation8 + $0x250] sm:$0xff] }
  0x7c   :  { %912 = vmatpush.msrb.mxu1 %v834_v38  ;;  %933 = vmatpush.msrb.mxu2 %v831_v44  ;;  %v4938_v38 = vld [vmem:[#allocation8 + $0x218] sm:$0xff] }
  0x7d   :  { %891 = vmatpush.msrb.mxu0 %v837_v36  ;;  %951 = vmatpush.msrb.mxu3 %v840_v37  ;;  %v4915_v36 = vld [vmem:[#allocation8 + $0x228] sm:$0xff]  ;;  %v4930_v37 = vld [vmem:[#allocation8 + $0x200] sm:$0xff]  ;;  %7845 = vst [vmem:[#allocation19_spill] sm:$0xff] %v4938_v38 }
  0x7e   :  { %913 = vmatpush.msrb.mxu1 %v830_v31  ;;  %934 = vmatpush.msrb.mxu2 %v4911_v41 }
  0x7f   :  { %4157 = vmatmul.msk.f32.gmra.mxu0 %vm97_vm0, %v4668_v50  ;;  %4165 = vmatmul.msk.f32.gmra.mxu1 %vm97_vm0, %v4668_v50 }
  0x80   :  { %4173 = vmatmul.msk.f32.gmra.mxu2 %vm97_vm0, %v4668_v50  ;;  %4181 = vmatmul.msk.f32.gmra.mxu3 %vm97_vm0, %v4668_v50  ;;  %v836_v50 = vld [vmem:[#allocation8 + $0x298] sm:$0xff] }
  0x81   :  { %892 = vmatpush.msrb.mxu0 %v833_v32  ;;  %952 = vmatpush.msrb.mxu3 %v836_v50  ;;  %v4932_v32 = vld [vmem:[#allocation8 + $0x208] sm:$0xff]  ;;  %v4940_v50 = vld [vmem:[#allocation8 + $0x210] sm:$0xff] }
  0x82   :  { %914 = vmatpush.msrb.mxu1 %v4909_v34  ;;  %935 = vmatpush.msrb.mxu2 %v4924_v43 }
  0x83   :  { %893 = vmatpush.msrb.mxu0 %v829_v20  ;;  %953 = vmatpush.msrb.mxu3 %v832_v30 }
  0x84   :  { %915 = vmatpush.msrb.mxu1 %v4915_v36  ;;  %936 = vmatpush.msrb.mxu2 %v4940_v50 }
  0x85   :  { %894 = vmatpush.msrb.mxu0 %v4907_v33  ;;  %954 = vmatpush.msrb.mxu3 %v828_v40 }
  0x86   :  { %916 = vmatpush.msrb.mxu1 %v4932_v32 }
  0x87   :  { %4158 = vmatmul.msk.f32.gmra.mxu0 %vm97_vm0, %v4705_v60  ;;  %4166 = vmatmul.msk.f32.gmra.mxu1 %vm97_vm0, %v4705_v60 }
  0x88   :  { %4174 = vmatmul.msk.f32.gmra.mxu2 %vm97_vm0, %v4705_v60  ;;  %4182 = vmatmul.msk.f32.gmra.mxu3 %vm97_vm0, %v4705_v60  ;;  %v4922_v60 = vld [vmem:[#allocation8 + $0x238] sm:$0xff] }
  0x89   :  { %895 = vmatpush.msrb.mxu0 %v4913_v42  ;;  %955 = vmatpush.msrb.mxu3 %v4922_v60 }
  0x8b   :  { %896 = vmatpush.msrb.mxu0 %v4930_v37  ;;  %956 = vmatpush.msrb.mxu3 %v4938_v38 }
  0x8f   :  { %4159 = vmatmul.msk.f32.gmra.mxu0 %vm97_vm0, %v4751_v9  ;;  %4167 = vmatmul.msk.f32.gmra.mxu1 %vm97_vm0, %v4751_v9 }
  0x90   :  { %4175 = vmatmul.msk.f32.gmra.mxu2 %vm97_vm0, %v4751_v9  ;;  %4183 = vmatmul.msk.f32.gmra.mxu3 %vm97_vm0, %v4751_v9  ;;  %v4553_v9 = vmov 0.0  }
  0x94   :  { %v4948_v20 = vpop.f32.mrf.mxu0  ;;  %v4950_v31 = vpop.f32.mrf.mxu1 }
  0x97   :  { %680 = vmatmul.f32.vlgmr.msra.gmra.mxu0 %v4553_v9  ;;  %700 = vmatmul.f32.vlgmr.msra.gmra.mxu1 %v4553_v9 }
  0x98   :  { %720 = vmatmul.f32.vlgmr.msra.gmra.mxu2 %v4553_v9  ;;  %740 = vmatmul.f32.vlgmr.msra.gmra.mxu3 %v4553_v9 }
  0x99   :  { %1100 = vmatpush.msra.mxu0 %v4650_v45  ;;  %1120 = vmatpush.msra.mxu1 %v4652_v46 }
  0x9a   :  { %1140 = vmatpush.msra.mxu2 %v4686_v54  ;;  %1160 = vmatpush.msra.mxu3 %v4660_v49  ;;  %v7854_v54 = vld [vmem:[#allocation12_spill] sm:$0xff] }
  0x9b   :  { %v4956_v30 = vpop.f32.mrf.mxu2  ;;  %v4958_v44 = vpop.f32.mrf.mxu3  ;;  %1101 = vmatpush.msra.mxu0 %v4654_v47  ;;  %1121 = vmatpush.msra.mxu1 %v4658_v48 }
  0x9c   :  { %v4962_v40 = vpop.f32.mrf.mxu0  ;;  %v4964_v38 = vpop.f32.mrf.mxu1  ;;  %1141 = vmatpush.msra.mxu2 %v4694_v57  ;;  %1161 = vmatpush.msra.mxu3 %v4682_v53 }
  0x9d   :  { %1102 = vmatpush.msra.mxu0 %v4678_v51  ;;  %1122 = vmatpush.msra.mxu1 %v4680_v52 }
  0x9e   :  { %1142 = vmatpush.msra.mxu2 %v4700_v59  ;;  %1162 = vmatpush.msra.mxu3 %v4696_v58  ;;  %v7859_v59 = vld [vmem:[#allocation15_spill] sm:$0xff] }
  0x9f   :  { %897 = vmatmul.f32.vlgmr.msrb.gmra.mxu0 %v4553_v9  ;;  %917 = vmatmul.f32.vlgmr.msrb.gmra.mxu1 %v4553_v9 }
  0xa0   :  { %957 = vmatmul.f32.vlgmr.msrb.gmra.mxu3 %v4553_v9  ;;  %937 = vmatmul.f32.vlgmr.msrb.gmra.mxu2 %v4553_v9 }
  0xa1   :  { %1103 = vmatpush.msra.mxu0 %v4688_v55  ;;  %1123 = vmatpush.msra.mxu1 %v4690_v56  ;;  %v7855_v55 = vld [vmem:[#allocation14_spill] sm:$0xff]  ;;  %v7856_v56 = vld [vmem:[#allocation13_spill] sm:$0xff] }
  0xa2   :  { %1143 = vmatpush.msra.mxu2 %v4724_v0  ;;  %1163 = vmatpush.msra.mxu3 %v4714_v61  ;;  %v7860_v61 = vld [vmem:[#allocation16_spill] sm:$0xff]  ;;  %v7863_v0 = vld [vmem:[#allocation18_spill] sm:$0xff] }
  0xa3   :  { %v4976_v45 = vpop.f32.mrf.mxu2  ;;  %v4978_v46 = vpop.f32.mrf.mxu3  ;;  %1104 = vmatpush.msra.mxu0 %v4720_v62  ;;  %1124 = vmatpush.msra.mxu1 %v4722_v63 }
  0xa4   :  { %7846 = vst [vmem:[#allocation20_spill] sm:$0xff] %v4976_v45  ;;  %v4982_v47 = vpop.f32.mrf.mxu0  ;;  %v4984_v48 = vpop.f32.mrf.mxu1  ;;  %1144 = vmatpush.msra.mxu2 %v4730_v2  ;;  %1164 = vmatpush.msra.mxu3 %v4728_v1  ;;  %v7864_v1 = vld [vmem:[#allocation17_spill] sm:$0xff]  ;;  %v5263_v45 = vld [vmem:[#allocation8 + $0x360] sm:$0xff] }
  0xa5   :  { %7847 = vst [vmem:[#allocation21_spill] sm:$0xff] %v4978_v46  ;;  %1105 = vmatpush.msra.mxu0 %v4732_v3  ;;  %1125 = vmatpush.msra.mxu1 %v4736_v4  ;;  %v5271_v46 = vld [vmem:[#allocation8 + $0x378] sm:$0xff] }
  0xa6   :  { %7848 = vst [vmem:[#allocation22_spill] sm:$0xff] %v4982_v47  ;;  %1145 = vmatpush.msra.mxu2 %v4742_v6  ;;  %1165 = vmatpush.msra.mxu3 %v4738_v5  ;;  %v5259_v47 = vld [vmem:[#allocation8 + $0x398] sm:$0xff] }
  0xa7   :  { %7849 = vst [vmem:[#allocation23_spill] sm:$0xff] %v4984_v48  ;;  %1106 = vmatpush.msra.mxu0 %v4744_v7  ;;  %1126 = vmatpush.msra.mxu1 %v4746_v8 }
  0xa8   :  { %1146 = vmatpush.msra.mxu2 %v4761_v11  ;;  %1166 = vmatpush.msra.mxu3 %v4759_v10  ;;  %7911 = vst [vmem:[#allocation71_spill] sm:$0xff] %v5259_v47 }
  0xa9   :  { %1107 = vmatpush.msra.mxu0 %v4767_v12  ;;  %1127 = vmatpush.msra.mxu1 %v4769_v13  ;;  %7912 = vst [vmem:[#allocation72_spill] sm:$0xff] %v5263_v45 }
  0xaa   :  { %1147 = vmatpush.msra.mxu2 %v4777_v15  ;;  %1167 = vmatpush.msra.mxu3 %v4775_v14  ;;  %v5063_v15 = vld [vmem:[%s7621_s3] sm:$0xff]  ;;  %7914 = vst [vmem:[#allocation74_spill] sm:$0xff] %v5271_v46 }
  0xab   :  { %v5000_v49 = vpop.f32.mrf.mxu2  ;;  %v5002_v51 = vpop.f32.mrf.mxu3  ;;  %1108 = vmatpush.msra.mxu0 %v4781_v16  ;;  %1128 = vmatpush.msra.mxu1 %v4783_v17  ;;  %v5066_v16 = vperm.slane %v5063_v15, 4  ;;  %v5069_v17 = vperm.slane %v5063_v15, 5 }
  0xac   :  { %7850 = vst [vmem:[#allocation24_spill] sm:$0xff] %v5000_v49  ;;  %v5006_v52 = vpop.f32.mrf.mxu0  ;;  %v5008_v53 = vpop.f32.mrf.mxu1  ;;  %1148 = vmatpush.msra.mxu2 %v4789_v19  ;;  %1168 = vmatpush.msra.mxu3 %v4787_v18  ;;  %v5247_v49 = vld [vmem:[#allocation8 + $0x388] sm:$0xff] }
  0xad   :  { %7851 = vst [vmem:[#allocation25_spill] sm:$0xff] %v5002_v51  ;;  %1109 = vmatpush.msra.mxu0 %v4793_v21  ;;  %1129 = vmatpush.msra.mxu1 %v4795_v22 }
  0xae   :  { %7852 = vst [vmem:[#allocation26_spill] sm:$0xff] %v5006_v52  ;;  %1149 = vmatpush.msra.mxu2 %v4805_v24  ;;  %1169 = vmatpush.msra.mxu3 %v4803_v23  ;;  %v5237_v52 = vld [vmem:[#allocation8 + $0x3b0] sm:$0xff] }
  0xaf   :  { %7853 = vst [vmem:[#allocation27_spill] sm:$0xff] %v5008_v53  ;;  %1110 = vmatpush.msra.mxu0 %v4811_v25  ;;  %1130 = vmatpush.msra.mxu1 %v4813_v26  ;;  %v5082_v25 = vperm.slane %v5063_v15, 6  ;;  %v5085_v26 = vperm.slane %v5063_v15, 7  ;;  %v5235_v53 = vld [vmem:[#allocation8 + $0x3a8] sm:$0xff] }
  0xb0   :  { %1150 = vmatpush.msra.mxu2 %v4821_v28  ;;  %1170 = vmatpush.msra.mxu3 %v4819_v27  ;;  %7907 = vst [vmem:[#allocation67_spill] sm:$0xff] %v5237_v52 }
  0xb1   :  { %1111 = vmatpush.msra.mxu0 %v4825_v29  ;;  %1131 = vmatpush.msra.mxu1 %v7854_v54  ;;  %7910 = vst [vmem:[#allocation70_spill] sm:$0xff] %v5247_v49 }
  0xb2   :  { %1151 = vmatpush.msra.mxu2 %v7855_v55  ;;  %1171 = vmatpush.msra.mxu3 %v7856_v56 }
  0xb3   :  { %v5024_v57 = vpop.f32.mrf.mxu2  ;;  %v5026_v58 = vpop.f32.mrf.mxu3  ;;  %1112 = vmatpush.msra.mxu0 %v7859_v59  ;;  %1132 = vmatpush.msra.mxu1 %v7860_v61 }
  0xb4   :  { %7857 = vst [vmem:[#allocation12_spill] sm:$0xff] %v5024_v57  ;;  %v5030_v62 = vpop.f32.mrf.mxu0  ;;  %v5032_v63 = vpop.f32.mrf.mxu1  ;;  %1152 = vmatpush.msra.mxu2 %v7863_v0  ;;  %1172 = vmatpush.msra.mxu3 %v7864_v1  ;;  %v5222_v57 = vperm.slane %v5063_v15, 0 }
  0xb5   :  { %7858 = vst [vmem:[#allocation14_spill] sm:$0xff] %v5026_v58  ;;  %v5233_v58 = vld [vmem:[#allocation8 + $0x3a0] sm:$0xff] }
  0xb6   :  { %7861 = vst [vmem:[#allocation13_spill] sm:$0xff] %v5030_v62  ;;  %v5215_v62 = vld [vmem:[#allocation8 + $0x3c0] sm:$0xff] }
  0xb7   :  { %7862 = vst [vmem:[#allocation15_spill] sm:$0xff] %v5032_v63  ;;  %v5205_v63 = vld [vmem:[#allocation8 + $0x3e8] sm:$0xff] }
  0xbb   :  { %v5036_v2 = vpop.f32.mrf.mxu2  ;;  %v5038_v3 = vpop.f32.mrf.mxu3 }
  0xbc   :  { %7865 = vst [vmem:[#allocation16_spill] sm:$0xff] %v5036_v2  ;;  %v5040_v4 = vpop.f32.mrf.mxu0  ;;  %v5042_v5 = vpop.f32.mrf.mxu1 }
  0xbd   :  { %7866 = vst [vmem:[#allocation18_spill] sm:$0xff] %v5038_v3  ;;  %v5203_v3 = vld [vmem:[#allocation8 + $0x3e0] sm:$0xff] }
  0xbe   :  { %7867 = vst [vmem:[#allocation17_spill] sm:$0xff] %v5040_v4  ;;  %v5187_v4 = vld [vmem:[#allocation8 + $0x10] sm:$0xff] }
  0xbf   :  { %7868 = vst [vmem:[#allocation28_spill] sm:$0xff] %v5042_v5  ;;  %v5185_v5 = vld [vmem:[#allocation8 + $0x8] sm:$0xff] }
  0xc3   :  { %v5044_v6 = vpop.f32.mrf.mxu2  ;;  %v5046_v7 = vpop.f32.mrf.mxu3 }
  0xc4   :  { %7869 = vst [vmem:[#allocation29_spill] sm:$0xff] %v5044_v6  ;;  %v5048_v8 = vpop.f32.mrf.mxu0  ;;  %v5050_v10 = vpop.f32.mrf.mxu1 }
  0xc5   :  { %7870 = vst [vmem:[#allocation30_spill] sm:$0xff] %v5046_v7  ;;  %v5183_v7 = vld [vmem:[#allocation8] sm:$0xff] }
  0xc6   :  { %7871 = vst [vmem:[#allocation31_spill] sm:$0xff] %v5048_v8 }
  0xc7   :  { %7872 = vst [vmem:[#allocation32_spill] sm:$0xff] %v5050_v10 }
  0xcb   :  { %v5052_v11 = vpop.f32.mrf.mxu2  ;;  %v5054_v12 = vpop.f32.mrf.mxu3 }
  0xcc   :  { %7873 = vst [vmem:[#allocation33_spill] sm:$0xff] %v5052_v11  ;;  %v5056_v13 = vpop.f32.mrf.mxu0  ;;  %v5058_v14 = vpop.f32.mrf.mxu1 }
  0xcd   :  { %7874 = vst [vmem:[#allocation34_spill] sm:$0xff] %v5054_v12 }
  0xce   :  { %7875 = vst [vmem:[#allocation35_spill] sm:$0xff] %v5056_v13 }
  0xcf   :  { %7876 = vst [vmem:[#allocation36_spill] sm:$0xff] %v5058_v14 }
  0xd3   :  { %v5071_v18 = vpop.f32.mrf.mxu2  ;;  %v5073_v19 = vpop.f32.mrf.mxu3 }
  0xd4   :  { %7877 = vst [vmem:[#allocation37_spill] sm:$0xff] %v5071_v18  ;;  %v303_v21 = vpop.f32.mrf.mxu0  ;;  %v344_v22 = vpop.f32.mrf.mxu1 }
  0xd5   :  { %7878 = vst [vmem:[#allocation38_spill] sm:$0xff] %v5073_v19  ;;  %v5076_v23 = vadd.f32 %v5066_v16, %v303_v21  ;;  %v5079_v24 = vadd.f32 %v5069_v17, %v344_v22 }
  0xd7   :  { %7879 = vst [vmem:[#allocation39_spill] sm:$0xff] %v5076_v23 }
  0xd8   :  { %7880 = vst [vmem:[#allocation40_spill] sm:$0xff] %v5079_v24 }
  0xdb   :  { %v385_v27 = vpop.f32.mrf.mxu2  ;;  %v426_v28 = vpop.f32.mrf.mxu3 }
  0xdc   :  { %v5088_v29 = vadd.f32 %v5082_v25, %v385_v27  ;;  %v5091_v9 = vadd.f32 %v5085_v26, %v426_v28  ;;  %v306_v54 = vpop.f32.mrf.mxu0  ;;  %v347_v55 = vpop.f32.mrf.mxu1 }
  0xdd   :  { %v5094_v56 = vadd.f32 %v5066_v16, %v306_v54  ;;  %v5097_v59 = vadd.f32 %v5069_v17, %v347_v55 }
  0xde   :  { %7881 = vst [vmem:[#allocation41_spill] sm:$0xff] %v5088_v29 }
  0xdf   :  { %7882 = vst [vmem:[#allocation42_spill] sm:$0xff] %v5091_v9 }
  0xe0   :  { %7883 = vst [vmem:[#allocation43_spill] sm:$0xff] %v5094_v56 }
  0xe1   :  { %7884 = vst [vmem:[#allocation44_spill] sm:$0xff] %v5097_v59 }
  0xe3   :  { %v388_v61 = vpop.f32.mrf.mxu2  ;;  %v429_v0 = vpop.f32.mrf.mxu3 }
  0xe4   :  { %v5100_v1 = vadd.f32 %v5082_v25, %v388_v61  ;;  %v5103_v21 = vadd.f32 %v5085_v26, %v429_v0  ;;  %v309_v22 = vpop.f32.mrf.mxu0  ;;  %v350_v27 = vpop.f32.mrf.mxu1 }
  0xe5   :  { %v5106_v28 = vadd.f32 %v5066_v16, %v309_v22  ;;  %v5109_v29 = vadd.f32 %v5069_v17, %v350_v27 }
  0xe6   :  { %7885 = vst [vmem:[#allocation45_spill] sm:$0xff] %v5100_v1 }
  0xe7   :  { %7886 = vst [vmem:[#allocation46_spill] sm:$0xff] %v5103_v21 }
  0xe8   :  { %7887 = vst [vmem:[#allocation47_spill] sm:$0xff] %v5106_v28 }
  0xe9   :  { %7888 = vst [vmem:[#allocation48_spill] sm:$0xff] %v5109_v29  ;;  %v5179_v29 = vld [vmem:[#allocation8 + $0x38] sm:$0xff] }
  0xeb   :  { %v391_v54 = vpop.f32.mrf.mxu2  ;;  %v432_v9 = vpop.f32.mrf.mxu3 }
  0xec   :  { %v5112_v55 = vadd.f32 %v5082_v25, %v391_v54  ;;  %v5115_v24 = vadd.f32 %v5085_v26, %v432_v9  ;;  %v312_v61 = vpop.f32.mrf.mxu0  ;;  %v353_v23 = vpop.f32.mrf.mxu1 }
  0xed   :  { %v5118_v0 = vadd.f32 %v5066_v16, %v312_v61  ;;  %v5121_v18 = vadd.f32 %v5069_v17, %v353_v23 }
  0xee   :  { %7889 = vst [vmem:[#allocation49_spill] sm:$0xff] %v5112_v55 }
  0xef   :  { %7890 = vst [vmem:[#allocation50_spill] sm:$0xff] %v5115_v24  ;;  %v5163_v24 = vld [vmem:[#allocation8 + $0x50] sm:$0xff] }
  0xf0   :  { %7891 = vst [vmem:[#allocation51_spill] sm:$0xff] %v5118_v0  ;;  %1153 = vmatpush.msra.mxu2 %v5163_v24  ;;  %v5201_v0 = vld [vmem:[#allocation8 + $0x18] sm:$0xff] }
  0xf1   :  { %7892 = vst [vmem:[#allocation52_spill] sm:$0xff] %v5121_v18 }
  0xf3   :  { %v394_v22 = vpop.f32.mrf.mxu2  ;;  %v435_v19 = vpop.f32.mrf.mxu3 }
  0xf4   :  { %v5124_v27 = vadd.f32 %v5082_v25, %v394_v22  ;;  %v5127_v14 = vadd.f32 %v5085_v26, %v435_v19  ;;  %v315_v54 = vpop.f32.mrf.mxu0  ;;  %v356_v13 = vpop.f32.mrf.mxu1 }
  0xf5   :  { %v5130_v9 = vadd.f32 %v5066_v16, %v315_v54  ;;  %v5133_v1 = vadd.f32 %v5069_v17, %v356_v13 }
  0xf6   :  { %7893 = vst [vmem:[#allocation53_spill] sm:$0xff] %v5124_v27 }
  0xf7   :  { %7894 = vst [vmem:[#allocation54_spill] sm:$0xff] %v5127_v14 }
  0xf8   :  { %7895 = vst [vmem:[#allocation55_spill] sm:$0xff] %v5130_v9  ;;  %v5229_v9 = vld [vmem:[#allocation8 + $0x3d8] sm:$0xff] }
  0xf9   :  { %7896 = vst [vmem:[#allocation56_spill] sm:$0xff] %v5133_v1  ;;  %v5225_v1 = vperm.slane %v5063_v15, 1 }
  0xfb   :  { %v397_v61 = vpop.f32.mrf.mxu2  ;;  %v438_v21 = vpop.f32.mrf.mxu3  ;;  %v469_v51 = vadd.f32 %v5225_v1, %v4950_v31 }
  0xfc   :  { %v5136_v23 = vadd.f32 %v5082_v25, %v397_v61  ;;  %v5139_v59 = vadd.f32 %v5085_v26, %v438_v21  ;;  %v318_v22 = vpop.f32.mrf.mxu0  ;;  %v359_v56 = vpop.f32.mrf.mxu1 }
  0xfd   :  { %v5142_v19 = vadd.f32 %v5066_v16, %v318_v22  ;;  %v5145_v11 = vadd.f32 %v5069_v17, %v359_v56  ;;  %v5159_v22 = vld [vmem:[#allocation8 + $0x40] sm:$0xff]  ;;  %v5161_v56 = vld [vmem:[#allocation8 + $0x48] sm:$0xff] }
  0xfe   :  { %7897 = vst [vmem:[#allocation57_spill] sm:$0xff] %v5136_v23  ;;  %1113 = vmatpush.msra.mxu0 %v5159_v22  ;;  %1133 = vmatpush.msra.mxu1 %v5161_v56  ;;  %v5217_v23 = vld [vmem:[#allocation8 + $0x3c8] sm:$0xff] }
  0xff   :  { %7898 = vst [vmem:[#allocation58_spill] sm:$0xff] %v5139_v59  ;;  %v5219_v59 = vld [vmem:[#allocation8 + $0x3d0] sm:$0xff] }
 0x100   :  { %7899 = vst [vmem:[#allocation59_spill] sm:$0xff] %v5142_v19  ;;  %v468_v19 = vadd.f32 %v5222_v57, %v4948_v20  ;;  %v5265_v20 = vld [vmem:[#allocation8 + $0x368] sm:$0xff] }
 0x101   :  { %7900 = vst [vmem:[#allocation60_spill] sm:$0xff] %v5145_v11  ;;  %v5249_v11 = vld [vmem:[#allocation8 + $0x390] sm:$0xff] }
 0x102   :  { %7913 = vst [vmem:[#allocation73_spill] sm:$0xff] %v5265_v20 }
 0x103   :  { %v400_v54 = vpop.f32.mrf.mxu2  ;;  %v441_v12 = vpop.f32.mrf.mxu3 }
 0x104   :  { %v5148_v13 = vadd.f32 %v5082_v25, %v400_v54  ;;  %v5151_v10 = vadd.f32 %v5085_v26, %v441_v12  ;;  %v321_v61 = vpop.f32.mrf.mxu0  ;;  %v362_v8 = vpop.f32.mrf.mxu1  ;;  %v5167_v12 = vld [vmem:[#allocation8 + $0x58] sm:$0xff]  ;;  %v5171_v54 = vld [vmem:[#allocation8 + $0x20] sm:$0xff] }
 0x105   :  { %v5154_v21 = vadd.f32 %v5066_v16, %v321_v61  ;;  %v5157_v55 = vadd.f32 %v5069_v17, %v362_v8  ;;  %1173 = vmatpush.msra.mxu3 %v5167_v12  ;;  %v5173_v8 = vld [vmem:[#allocation8 + $0x28] sm:$0xff]  ;;  %v5175_v61 = vld [vmem:[#allocation8 + $0x30] sm:$0xff]  ;;  %1114 = vmatpush.msra.mxu0 %v5171_v54 }
 0x106   :  { %7901 = vst [vmem:[#allocation61_spill] sm:$0xff] %v5148_v13  ;;  %1134 = vmatpush.msra.mxu1 %v5173_v8  ;;  %1154 = vmatpush.msra.mxu2 %v5175_v61  ;;  %v5241_v13 = vld [vmem:[#allocation8 + $0x3b8] sm:$0xff] }
 0x107   :  { %7902 = vst [vmem:[#allocation62_spill] sm:$0xff] %v5151_v10  ;;  %1174 = vmatpush.msra.mxu3 %v5179_v29  ;;  %1115 = vmatpush.msra.mxu0 %v5183_v7  ;;  %v5245_v10 = vld [vmem:[#allocation8 + $0x380] sm:$0xff] }
 0x108   :  { %7903 = vst [vmem:[#allocation63_spill] sm:$0xff] %v5154_v21  ;;  %1135 = vmatpush.msra.mxu1 %v5185_v5  ;;  %1155 = vmatpush.msra.mxu2 %v5187_v4 }
 0x109   :  { %7904 = vst [vmem:[#allocation64_spill] sm:$0xff] %v5157_v55  ;;  %1175 = vmatpush.msra.mxu3 %v5201_v0  ;;  %1316 = vmatpush.msrb.mxu0 %v5203_v3  ;;  %v5267_v55 = vld [vmem:[#allocation8 + $0x370] sm:$0xff] }
 0x10a   :  { %1336 = vmatpush.msrb.mxu1 %v5205_v63  ;;  %7908 = vst [vmem:[#allocation68_spill] sm:$0xff] %v5241_v13 }
 0x10b   :  { %v403_v28 = vpop.f32.mrf.mxu2  ;;  %v444_v6 = vpop.f32.mrf.mxu3  ;;  %1317 = vmatpush.msrb.mxu0 %v5215_v62  ;;  %7909 = vst [vmem:[#allocation69_spill] sm:$0xff] %v5245_v10 }
 0x10c   :  { %v5190_v27 = vadd.f32 %v5082_v25, %v403_v28  ;;  %v5193_v14 = vadd.f32 %v5085_v26, %v444_v6  ;;  %v5195_v2 = vpop.f32.mrf.mxu0  ;;  %v5197_v18 = vpop.f32.mrf.mxu1  ;;  %v5209_v6 = vld [vmem:[#allocation8 + $0x3f0] sm:$0xff]  ;;  %v5211_v28 = vld [vmem:[#allocation8 + $0x3f8] sm:$0xff]  ;;  %1337 = vmatpush.msrb.mxu1 %v5217_v23 }
 0x10d   :  { %1356 = vmatpush.msrb.mxu2 %v5209_v6  ;;  %1376 = vmatpush.msrb.mxu3 %v5211_v28 }
 0x10e   :  { %7905 = vst [vmem:[#allocation65_spill] sm:$0xff] %v5190_v27  ;;  %1318 = vmatpush.msrb.mxu0 %v5233_v58  ;;  %1338 = vmatpush.msrb.mxu1 %v5235_v53 }
 0x10f   :  { %7906 = vst [vmem:[#allocation66_spill] sm:$0xff] %v5193_v14  ;;  %1357 = vmatpush.msrb.mxu2 %v5219_v59  ;;  %1377 = vmatpush.msrb.mxu3 %v5229_v9 }
 0x110   :  { %1319 = vmatpush.msrb.mxu0 %v5245_v10  ;;  %1339 = vmatpush.msrb.mxu1 %v5247_v49  ;;  %v5278_v49 = vld [vmem:[#allocation8 + $0x340] sm:$0xff]  ;;  %v5280_v10 = vld [vmem:[#allocation8 + $0x348] sm:$0xff] }
 0x111   :  { %1358 = vmatpush.msrb.mxu2 %v5237_v52  ;;  %1378 = vmatpush.msrb.mxu3 %v5241_v13  ;;  %v5274_v13 = vperm.slane %v5063_v15, 3  ;;  %7916 = vst [vmem:[#allocation76_spill] sm:$0xff] %v5278_v49  ;;  %v5282_v52 = vld [vmem:[#allocation8 + $0x350] sm:$0xff] }
 0x112   :  { %1320 = vmatpush.msrb.mxu0 %v5263_v45  ;;  %1340 = vmatpush.msrb.mxu1 %v5265_v20  ;;  %7917 = vst [vmem:[#allocation77_spill] sm:$0xff] %v5280_v10  ;;  %v5292_v20 = vld [vmem:[#allocation8 + $0x320] sm:$0xff]  ;;  %v5294_v45 = vld [vmem:[#allocation8 + $0x328] sm:$0xff] }
 0x113   :  { %v5255_v48 = vpop.f32.mrf.mxu3  ;;  %1359 = vmatpush.msrb.mxu2 %v5249_v11  ;;  %1379 = vmatpush.msrb.mxu3 %v5259_v47  ;;  %7915 = vst [vmem:[#allocation75_spill] sm:$0xff] %v5274_v13  ;;  %v5296_v47 = vld [vmem:[#allocation8 + $0x330] sm:$0xff] }
 0x114   :  { %v681_v27 = vpop.f32.mrf.mxu0  ;;  %v701_v14 = vpop.f32.mrf.mxu1  ;;  %7918 = vst [vmem:[#allocation78_spill] sm:$0xff] %v5282_v52  ;;  %1321 = vmatpush.msrb.mxu0 %v5278_v49  ;;  %1341 = vmatpush.msrb.mxu1 %v5280_v10  ;;  %v5306_v10 = vld [vmem:[#allocation8 + $0x300] sm:$0xff]  ;;  %v5308_v49 = vld [vmem:[#allocation8 + $0x308] sm:$0xff] }
 0x115   :  { %v744_v31 = vadd.f32 %v681_v27, %v468_v19  ;;  %v745_v21 = vadd.f32 %v701_v14, %v469_v51  ;;  %1360 = vmatpush.msrb.mxu2 %v5267_v55  ;;  %1380 = vmatpush.msrb.mxu3 %v5271_v46  ;;  %v5286_v27 = vld [vmem:[#allocation8 + $0x358] sm:$0xff]  ;;  %v5288_v19 = vpop.f32.mrf.mxu2  ;;  %7920 = vst [vmem:[#allocation80_spill] sm:$0xff] %v5292_v20  ;;  %v5310_v46 = vld [vmem:[#allocation8 + $0x310] sm:$0xff] }
 0x116   :  { %7919 = vst [vmem:[#allocation79_spill] sm:$0xff] %v5286_v27  ;;  %1322 = vmatpush.msrb.mxu0 %v5292_v20  ;;  %1342 = vmatpush.msrb.mxu1 %v5294_v45 }
 0x117   :  { %v4184_v51 = vmul.f32 -1.442695, %v744_v31  ;;  %v4185_v14 = vmul.f32 -1.442695, %v745_v21  ;;  %7921 = vst [vmem:[#allocation81_spill] sm:$0xff] %v5294_v45  ;;  %1361 = vmatpush.msrb.mxu2 %v5282_v52  ;;  %1381 = vmatpush.msrb.mxu3 %v5286_v27  ;;  %v5300_v21 = vld [vmem:[#allocation8 + $0x338] sm:$0xff]  ;;  %v471_v31 = vadd.f32 %v5274_v13, %v4958_v44  ;;  %v529_v27 = vadd.f32 %v5069_v17, %v5197_v18 }
 0x118   :  { %7922 = vst [vmem:[#allocation82_spill] sm:$0xff] %v5296_v47  ;;  %v5318_v44 = vld [vmem:[#allocation8 + $0x318] sm:$0xff]  ;;  %1323 = vmatpush.msrb.mxu0 %v5306_v10  ;;  %1343 = vmatpush.msrb.mxu1 %v5308_v49  ;;  %v5322_v13 = vld [vmem:[#allocation8 + $0x2e0] sm:$0xff] }
 0x119   :  { %4239 = vpow2.f32 %v4184_v51  ;;  %7923 = vst [vmem:[#allocation83_spill] sm:$0xff] %v5300_v21  ;;  %v528_v51 = vadd.f32 %v5066_v16, %v5195_v2  ;;  %1362 = vmatpush.msrb.mxu2 %v5296_v47  ;;  %1382 = vmatpush.msrb.mxu3 %v5300_v21  ;;  %v5324_v2 = vld [vmem:[#allocation8 + $0x2e8] sm:$0xff]  ;;  %v5326_v16 = vld [vmem:[#allocation8 + $0x2f0] sm:$0xff]  ;;  %v5330_v21 = vld [vmem:[#allocation8 + $0x2f8] sm:$0xff] }
 0x11a   :  { %4241 = vpow2.f32 %v4185_v14  ;;  %7924 = vst [vmem:[#allocation84_spill] sm:$0xff] %v5306_v10  ;;  %1324 = vmatpush.msrb.mxu0 %v5322_v13  ;;  %1344 = vmatpush.msrb.mxu1 %v5324_v2  ;;  %v5338_v10 = vld [vmem:[#allocation8 + $0x2d0] sm:$0xff] }
 0x11b   :  { %7925 = vst [vmem:[#allocation85_spill] sm:$0xff] %v5308_v49  ;;  %v741_v52 = vpop.f32.mrf.mxu3  ;;  %1363 = vmatpush.msrb.mxu2 %v5310_v46  ;;  %1383 = vmatpush.msrb.mxu3 %v5318_v44  ;;  %v5336_v49 = vld [vmem:[#allocation8 + $0x2c8] sm:$0xff] }
 0x11c   :  { %v747_v14 = vadd.f32 %v741_v52, %v471_v31  ;;  %v898_v45 = vpop.f32.mrf.mxu0  ;;  %v918_v20 = vpop.f32.mrf.mxu1  ;;  %7926 = vst [vmem:[#allocation86_spill] sm:$0xff] %v5322_v13  ;;  %v5334_v31 = vld [vmem:[#allocation8 + $0x2c0] sm:$0xff]  ;;  %1345 = vmatpush.msrb.mxu1 %v5336_v49  ;;  %v5350_v13 = vld [vmem:[#allocation8 + $0x2a8] sm:$0xff] }
 0x11d   :  { %7927 = vst [vmem:[#allocation87_spill] sm:$0xff] %v5324_v2  ;;  %v961_v17 = vadd.f32 %v898_v45, %v528_v51  ;;  %v962_v18 = vadd.f32 %v918_v20, %v529_v27  ;;  %1364 = vmatpush.msrb.mxu2 %v5326_v16  ;;  %1384 = vmatpush.msrb.mxu3 %v5330_v21  ;;  %v5342_v20 = vld [vmem:[#allocation8 + $0x2d8] sm:$0xff]  ;;  %v5348_v2 = vld [vmem:[#allocation8 + $0x2a0] sm:$0xff] }
 0x11e   :  { %7928 = vst [vmem:[#allocation88_spill] sm:$0xff] %v5326_v16  ;;  %v4186_v52 = vmul.f32 -1.442695, %v747_v14  ;;  %1325 = vmatpush.msrb.mxu0 %v5334_v31  ;;  %1346 = vmatpush.msrb.mxu1 %v5350_v13 }
 0x11f   :  { %7929 = vst [vmem:[#allocation89_spill] sm:$0xff] %v5336_v49  ;;  %v4240_v47 = vpop.eup %4239  ;;  %v4187_v45 = vmul.f32 -1.442695, %v961_v17  ;;  %v4188_v14 = vmul.f32 -1.442695, %v962_v18  ;;  %v5352_v17 = vld [vmem:[#allocation8 + $0x2b8] sm:$0xff]  ;;  %1365 = vmatpush.msrb.mxu2 %v5338_v10  ;;  %1385 = vmatpush.msrb.mxu3 %v5342_v20  ;;  %v531_v18 = vadd.f32 %v5085_v26, %v5255_v48 }
 0x120   :  { %7930 = vst [vmem:[#allocation90_spill] sm:$0xff] %v5338_v10  ;;  %v4242_v27 = vpop.eup %4241  ;;  %v5344_v51 = vadd.f32 1.0, %v4240_v47  ;;  %4243 = vpow2.f32 %v4186_v52  ;;  %v5359_v47 = vperm.slane %v5063_v15, 2  ;;  %v721_v52 = vpop.f32.mrf.mxu2  ;;  %1326 = vmatpush.msrb.mxu0 %v5348_v2  ;;  %v5370_v10 = vld [vmem:[#allocation8 + $0x298] sm:$0xff]  ;;  %v5375_v48 = vld [vmem:[#allocation8 + $0x260] sm:$0xff]  ;;  %v5377_v26 = vld [vmem:[#allocation8 + $0x268] sm:$0xff] }
 0x121   :  { %7931 = vst [vmem:[#allocation91_spill] sm:$0xff] %v5342_v20  ;;  %v5354_v16 = vadd.f32 1.0, %v4242_v27  ;;  %4245 = vpow2.f32 %v4187_v45  ;;  %v5366_v27 = vld [vmem:[#allocation8 + $0x280] sm:$0xff]  ;;  %v5368_v45 = vld [vmem:[#allocation8 + $0x288] sm:$0xff]  ;;  %1366 = vmatpush.msrb.mxu2 %v4893_v35  ;;  %1386 = vmatpush.msrb.mxu3 %v5352_v17  ;;  %v5383_v20 = vld [vmem:[#allocation8 + $0x278] sm:$0xff] }
 0x122   :  { %7932 = vst [vmem:[#allocation92_spill] sm:$0xff] %v5348_v2  ;;  %4247 = vrcp.f32 %v5344_v51  ;;  %1327 = vmatpush.msrb.mxu0 %v5366_v27  ;;  %1347 = vmatpush.msrb.mxu1 %v5368_v45  ;;  %vm757_vm3 = vweird.f32 %v5344_v51 }
 0x123   :  { %7933 = vst [vmem:[#allocation93_spill] sm:$0xff] %v5350_v13  ;;  %4249 = vrcp.f32 %v5354_v16  ;;  %v958_v15 = vpop.f32.mrf.mxu3  ;;  %v5381_v13 = vld [vmem:[#allocation8 + $0x270] sm:$0xff]  ;;  %1367 = vmatpush.msrb.mxu2 %v4896_v39  ;;  %1387 = vmatpush.msrb.mxu3 %v5370_v10  ;;  %vm776_vm2 = vweird.f32 %v5354_v16 }
 0x124   :  { %7934 = vst [vmem:[#allocation94_spill] sm:$0xff] %v5352_v17  ;;  %4251 = vpow2.f32 %v4188_v14  ;;  %v964_v2 = vadd.f32 %v958_v15, %v531_v18  ;;  %v470_v17 = vadd.f32 %v5359_v47, %v4956_v30  ;;  %1328 = vmatpush.msrb.mxu0 %v5375_v48  ;;  %1348 = vmatpush.msrb.mxu1 %v5377_v26  ;;  %v5391_v14 = vld [vmem:[#allocation8 + $0x258] sm:$0xff] }
 0x125   :  { %7935 = vst [vmem:[#allocation95_spill] sm:$0xff] %v5359_v47  ;;  %1368 = vmatpush.msrb.mxu2 %v5381_v13  ;;  %1388 = vmatpush.msrb.mxu3 %v5383_v20 }
 0x126   :  { %7936 = vst [vmem:[#allocation96_spill] sm:$0xff] %v5368_v45  ;;  %v4244_v35 = vpop.eup %4243  ;;  %v4189_v49 = vmul.f32 -1.442695, %v964_v2  ;;  %1329 = vmatpush.msrb.mxu0 %v4907_v33  ;;  %1349 = vmatpush.msrb.mxu1 %v4909_v34  ;;  %v530_v33 = vadd.f32 %v5082_v25, %v5288_v19  ;;  %v780_v25 = vand.u32 2147483647, %v5354_v16 }
 0x127   :  { %7937 = vst [vmem:[#allocation97_spill] sm:$0xff] %v5370_v10  ;;  %v4246_v18 = vpop.eup %4245  ;;  %v5393_v15 = vadd.f32 1.0, %v4244_v35  ;;  %v746_v10 = vadd.f32 %v721_v52, %v470_v17  ;;  %1369 = vmatpush.msrb.mxu2 %v4911_v41  ;;  %1389 = vmatpush.msrb.mxu3 %v5391_v14  ;;  %v782_v52 = vand.u32 2147483648, %v5354_v16 }
 0x128   :  { %7938 = vst [vmem:[#allocation98_spill] sm:$0xff] %v5381_v13  ;;  %v4248_v39 = vpop.eup %4247  ;;  %v5397_v45 = vadd.f32 1.0, %v4246_v18  ;;  %4253 = vpow2.f32 %v4189_v49  ;;  %1330 = vmatpush.msrb.mxu0 %v4913_v42  ;;  %1350 = vmatpush.msrb.mxu1 %v4915_v36  ;;  %v761_v49 = vand.u32 2147483647, %v5344_v51  ;;  %v763_v18 = vand.u32 2147483648, %v5344_v51  ;;  %v938_v42 = vpop.f32.mrf.mxu2 }
 0x129   :  { %7939 = vst [vmem:[#allocation99_spill] sm:$0xff] %v5383_v20  ;;  %v4250_v30 = vpop.eup %4249  ;;  %v753_v2 = vmul.f32 %v4248_v39, %v5344_v51  ;;  %4255 = vrcp.f32 %v5393_v15  ;;  %1370 = vmatpush.msrb.mxu2 %v4924_v43  ;;  %1390 = vmatpush.msrb.mxu3 %v4922_v60  ;;  %vm758_vm1 = vweird.f32 %v4248_v39  ;;  %v7941_v60 = vld [vmem:[#allocation19_spill] sm:$0xff]  ;;  %vm781_vm8 = vcmp.eq.f32.partialorder %v780_v25, 8.507059e+37 }
 0x12a   :  { %7940 = vst [vmem:[#allocation100_spill] sm:$0xff] %v5391_v14  ;;  %v4252_v35 = vpop.eup %4251  ;;  %v772_v20 = vmul.f32 %v4250_v30, %v5354_v16  ;;  %4257 = vrcp.f32 %v5397_v45  ;;  %1331 = vmatpush.msrb.mxu0 %v4930_v37  ;;  %1351 = vmatpush.msrb.mxu1 %v4932_v32  ;;  %vm777_vm4 = vweird.f32 %v4250_v30  ;;  %vm762_vm5 = vcmp.eq.f32.partialorder %v761_v49, 8.507059e+37  ;;  %vm759_vm6 = vmor %vm757_vm3, %vm758_vm1 }
 0x12b   :  { %v754_v34 = vsub.f32 1.0, %v753_v2  ;;  %v5412_v17 = vadd.f32 1.0, %v4252_v35  ;;  %4259 = vtanh.f32 %v746_v10  ;;  %1371 = vmatpush.msrb.mxu2 %v4940_v50  ;;  %1391 = vmatpush.msrb.mxu3 %v7941_v60  ;;  %v783_v35 = vor.u32 1.1754944e-38, %v782_v52  ;;  %vm778_vm7 = vmor %vm776_vm2, %vm777_vm4 }
 0x12c   :  { %v773_v41 = vsub.f32 1.0, %v772_v20  ;;  %v963_v20 = vadd.f32 %v938_v42, %v530_v33  ;;  %v764_v50 = vor.u32 1.1754944e-38, %v763_v18  ;;  %v802_v25 = vand.u32 2147483648, %v5393_v15 }
 0x12d   :  { %v755_v36 = vmul.f32 %v4248_v39, %v754_v34  ;;  %4261 = vrcp.f32 %v5412_v17  ;;  %vm974_vm9 = vweird.f32 %v5397_v45  ;;  %vm796_vm14 = vweird.f32 %v5393_v15 }
 0x12e   :  { %v4254_v43 = vpop.eup %4253  ;;  %v774_v19 = vmul.f32 %v4250_v30, %v773_v41  ;;  %vm993_vm1 = vweird.f32 %v5412_v17 }
 0x12f   :  { %v5426_v37 = vpop.eup %4255  ;;  %v756_v32 = vadd.f32 %v4248_v39, %v755_v36  ;;  %v5428_v10 = vadd.f32 1.0, %v4254_v43  ;;  %v980_v36 = vand.u32 2147483648, %v5397_v45 }
 0x130   :  { %v4258_v2 = vpop.eup %4257  ;;  %v775_v34 = vadd.f32 %v4250_v30, %v774_v19  ;;  %v792_v41 = vmul.f32 %v5426_v37, %v5393_v15  ;;  %vm797_vm11 = vweird.f32 %v5426_v37 }
 0x131   :  { %v760_v60 = vsel %vm759_vm6, %v4248_v39, %v756_v32  ;;  %v970_v51 = vmul.f32 %v4258_v2, %v5397_v45  ;;  %4263 = vrcp.f32 %v5428_v10  ;;  %v4260_v49 = vpop.eup %4259  ;;  %vm975_vm10 = vweird.f32 %v4258_v2  ;;  %vm5458_vm0 = vmor %vm796_vm14, %vm797_vm11 }
 0x132   :  { %v765_v33 = vsel %vm762_vm5, %v764_v50, %v760_v60  ;;  %v779_v42 = vsel %vm778_vm7, %v4250_v30, %v775_v34  ;;  %v793_v52 = vsub.f32 1.0, %v792_v41  ;;  %4265 = vtanh.f32 %v963_v20  ;;  %vm976_vm12 = vmor %vm974_vm9, %vm975_vm10 }
 0x133   :  { %v4262_v18 = vpop.eup %4261  ;;  %v784_v43 = vsel %vm781_vm8, %v783_v35, %v779_v42  ;;  %v807_v19 = vmul.f32 %v4260_v49, %v765_v33  ;;  %v971_v14 = vsub.f32 1.0, %v970_v51  ;;  %v978_v30 = vand.u32 2147483647, %v5397_v45 }
 0x134   :  { %v806_v39 = vmul.f32 0.0, %v784_v43  ;;  %v794_v16 = vmul.f32 %v5426_v37, %v793_v52  ;;  %v989_v32 = vmul.f32 %v4262_v18, %v5412_v17  ;;  %v999_v35 = vand.u32 2147483648, %v5412_v17 }
 0x135   :  { %v972_v13 = vmul.f32 %v4258_v2, %v971_v14  ;;  %v981_v41 = vor.u32 1.1754944e-38, %v980_v36  ;;  %v997_v51 = vand.u32 2147483647, %v5412_v17  ;;  %vm994_vm13 = vweird.f32 %v4262_v18  ;;  %v5556_v36 = vld [vmem:[#allocation8 + $0x140] sm:$0xff] }
 0x136   :  { %v5443_v50 = vadd.f32 %v807_v19, %v806_v39  ;;  %v990_v34 = vsub.f32 1.0, %v989_v32  ;;  %v795_v14 = vadd.f32 %v5426_v37, %v794_v16  ;;  %vm979_vm15 = vcmp.eq.f32.partialorder %v978_v30, 8.507059e+37  ;;  %vm995_vm2 = vmor %vm993_vm1, %vm994_vm13  ;;  %7950 = vst [vmem:[#allocation104_spill] sm:$0xff] %v5556_v36 }
 0x137   :  { %v5446_v20 = vpop.eup %4263  ;;  %v973_v60 = vadd.f32 %v4258_v2, %v972_v13  ;;  %v800_v13 = vand.u32 2147483647, %v5393_v15  ;;  %v1000_v16 = vor.u32 1.1754944e-38, %v999_v35  ;;  %v803_v32 = vor.u32 1.1754944e-38, %v802_v25  ;;  %v5471_v35 = vld [vmem:[#allocation8 + $0x1e0] sm:$0xff]  ;;  %v5481_v25 = vld [vmem:[#allocation8 + $0x1f8] sm:$0xff] }
 0x138   :  { %7942 = vst [vmem:[#allocation19_spill] sm:$0xff] %v5443_v50  ;;  %4267 = vtanh.f32 %v5443_v50  ;;  %v991_v49 = vmul.f32 %v4262_v18, %v990_v34  ;;  %v1009_v33 = vmul.f32 %v5446_v20, %v5428_v10  ;;  %v4266_v42 = vpop.eup %4265  ;;  %v799_v45 = vsel %vm5458_vm0, %v5426_v37, %v795_v14  ;;  %v5489_v14 = vld [vmem:[#allocation8 + $0x1c8] sm:$0xff] }
 0x139   :  { %v977_v52 = vsel %vm976_vm12, %v4258_v2, %v973_v60  ;;  %vm998_vm3 = vcmp.eq.f32.partialorder %v997_v51, 8.507059e+37  ;;  %vm801_vm4 = vcmp.eq.f32.partialorder %v800_v13, 8.507059e+37  ;;  %vm1014_vm5 = vweird.f32 %v5446_v20  ;;  %v5497_v13 = vld [vmem:[#allocation8 + $0x1d8] sm:$0xff] }
 0x13a   :  { %v1010_v43 = vsub.f32 1.0, %v1009_v33  ;;  %v982_v19 = vsel %vm979_vm15, %v981_v41, %v977_v52  ;;  %v992_v39 = vadd.f32 %v4262_v18, %v991_v49  ;;  %v804_v17 = vsel %vm801_vm4, %v803_v32, %v799_v45  ;;  %v5473_v49 = vld [vmem:[#allocation8 + $0x1e8] sm:$0xff]  ;;  %v5495_v52 = vld [vmem:[#allocation8 + $0x1d0] sm:$0xff]  ;;  %v5522_v32 = vld [vmem:[#allocation8 + $0x180] sm:$0xff] }
 0x13b   :  { %v1024_v30 = vmul.f32 %v4266_v42, %v982_v19  ;;  %v1019_v51 = vand.u32 2147483648, %v5428_v10  ;;  %vm1013_vm6 = vweird.f32 %v5428_v10  ;;  %v1017_v42 = vand.u32 2147483647, %v5428_v10  ;;  %v5509_v10 = vld [vmem:[#allocation8 + $0x1a8] sm:$0xff] }
 0x13c   :  { %v996_v2 = vsel %vm995_vm2, %v4262_v18, %v992_v39  ;;  %v1011_v15 = vmul.f32 %v5446_v20, %v1010_v43  ;;  %v5479_v18 = vld [vmem:[#allocation8 + $0x1f0] sm:$0xff]  ;;  %vm5501_vm7 = vmor %vm1013_vm6, %vm1014_vm5  ;;  %v5507_v43 = vld [vmem:[#allocation8 + $0x1a0] sm:$0xff] }
 0x13d   :  { %v1001_v34 = vsel %vm998_vm3, %v1000_v16, %v996_v2  ;;  %v5516_v39 = vld [vmem:[#allocation8 + $0x1b0] sm:$0xff]  ;;  %v5518_v16 = vld [vmem:[#allocation8 + $0x1b8] sm:$0xff]  ;;  %v1020_v45 = vor.u32 1.1754944e-38, %v1019_v51  ;;  %v5524_v2 = vld [vmem:[#allocation8 + $0x188] sm:$0xff]  ;;  %vm1018_vm8 = vcmp.eq.f32.partialorder %v1017_v42, 8.507059e+37 }
 0x13e   :  { %v4268_v60 = vpop.eup %4267  ;;  %v1023_v50 = vmul.f32 0.0, %v1001_v34  ;;  %v1012_v37 = vadd.f32 %v5446_v20, %v1011_v15  ;;  %v5546_v51 = vld [vmem:[#allocation8 + $0x170] sm:$0xff]  ;;  %v5548_v42 = vld [vmem:[#allocation8 + $0x178] sm:$0xff] }
 0x13f   :  { %v5467_v33 = vmul.f32 %v4268_v60, %v804_v17  ;;  %v5540_v17 = vld [vmem:[#allocation8 + $0x160] sm:$0xff]  ;;  %7949 = vst [vmem:[#allocation103_spill] sm:$0xff] %v5548_v42 }
 0x140   :  { %v5469_v41 = vadd.f32 %v1024_v30, %v1023_v50  ;;  %v5487_v50 = vld [vmem:[#allocation8 + $0x1c0] sm:$0xff]  ;;  %v1016_v19 = vsel %vm5501_vm7, %v5446_v20, %v1012_v37  ;;  %v5528_v20 = vld [vmem:[#allocation8 + $0x190] sm:$0xff]  ;;  %v5530_v30 = vld [vmem:[#allocation8 + $0x198] sm:$0xff] }
 0x141   :  { %7945 = vst [vmem:[#allocation101_spill] sm:$0xff] %v5467_v33  ;;  %1116 = vmatmul.f32.vlgmr.msra.gmra.mxu0 %v5467_v33  ;;  %1136 = vmatmul.f32.vlgmr.msra.gmra.mxu1 %v5467_v33  ;;  %v1021_v34 = vsel %vm1018_vm8, %v1020_v45, %v1016_v19  ;;  %v5542_v37 = vld [vmem:[#allocation8 + $0x168] sm:$0xff]  ;;  %v5560_v45 = vld [vmem:[#allocation8 + $0x150] sm:$0xff] }
 0x142   :  { %4269 = vtanh.f32 %v5469_v41  ;;  %1156 = vmatmul.f32.vlgmr.msra.gmra.mxu2 %v5467_v33  ;;  %1176 = vmatmul.f32.vlgmr.msra.gmra.mxu3 %v5467_v33  ;;  %v5558_v19 = vld [vmem:[#allocation8 + $0x148] sm:$0xff]  ;;  %7952 = vst [vmem:[#allocation106_spill] sm:$0xff] %v5560_v45 }
 0x143   :  { %1536 = vmatpush.msra.mxu0 %v5471_v35  ;;  %1556 = vmatpush.msra.mxu1 %v5473_v49  ;;  %7951 = vst [vmem:[#allocation105_spill] sm:$0xff] %v5558_v19  ;;  %v5570_v33 = vld [vmem:[#allocation8 + $0x128] sm:$0xff] }
 0x144   :  { %1576 = vmatpush.msra.mxu2 %v5479_v18  ;;  %1596 = vmatpush.msra.mxu3 %v5481_v25  ;;  %7955 = vst [vmem:[#allocation109_spill] sm:$0xff] %v5570_v33 }
 0x145   :  { %1537 = vmatpush.msra.mxu0 %v5487_v50  ;;  %1557 = vmatpush.msra.mxu1 %v5489_v14 }
 0x146   :  { %1577 = vmatpush.msra.mxu2 %v5495_v52  ;;  %1597 = vmatpush.msra.mxu3 %v5497_v13 }
 0x147   :  { %1538 = vmatpush.msra.mxu0 %v5507_v43  ;;  %1558 = vmatpush.msra.mxu1 %v5509_v10 }
 0x148   :  { %v4270_v15 = vpop.eup %4269  ;;  %1578 = vmatpush.msra.mxu2 %v5516_v39  ;;  %1598 = vmatpush.msra.mxu3 %v5518_v16 }
 0x149   :  { %v5534_v60 = vmul.f32 %v4270_v15, %v1021_v34  ;;  %1539 = vmatpush.msra.mxu0 %v5522_v32  ;;  %1559 = vmatpush.msra.mxu1 %v5524_v2  ;;  %v5564_v15 = vld [vmem:[#allocation8 + $0x158] sm:$0xff]  ;;  %v5568_v34 = vld [vmem:[#allocation8 + $0x120] sm:$0xff] }
 0x14a   :  { %1579 = vmatpush.msra.mxu2 %v5528_v20  ;;  %1599 = vmatpush.msra.mxu3 %v5530_v30  ;;  %7953 = vst [vmem:[#allocation107_spill] sm:$0xff] %v5564_v15 }
 0x14b   :  { %7948 = vst [vmem:[#allocation102_spill] sm:$0xff] %v5534_v60  ;;  %1332 = vmatmul.f32.vlgmr.msrb.gmra.mxu0 %v5534_v60  ;;  %1352 = vmatmul.f32.vlgmr.msrb.gmra.mxu1 %v5534_v60 }
 0x14c   :  { %1372 = vmatmul.f32.vlgmr.msrb.gmra.mxu2 %v5534_v60  ;;  %1392 = vmatmul.f32.vlgmr.msrb.gmra.mxu3 %v5534_v60  ;;  %7954 = vst [vmem:[#allocation108_spill] sm:$0xff] %v5568_v34  ;;  %v5572_v60 = vld [vmem:[#allocation8 + $0x130] sm:$0xff] }
 0x14d   :  { %1540 = vmatpush.msra.mxu0 %v5540_v17  ;;  %1560 = vmatpush.msra.mxu1 %v5542_v37  ;;  %7956 = vst [vmem:[#allocation110_spill] sm:$0xff] %v5572_v60 }
 0x14e   :  { %1580 = vmatpush.msra.mxu2 %v5546_v51  ;;  %1600 = vmatpush.msra.mxu3 %v5548_v42  ;;  %v5576_v42 = vld [vmem:[#allocation8 + $0x138] sm:$0xff] }
 0x14f   :  { %1541 = vmatpush.msra.mxu0 %v5556_v36  ;;  %1561 = vmatpush.msra.mxu1 %v5558_v19  ;;  %7957 = vst [vmem:[#allocation111_spill] sm:$0xff] %v5576_v42  ;;  %v5580_v19 = vld [vmem:[#allocation8 + $0x100] sm:$0xff]  ;;  %v5588_v36 = vld [vmem:[#allocation8 + $0x118] sm:$0xff] }
 0x150   :  { %1581 = vmatpush.msra.mxu2 %v5560_v45  ;;  %1601 = vmatpush.msra.mxu3 %v5564_v15  ;;  %7958 = vst [vmem:[#allocation112_spill] sm:$0xff] %v5580_v19  ;;  %v5582_v45 = vld [vmem:[#allocation8 + $0x108] sm:$0xff]  ;;  %v5584_v15 = vld [vmem:[#allocation8 + $0x110] sm:$0xff] }
 0x151   :  { %1542 = vmatpush.msra.mxu0 %v5568_v34  ;;  %1562 = vmatpush.msra.mxu1 %v5570_v33  ;;  %7959 = vst [vmem:[#allocation113_spill] sm:$0xff] %v5582_v45  ;;  %v5592_v33 = vld [vmem:[#allocation8 + $0xe0] sm:$0xff]  ;;  %v5600_v34 = vld [vmem:[#allocation8 + $0xf8] sm:$0xff] }
 0x152   :  { %1582 = vmatpush.msra.mxu2 %v5572_v60  ;;  %1602 = vmatpush.msra.mxu3 %v5576_v42  ;;  %7960 = vst [vmem:[#allocation114_spill] sm:$0xff] %v5584_v15  ;;  %v5594_v60 = vld [vmem:[#allocation8 + $0xe8] sm:$0xff]  ;;  %v5596_v42 = vld [vmem:[#allocation8 + $0xf0] sm:$0xff] }
 0x153   :  { %1543 = vmatpush.msra.mxu0 %v5580_v19  ;;  %1563 = vmatpush.msra.mxu1 %v5582_v45  ;;  %7961 = vst [vmem:[#allocation115_spill] sm:$0xff] %v5588_v36  ;;  %v5604_v45 = vld [vmem:[#allocation8 + $0xc0] sm:$0xff]  ;;  %v5612_v19 = vld [vmem:[#allocation8 + $0xd8] sm:$0xff] }
 0x154   :  { %1583 = vmatpush.msra.mxu2 %v5584_v15  ;;  %1603 = vmatpush.msra.mxu3 %v5588_v36  ;;  %7962 = vst [vmem:[#allocation116_spill] sm:$0xff] %v5592_v33  ;;  %v5606_v15 = vld [vmem:[#allocation8 + $0xc8] sm:$0xff]  ;;  %v5608_v36 = vld [vmem:[#allocation8 + $0xd0] sm:$0xff] }
 0x155   :  { %7963 = vst [vmem:[#allocation117_spill] sm:$0xff] %v5594_v60  ;;  %1544 = vmatpush.msra.mxu0 %v5592_v33  ;;  %1564 = vmatpush.msra.mxu1 %v5594_v60  ;;  %v5616_v60 = vld [vmem:[#allocation8 + $0xa0] sm:$0xff]  ;;  %v5624_v33 = vld [vmem:[#allocation8 + $0xb8] sm:$0xff] }
 0x156   :  { %7964 = vst [vmem:[#allocation118_spill] sm:$0xff] %v5596_v42  ;;  %1584 = vmatpush.msra.mxu2 %v5596_v42  ;;  %1604 = vmatpush.msra.mxu3 %v5600_v34  ;;  %v5618_v42 = vld [vmem:[#allocation8 + $0xa8] sm:$0xff] }
 0x157   :  { %7965 = vst [vmem:[#allocation119_spill] sm:$0xff] %v5600_v34  ;;  %1545 = vmatpush.msra.mxu0 %v5604_v45  ;;  %1565 = vmatpush.msra.mxu1 %v5606_v15  ;;  %v5620_v34 = vld [vmem:[#allocation8 + $0xb0] sm:$0xff] }
 0x158   :  { %7966 = vst [vmem:[#allocation120_spill] sm:$0xff] %v5604_v45  ;;  %1585 = vmatpush.msra.mxu2 %v5608_v36  ;;  %1605 = vmatpush.msra.mxu3 %v5612_v19  ;;  %v5636_v45 = vld [vmem:[#allocation8 + $0x98] sm:$0xff] }
 0x159   :  { %7967 = vst [vmem:[#allocation121_spill] sm:$0xff] %v5606_v15  ;;  %1546 = vmatpush.msra.mxu0 %v5616_v60  ;;  %1566 = vmatpush.msra.mxu1 %v5618_v42  ;;  %v5628_v15 = vld [vmem:[#allocation8 + $0x80] sm:$0xff] }
 0x15a   :  { %7968 = vst [vmem:[#allocation122_spill] sm:$0xff] %v5608_v36  ;;  %1586 = vmatpush.msra.mxu2 %v5620_v34  ;;  %1606 = vmatpush.msra.mxu3 %v5624_v33  ;;  %v5630_v36 = vld [vmem:[#allocation8 + $0x88] sm:$0xff] }
 0x15b   :  { %7969 = vst [vmem:[#allocation123_spill] sm:$0xff] %v5612_v19  ;;  %v5632_v19 = vld [vmem:[#allocation8 + $0x90] sm:$0xff]  ;;  %1547 = vmatpush.msra.mxu0 %v5628_v15  ;;  %1567 = vmatpush.msra.mxu1 %v5630_v36 }
 0x15c   :  { %7970 = vst [vmem:[#allocation124_spill] sm:$0xff] %v5616_v60  ;;  %1587 = vmatpush.msra.mxu2 %v5632_v19  ;;  %1607 = vmatpush.msra.mxu3 %v5636_v45  ;;  %v5648_v60 = vld [vmem:[#allocation8 + $0x78] sm:$0xff] }
 0x15d   :  { %7971 = vst [vmem:[#allocation125_spill] sm:$0xff] %v5618_v42  ;;  %v5640_v42 = vld [vmem:[#allocation8 + $0x60] sm:$0xff] }
 0x15e   :  { %7972 = vst [vmem:[#allocation126_spill] sm:$0xff] %v5620_v34  ;;  %v5642_v34 = vld [vmem:[#allocation8 + $0x68] sm:$0xff]  ;;  %1548 = vmatpush.msra.mxu0 %v5640_v42  ;;  %1608 = vmatpush.msra.mxu3 %v5648_v60 }
 0x15f   :  { %7973 = vst [vmem:[#allocation127_spill] sm:$0xff] %v5624_v33  ;;  %v5644_v33 = vld [vmem:[#allocation8 + $0x70] sm:$0xff]  ;;  %1568 = vmatpush.msra.mxu1 %v5642_v34 }
 0x160   :  { %1588 = vmatpush.msra.mxu2 %v5644_v33  ;;  %1549 = vmatpush.msra.mxu0 %v5159_v22  ;;  %v7982_v22 = vld [vmem:[#allocation76_spill] sm:$0xff] }
 0x161   :  { %1569 = vmatpush.msra.mxu1 %v5161_v56  ;;  %1609 = vmatpush.msra.mxu3 %v5167_v12  ;;  %v7983_v56 = vld [vmem:[#allocation77_spill] sm:$0xff] }
 0x162   :  { %1589 = vmatpush.msra.mxu2 %v5163_v24  ;;  %1550 = vmatpush.msra.mxu0 %v5171_v54  ;;  %v7984_v12 = vld [vmem:[#allocation21_spill] sm:$0xff]  ;;  %v7985_v54 = vld [vmem:[#allocation75_spill] sm:$0xff] }
 0x163   :  { %1570 = vmatpush.msra.mxu1 %v5173_v8  ;;  %1610 = vmatpush.msra.mxu3 %v5179_v29  ;;  %v7986_v8 = vld [vmem:[#allocation78_spill] sm:$0xff] }
 0x164   :  { %1590 = vmatpush.msra.mxu2 %v5175_v61  ;;  %1551 = vmatpush.msra.mxu0 %v5183_v7  ;;  %v7974_v7 = vld [vmem:[#allocation67_spill] sm:$0xff] }
 0x165   :  { %1571 = vmatpush.msra.mxu1 %v5185_v5  ;;  %1611 = vmatpush.msra.mxu3 %v5201_v0  ;;  %v7977_v0 = vld [vmem:[#allocation70_spill] sm:$0xff]  ;;  %v7987_v61 = vld [vmem:[#allocation79_spill] sm:$0xff] }
 0x166   :  { %1591 = vmatpush.msra.mxu2 %v5187_v4  ;;  %1752 = vmatpush.msrb.mxu0 %v5203_v3  ;;  %v476_v4 = vadd.f32 %v5222_v57, %v4962_v40  ;;  %v477_v3 = vadd.f32 %v5225_v1, %v4964_v38  ;;  %v7978_v40 = vld [vmem:[#allocation71_spill] sm:$0xff] }
 0x167   :  { %1772 = vmatpush.msrb.mxu1 %v5205_v63  ;;  %1812 = vmatpush.msrb.mxu3 %v5211_v28  ;;  %v7988_v28 = vld [vmem:[#allocation80_spill] sm:$0xff] }
 0x168   :  { %1792 = vmatpush.msrb.mxu2 %v5209_v6  ;;  %1753 = vmatpush.msrb.mxu0 %v5215_v62  ;;  %v7975_v62 = vld [vmem:[#allocation68_spill] sm:$0xff] }
 0x169   :  { %1773 = vmatpush.msrb.mxu1 %v5217_v23  ;;  %1813 = vmatpush.msrb.mxu3 %v5229_v9  ;;  %v7979_v9 = vld [vmem:[#allocation72_spill] sm:$0xff]  ;;  %v7981_v23 = vld [vmem:[#allocation74_spill] sm:$0xff] }
 0x16a   :  { %1793 = vmatpush.msrb.mxu2 %v5219_v59  ;;  %1754 = vmatpush.msrb.mxu0 %v5233_v58  ;;  %v7976_v59 = vld [vmem:[#allocation69_spill] sm:$0xff] }
 0x16b   :  { %1774 = vmatpush.msrb.mxu1 %v5235_v53  ;;  %1814 = vmatpush.msrb.mxu3 %v7975_v62  ;;  %v7980_v53 = vld [vmem:[#allocation73_spill] sm:$0xff] }
 0x16c   :  { %1794 = vmatpush.msrb.mxu2 %v7974_v7  ;;  %1755 = vmatpush.msrb.mxu0 %v7976_v59  ;;  %v7993_v7 = vld [vmem:[#allocation85_spill] sm:$0xff] }
 0x16d   :  { %1775 = vmatpush.msrb.mxu1 %v7977_v0  ;;  %1815 = vmatpush.msrb.mxu3 %v7978_v40  ;;  %v7994_v0 = vld [vmem:[#allocation63_spill] sm:$0xff] }
 0x16e   :  { %1795 = vmatpush.msrb.mxu2 %v5249_v11  ;;  %1756 = vmatpush.msrb.mxu0 %v7979_v9  ;;  %v479_v11 = vadd.f32 %v7985_v54, %v7984_v12  ;;  %v7996_v9 = vld [vmem:[#allocation86_spill] sm:$0xff] }
 0x16f   :  { %1776 = vmatpush.msrb.mxu1 %v7980_v53  ;;  %1816 = vmatpush.msrb.mxu3 %v7981_v23  ;;  %v7997_v53 = vld [vmem:[#allocation87_spill] sm:$0xff] }
 0x170   :  { %1796 = vmatpush.msrb.mxu2 %v5267_v55  ;;  %1757 = vmatpush.msrb.mxu0 %v7982_v22 }
 0x171   :  { %1777 = vmatpush.msrb.mxu1 %v7983_v56  ;;  %1817 = vmatpush.msrb.mxu3 %v7987_v61  ;;  %v7998_v56 = vld [vmem:[#allocation88_spill] sm:$0xff]  ;;  %v8000_v61 = vld [vmem:[#allocation90_spill] sm:$0xff] }
 0x172   :  { %1797 = vmatpush.msrb.mxu2 %v7986_v8  ;;  %1758 = vmatpush.msrb.mxu0 %v7988_v28  ;;  %v5714_v8 = vld [vmem:[#allocation8 + $0x2b0] sm:$0xff]  ;;  %v8002_v28 = vld [vmem:[#allocation92_spill] sm:$0xff] }
 0x1be   :  { %v1117_v63 = vpop.f32.mrf.mxu0  ;;  %v1137_v5 = vpop.f32.mrf.mxu1 }
 0x1bf   :  { %v1180_v24 = vadd.f32 %v1117_v63, %v476_v4  ;;  %v1181_v29 = vadd.f32 %v1137_v5, %v477_v3  ;;  %v7989_v4 = vld [vmem:[#allocation81_spill] sm:$0xff]  ;;  %v7990_v3 = vld [vmem:[#allocation82_spill] sm:$0xff]  ;;  %v7991_v63 = vld [vmem:[#allocation83_spill] sm:$0xff] }
 0x1c0   :  { %1778 = vmatpush.msrb.mxu1 %v7989_v4  ;;  %1798 = vmatpush.msrb.mxu2 %v7990_v3  ;;  %v7992_v5 = vld [vmem:[#allocation84_spill] sm:$0xff]  ;;  %v5722_v4 = vld [vmem:[#allocation8 + $0x290] sm:$0xff] }
 0x1c1   :  { %v4190_v38 = vmul.f32 -1.442695, %v1180_v24  ;;  %v4191_v58 = vmul.f32 -1.442695, %v1181_v29  ;;  %1818 = vmatpush.msrb.mxu3 %v7991_v63  ;;  %1759 = vmatpush.msrb.mxu0 %v7992_v5  ;;  %v8005_v3 = vld [vmem:[#allocation20_spill] sm:$0xff] }
 0x1c2   :  { %1779 = vmatpush.msrb.mxu1 %v7993_v7  ;;  %1799 = vmatpush.msrb.mxu2 %v5310_v46  ;;  %v478_v63 = vadd.f32 %v5359_v47, %v8005_v3  ;;  %v8006_v7 = vld [vmem:[#allocation96_spill] sm:$0xff] }
 0x1c3   :  { %4271 = vpow2.f32 %v4190_v38  ;;  %1819 = vmatpush.msrb.mxu3 %v5318_v44  ;;  %v7995_v38 = vld [vmem:[#allocation64_spill] sm:$0xff]  ;;  %1760 = vmatpush.msrb.mxu0 %v7996_v9 }
 0x1c4   :  { %4273 = vpow2.f32 %v4191_v58  ;;  %1780 = vmatpush.msrb.mxu1 %v7997_v53  ;;  %1800 = vmatpush.msrb.mxu2 %v7998_v56  ;;  %v8013_v56 = vld [vmem:[#allocation99_spill] sm:$0xff] }
 0x1c5   :  { %v1177_v6 = vpop.f32.mrf.mxu3  ;;  %1820 = vmatpush.msrb.mxu3 %v5330_v21  ;;  %1761 = vmatpush.msrb.mxu0 %v5334_v31  ;;  %v8003_v21 = vld [vmem:[#allocation93_spill] sm:$0xff]  ;;  %v8004_v31 = vld [vmem:[#allocation94_spill] sm:$0xff] }
 0x1c6   :  { %v1183_v55 = vadd.f32 %v1177_v6, %v479_v11  ;;  %v7999_v11 = vld [vmem:[#allocation89_spill] sm:$0xff]  ;;  %1801 = vmatpush.msrb.mxu2 %v8000_v61  ;;  %v8001_v6 = vld [vmem:[#allocation91_spill] sm:$0xff] }
 0x1c7   :  { %1781 = vmatpush.msrb.mxu1 %v7999_v11  ;;  %1821 = vmatpush.msrb.mxu3 %v8001_v6  ;;  %v5760_v61 = vld [vmem:[#allocation8 + $0x238] sm:$0xff] }
 0x1c8   :  { %v4192_v62 = vmul.f32 -1.442695, %v1183_v55  ;;  %v1333_v24 = vpop.f32.mrf.mxu0  ;;  %v1353_v29 = vpop.f32.mrf.mxu1  ;;  %1762 = vmatpush.msrb.mxu0 %v8002_v28  ;;  %1802 = vmatpush.msrb.mxu2 %v5714_v8  ;;  %8017 = vst [vmem:[#allocation73_spill] sm:$0xff] %v5760_v61 }
 0x1c9   :  { %v4272_v59 = vpop.eup %4271  ;;  %v1396_v40 = vadd.f32 %v1333_v24, %v7994_v0  ;;  %v1397_v58 = vadd.f32 %v1353_v29, %v7995_v38  ;;  %1782 = vmatpush.msrb.mxu1 %v8003_v21  ;;  %v1157_v55 = vpop.f32.mrf.mxu2  ;;  %1822 = vmatpush.msrb.mxu3 %v8004_v31  ;;  %v8007_v24 = vld [vmem:[#allocation66_spill] sm:$0xff]  ;;  %v5733_v0 = vld [vmem:[#allocation8 + $0x240] sm:$0xff]  ;;  %v5768_v31 = vld [vmem:[#allocation8 + $0x208] sm:$0xff] }
 0x1ca   :  { %v4274_v23 = vpop.eup %4273  ;;  %v5706_v22 = vadd.f32 1.0, %v4272_v59  ;;  %4275 = vpow2.f32 %v4192_v62  ;;  %1763 = vmatpush.msrb.mxu0 %v5366_v27  ;;  %1803 = vmatpush.msrb.mxu2 %v5722_v4  ;;  %v8008_v59 = vld [vmem:[#allocation97_spill] sm:$0xff]  ;;  %8009 = vst [vmem:[#allocation67_spill] sm:$0xff] %v5733_v0  ;;  %v1182_v38 = vadd.f32 %v1157_v55, %v478_v63  ;;  %v5741_v27 = vld [vmem:[#allocation8 + $0x250] sm:$0xff]  ;;  %v8018_v21 = vld [vmem:[#allocation100_spill] sm:$0xff] }
 0x1cb   :  { %v5710_v46 = vadd.f32 1.0, %v4274_v23  ;;  %v4193_v44 = vmul.f32 -1.442695, %v1396_v40  ;;  %v4194_v12 = vmul.f32 -1.442695, %v1397_v58  ;;  %1783 = vmatpush.msrb.mxu1 %v8006_v7  ;;  %1823 = vmatpush.msrb.mxu3 %v8008_v59  ;;  %v5735_v40 = vld [vmem:[#allocation8 + $0x248] sm:$0xff] }
 0x1cc   :  { %4277 = vrcp.f32 %v5706_v22  ;;  %8010 = vst [vmem:[#allocation68_spill] sm:$0xff] %v5735_v40  ;;  %1764 = vmatpush.msrb.mxu0 %v5375_v48  ;;  %v8012_v23 = vld [vmem:[#allocation98_spill] sm:$0xff]  ;;  %v5766_v55 = vld [vmem:[#allocation8 + $0x200] sm:$0xff]  ;;  %v1199_v59 = vand.u32 2147483648, %v5706_v22  ;;  %vm1193_vm12 = vweird.f32 %v5706_v22 }
 0x1cd   :  { %4279 = vrcp.f32 %v5710_v46  ;;  %1784 = vmatpush.msrb.mxu1 %v5377_v26  ;;  %8011 = vst [vmem:[#allocation69_spill] sm:$0xff] %v5741_v27  ;;  %1804 = vmatpush.msrb.mxu2 %v8012_v23  ;;  %v5758_v26 = vld [vmem:[#allocation8 + $0x230] sm:$0xff]  ;;  %vm1212_vm11 = vweird.f32 %v5710_v46 }
 0x1ce   :  { %4281 = vpow2.f32 %v4193_v44  ;;  %1824 = vmatpush.msrb.mxu3 %v8013_v56  ;;  %v5747_v44 = vld [vmem:[#allocation8 + $0x220] sm:$0xff]  ;;  %1765 = vmatpush.msrb.mxu0 %v5733_v0  ;;  %8016 = vst [vmem:[#allocation72_spill] sm:$0xff] %v5758_v26  ;;  %v5774_v7 = vld [vmem:[#allocation8 + $0x210] sm:$0xff] }
 0x1cf   :  { %4283 = vpow2.f32 %v4194_v12  ;;  %v1393_v5 = vpop.f32.mrf.mxu3  ;;  %8014 = vst [vmem:[#allocation70_spill] sm:$0xff] %v5747_v44  ;;  %v5749_v12 = vld [vmem:[#allocation8 + $0x228] sm:$0xff]  ;;  %1785 = vmatpush.msrb.mxu1 %v5735_v40  ;;  %1805 = vmatpush.msrb.mxu2 %v5741_v27  ;;  %v8024_v27 = vld [vmem:[#allocation19_spill] sm:$0xff] }
 0x1d0   :  { %v4276_v62 = vpop.eup %4275  ;;  %v1399_v29 = vadd.f32 %v1393_v5, %v8007_v24  ;;  %8015 = vst [vmem:[#allocation71_spill] sm:$0xff] %v5749_v12  ;;  %1825 = vmatpush.msrb.mxu3 %v8018_v21  ;;  %1766 = vmatpush.msrb.mxu0 %v5747_v44 }
 0x1d1   :  { %v5737_v58 = vadd.f32 1.0, %v4276_v62  ;;  %8019 = vst [vmem:[#allocation74_spill] sm:$0xff] %v5766_v55  ;;  %1786 = vmatpush.msrb.mxu1 %v5749_v12  ;;  %v5776_v62 = vld [vmem:[#allocation8 + $0x218] sm:$0xff]  ;;  %1806 = vmatpush.msrb.mxu2 %v5758_v26 }
 0x1d2   :  { %v5743_v9 = vpop.eup %4277  ;;  %v4195_v53 = vmul.f32 -1.442695, %v1399_v29  ;;  %8020 = vst [vmem:[#allocation76_spill] sm:$0xff] %v5768_v31  ;;  %v1197_v29 = vand.u32 2147483647, %v5706_v22  ;;  %1826 = vmatpush.msrb.mxu3 %v5760_v61  ;;  %1767 = vmatpush.msrb.mxu0 %v5766_v55 }
 0x1d3   :  { %v5751_v11 = vpop.eup %4279  ;;  %v1189_v48 = vmul.f32 %v5743_v9, %v5706_v22  ;;  %4285 = vrcp.f32 %v5737_v58  ;;  %8021 = vst [vmem:[#allocation77_spill] sm:$0xff] %v5774_v7  ;;  %vm1194_vm9 = vweird.f32 %v5743_v9  ;;  %1787 = vmatpush.msrb.mxu1 %v5768_v31  ;;  %1807 = vmatpush.msrb.mxu2 %v5774_v7  ;;  %v8023_v31 = vld [vmem:[#allocation65_spill] sm:$0xff]  ;;  %vm1232_vm1 = vweird.f32 %v5737_v58 }
 0x1d4   :  { %v4282_v6 = vpop.eup %4281  ;;  %v1208_v28 = vmul.f32 %v5751_v11, %v5710_v46  ;;  %4287 = vpow2.f32 %v4195_v53  ;;  %8022 = vst [vmem:[#allocation21_spill] sm:$0xff] %v5776_v62  ;;  %vm1213_vm10 = vweird.f32 %v5751_v11  ;;  %1827 = vmatpush.msrb.mxu3 %v5776_v62  ;;  %vm1195_vm13 = vmor %vm1193_vm12, %vm1194_vm9  ;;  %vm1198_vm14 = vcmp.eq.f32.partialorder %v1197_v29, 8.507059e+37 }
 0x1d5   :  { %v4284_v3 = vpop.eup %4283  ;;  %v1190_v63 = vsub.f32 1.0, %v1189_v48  ;;  %4289 = vtanh.f32 %v1182_v38  ;;  %v5770_v5 = vadd.f32 1.0, %v4282_v6  ;;  %v1218_v38 = vand.u32 2147483648, %v5710_v46  ;;  %v1373_v6 = vpop.f32.mrf.mxu2  ;;  %vm1214_vm15 = vmor %vm1212_vm11, %vm1213_vm10 }
 0x1d6   :  { %v1209_v24 = vsub.f32 1.0, %v1208_v28  ;;  %v5780_v53 = vadd.f32 1.0, %v4284_v3  ;;  %v1216_v48 = vand.u32 2147483647, %v5710_v46  ;;  %v1398_v22 = vadd.f32 %v1373_v6, %v8023_v31 }
 0x1d7   :  { %v1191_v23 = vmul.f32 %v5743_v9, %v1190_v63  ;;  %4291 = vrcp.f32 %v5770_v5  ;;  %v1200_v63 = vor.u32 1.1754944e-38, %v1199_v59  ;;  %v1219_v46 = vor.u32 1.1754944e-38, %v1218_v38 }
 0x1d8   :  { %v1210_v56 = vmul.f32 %v5751_v11, %v1209_v24  ;;  %4293 = vrcp.f32 %v5780_v53  ;;  %vm1217_vm0 = vcmp.eq.f32.partialorder %v1216_v48, 8.507059e+37  ;;  %v1434_v6 = vand.u32 2147483648, %v5780_v53 }
 0x1d9   :  { %v5796_v28 = vpop.eup %4285  ;;  %v1192_v21 = vadd.f32 %v5743_v9, %v1191_v23  ;;  %vm1409_vm6 = vweird.f32 %v5770_v5  ;;  %vm1428_vm7 = vweird.f32 %v5780_v53 }
 0x1da   :  { %v4288_v3 = vpop.eup %4287  ;;  %v1211_v24 = vadd.f32 %v5751_v11, %v1210_v56  ;;  %v1228_v7 = vmul.f32 %v5796_v28, %v5737_v58  ;;  %vm1233_vm2 = vweird.f32 %v5796_v28 }
 0x1db   :  { %v4290_v62 = vpop.eup %4289  ;;  %v1196_v23 = vsel %vm1195_vm13, %v5743_v9, %v1192_v21  ;;  %v5810_v55 = vadd.f32 1.0, %v4288_v3  ;;  %v1432_v3 = vand.u32 2147483647, %v5780_v53  ;;  %vm5832_vm5 = vmor %vm1232_vm1, %vm1233_vm2 }
 0x1dc   :  { %v1201_v61 = vsel %vm1198_vm14, %v1200_v63, %v1196_v23  ;;  %v1215_v29 = vsel %vm1214_vm15, %v5751_v11, %v1211_v24  ;;  %v1229_v59 = vsub.f32 1.0, %v1228_v7  ;;  %v1238_v7 = vand.u32 2147483648, %v5737_v58 }
 0x1dd   :  { %v4292_v56 = vpop.eup %4291  ;;  %v1220_v26 = vsel %vm1217_vm0, %v1219_v46, %v1215_v29  ;;  %v1243_v12 = vmul.f32 %v4290_v62, %v1201_v61  ;;  %4295 = vrcp.f32 %v5810_v55  ;;  %v1413_v61 = vand.u32 2147483647, %v5770_v5 }
 0x1de   :  { %v4294_v44 = vpop.eup %4293  ;;  %v1242_v40 = vmul.f32 %v1220_v26, %v8024_v27  ;;  %v1230_v38 = vmul.f32 %v5796_v28, %v1229_v59  ;;  %v1405_v9 = vmul.f32 %v4292_v56, %v5770_v5  ;;  %4297 = vtanh.f32 %v1398_v22 }
 0x1df   :  { %v1424_v31 = vmul.f32 %v4294_v44, %v5780_v53  ;;  %v1415_v27 = vand.u32 2147483648, %v5770_v5  ;;  %vm1410_vm3 = vweird.f32 %v4292_v56  ;;  %vm1429_vm4 = vweird.f32 %v4294_v44 }
 0x1e0   :  { %v5819_v11 = vadd.f32 %v1243_v12, %v1242_v40  ;;  %v1406_v48 = vsub.f32 1.0, %v1405_v9  ;;  %v1231_v26 = vadd.f32 %v5796_v28, %v1230_v38  ;;  %v1236_v63 = vand.u32 2147483647, %v5737_v58  ;;  %vm1411_vm8 = vmor %vm1409_vm6, %vm1410_vm3 }
 0x1e1   :  { %v1425_v62 = vsub.f32 1.0, %v1424_v31  ;;  %v1239_v46 = vor.u32 1.1754944e-38, %v1238_v7  ;;  %v1416_v59 = vor.u32 1.1754944e-38, %v1415_v27  ;;  %vm1430_vm9 = vmor %vm1428_vm7, %vm1429_vm4  ;;  %v1435_v9 = vor.u32 1.1754944e-38, %v1434_v6  ;;  %v8050_v6 = vld [vmem:[#allocation123_spill] sm:$0xff] }
 0x1e2   :  { %8025 = vst [vmem:[#allocation75_spill] sm:$0xff] %v5819_v11  ;;  %4299 = vtanh.f32 %v5819_v11  ;;  %v1407_v21 = vmul.f32 %v4292_v56, %v1406_v48  ;;  %v1235_v58 = vsel %vm5832_vm5, %v5796_v28, %v1231_v26  ;;  %vm1414_vm10 = vcmp.eq.f32.partialorder %v1413_v61, 8.507059e+37  ;;  %v8048_v61 = vld [vmem:[#allocation121_spill] sm:$0xff]  ;;  %v8049_v26 = vld [vmem:[#allocation122_spill] sm:$0xff] }
 0x1e3   :  { %v4296_v40 = vpop.eup %4295  ;;  %v1426_v12 = vmul.f32 %v4294_v44, %v1425_v62  ;;  %vm1433_vm11 = vcmp.eq.f32.partialorder %v1432_v3, 8.507059e+37  ;;  %vm1237_vm12 = vcmp.eq.f32.partialorder %v1236_v63, 8.507059e+37  ;;  %v1454_v28 = vand.u32 2147483648, %v5810_v55  ;;  %v8052_v3 = vld [vmem:[#allocation125_spill] sm:$0xff]  ;;  %v8053_v63 = vld [vmem:[#allocation126_spill] sm:$0xff] }
 0x1e4   :  { %v1408_v23 = vadd.f32 %v4292_v56, %v1407_v21  ;;  %v1444_v22 = vmul.f32 %v4296_v40, %v5810_v55  ;;  %v4298_v29 = vpop.eup %4297  ;;  %v1240_v0 = vsel %vm1237_vm12, %v1239_v46, %v1235_v58  ;;  %vm1449_vm13 = vweird.f32 %v4296_v40  ;;  %v8054_v46 = vld [vmem:[#allocation127_spill] sm:$0xff]  ;;  %v5949_v58 = vld [vmem:[#allocation8 + $0x3e8] sm:$0xff] }
 0x1e5   :  { %v1427_v38 = vadd.f32 %v4294_v44, %v1426_v12  ;;  %vm1448_vm14 = vweird.f32 %v5810_v55 }
 0x1e6   :  { %v1412_v31 = vsel %vm1411_vm8, %v4292_v56, %v1408_v23  ;;  %v1445_v7 = vsub.f32 1.0, %v1444_v22  ;;  %vm1450_vm15 = vmor %vm1448_vm14, %vm1449_vm13  ;;  %v8046_v56 = vld [vmem:[#allocation119_spill] sm:$0xff]  ;;  %v5913_v23 = vld [vmem:[#allocation8 + $0x40] sm:$0xff] }
 0x1e7   :  { %v1417_v48 = vsel %vm1414_vm10, %v1416_v59, %v1412_v31  ;;  %v1431_v62 = vsel %vm1430_vm9, %v4294_v44, %v1427_v38  ;;  %v5915_v22 = vld [vmem:[#allocation8 + $0x48] sm:$0xff]  ;;  %v5945_v59 = vld [vmem:[#allocation8 + $0x18] sm:$0xff]  ;;  %v5947_v38 = vld [vmem:[#allocation8 + $0x3e0] sm:$0xff] }
 0x1e8   :  { %v4300_v5 = vpop.eup %4299  ;;  %v1436_v21 = vsel %vm1433_vm11, %v1435_v9, %v1431_v62  ;;  %v1459_v11 = vmul.f32 %v4298_v29, %v1417_v48  ;;  %v1446_v53 = vmul.f32 %v4296_v40, %v1445_v7  ;;  %v5917_v29 = vld [vmem:[#allocation8 + $0x50] sm:$0xff]  ;;  %v5955_v31 = vld [vmem:[#allocation8 + $0x3f8] sm:$0xff] }
 0x1e9   :  { %v1458_v27 = vmul.f32 %v1436_v21, %v5469_v41  ;;  %v5843_v12 = vmul.f32 %v4300_v5, %v1240_v0  ;;  %v1452_v41 = vand.u32 2147483647, %v5810_v55  ;;  %v8045_v55 = vld [vmem:[#allocation118_spill] sm:$0xff]  ;;  %v8056_v62 = vld [vmem:[#allocation23_spill] sm:$0xff]  ;;  %v5963_v21 = vld [vmem:[#allocation8 + $0x3c0] sm:$0xff] }
 0x1ea   :  { %v1447_v44 = vadd.f32 %v4296_v40, %v1446_v53  ;;  %v5953_v9 = vld [vmem:[#allocation8 + $0x3f0] sm:$0xff]  ;;  %v485_v5 = vadd.f32 %v5225_v1, %v8056_v62  ;;  %v5965_v53 = vld [vmem:[#allocation8 + $0x3c8] sm:$0xff] }
 0x1eb   :  { %8028 = vst [vmem:[#allocation78_spill] sm:$0xff] %v5843_v12  ;;  %v5845_v24 = vadd.f32 %v1459_v11, %v1458_v27  ;;  %1552 = vmatmul.f32.vlgmr.msra.gmra.mxu0 %v5843_v12  ;;  %1572 = vmatmul.f32.vlgmr.msra.gmra.mxu1 %v5843_v12  ;;  %vm1453_vm0 = vcmp.eq.f32.partialorder %v1452_v41, 8.507059e+37  ;;  %v8047_v11 = vld [vmem:[#allocation120_spill] sm:$0xff]  ;;  %v8055_v7 = vld [vmem:[#allocation22_spill] sm:$0xff]  ;;  %v5971_v41 = vld [vmem:[#allocation8 + $0x3d8] sm:$0xff] }
 0x1ec   :  { %1592 = vmatmul.f32.vlgmr.msra.gmra.mxu2 %v5843_v12  ;;  %1612 = vmatmul.f32.vlgmr.msra.gmra.mxu3 %v5843_v12  ;;  %v1451_v0 = vsel %vm1450_vm15, %v4296_v40, %v1447_v44  ;;  %v8051_v40 = vld [vmem:[#allocation124_spill] sm:$0xff]  ;;  %v484_v48 = vadd.f32 %v5222_v57, %v8055_v7  ;;  %v5967_v27 = vld [vmem:[#allocation8 + $0x3d0] sm:$0xff] }
 0x1ed   :  { %4301 = vtanh.f32 %v5845_v24  ;;  %1972 = vmatpush.msra.mxu0 %v5471_v35  ;;  %1992 = vmatpush.msra.mxu1 %v5473_v49  ;;  %v1455_v35 = vor.u32 1.1754944e-38, %v1454_v28  ;;  %v6055_v12 = vld [vmem:[#allocation8 + $0x2e0] sm:$0xff] }
 0x1ee   :  { %2012 = vmatpush.msra.mxu2 %v5479_v18  ;;  %2032 = vmatpush.msra.mxu3 %v5481_v25  ;;  %8071 = vst [vmem:[#allocation89_spill] sm:$0xff] %v6055_v12 }
 0x1ef   :  { %1973 = vmatpush.msra.mxu0 %v5487_v50  ;;  %1993 = vmatpush.msra.mxu1 %v5489_v14  ;;  %v1456_v18 = vsel %vm1453_vm0, %v1455_v35, %v1451_v0  ;;  %v8030_v50 = vld [vmem:[#allocation103_spill] sm:$0xff]  ;;  %v8031_v14 = vld [vmem:[#allocation104_spill] sm:$0xff] }
 0x1f0   :  { %2013 = vmatpush.msra.mxu2 %v5495_v52  ;;  %2033 = vmatpush.msra.mxu3 %v5497_v13  ;;  %v8032_v52 = vld [vmem:[#allocation105_spill] sm:$0xff]  ;;  %v8033_v13 = vld [vmem:[#allocation106_spill] sm:$0xff] }
 0x1f1   :  { %1974 = vmatpush.msra.mxu0 %v5507_v43  ;;  %1994 = vmatpush.msra.mxu1 %v5509_v10  ;;  %v8034_v43 = vld [vmem:[#allocation107_spill] sm:$0xff]  ;;  %v8035_v10 = vld [vmem:[#allocation108_spill] sm:$0xff] }
 0x1f2   :  { %2014 = vmatpush.msra.mxu2 %v5516_v39  ;;  %2034 = vmatpush.msra.mxu3 %v5518_v16  ;;  %v8036_v39 = vld [vmem:[#allocation109_spill] sm:$0xff]  ;;  %v8037_v16 = vld [vmem:[#allocation110_spill] sm:$0xff] }
 0x1f3   :  { %v4302_v49 = vpop.eup %4301  ;;  %1975 = vmatpush.msra.mxu0 %v5522_v32  ;;  %1995 = vmatpush.msra.mxu1 %v5524_v2  ;;  %v8038_v32 = vld [vmem:[#allocation111_spill] sm:$0xff]  ;;  %v8039_v2 = vld [vmem:[#allocation112_spill] sm:$0xff] }
 0x1f4   :  { %v5869_v25 = vmul.f32 %v4302_v49, %v1456_v18  ;;  %2015 = vmatpush.msra.mxu2 %v5528_v20  ;;  %2035 = vmatpush.msra.mxu3 %v5530_v30  ;;  %v8040_v20 = vld [vmem:[#allocation113_spill] sm:$0xff]  ;;  %v8041_v30 = vld [vmem:[#allocation114_spill] sm:$0xff]  ;;  %v5975_v49 = vld [vmem:[#allocation8 + $0x3a0] sm:$0xff] }
 0x1f5   :  { %1976 = vmatpush.msra.mxu0 %v5540_v17  ;;  %1996 = vmatpush.msra.mxu1 %v5542_v37  ;;  %v8042_v17 = vld [vmem:[#allocation115_spill] sm:$0xff]  ;;  %v8043_v37 = vld [vmem:[#allocation116_spill] sm:$0xff]  ;;  %v5977_v18 = vld [vmem:[#allocation8 + $0x3a8] sm:$0xff] }
 0x1f6   :  { %8029 = vst [vmem:[#allocation79_spill] sm:$0xff] %v5869_v25  ;;  %1768 = vmatmul.f32.vlgmr.msrb.gmra.mxu0 %v5869_v25  ;;  %1788 = vmatmul.f32.vlgmr.msrb.gmra.mxu1 %v5869_v25 }
 0x1f7   :  { %1808 = vmatmul.f32.vlgmr.msrb.gmra.mxu2 %v5869_v25  ;;  %1828 = vmatmul.f32.vlgmr.msrb.gmra.mxu3 %v5869_v25 }
 0x1f8   :  { %2016 = vmatpush.msra.mxu2 %v5546_v51  ;;  %2036 = vmatpush.msra.mxu3 %v8030_v50  ;;  %v8044_v51 = vld [vmem:[#allocation117_spill] sm:$0xff]  ;;  %v5979_v50 = vld [vmem:[#allocation8 + $0x3b0] sm:$0xff] }
 0x1f9   :  { %1977 = vmatpush.msra.mxu0 %v8031_v14  ;;  %1997 = vmatpush.msra.mxu1 %v8032_v52  ;;  %v5983_v14 = vld [vmem:[#allocation8 + $0x3b8] sm:$0xff] }
 0x1fa   :  { %2017 = vmatpush.msra.mxu2 %v8033_v13  ;;  %2037 = vmatpush.msra.mxu3 %v8034_v43  ;;  %v5987_v43 = vld [vmem:[#allocation8 + $0x380] sm:$0xff] }
 0x1fb   :  { %1978 = vmatpush.msra.mxu0 %v8035_v10  ;;  %1998 = vmatpush.msra.mxu1 %v8036_v39  ;;  %v5989_v10 = vld [vmem:[#allocation8 + $0x388] sm:$0xff]  ;;  %v5993_v39 = vld [vmem:[#allocation8 + $0x390] sm:$0xff] }
 0x1fc   :  { %2018 = vmatpush.msra.mxu2 %v8037_v16  ;;  %2038 = vmatpush.msra.mxu3 %v8038_v32  ;;  %v5995_v16 = vld [vmem:[#allocation8 + $0x398] sm:$0xff]  ;;  %v5999_v32 = vld [vmem:[#allocation8 + $0x360] sm:$0xff] }
 0x1fd   :  { %1979 = vmatpush.msra.mxu0 %v8039_v2  ;;  %1999 = vmatpush.msra.mxu1 %v8040_v20  ;;  %v6001_v2 = vld [vmem:[#allocation8 + $0x368] sm:$0xff]  ;;  %v6003_v20 = vld [vmem:[#allocation8 + $0x370] sm:$0xff] }
 0x1fe   :  { %2019 = vmatpush.msra.mxu2 %v8041_v30  ;;  %2039 = vmatpush.msra.mxu3 %v8042_v17  ;;  %v8057_v30 = vld [vmem:[#allocation25_spill] sm:$0xff] }
 0x1ff   :  { %1980 = vmatpush.msra.mxu0 %v8043_v37  ;;  %2000 = vmatpush.msra.mxu1 %v8044_v51  ;;  %v487_v17 = vadd.f32 %v7985_v54, %v8057_v30  ;;  %v6009_v37 = vld [vmem:[#allocation8 + $0x378] sm:$0xff]  ;;  %v8069_v30 = vld [vmem:[#allocation60_spill] sm:$0xff] }
 0x200   :  { %2020 = vmatpush.msra.mxu2 %v8045_v55  ;;  %2040 = vmatpush.msra.mxu3 %v8046_v56  ;;  %v6013_v55 = vld [vmem:[#allocation8 + $0x340] sm:$0xff]  ;;  %v6015_v56 = vld [vmem:[#allocation8 + $0x348] sm:$0xff] }
 0x201   :  { %1981 = vmatpush.msra.mxu0 %v8047_v11  ;;  %2001 = vmatpush.msra.mxu1 %v8048_v61  ;;  %8058 = vst [vmem:[#allocation80_spill] sm:$0xff] %v6015_v56  ;;  %v6017_v11 = vld [vmem:[#allocation8 + $0x350] sm:$0xff] }
 0x202   :  { %2021 = vmatpush.msra.mxu2 %v8049_v26  ;;  %2041 = vmatpush.msra.mxu3 %v8050_v6  ;;  %8059 = vst [vmem:[#allocation81_spill] sm:$0xff] %v6017_v11  ;;  %v6021_v26 = vld [vmem:[#allocation8 + $0x358] sm:$0xff]  ;;  %v6025_v6 = vld [vmem:[#allocation8 + $0x320] sm:$0xff] }
 0x203   :  { %1982 = vmatpush.msra.mxu0 %v8051_v40  ;;  %2002 = vmatpush.msra.mxu1 %v8052_v3  ;;  %8060 = vst [vmem:[#allocation82_spill] sm:$0xff] %v6021_v26  ;;  %v6027_v40 = vld [vmem:[#allocation8 + $0x328] sm:$0xff]  ;;  %v6029_v3 = vld [vmem:[#allocation8 + $0x330] sm:$0xff] }
 0x204   :  { %2022 = vmatpush.msra.mxu2 %v8053_v63  ;;  %2042 = vmatpush.msra.mxu3 %v8054_v46  ;;  %8061 = vst [vmem:[#allocation83_spill] sm:$0xff] %v6025_v6  ;;  %v6033_v46 = vld [vmem:[#allocation8 + $0x338] sm:$0xff] }
 0x205   :  { %1983 = vmatpush.msra.mxu0 %v5628_v15  ;;  %2003 = vmatpush.msra.mxu1 %v5630_v36  ;;  %v5921_v36 = vld [vmem:[#allocation8 + $0x58] sm:$0xff]  ;;  %v5939_v15 = vld [vmem:[#allocation8 + $0x8] sm:$0xff]  ;;  %8062 = vst [vmem:[#allocation84_spill] sm:$0xff] %v6027_v40 }
 0x206   :  { %2023 = vmatpush.msra.mxu2 %v5632_v19  ;;  %2043 = vmatpush.msra.mxu3 %v5636_v45  ;;  %v5933_v19 = vld [vmem:[#allocation8 + $0x38] sm:$0xff]  ;;  %v5937_v45 = vld [vmem:[#allocation8] sm:$0xff]  ;;  %8063 = vst [vmem:[#allocation85_spill] sm:$0xff] %v6029_v3 }
 0x207   :  { %1984 = vmatpush.msra.mxu0 %v5640_v42  ;;  %2004 = vmatpush.msra.mxu1 %v5642_v34  ;;  %v5925_v42 = vld [vmem:[#allocation8 + $0x20] sm:$0xff]  ;;  %v5941_v34 = vld [vmem:[#allocation8 + $0x10] sm:$0xff]  ;;  %8064 = vst [vmem:[#allocation63_spill] sm:$0xff] %v6033_v46 }
 0x208   :  { %2024 = vmatpush.msra.mxu2 %v5644_v33  ;;  %2044 = vmatpush.msra.mxu3 %v5648_v60  ;;  %v5927_v33 = vld [vmem:[#allocation8 + $0x28] sm:$0xff]  ;;  %v5929_v60 = vld [vmem:[#allocation8 + $0x30] sm:$0xff] }
 0x209   :  { %1985 = vmatpush.msra.mxu0 %v5913_v23  ;;  %2005 = vmatpush.msra.mxu1 %v5915_v22 }
 0x20a   :  { %2025 = vmatpush.msra.mxu2 %v5917_v29  ;;  %2045 = vmatpush.msra.mxu3 %v5921_v36 }
 0x20b   :  { %1986 = vmatpush.msra.mxu0 %v5925_v42  ;;  %2006 = vmatpush.msra.mxu1 %v5927_v33 }
 0x20c   :  { %2026 = vmatpush.msra.mxu2 %v5929_v60  ;;  %2046 = vmatpush.msra.mxu3 %v5933_v19 }
 0x20d   :  { %1987 = vmatpush.msra.mxu0 %v5937_v45  ;;  %2007 = vmatpush.msra.mxu1 %v5939_v15 }
 0x20e   :  { %2027 = vmatpush.msra.mxu2 %v5941_v34  ;;  %2047 = vmatpush.msra.mxu3 %v5945_v59 }
 0x20f   :  { %2188 = vmatpush.msrb.mxu0 %v5947_v38  ;;  %2208 = vmatpush.msrb.mxu1 %v5949_v58 }
 0x210   :  { %2228 = vmatpush.msrb.mxu2 %v5953_v9  ;;  %2248 = vmatpush.msrb.mxu3 %v5955_v31 }
 0x211   :  { %2189 = vmatpush.msrb.mxu0 %v5963_v21  ;;  %2209 = vmatpush.msrb.mxu1 %v5965_v53 }
 0x212   :  { %2229 = vmatpush.msrb.mxu2 %v5967_v27  ;;  %2249 = vmatpush.msrb.mxu3 %v5971_v41 }
 0x213   :  { %2190 = vmatpush.msrb.mxu0 %v5975_v49  ;;  %2210 = vmatpush.msrb.mxu1 %v5977_v18 }
 0x214   :  { %2230 = vmatpush.msrb.mxu2 %v5979_v50  ;;  %2250 = vmatpush.msrb.mxu3 %v5983_v14 }
 0x215   :  { %2191 = vmatpush.msrb.mxu0 %v5987_v43  ;;  %2211 = vmatpush.msrb.mxu1 %v5989_v10 }
 0x216   :  { %2231 = vmatpush.msrb.mxu2 %v5993_v39  ;;  %2251 = vmatpush.msrb.mxu3 %v5995_v16 }
 0x217   :  { %2192 = vmatpush.msrb.mxu0 %v5999_v32  ;;  %2212 = vmatpush.msrb.mxu1 %v6001_v2 }
 0x218   :  { %2232 = vmatpush.msrb.mxu2 %v6003_v20  ;;  %2252 = vmatpush.msrb.mxu3 %v6009_v37 }
 0x219   :  { %2193 = vmatpush.msrb.mxu0 %v6013_v55  ;;  %2213 = vmatpush.msrb.mxu1 %v6015_v56  ;;  %v8103_v56 = vld [vmem:[#allocation75_spill] sm:$0xff] }
 0x21a   :  { %2233 = vmatpush.msrb.mxu2 %v6017_v11  ;;  %2253 = vmatpush.msrb.mxu3 %v6021_v26 }
 0x21b   :  { %2194 = vmatpush.msrb.mxu0 %v6025_v6  ;;  %2214 = vmatpush.msrb.mxu1 %v6027_v40  ;;  %v8101_v6 = vld [vmem:[#allocation77_spill] sm:$0xff] }
 0x21c   :  { %2234 = vmatpush.msrb.mxu2 %v6029_v3  ;;  %2254 = vmatpush.msrb.mxu3 %v6033_v46 }
 0x268   :  { %v1553_v44 = vpop.f32.mrf.mxu0  ;;  %v1573_v28 = vpop.f32.mrf.mxu1 }
 0x269   :  { %v1616_v0 = vadd.f32 %v1553_v44, %v484_v48  ;;  %v1617_v35 = vadd.f32 %v1573_v28, %v485_v5  ;;  %v6037_v5 = vld [vmem:[#allocation8 + $0x300] sm:$0xff]  ;;  %v6039_v44 = vld [vmem:[#allocation8 + $0x308] sm:$0xff]  ;;  %v6041_v28 = vld [vmem:[#allocation8 + $0x310] sm:$0xff] }
 0x26a   :  { %8065 = vst [vmem:[#allocation64_spill] sm:$0xff] %v6037_v5  ;;  %2195 = vmatpush.msrb.mxu0 %v6037_v5  ;;  %2215 = vmatpush.msrb.mxu1 %v6039_v44  ;;  %v6085_v5 = vld [vmem:[#allocation8 + $0x2a8] sm:$0xff] }
 0x26b   :  { %v4196_v52 = vmul.f32 -1.442695, %v1616_v0  ;;  %v4197_v13 = vmul.f32 -1.442695, %v1617_v35  ;;  %8066 = vst [vmem:[#allocation86_spill] sm:$0xff] %v6039_v44  ;;  %2235 = vmatpush.msrb.mxu2 %v6041_v28 }
 0x26c   :  { %8067 = vst [vmem:[#allocation87_spill] sm:$0xff] %v6041_v28  ;;  %2196 = vmatpush.msrb.mxu0 %v6055_v12  ;;  %v6083_v12 = vld [vmem:[#allocation8 + $0x2a0] sm:$0xff] }
 0x26d   :  { %4303 = vpow2.f32 %v4196_v52  ;;  %v8068_v52 = vld [vmem:[#allocation59_spill] sm:$0xff]  ;;  %8080 = vst [vmem:[#allocation66_spill] sm:$0xff] %v6083_v12 }
 0x26e   :  { %4305 = vpow2.f32 %v4197_v13  ;;  %8081 = vst [vmem:[#allocation97_spill] sm:$0xff] %v6085_v5 }
 0x26f   :  { %v1613_v51 = vpop.f32.mrf.mxu3 }
 0x270   :  { %v1619_v61 = vadd.f32 %v1613_v51, %v487_v17  ;;  %v6049_v51 = vld [vmem:[#allocation8 + $0x318] sm:$0xff] }
 0x271   :  { %8070 = vst [vmem:[#allocation88_spill] sm:$0xff] %v6049_v51  ;;  %2255 = vmatpush.msrb.mxu3 %v6049_v51  ;;  %v8078_v51 = vld [vmem:[#allocation24_spill] sm:$0xff] }
 0x272   :  { %v4198_v63 = vmul.f32 -1.442695, %v1619_v61  ;;  %v486_v28 = vadd.f32 %v5359_v47, %v8078_v51  ;;  %v6091_v51 = vld [vmem:[#allocation8 + $0x280] sm:$0xff] }
 0x273   :  { %v4304_v7 = vpop.eup %4303  ;;  %v1769_v48 = vpop.f32.mrf.mxu0  ;;  %8083 = vst [vmem:[#allocation99_spill] sm:$0xff] %v6091_v51 }
 0x274   :  { %v1789_v62 = vpop.f32.mrf.mxu1  ;;  %v4306_v0 = vpop.eup %4305  ;;  %v6043_v35 = vadd.f32 1.0, %v4304_v7  ;;  %4307 = vpow2.f32 %v4198_v63  ;;  %v1832_v13 = vadd.f32 %v1769_v48, %v8068_v52  ;;  %v6057_v7 = vld [vmem:[#allocation8 + $0x2e8] sm:$0xff]  ;;  %v6059_v63 = vld [vmem:[#allocation8 + $0x2f0] sm:$0xff]  ;;  %v6064_v48 = vld [vmem:[#allocation8 + $0x2f8] sm:$0xff] }
 0x275   :  { %v1833_v17 = vadd.f32 %v1789_v62, %v8069_v30  ;;  %v6051_v61 = vadd.f32 1.0, %v4306_v0  ;;  %8072 = vst [vmem:[#allocation90_spill] sm:$0xff] %v6057_v7  ;;  %2216 = vmatpush.msrb.mxu1 %v6057_v7  ;;  %v6069_v62 = vld [vmem:[#allocation8 + $0x2c0] sm:$0xff]  ;;  %v6071_v0 = vld [vmem:[#allocation8 + $0x2c8] sm:$0xff]  ;;  %v6073_v52 = vld [vmem:[#allocation8 + $0x2d0] sm:$0xff]  ;;  %v1593_v30 = vpop.f32.mrf.mxu2  ;;  %2236 = vmatpush.msrb.mxu2 %v6059_v63 }
 0x276   :  { %8073 = vst [vmem:[#allocation91_spill] sm:$0xff] %v6059_v63  ;;  %4309 = vrcp.f32 %v6043_v35  ;;  %v4199_v25 = vmul.f32 -1.442695, %v1832_v13  ;;  %2256 = vmatpush.msrb.mxu3 %v6064_v48  ;;  %2197 = vmatpush.msrb.mxu0 %v6069_v62  ;;  %v6081_v7 = vld [vmem:[#allocation8 + $0x2d8] sm:$0xff]  ;;  %v8085_v63 = vld [vmem:[#allocation62_spill] sm:$0xff]  ;;  %v1635_v40 = vand.u32 2147483648, %v6043_v35  ;;  %vm1629_vm4 = vweird.f32 %v6043_v35 }
 0x277   :  { %8074 = vst [vmem:[#allocation92_spill] sm:$0xff] %v6064_v48  ;;  %4311 = vrcp.f32 %v6051_v61  ;;  %v4200_v44 = vmul.f32 -1.442695, %v1833_v17  ;;  %2217 = vmatpush.msrb.mxu1 %v6071_v0  ;;  %2237 = vmatpush.msrb.mxu2 %v6073_v52  ;;  %v6089_v17 = vld [vmem:[#allocation8 + $0x2b8] sm:$0xff]  ;;  %v1633_v3 = vand.u32 2147483647, %v6043_v35  ;;  %vm1648_vm3 = vweird.f32 %v6051_v61 }
 0x278   :  { %8075 = vst [vmem:[#allocation93_spill] sm:$0xff] %v6069_v62  ;;  %4313 = vpow2.f32 %v4199_v25  ;;  %2257 = vmatpush.msrb.mxu3 %v6081_v7  ;;  %v6093_v62 = vld [vmem:[#allocation8 + $0x288] sm:$0xff]  ;;  %2198 = vmatpush.msrb.mxu0 %v6083_v12  ;;  %v6100_v25 = vld [vmem:[#allocation8 + $0x298] sm:$0xff]  ;;  %v1654_v12 = vand.u32 2147483648, %v6051_v61 }
 0x279   :  { %8076 = vst [vmem:[#allocation94_spill] sm:$0xff] %v6071_v0  ;;  %v1618_v0 = vadd.f32 %v1593_v30, %v486_v28  ;;  %4315 = vpow2.f32 %v4200_v44  ;;  %2218 = vmatpush.msrb.mxu1 %v6085_v5  ;;  %2238 = vmatpush.msrb.mxu2 %v5714_v8  ;;  %v6108_v28 = vld [vmem:[#allocation8 + $0x268] sm:$0xff]  ;;  %v6119_v8 = vld [vmem:[#allocation8 + $0x278] sm:$0xff]  ;;  %vm1634_vm7 = vcmp.eq.f32.partialorder %v1633_v3, 8.507059e+37 }
 0x27a   :  { %8077 = vst [vmem:[#allocation20_spill] sm:$0xff] %v6073_v52  ;;  %v4308_v46 = vpop.eup %4307  ;;  %v1829_v13 = vpop.f32.mrf.mxu3  ;;  %2258 = vmatpush.msrb.mxu3 %v6089_v17  ;;  %2199 = vmatpush.msrb.mxu0 %v6091_v51  ;;  %v6127_v51 = vld [vmem:[#allocation8 + $0x258] sm:$0xff] }
 0x27b   :  { %8079 = vst [vmem:[#allocation96_spill] sm:$0xff] %v6081_v7  ;;  %v6095_v48 = vadd.f32 1.0, %v4308_v46  ;;  %v1835_v47 = vadd.f32 %v1829_v13, %v8085_v63  ;;  %v6106_v7 = vld [vmem:[#allocation8 + $0x260] sm:$0xff]  ;;  %2219 = vmatpush.msrb.mxu1 %v6093_v62  ;;  %v6117_v63 = vld [vmem:[#allocation8 + $0x270] sm:$0xff]  ;;  %2239 = vmatpush.msrb.mxu2 %v5722_v4 }
 0x27c   :  { %8082 = vst [vmem:[#allocation98_spill] sm:$0xff] %v6089_v17  ;;  %v6102_v52 = vpop.eup %4309  ;;  %2259 = vmatpush.msrb.mxu3 %v6100_v25  ;;  %2200 = vmatpush.msrb.mxu0 %v6106_v7 }
 0x27d   :  { %8084 = vst [vmem:[#allocation100_spill] sm:$0xff] %v6093_v62  ;;  %v6110_v46 = vpop.eup %4311  ;;  %v1625_v44 = vmul.f32 %v6102_v52, %v6043_v35  ;;  %4317 = vrcp.f32 %v6095_v48  ;;  %v4201_v17 = vmul.f32 -1.442695, %v1835_v47  ;;  %2220 = vmatpush.msrb.mxu1 %v6108_v28  ;;  %2240 = vmatpush.msrb.mxu2 %v6117_v63  ;;  %vm1630_vm1 = vweird.f32 %v6102_v52  ;;  %v8098_v35 = vld [vmem:[#allocation73_spill] sm:$0xff] }
 0x27e   :  { %8086 = vst [vmem:[#allocation65_spill] sm:$0xff] %v6100_v25  ;;  %v1644_v30 = vmul.f32 %v6110_v46, %v6051_v61  ;;  %4319 = vtanh.f32 %v1618_v0  ;;  %v4314_v62 = vpop.eup %4313  ;;  %2260 = vmatpush.msrb.mxu3 %v6119_v8  ;;  %vm1649_vm2 = vweird.f32 %v6110_v46  ;;  %vm1631_vm5 = vmor %vm1629_vm4, %vm1630_vm1  ;;  %vm1668_vm9 = vweird.f32 %v6095_v48 }
 0x27f   :  { %8087 = vst [vmem:[#allocation19_spill] sm:$0xff] %v6106_v7  ;;  %v1626_v13 = vsub.f32 1.0, %v1625_v44  ;;  %v4316_v4 = vpop.eup %4315  ;;  %v6136_v0 = vadd.f32 1.0, %v4314_v62  ;;  %4321 = vpow2.f32 %v4201_v17  ;;  %v8092_v44 = vld [vmem:[#allocation67_spill] sm:$0xff]  ;;  %vm1650_vm6 = vmor %vm1648_vm3, %vm1649_vm2 }
 0x280   :  { %8088 = vst [vmem:[#allocation103_spill] sm:$0xff] %v6108_v28  ;;  %v1645_v5 = vsub.f32 1.0, %v1644_v30  ;;  %2201 = vmatpush.msrb.mxu0 %v8092_v44  ;;  %v8093_v30 = vld [vmem:[#allocation68_spill] sm:$0xff]  ;;  %v6143_v7 = vadd.f32 1.0, %v4316_v4  ;;  %2261 = vmatpush.msrb.mxu3 %v6127_v51  ;;  %v8096_v17 = vld [vmem:[#allocation71_spill] sm:$0xff] }
 0x281   :  { %8089 = vst [vmem:[#allocation104_spill] sm:$0xff] %v6117_v63  ;;  %v1627_v47 = vmul.f32 %v6102_v52, %v1626_v13  ;;  %2221 = vmatpush.msrb.mxu1 %v8093_v30  ;;  %v1652_v63 = vand.u32 2147483647, %v6051_v61  ;;  %4323 = vrcp.f32 %v6136_v0  ;;  %v8097_v61 = vld [vmem:[#allocation72_spill] sm:$0xff]  ;;  %v1655_v30 = vor.u32 1.1754944e-38, %v1654_v12 }
 0x282   :  { %8090 = vst [vmem:[#allocation105_spill] sm:$0xff] %v6119_v8  ;;  %v1646_v28 = vmul.f32 %v6110_v46, %v1645_v5  ;;  %v8094_v8 = vld [vmem:[#allocation69_spill] sm:$0xff]  ;;  %v8095_v5 = vld [vmem:[#allocation70_spill] sm:$0xff]  ;;  %4325 = vrcp.f32 %v6143_v7  ;;  %2262 = vmatpush.msrb.mxu3 %v8098_v35  ;;  %vm1864_vm14 = vweird.f32 %v6143_v7  ;;  %vm1845_vm15 = vweird.f32 %v6136_v0 }
 0x283   :  { %8091 = vst [vmem:[#allocation106_spill] sm:$0xff] %v6127_v51  ;;  %2241 = vmatpush.msrb.mxu2 %v8094_v8  ;;  %v6147_v13 = vpop.eup %4317  ;;  %v1628_v62 = vadd.f32 %v6102_v52, %v1627_v47  ;;  %2202 = vmatpush.msrb.mxu0 %v8095_v5  ;;  %v1636_v8 = vor.u32 1.1754944e-38, %v1635_v40  ;;  %v8099_v40 = vld [vmem:[#allocation74_spill] sm:$0xff]  ;;  %vm1653_vm8 = vcmp.eq.f32.partialorder %v1652_v63, 8.507059e+37  ;;  %v8102_v35 = vld [vmem:[#allocation21_spill] sm:$0xff] }
 0x284   :  { %2222 = vmatpush.msrb.mxu1 %v8096_v17  ;;  %v1647_v4 = vadd.f32 %v6110_v46, %v1646_v28  ;;  %v1664_v44 = vmul.f32 %v6147_v13, %v6095_v48  ;;  %v4320_v47 = vpop.eup %4319  ;;  %v8100_v28 = vld [vmem:[#allocation76_spill] sm:$0xff]  ;;  %2263 = vmatpush.msrb.mxu3 %v8102_v35  ;;  %vm1669_vm10 = vweird.f32 %v6147_v13 }
 0x285   :  { %2242 = vmatpush.msrb.mxu2 %v8097_v61  ;;  %v1632_v5 = vsel %vm1631_vm5, %v6102_v52, %v1628_v62  ;;  %2203 = vmatpush.msrb.mxu0 %v8099_v40  ;;  %v1809_v61 = vpop.f32.mrf.mxu2  ;;  %v4322_v26 = vpop.eup %4321  ;;  %vm6189_vm11 = vmor %vm1668_vm9, %vm1669_vm10 }
 0x286   :  { %2223 = vmatpush.msrb.mxu1 %v8100_v28  ;;  %v1637_v17 = vsel %vm1634_vm7, %v1636_v8, %v1632_v5  ;;  %v1651_v51 = vsel %vm1650_vm6, %v6110_v46, %v1647_v4  ;;  %v1665_v25 = vsub.f32 1.0, %v1664_v44  ;;  %v6173_v62 = vadd.f32 1.0, %v4322_v26  ;;  %v8104_v8 = vld [vmem:[#allocation61_spill] sm:$0xff] }
 0x287   :  { %2243 = vmatpush.msrb.mxu2 %v8101_v6  ;;  %v1656_v11 = vsel %vm1653_vm8, %v1655_v30, %v1651_v51  ;;  %v1679_v12 = vmul.f32 %v4320_v47, %v1637_v17  ;;  %v4324_v40 = vpop.eup %4323  ;;  %v1834_v5 = vadd.f32 %v1809_v61, %v8104_v8  ;;  %v1672_v51 = vand.u32 2147483647, %v6095_v48 }
 0x288   :  { %v1678_v52 = vmul.f32 %v1656_v11, %v8103_v56  ;;  %v1666_v3 = vmul.f32 %v6147_v13, %v1665_v25  ;;  %v4326_v46 = vpop.eup %4325  ;;  %v1841_v4 = vmul.f32 %v4324_v40, %v6136_v0  ;;  %4327 = vrcp.f32 %v6173_v62 }
 0x289   :  { %v1674_v56 = vand.u32 2147483648, %v6095_v48  ;;  %v1860_v11 = vmul.f32 %v4326_v46, %v6143_v7  ;;  %v1849_v44 = vand.u32 2147483647, %v6136_v0  ;;  %v1851_v47 = vand.u32 2147483648, %v6136_v0 }
 0x28a   :  { %v6176_v63 = vadd.f32 %v1679_v12, %v1678_v52  ;;  %v1842_v26 = vsub.f32 1.0, %v1841_v4  ;;  %v1667_v6 = vadd.f32 %v6147_v13, %v1666_v3  ;;  %v1870_v28 = vand.u32 2147483648, %v6143_v7 }
 0x28b   :  { %v1861_v25 = vsub.f32 1.0, %v1860_v11  ;;  %vm1846_vm12 = vweird.f32 %v4324_v40  ;;  %v1868_v61 = vand.u32 2147483647, %v6143_v7  ;;  %v1675_v35 = vor.u32 1.1754944e-38, %v1674_v56 }
 0x28c   :  { %8105 = vst [vmem:[#allocation107_spill] sm:$0xff] %v6176_v63  ;;  %4329 = vtanh.f32 %v6176_v63  ;;  %v1843_v17 = vmul.f32 %v4324_v40, %v1842_v26  ;;  %vm1865_vm13 = vweird.f32 %v4326_v46  ;;  %v1671_v48 = vsel %vm6189_vm11, %v6147_v13, %v1667_v6  ;;  %vm1847_vm1 = vmor %vm1845_vm15, %vm1846_vm12 }
 0x28d   :  { %4331 = vtanh.f32 %v1834_v5  ;;  %v1862_v12 = vmul.f32 %v4326_v46, %v1861_v25  ;;  %vm1673_vm0 = vcmp.eq.f32.partialorder %v1672_v51, 8.507059e+37  ;;  %vm1850_vm2 = vcmp.eq.f32.partialorder %v1849_v44, 8.507059e+37  ;;  %vm1866_vm3 = vmor %vm1864_vm14, %vm1865_vm13  ;;  %v6206_v44 = vld [vmem:[#allocation8 + $0x1e0] sm:$0xff] }
 0x28e   :  { %v6198_v52 = vpop.eup %4327  ;;  %v1844_v3 = vadd.f32 %v4324_v40, %v1843_v17  ;;  %v1852_v8 = vor.u32 1.1754944e-38, %v1851_v47  ;;  %v1871_v11 = vor.u32 1.1754944e-38, %v1870_v28  ;;  %vm1869_vm4 = vcmp.eq.f32.partialorder %v1868_v61, 8.507059e+37  ;;  %v6208_v47 = vld [vmem:[#allocation8 + $0x1e8] sm:$0xff]  ;;  %v6220_v28 = vld [vmem:[#allocation8 + $0x1c0] sm:$0xff] }
 0x28f   :  { %v1863_v5 = vadd.f32 %v4326_v46, %v1862_v12  ;;  %v1880_v4 = vmul.f32 %v6198_v52, %v6173_v62  ;;  %v1676_v13 = vsel %vm1673_vm0, %v1675_v35, %v1671_v48  ;;  %v6222_v61 = vld [vmem:[#allocation8 + $0x1c8] sm:$0xff]  ;;  %v6230_v48 = vld [vmem:[#allocation8 + $0x1d8] sm:$0xff]  ;;  %vm1885_vm5 = vweird.f32 %v6198_v52 }
 0x290   :  { %v1848_v26 = vsel %vm1847_vm1, %v4324_v40, %v1844_v3  ;;  %v6214_v40 = vld [vmem:[#allocation8 + $0x1f0] sm:$0xff]  ;;  %vm1884_vm6 = vweird.f32 %v6173_v62 }
 0x291   :  { %v1853_v25 = vsel %vm1850_vm2, %v1852_v8, %v1848_v26  ;;  %v1867_v7 = vsel %vm1866_vm3, %v4326_v46, %v1863_v5  ;;  %v1881_v30 = vsub.f32 1.0, %v1880_v4  ;;  %v6216_v46 = vld [vmem:[#allocation8 + $0x1f8] sm:$0xff]  ;;  %v6236_v8 = vld [vmem:[#allocation8 + $0x1a0] sm:$0xff]  ;;  %v6238_v5 = vld [vmem:[#allocation8 + $0x1a8] sm:$0xff]  ;;  %v1890_v4 = vand.u32 2147483648, %v6173_v62 }
 0x292   :  { %v4330_v56 = vpop.eup %4329  ;;  %v1872_v0 = vsel %vm1869_vm4, %v1871_v11, %v1867_v7  ;;  %v6246_v11 = vld [vmem:[#allocation8 + $0x1b8] sm:$0xff]  ;;  %v6252_v26 = vld [vmem:[#allocation8 + $0x180] sm:$0xff]  ;;  %vm6258_vm7 = vmor %vm1884_vm6, %vm1885_vm5 }
 0x293   :  { %v4332_v6 = vpop.eup %4331  ;;  %v6204_v17 = vmul.f32 %v4330_v56, %v1676_v13  ;;  %v1894_v12 = vmul.f32 %v1872_v0, %v5845_v24  ;;  %v1882_v63 = vmul.f32 %v6198_v52, %v1881_v30  ;;  %v6228_v24 = vld [vmem:[#allocation8 + $0x1d0] sm:$0xff]  ;;  %v6254_v13 = vld [vmem:[#allocation8 + $0x188] sm:$0xff]  ;;  %v6273_v30 = vld [vmem:[#allocation8 + $0x160] sm:$0xff] }
 0x294   :  { %v1895_v51 = vmul.f32 %v4332_v6, %v1853_v25  ;;  %v6244_v56 = vld [vmem:[#allocation8 + $0x1b0] sm:$0xff]  ;;  %v6275_v0 = vld [vmem:[#allocation8 + $0x168] sm:$0xff] }
 0x295   :  { %8108 = vst [vmem:[#allocation108_spill] sm:$0xff] %v6204_v17  ;;  %1988 = vmatmul.f32.vlgmr.msra.gmra.mxu0 %v6204_v17  ;;  %2008 = vmatmul.f32.vlgmr.msra.gmra.mxu1 %v6204_v17  ;;  %v1883_v3 = vadd.f32 %v6198_v52, %v1882_v63  ;;  %v1888_v63 = vand.u32 2147483647, %v6173_v62  ;;  %v6264_v25 = vld [vmem:[#allocation8 + $0x190] sm:$0xff]  ;;  %v6266_v62 = vld [vmem:[#allocation8 + $0x198] sm:$0xff]  ;;  %v6297_v6 = vld [vmem:[#allocation8 + $0x148] sm:$0xff] }
 0x296   :  { %2028 = vmatmul.f32.vlgmr.msra.gmra.mxu2 %v6204_v17  ;;  %2048 = vmatmul.f32.vlgmr.msra.gmra.mxu3 %v6204_v17  ;;  %v6224_v35 = vadd.f32 %v1895_v51, %v1894_v12  ;;  %v1891_v51 = vor.u32 1.1754944e-38, %v1890_v4  ;;  %v6279_v12 = vld [vmem:[#allocation8 + $0x170] sm:$0xff]  ;;  %v6281_v17 = vld [vmem:[#allocation8 + $0x178] sm:$0xff]  ;;  %8114 = vst [vmem:[#allocation112_spill] sm:$0xff] %v6297_v6 }
 0x297   :  { %2408 = vmatpush.msra.mxu0 %v6206_v44  ;;  %2428 = vmatpush.msra.mxu1 %v6208_v47  ;;  %v1887_v7 = vsel %vm6258_vm7, %v6198_v52, %v1883_v3  ;;  %8111 = vst [vmem:[#allocation109_spill] sm:$0xff] %v6281_v17  ;;  %vm1889_vm8 = vcmp.eq.f32.partialorder %v1888_v63, 8.507059e+37  ;;  %v6295_v63 = vld [vmem:[#allocation8 + $0x140] sm:$0xff] }
 0x298   :  { %2448 = vmatpush.msra.mxu2 %v6214_v40  ;;  %2468 = vmatpush.msra.mxu3 %v6216_v46  ;;  %4333 = vtanh.f32 %v6224_v35  ;;  %v1892_v3 = vsel %vm1889_vm8, %v1891_v51, %v1887_v7  ;;  %8113 = vst [vmem:[#allocation111_spill] sm:$0xff] %v6295_v63  ;;  %v6299_v7 = vld [vmem:[#allocation8 + $0x150] sm:$0xff]  ;;  %v6303_v51 = vld [vmem:[#allocation8 + $0x158] sm:$0xff] }
 0x299   :  { %2409 = vmatpush.msra.mxu0 %v6220_v28  ;;  %2429 = vmatpush.msra.mxu1 %v6222_v61  ;;  %8115 = vst [vmem:[#allocation113_spill] sm:$0xff] %v6299_v7 }
 0x29a   :  { %2449 = vmatpush.msra.mxu2 %v6228_v24  ;;  %2469 = vmatpush.msra.mxu3 %v6230_v48  ;;  %8116 = vst [vmem:[#allocation114_spill] sm:$0xff] %v6303_v51 }
 0x29b   :  { %2410 = vmatpush.msra.mxu0 %v6236_v8  ;;  %2430 = vmatpush.msra.mxu1 %v6238_v5 }
 0x29c   :  { %2450 = vmatpush.msra.mxu2 %v6244_v56  ;;  %2470 = vmatpush.msra.mxu3 %v6246_v11 }
 0x29d   :  { %2411 = vmatpush.msra.mxu0 %v6252_v26  ;;  %2431 = vmatpush.msra.mxu1 %v6254_v13 }
 0x29e   :  { %2451 = vmatpush.msra.mxu2 %v6264_v25  ;;  %2471 = vmatpush.msra.mxu3 %v6266_v62  ;;  %v4334_v52 = vpop.eup %4333 }
 0x29f   :  { %2412 = vmatpush.msra.mxu0 %v6273_v30  ;;  %2432 = vmatpush.msra.mxu1 %v6275_v0  ;;  %v6287_v4 = vmul.f32 %v4334_v52, %v1892_v3  ;;  %v6307_v52 = vld [vmem:[#allocation8 + $0x120] sm:$0xff]  ;;  %v6309_v3 = vld [vmem:[#allocation8 + $0x128] sm:$0xff] }
 0x2a0   :  { %2452 = vmatpush.msra.mxu2 %v6279_v12  ;;  %2472 = vmatpush.msra.mxu3 %v6281_v17  ;;  %8117 = vst [vmem:[#allocation115_spill] sm:$0xff] %v6307_v52  ;;  %v6315_v17 = vld [vmem:[#allocation8 + $0x138] sm:$0xff] }
 0x2a1   :  { %8112 = vst [vmem:[#allocation110_spill] sm:$0xff] %v6287_v4  ;;  %2204 = vmatmul.f32.vlgmr.msrb.gmra.mxu0 %v6287_v4  ;;  %2224 = vmatmul.f32.vlgmr.msrb.gmra.mxu1 %v6287_v4 }
 0x2a2   :  { %2244 = vmatmul.f32.vlgmr.msrb.gmra.mxu2 %v6287_v4  ;;  %2264 = vmatmul.f32.vlgmr.msrb.gmra.mxu3 %v6287_v4  ;;  %8118 = vst [vmem:[#allocation116_spill] sm:$0xff] %v6309_v3  ;;  %v6311_v4 = vld [vmem:[#allocation8 + $0x130] sm:$0xff] }
 0x2a3   :  { %2413 = vmatpush.msra.mxu0 %v6295_v63  ;;  %2433 = vmatpush.msra.mxu1 %v6297_v6  ;;  %8119 = vst [vmem:[#allocation117_spill] sm:$0xff] %v6311_v4  ;;  %v6319_v6 = vld [vmem:[#allocation8 + $0x100] sm:$0xff]  ;;  %v6327_v63 = vld [vmem:[#allocation8 + $0x118] sm:$0xff] }
 0x2a4   :  { %2453 = vmatpush.msra.mxu2 %v6299_v7  ;;  %2473 = vmatpush.msra.mxu3 %v6303_v51  ;;  %8120 = vst [vmem:[#allocation118_spill] sm:$0xff] %v6315_v17  ;;  %v6321_v7 = vld [vmem:[#allocation8 + $0x108] sm:$0xff]  ;;  %v6323_v51 = vld [vmem:[#allocation8 + $0x110] sm:$0xff] }
 0x2a5   :  { %2414 = vmatpush.msra.mxu0 %v6307_v52  ;;  %2434 = vmatpush.msra.mxu1 %v6309_v3  ;;  %8121 = vst [vmem:[#allocation119_spill] sm:$0xff] %v6319_v6  ;;  %v6331_v3 = vld [vmem:[#allocation8 + $0xe0] sm:$0xff]  ;;  %v6339_v52 = vld [vmem:[#allocation8 + $0xf8] sm:$0xff] }
 0x2a6   :  { %2454 = vmatpush.msra.mxu2 %v6311_v4  ;;  %2474 = vmatpush.msra.mxu3 %v6315_v17  ;;  %8122 = vst [vmem:[#allocation120_spill] sm:$0xff] %v6321_v7  ;;  %v6333_v4 = vld [vmem:[#allocation8 + $0xe8] sm:$0xff]  ;;  %v6335_v17 = vld [vmem:[#allocation8 + $0xf0] sm:$0xff] }
 0x2a7   :  { %8123 = vst [vmem:[#allocation121_spill] sm:$0xff] %v6323_v51  ;;  %2415 = vmatpush.msra.mxu0 %v6319_v6  ;;  %2435 = vmatpush.msra.mxu1 %v6321_v7  ;;  %v6343_v7 = vld [vmem:[#allocation8 + $0xc0] sm:$0xff]  ;;  %v6351_v6 = vld [vmem:[#allocation8 + $0xd8] sm:$0xff] }
 0x2a8   :  { %8124 = vst [vmem:[#allocation122_spill] sm:$0xff] %v6327_v63  ;;  %2455 = vmatpush.msra.mxu2 %v6323_v51  ;;  %2475 = vmatpush.msra.mxu3 %v6327_v63  ;;  %v6345_v51 = vld [vmem:[#allocation8 + $0xc8] sm:$0xff]  ;;  %v6347_v63 = vld [vmem:[#allocation8 + $0xd0] sm:$0xff] }
 0x2a9   :  { %8125 = vst [vmem:[#allocation123_spill] sm:$0xff] %v6331_v3  ;;  %2416 = vmatpush.msra.mxu0 %v6331_v3  ;;  %2436 = vmatpush.msra.mxu1 %v6333_v4  ;;  %v6363_v3 = vld [vmem:[#allocation8 + $0xb8] sm:$0xff] }
 0x2aa   :  { %8126 = vst [vmem:[#allocation124_spill] sm:$0xff] %v6333_v4  ;;  %2456 = vmatpush.msra.mxu2 %v6335_v17  ;;  %2476 = vmatpush.msra.mxu3 %v6339_v52  ;;  %v6355_v4 = vld [vmem:[#allocation8 + $0xa0] sm:$0xff] }
 0x2ab   :  { %8127 = vst [vmem:[#allocation125_spill] sm:$0xff] %v6335_v17  ;;  %2417 = vmatpush.msra.mxu0 %v6343_v7  ;;  %2437 = vmatpush.msra.mxu1 %v6345_v51  ;;  %v6357_v17 = vld [vmem:[#allocation8 + $0xa8] sm:$0xff] }
 0x2ac   :  { %8128 = vst [vmem:[#allocation126_spill] sm:$0xff] %v6339_v52  ;;  %2457 = vmatpush.msra.mxu2 %v6347_v63  ;;  %2477 = vmatpush.msra.mxu3 %v6351_v6  ;;  %v6359_v52 = vld [vmem:[#allocation8 + $0xb0] sm:$0xff] }
 0x2ad   :  { %8129 = vst [vmem:[#allocation127_spill] sm:$0xff] %v6343_v7  ;;  %2418 = vmatpush.msra.mxu0 %v6355_v4  ;;  %2438 = vmatpush.msra.mxu1 %v6357_v17  ;;  %v6375_v7 = vld [vmem:[#allocation8 + $0x98] sm:$0xff] }
 0x2ae   :  { %8130 = vst [vmem:[#allocation22_spill] sm:$0xff] %v6345_v51  ;;  %2458 = vmatpush.msra.mxu2 %v6359_v52  ;;  %2478 = vmatpush.msra.mxu3 %v6363_v3  ;;  %v6367_v51 = vld [vmem:[#allocation8 + $0x80] sm:$0xff] }
 0x2af   :  { %8131 = vst [vmem:[#allocation23_spill] sm:$0xff] %v6347_v63  ;;  %v6369_v63 = vld [vmem:[#allocation8 + $0x88] sm:$0xff]  ;;  %2419 = vmatpush.msra.mxu0 %v6367_v51 }
 0x2b0   :  { %8132 = vst [vmem:[#allocation25_spill] sm:$0xff] %v6351_v6  ;;  %v6371_v6 = vld [vmem:[#allocation8 + $0x90] sm:$0xff]  ;;  %2439 = vmatpush.msra.mxu1 %v6369_v63  ;;  %2479 = vmatpush.msra.mxu3 %v6375_v7 }
 0x2b1   :  { %8133 = vst [vmem:[#allocation59_spill] sm:$0xff] %v6355_v4  ;;  %2459 = vmatpush.msra.mxu2 %v6371_v6  ;;  %v6387_v4 = vld [vmem:[#allocation8 + $0x78] sm:$0xff] }
 0x2b2   :  { %8134 = vst [vmem:[#allocation60_spill] sm:$0xff] %v6357_v17  ;;  %v6379_v17 = vld [vmem:[#allocation8 + $0x60] sm:$0xff]  ;;  %2480 = vmatpush.msra.mxu3 %v6387_v4 }
 0x2b3   :  { %8135 = vst [vmem:[#allocation24_spill] sm:$0xff] %v6359_v52  ;;  %v6381_v52 = vld [vmem:[#allocation8 + $0x68] sm:$0xff]  ;;  %2420 = vmatpush.msra.mxu0 %v6379_v17 }
 0x2b4   :  { %8136 = vst [vmem:[#allocation62_spill] sm:$0xff] %v6363_v3  ;;  %v6383_v3 = vld [vmem:[#allocation8 + $0x70] sm:$0xff]  ;;  %2440 = vmatpush.msra.mxu1 %v6381_v52  ;;  %2481 = vmatpush.msra.mxu3 %v5921_v36 }
 0x2b5   :  { %8137 = vst [vmem:[#allocation67_spill] sm:$0xff] %v6381_v52  ;;  %2460 = vmatpush.msra.mxu2 %v6383_v3  ;;  %2421 = vmatpush.msra.mxu0 %v5913_v23  ;;  %v8140_v52 = vld [vmem:[#allocation26_spill] sm:$0xff] }
 0x2b6   :  { %8138 = vst [vmem:[#allocation68_spill] sm:$0xff] %v6383_v3  ;;  %2441 = vmatpush.msra.mxu1 %v5915_v22  ;;  %2482 = vmatpush.msra.mxu3 %v5933_v19  ;;  %v492_v3 = vadd.f32 %v5222_v57, %v8140_v52  ;;  %v8142_v19 = vld [vmem:[#allocation14_spill] sm:$0xff]  ;;  %v8156_v52 = vld [vmem:[#allocation89_spill] sm:$0xff] }
 0x2b7   :  { %8139 = vst [vmem:[#allocation69_spill] sm:$0xff] %v6387_v4  ;;  %2461 = vmatpush.msra.mxu2 %v5917_v29  ;;  %2422 = vmatpush.msra.mxu0 %v5925_v42  ;;  %v8141_v4 = vld [vmem:[#allocation27_spill] sm:$0xff] }
 0x2b8   :  { %2442 = vmatpush.msra.mxu1 %v5927_v33  ;;  %v493_v23 = vadd.f32 %v5225_v1, %v8141_v4  ;;  %2483 = vmatpush.msra.mxu3 %v5945_v59 }
 0x2b9   :  { %2462 = vmatpush.msra.mxu2 %v5929_v60  ;;  %2423 = vmatpush.msra.mxu0 %v5937_v45  ;;  %v495_v45 = vadd.f32 %v7985_v54, %v8142_v19  ;;  %v8161_v19 = vld [vmem:[#allocation92_spill] sm:$0xff] }
 0x2ba   :  { %2443 = vmatpush.msra.mxu1 %v5939_v15  ;;  %2684 = vmatpush.msrb.mxu3 %v5955_v31 }
 0x2bb   :  { %2463 = vmatpush.msra.mxu2 %v5941_v34  ;;  %2624 = vmatpush.msrb.mxu0 %v5947_v38 }
 0x2bc   :  { %2644 = vmatpush.msrb.mxu1 %v5949_v58  ;;  %2685 = vmatpush.msrb.mxu3 %v5971_v41  ;;  %v8143_v58 = vld [vmem:[#allocation80_spill] sm:$0xff] }
 0x2bd   :  { %2664 = vmatpush.msrb.mxu2 %v5953_v9  ;;  %2625 = vmatpush.msrb.mxu0 %v5963_v21  ;;  %v8144_v21 = vld [vmem:[#allocation81_spill] sm:$0xff] }
 0x2be   :  { %2645 = vmatpush.msrb.mxu1 %v5965_v53  ;;  %2686 = vmatpush.msrb.mxu3 %v5983_v14  ;;  %v8145_v53 = vld [vmem:[#allocation82_spill] sm:$0xff]  ;;  %v8148_v14 = vld [vmem:[#allocation85_spill] sm:$0xff] }
 0x2bf   :  { %2665 = vmatpush.msrb.mxu2 %v5967_v27  ;;  %2626 = vmatpush.msrb.mxu0 %v5975_v49 }
 0x2c0   :  { %2646 = vmatpush.msrb.mxu1 %v5977_v18  ;;  %2687 = vmatpush.msrb.mxu3 %v5995_v16  ;;  %v8146_v18 = vld [vmem:[#allocation83_spill] sm:$0xff] }
 0x2c1   :  { %2666 = vmatpush.msrb.mxu2 %v5979_v50  ;;  %2627 = vmatpush.msrb.mxu0 %v5987_v43  ;;  %v8147_v50 = vld [vmem:[#allocation84_spill] sm:$0xff]  ;;  %v8149_v43 = vld [vmem:[#allocation63_spill] sm:$0xff] }
 0x2c2   :  { %2647 = vmatpush.msrb.mxu1 %v5989_v10  ;;  %2688 = vmatpush.msrb.mxu3 %v6009_v37  ;;  %v8150_v10 = vld [vmem:[#allocation64_spill] sm:$0xff]  ;;  %v8152_v16 = vld [vmem:[#allocation55_spill] sm:$0xff] }
 0x2c3   :  { %2667 = vmatpush.msrb.mxu2 %v5993_v39  ;;  %2628 = vmatpush.msrb.mxu0 %v5999_v32  ;;  %v8151_v39 = vld [vmem:[#allocation86_spill] sm:$0xff]  ;;  %v8154_v37 = vld [vmem:[#allocation87_spill] sm:$0xff] }
 0x2c4   :  { %2648 = vmatpush.msrb.mxu1 %v6001_v2  ;;  %2689 = vmatpush.msrb.mxu3 %v8145_v53  ;;  %v8153_v2 = vld [vmem:[#allocation56_spill] sm:$0xff] }
 0x2c5   :  { %2668 = vmatpush.msrb.mxu2 %v6003_v20  ;;  %2629 = vmatpush.msrb.mxu0 %v6013_v55  ;;  %v8155_v55 = vld [vmem:[#allocation88_spill] sm:$0xff] }
 0x2c6   :  { %2649 = vmatpush.msrb.mxu1 %v8143_v58  ;;  %2690 = vmatpush.msrb.mxu3 %v8149_v43  ;;  %v8165_v53 = vld [vmem:[#allocation96_spill] sm:$0xff] }
 0x2c7   :  { %2669 = vmatpush.msrb.mxu2 %v8144_v21  ;;  %2630 = vmatpush.msrb.mxu0 %v8146_v18  ;;  %v8164_v21 = vld [vmem:[#allocation20_spill] sm:$0xff]  ;;  %v8166_v18 = vld [vmem:[#allocation66_spill] sm:$0xff] }
 0x2c8   :  { %2650 = vmatpush.msrb.mxu1 %v8147_v50  ;;  %2691 = vmatpush.msrb.mxu3 %v8155_v55  ;;  %v8167_v50 = vld [vmem:[#allocation97_spill] sm:$0xff] }
 0x2c9   :  { %2670 = vmatpush.msrb.mxu2 %v8148_v14  ;;  %2631 = vmatpush.msrb.mxu0 %v8150_v10  ;;  %v6472_v14 = vld [vmem:[#allocation8 + $0x290] sm:$0xff] }
 0x2ca   :  { %2651 = vmatpush.msrb.mxu1 %v8151_v39  ;;  %2692 = vmatpush.msrb.mxu3 %v8161_v19  ;;  %v8168_v10 = vld [vmem:[#allocation98_spill] sm:$0xff] }
 0x2cb   :  { %2671 = vmatpush.msrb.mxu2 %v8154_v37  ;;  %2632 = vmatpush.msrb.mxu0 %v8156_v52  ;;  %v8172_v52 = vld [vmem:[#allocation65_spill] sm:$0xff]  ;;  %v6494_v19 = vld [vmem:[#allocation8 + $0x250] sm:$0xff] }
 0x2cc   :  { %2693 = vmatpush.msrb.mxu3 %v8165_v53  ;;  %v6502_v53 = vld [vmem:[#allocation8 + $0x220] sm:$0xff] }
 0x2ce   :  { %2694 = vmatpush.msrb.mxu3 %v8168_v10  ;;  %v6514_v10 = vld [vmem:[#allocation8 + $0x230] sm:$0xff] }
 0x2d0   :  { %2695 = vmatpush.msrb.mxu3 %v8172_v52 }
 0x312   :  { %v1989_v22 = vpop.f32.mrf.mxu0  ;;  %v2009_v29 = vpop.f32.mrf.mxu1 }
 0x313   :  { %v2052_v36 = vadd.f32 %v1989_v22, %v492_v3  ;;  %v2053_v42 = vadd.f32 %v2009_v29, %v493_v23  ;;  %v8157_v3 = vld [vmem:[#allocation90_spill] sm:$0xff]  ;;  %v8158_v22 = vld [vmem:[#allocation12_spill] sm:$0xff]  ;;  %v8159_v29 = vld [vmem:[#allocation95_spill] sm:$0xff] }
 0x314   :  { %2652 = vmatpush.msrb.mxu1 %v8157_v3  ;;  %v6485_v3 = vld [vmem:[#allocation8 + $0x240] sm:$0xff] }
 0x315   :  { %v4202_v33 = vmul.f32 -1.442695, %v2052_v36  ;;  %v4203_v60 = vmul.f32 -1.442695, %v2053_v42  ;;  %v494_v36 = vadd.f32 %v8159_v29, %v8158_v22 }
 0x317   :  { %4335 = vpow2.f32 %v4202_v33 }
 0x318   :  { %4337 = vpow2.f32 %v4203_v60  ;;  %v8160_v60 = vld [vmem:[#allocation91_spill] sm:$0xff] }
 0x319   :  { %v2049_v15 = vpop.f32.mrf.mxu3  ;;  %v2029_v4 = vpop.f32.mrf.mxu2  ;;  %2672 = vmatpush.msrb.mxu2 %v8160_v60  ;;  %v8174_v60 = vld [vmem:[#allocation103_spill] sm:$0xff] }
 0x31a   :  { %v2055_v34 = vadd.f32 %v2049_v15, %v495_v45  ;;  %v8162_v15 = vld [vmem:[#allocation93_spill] sm:$0xff]  ;;  %v2054_v58 = vadd.f32 %v2029_v4, %v494_v36 }
 0x31b   :  { %2633 = vmatpush.msrb.mxu0 %v8162_v15  ;;  %2673 = vmatpush.msrb.mxu2 %v8164_v21  ;;  %v8176_v21 = vld [vmem:[#allocation105_spill] sm:$0xff] }
 0x31c   :  { %v4204_v59 = vmul.f32 -1.442695, %v2055_v34  ;;  %v8163_v34 = vld [vmem:[#allocation94_spill] sm:$0xff]  ;;  %2696 = vmatpush.msrb.mxu3 %v8176_v21 }
 0x31d   :  { %v4336_v38 = vpop.eup %4335  ;;  %2653 = vmatpush.msrb.mxu1 %v8163_v34  ;;  %2634 = vmatpush.msrb.mxu0 %v8166_v18 }
 0x31e   :  { %v4338_v9 = vpop.eup %4337  ;;  %v6431_v31 = vadd.f32 1.0, %v4336_v38  ;;  %4339 = vpow2.f32 %v4204_v59  ;;  %v2205_v41 = vpop.f32.mrf.mxu0  ;;  %v6459_v59 = vld [vmem:[#allocation8 + $0x2b0] sm:$0xff] }
 0x31f   :  { %v6435_v27 = vadd.f32 1.0, %v4338_v9  ;;  %v2225_v49 = vpop.f32.mrf.mxu1  ;;  %v2268_v32 = vadd.f32 %v2205_v41, %v8152_v16  ;;  %2654 = vmatpush.msrb.mxu1 %v8167_v50  ;;  %2674 = vmatpush.msrb.mxu2 %v6459_v59  ;;  %v8169_v16 = vld [vmem:[#allocation58_spill] sm:$0xff] }
 0x320   :  { %4341 = vrcp.f32 %v6431_v31  ;;  %v2269_v20 = vadd.f32 %v2225_v49, %v8153_v2  ;;  %v8170_v2 = vld [vmem:[#allocation99_spill] sm:$0xff]  ;;  %v2069_v55 = vand.u32 2147483647, %v6431_v31  ;;  %v2071_v4 = vand.u32 2147483648, %v6431_v31 }
 0x321   :  { %4343 = vrcp.f32 %v6435_v27  ;;  %v4205_v42 = vmul.f32 -1.442695, %v2268_v32  ;;  %2635 = vmatpush.msrb.mxu0 %v8170_v2  ;;  %2675 = vmatpush.msrb.mxu2 %v6472_v14  ;;  %v2090_v22 = vand.u32 2147483648, %v6435_v27  ;;  %vm2065_vm11 = vweird.f32 %v6431_v31 }
 0x322   :  { %v4206_v33 = vmul.f32 -1.442695, %v2269_v20  ;;  %v8171_v20 = vld [vmem:[#allocation100_spill] sm:$0xff]  ;;  %vm2084_vm12 = vweird.f32 %v6435_v27  ;;  %vm6526_vm14 = vcmp.eq.f32.partialorder %v2069_v55, 8.507059e+37  ;;  %v8189_v55 = vld [vmem:[#allocation57_spill] sm:$0xff] }
 0x323   :  { %4345 = vpow2.f32 %v4205_v42  ;;  %2655 = vmatpush.msrb.mxu1 %v8171_v20  ;;  %v2072_v20 = vor.u32 1.1754944e-38, %v2071_v4  ;;  %v2091_v4 = vor.u32 1.1754944e-38, %v2090_v22 }
 0x324   :  { %v4340_v23 = vpop.eup %4339 }
 0x325   :  { %v6455_v45 = vadd.f32 1.0, %v4340_v23  ;;  %v2265_v9 = vpop.f32.mrf.mxu3  ;;  %v6487_v23 = vld [vmem:[#allocation8 + $0x248] sm:$0xff]  ;;  %2656 = vmatpush.msrb.mxu1 %v8174_v60 }
 0x326   :  { %v6461_v38 = vpop.eup %4341  ;;  %v2271_v32 = vadd.f32 %v2265_v9, %v8169_v16  ;;  %v8175_v9 = vld [vmem:[#allocation104_spill] sm:$0xff] }
 0x327   :  { %v6465_v41 = vpop.eup %4343  ;;  %v2061_v49 = vmul.f32 %v6461_v38, %v6431_v31  ;;  %4347 = vrcp.f32 %v6455_v45  ;;  %vm2066_vm9 = vweird.f32 %v6461_v38  ;;  %2676 = vmatpush.msrb.mxu2 %v8175_v9  ;;  %2657 = vmatpush.msrb.mxu1 %v6487_v23  ;;  %v6537_v31 = vld [vmem:[#allocation8 + $0x208] sm:$0xff]  ;;  %vm2104_vm2 = vweird.f32 %v6455_v45 }
 0x328   :  { %v2080_v43 = vmul.f32 %v6465_v41, %v6435_v27  ;;  %4349 = vpow2.f32 %v4206_v33  ;;  %v4207_v42 = vmul.f32 -1.442695, %v2271_v32  ;;  %v8173_v33 = vld [vmem:[#allocation19_spill] sm:$0xff]  ;;  %vm2085_vm10 = vweird.f32 %v6465_v41  ;;  %vm6522_vm13 = vmor %vm2065_vm11, %vm2066_vm9  ;;  %8182 = vst [vmem:[#allocation70_spill] sm:$0xff] %v6537_v31 }
 0x329   :  { %v2062_v39 = vsub.f32 1.0, %v2061_v49  ;;  %4351 = vtanh.f32 %v2054_v58  ;;  %2636 = vmatpush.msrb.mxu0 %v8173_v33  ;;  %v4346_v15 = vpop.eup %4345  ;;  %v2088_v58 = vand.u32 2147483647, %v6435_v27  ;;  %v6504_v49 = vld [vmem:[#allocation8 + $0x228] sm:$0xff]  ;;  %2677 = vmatpush.msrb.mxu2 %v6494_v19  ;;  %vm6543_vm15 = vmor %vm2084_vm12, %vm2085_vm10  ;;  %v6557_v27 = vld [vmem:[#allocation8 + $0x218] sm:$0xff] }
 0x32a   :  { %v2081_v37 = vsub.f32 1.0, %v2080_v43  ;;  %v6510_v43 = vadd.f32 1.0, %v4346_v15  ;;  %4353 = vpow2.f32 %v4207_v42  ;;  %v6535_v42 = vld [vmem:[#allocation8 + $0x200] sm:$0xff]  ;;  %2658 = vmatpush.msrb.mxu1 %v6504_v49  ;;  %v6555_v15 = vld [vmem:[#allocation8 + $0x210] sm:$0xff]  ;;  %8186 = vst [vmem:[#allocation72_spill] sm:$0xff] %v6557_v27 }
 0x32b   :  { %v2063_v36 = vmul.f32 %v6461_v38, %v2062_v39  ;;  %2637 = vmatpush.msrb.mxu0 %v6485_v3  ;;  %v6516_v39 = vld [vmem:[#allocation8 + $0x238] sm:$0xff]  ;;  %8185 = vst [vmem:[#allocation71_spill] sm:$0xff] %v6555_v15  ;;  %vm2089_vm0 = vcmp.eq.f32.partialorder %v2088_v58, 8.507059e+37  ;;  %2678 = vmatpush.msrb.mxu2 %v6514_v10 }
 0x32c   :  { %v2082_v34 = vmul.f32 %v6465_v41, %v2081_v37  ;;  %4355 = vrcp.f32 %v6510_v43  ;;  %2659 = vmatpush.msrb.mxu1 %v6537_v31  ;;  %vm2281_vm5 = vweird.f32 %v6510_v43 }
 0x32d   :  { %v6506_v18 = vpop.eup %4347  ;;  %v2064_v50 = vadd.f32 %v6461_v38, %v2063_v36  ;;  %v8181_v36 = vld [vmem:[#allocation106_spill] sm:$0xff]  ;;  %2638 = vmatpush.msrb.mxu0 %v6502_v53  ;;  %2679 = vmatpush.msrb.mxu2 %v6555_v15 }
 0x32e   :  { %v4350_v16 = vpop.eup %4349  ;;  %v2083_v37 = vadd.f32 %v6465_v41, %v2082_v34  ;;  %v2100_v52 = vmul.f32 %v6506_v18, %v6455_v45  ;;  %2697 = vmatpush.msrb.mxu3 %v8181_v36  ;;  %vm2105_vm1 = vweird.f32 %v6506_v18  ;;  %v2110_v36 = vand.u32 2147483648, %v6455_v45 }
 0x32f   :  { %v2068_v33 = vsel %vm6522_vm13, %v6461_v38, %v2064_v50  ;;  %v6551_v60 = vadd.f32 1.0, %v4350_v16  ;;  %v4352_v34 = vpop.eup %4351  ;;  %2639 = vmatpush.msrb.mxu0 %v6535_v42  ;;  %v8187_v16 = vld [vmem:[#allocation107_spill] sm:$0xff]  ;;  %vm6586_vm3 = vmor %vm2104_vm2, %vm2105_vm1 }
 0x330   :  { %v2073_v22 = vsel %vm6526_vm14, %v2072_v20, %v2068_v33  ;;  %v2087_v38 = vsel %vm6543_vm15, %v6465_v41, %v2083_v37  ;;  %v2101_v9 = vsub.f32 1.0, %v2100_v52  ;;  %2698 = vmatpush.msrb.mxu3 %v6516_v39  ;;  %v2245_v20 = vpop.f32.mrf.mxu2  ;;  %v4354_v41 = vpop.eup %4353 }
 0x331   :  { %v2092_v21 = vsel %vm2089_vm0, %v2091_v4, %v2087_v38  ;;  %v2115_v50 = vmul.f32 %v4352_v34, %v2073_v22  ;;  %4357 = vrcp.f32 %v6551_v60  ;;  %v6575_v37 = vadd.f32 1.0, %v4354_v41 }
 0x332   :  { %v2114_v32 = vmul.f32 %v2092_v21, %v8187_v16  ;;  %v2102_v2 = vmul.f32 %v6506_v18, %v2101_v9  ;;  %2699 = vmatpush.msrb.mxu3 %v6557_v27  ;;  %v4356_v52 = vpop.eup %4355  ;;  %v2270_v4 = vadd.f32 %v2245_v20, %v8189_v55  ;;  %v2108_v38 = vand.u32 2147483647, %v6455_v45 }
 0x333   :  { %v2277_v34 = vmul.f32 %v4356_v52, %v6510_v43  ;;  %v2111_v16 = vor.u32 1.1754944e-38, %v2110_v36  ;;  %vm2282_vm4 = vweird.f32 %v4356_v52  ;;  %v2285_v45 = vand.u32 2147483647, %v6510_v43 }
 0x334   :  { %v6573_v58 = vadd.f32 %v2115_v50, %v2114_v32  ;;  %v2103_v33 = vadd.f32 %v6506_v18, %v2102_v2  ;;  %v2287_v32 = vand.u32 2147483648, %v6510_v43  ;;  %v2306_v55 = vand.u32 2147483648, %v6551_v60  ;;  %vm2283_vm9 = vmor %vm2281_vm5, %vm2282_vm4 }
 0x335   :  { %v2278_v21 = vsub.f32 1.0, %v2277_v34  ;;  %v2304_v34 = vand.u32 2147483647, %v6551_v60  ;;  %vm2109_vm6 = vcmp.eq.f32.partialorder %v2108_v38, 8.507059e+37  ;;  %vm2300_vm8 = vweird.f32 %v6551_v60 }
 0x336   :  { %8188 = vst [vmem:[#allocation73_spill] sm:$0xff] %v6573_v58  ;;  %4359 = vtanh.f32 %v6573_v58  ;;  %v2107_v2 = vsel %vm6586_vm3, %v6506_v18, %v2103_v33  ;;  %v2288_v18 = vor.u32 1.1754944e-38, %v2287_v32  ;;  %vm2286_vm10 = vcmp.eq.f32.partialorder %v2285_v45, 8.507059e+37  ;;  %v8207_v32 = vld [vmem:[#allocation125_spill] sm:$0xff]  ;;  %v8210_v45 = vld [vmem:[#allocation22_spill] sm:$0xff] }
 0x337   :  { %v4358_v22 = vpop.eup %4357  ;;  %4361 = vrcp.f32 %v6575_v37  ;;  %v2279_v41 = vmul.f32 %v4356_v52, %v2278_v21  ;;  %v2112_v15 = vsel %vm2109_vm6, %v2111_v16, %v2107_v2  ;;  %v2307_v38 = vor.u32 1.1754944e-38, %v2306_v55  ;;  %v8211_v55 = vld [vmem:[#allocation23_spill] sm:$0xff] }
 0x338   :  { %v2296_v50 = vmul.f32 %v4358_v22, %v6551_v60  ;;  %4363 = vtanh.f32 %v2270_v4  ;;  %vm2301_vm7 = vweird.f32 %v4358_v22  ;;  %vm2305_vm12 = vcmp.eq.f32.partialorder %v2304_v34, 8.507059e+37  ;;  %v8212_v34 = vld [vmem:[#allocation25_spill] sm:$0xff] }
 0x339   :  { %v2280_v4 = vadd.f32 %v4356_v52, %v2279_v41  ;;  %vm2302_vm11 = vmor %vm2300_vm8, %vm2301_vm7  ;;  %vm2320_vm14 = vweird.f32 %v6575_v37  ;;  %v8209_v41 = vld [vmem:[#allocation127_spill] sm:$0xff] }
 0x33a   :  { %v2297_v20 = vsub.f32 1.0, %v2296_v50 }
 0x33b   :  { %v2284_v9 = vsel %vm2283_vm9, %v4356_v52, %v2280_v4  ;;  %v8214_v4 = vld [vmem:[#allocation60_spill] sm:$0xff] }
 0x33c   :  { %v4360_v36 = vpop.eup %4359  ;;  %v2298_v27 = vmul.f32 %v4358_v22, %v2297_v20  ;;  %v2289_v31 = vsel %vm2286_vm10, %v2288_v18, %v2284_v9  ;;  %v8208_v20 = vld [vmem:[#allocation126_spill] sm:$0xff]  ;;  %v8215_v18 = vld [vmem:[#allocation24_spill] sm:$0xff] }
 0x33d   :  { %v4362_v58 = vpop.eup %4361  ;;  %v6600_v33 = vmul.f32 %v4360_v36, %v2112_v15  ;;  %v8213_v36 = vld [vmem:[#allocation59_spill] sm:$0xff]  ;;  %v8216_v9 = vld [vmem:[#allocation62_spill] sm:$0xff] }
 0x33e   :  { %v2299_v21 = vadd.f32 %v4358_v22, %v2298_v27  ;;  %v2316_v43 = vmul.f32 %v4362_v58, %v6575_v37  ;;  %v4364_v50 = vpop.eup %4363  ;;  %vm2321_vm13 = vweird.f32 %v4362_v58 }
 0x33f   :  { %2424 = vmatmul.f32.vlgmr.msra.gmra.mxu0 %v6600_v33  ;;  %2444 = vmatmul.f32.vlgmr.msra.gmra.mxu1 %v6600_v33  ;;  %v2331_v60 = vmul.f32 %v4364_v50, %v2289_v31  ;;  %vm2322_vm15 = vmor %vm2320_vm14, %vm2321_vm13  ;;  %v8219_v50 = vld [vmem:[#allocation69_spill] sm:$0xff] }
 0x340   :  { %v2303_v16 = vsel %vm2302_vm11, %v4358_v22, %v2299_v21  ;;  %v2317_v2 = vsub.f32 1.0, %v2316_v43  ;;  %2464 = vmatmul.f32.vlgmr.msra.gmra.mxu2 %v6600_v33  ;;  %2484 = vmatmul.f32.vlgmr.msra.gmra.mxu3 %v6600_v33  ;;  %v8206_v22 = vld [vmem:[#allocation124_spill] sm:$0xff]  ;;  %v8217_v21 = vld [vmem:[#allocation67_spill] sm:$0xff] }
 0x341   :  { %v2308_v15 = vsel %vm2305_vm12, %v2307_v38, %v2303_v16  ;;  %2844 = vmatpush.msra.mxu0 %v6206_v44  ;;  %2864 = vmatpush.msra.mxu1 %v6208_v47  ;;  %v2326_v47 = vand.u32 2147483648, %v6575_v37  ;;  %v8218_v43 = vld [vmem:[#allocation68_spill] sm:$0xff]  ;;  %v6674_v16 = vld [vmem:[#allocation8 + $0x48] sm:$0xff] }
 0x342   :  { %v2330_v27 = vmul.f32 %v2308_v15, %v6224_v35  ;;  %v2318_v52 = vmul.f32 %v4362_v58, %v2317_v2  ;;  %2884 = vmatpush.msra.mxu2 %v6214_v40  ;;  %2904 = vmatpush.msra.mxu3 %v6216_v46  ;;  %v2324_v40 = vand.u32 2147483647, %v6575_v37  ;;  %v8193_v35 = vld [vmem:[#allocation111_spill] sm:$0xff]  ;;  %v6672_v38 = vld [vmem:[#allocation8 + $0x40] sm:$0xff]  ;;  %v6698_v15 = vld [vmem:[#allocation8 + $0x8] sm:$0xff] }
 0x343   :  { %2845 = vmatpush.msra.mxu0 %v6220_v28  ;;  %2865 = vmatpush.msra.mxu1 %v6222_v61  ;;  %v2327_v28 = vor.u32 1.1754944e-38, %v2326_v47  ;;  %v8192_v61 = vld [vmem:[#allocation109_spill] sm:$0xff]  ;;  %v8205_v37 = vld [vmem:[#allocation123_spill] sm:$0xff]  ;;  %v6696_v2 = vld [vmem:[#allocation8] sm:$0xff] }
 0x344   :  { %v6614_v31 = vadd.f32 %v2331_v60, %v2330_v27  ;;  %2885 = vmatpush.msra.mxu2 %v6228_v24  ;;  %2905 = vmatpush.msra.mxu3 %v6230_v48  ;;  %v2319_v44 = vadd.f32 %v4362_v58, %v2318_v52  ;;  %vm2325_vm0 = vcmp.eq.f32.partialorder %v2324_v40, 8.507059e+37  ;;  %v8194_v24 = vld [vmem:[#allocation112_spill] sm:$0xff]  ;;  %v6676_v60 = vld [vmem:[#allocation8 + $0x50] sm:$0xff]  ;;  %v8220_v52 = vld [vmem:[#allocation13_spill] sm:$0xff] }
 0x345   :  { %2846 = vmatpush.msra.mxu0 %v6236_v8  ;;  %2866 = vmatpush.msra.mxu1 %v6238_v5  ;;  %v8195_v5 = vld [vmem:[#allocation113_spill] sm:$0xff]  ;;  %v6700_v27 = vld [vmem:[#allocation8 + $0x10] sm:$0xff]  ;;  %v8221_v47 = vld [vmem:[#allocation15_spill] sm:$0xff] }
 0x346   :  { %4365 = vtanh.f32 %v6614_v31  ;;  %2886 = vmatpush.msra.mxu2 %v6244_v56  ;;  %2906 = vmatpush.msra.mxu3 %v6246_v11  ;;  %v2323_v46 = vsel %vm2322_vm15, %v4362_v58, %v2319_v44  ;;  %v8196_v56 = vld [vmem:[#allocation114_spill] sm:$0xff]  ;;  %v500_v44 = vadd.f32 %v5222_v57, %v8220_v52  ;;  %v501_v40 = vadd.f32 %v5225_v1, %v8221_v47  ;;  %v6774_v52 = vld [vmem:[#allocation8 + $0x348] sm:$0xff] }
 0x347   :  { %2847 = vmatpush.msra.mxu0 %v6252_v26  ;;  %2867 = vmatpush.msra.mxu1 %v6254_v13  ;;  %v2328_v8 = vsel %vm2325_vm0, %v2327_v28, %v2323_v46  ;;  %v8197_v26 = vld [vmem:[#allocation115_spill] sm:$0xff]  ;;  %v8198_v13 = vld [vmem:[#allocation116_spill] sm:$0xff]  ;;  %v8204_v58 = vld [vmem:[#allocation122_spill] sm:$0xff]  ;;  %8230 = vst [vmem:[#allocation27_spill] sm:$0xff] %v6774_v52 }
 0x348   :  { %2887 = vmatpush.msra.mxu2 %v6264_v25  ;;  %2907 = vmatpush.msra.mxu3 %v6266_v62  ;;  %v8199_v25 = vld [vmem:[#allocation117_spill] sm:$0xff]  ;;  %v8200_v62 = vld [vmem:[#allocation118_spill] sm:$0xff]  ;;  %v6708_v46 = vld [vmem:[#allocation8 + $0x18] sm:$0xff] }
 0x349   :  { %2848 = vmatpush.msra.mxu0 %v6273_v30  ;;  %2868 = vmatpush.msra.mxu1 %v6275_v0  ;;  %v8201_v30 = vld [vmem:[#allocation119_spill] sm:$0xff]  ;;  %v8202_v0 = vld [vmem:[#allocation120_spill] sm:$0xff] }
 0x34a   :  { %2888 = vmatpush.msra.mxu2 %v6279_v12  ;;  %2908 = vmatpush.msra.mxu3 %v8192_v61  ;;  %v8203_v12 = vld [vmem:[#allocation121_spill] sm:$0xff]  ;;  %v6710_v28 = vld [vmem:[#allocation8 + $0x3e0] sm:$0xff] }
 0x34b   :  { %2849 = vmatpush.msra.mxu0 %v8193_v35  ;;  %2869 = vmatpush.msra.mxu1 %v8194_v24  ;;  %v6712_v61 = vld [vmem:[#allocation8 + $0x3e8] sm:$0xff] }
 0x34c   :  { %v4366_v48 = vpop.eup %4365  ;;  %2889 = vmatpush.msra.mxu2 %v8195_v5  ;;  %2909 = vmatpush.msra.mxu3 %v8196_v56 }
 0x34d   :  { %v6638_v11 = vmul.f32 %v4366_v48, %v2328_v8  ;;  %2850 = vmatpush.msra.mxu0 %v8197_v26  ;;  %2870 = vmatpush.msra.mxu1 %v8198_v13  ;;  %v6716_v48 = vld [vmem:[#allocation8 + $0x3f0] sm:$0xff]  ;;  %v6718_v8 = vld [vmem:[#allocation8 + $0x3f8] sm:$0xff]  ;;  %v6722_v26 = vld [vmem:[#allocation8 + $0x3c0] sm:$0xff] }
 0x34e   :  { %2890 = vmatpush.msra.mxu2 %v8199_v25  ;;  %2910 = vmatpush.msra.mxu3 %v8200_v62  ;;  %v6724_v13 = vld [vmem:[#allocation8 + $0x3c8] sm:$0xff]  ;;  %v6726_v25 = vld [vmem:[#allocation8 + $0x3d0] sm:$0xff]  ;;  %v6730_v62 = vld [vmem:[#allocation8 + $0x3d8] sm:$0xff] }
 0x34f   :  { %2640 = vmatmul.f32.vlgmr.msrb.gmra.mxu0 %v6638_v11  ;;  %2660 = vmatmul.f32.vlgmr.msrb.gmra.mxu1 %v6638_v11 }
 0x350   :  { %2680 = vmatmul.f32.vlgmr.msrb.gmra.mxu2 %v6638_v11  ;;  %2700 = vmatmul.f32.vlgmr.msrb.gmra.mxu3 %v6638_v11 }
 0x351   :  { %2851 = vmatpush.msra.mxu0 %v8201_v30  ;;  %2871 = vmatpush.msra.mxu1 %v8202_v0 }
 0x352   :  { %2891 = vmatpush.msra.mxu2 %v8203_v12  ;;  %2911 = vmatpush.msra.mxu3 %v8204_v58  ;;  %v6734_v12 = vld [vmem:[#allocation8 + $0x3a0] sm:$0xff]  ;;  %v6736_v58 = vld [vmem:[#allocation8 + $0x3a8] sm:$0xff] }
 0x353   :  { %2852 = vmatpush.msra.mxu0 %v8205_v37  ;;  %2872 = vmatpush.msra.mxu1 %v8206_v22  ;;  %v6740_v37 = vld [vmem:[#allocation8 + $0x3b0] sm:$0xff]  ;;  %v6742_v22 = vld [vmem:[#allocation8 + $0x3b8] sm:$0xff] }
 0x354   :  { %2892 = vmatpush.msra.mxu2 %v8207_v32  ;;  %2912 = vmatpush.msra.mxu3 %v8208_v20  ;;  %v6746_v32 = vld [vmem:[#allocation8 + $0x380] sm:$0xff]  ;;  %v6748_v20 = vld [vmem:[#allocation8 + $0x388] sm:$0xff] }
 0x355   :  { %2853 = vmatpush.msra.mxu0 %v8209_v41  ;;  %2873 = vmatpush.msra.mxu1 %v8210_v45  ;;  %v6750_v41 = vld [vmem:[#allocation8 + $0x390] sm:$0xff] }
 0x356   :  { %2893 = vmatpush.msra.mxu2 %v8211_v55  ;;  %2913 = vmatpush.msra.mxu3 %v8212_v34  ;;  %8222 = vst [vmem:[#allocation74_spill] sm:$0xff] %v6750_v41  ;;  %v8223_v45 = vld [vmem:[#allocation18_spill] sm:$0xff]  ;;  %v6756_v34 = vld [vmem:[#allocation8 + $0x398] sm:$0xff] }
 0x357   :  { %2854 = vmatpush.msra.mxu0 %v8213_v36  ;;  %2874 = vmatpush.msra.mxu1 %v8214_v4  ;;  %v503_v55 = vadd.f32 %v7985_v54, %v8223_v45  ;;  %8224 = vst [vmem:[#allocation76_spill] sm:$0xff] %v6756_v34  ;;  %v6760_v4 = vld [vmem:[#allocation8 + $0x360] sm:$0xff]  ;;  %v6794_v45 = vld [vmem:[#allocation8 + $0x338] sm:$0xff] }
 0x358   :  { %2894 = vmatpush.msra.mxu2 %v8215_v18  ;;  %2914 = vmatpush.msra.mxu3 %v8216_v9  ;;  %8225 = vst [vmem:[#allocation77_spill] sm:$0xff] %v6760_v4  ;;  %v6762_v18 = vld [vmem:[#allocation8 + $0x368] sm:$0xff]  ;;  %v6764_v9 = vld [vmem:[#allocation8 + $0x370] sm:$0xff] }
 0x359   :  { %2855 = vmatpush.msra.mxu0 %v6367_v51  ;;  %2875 = vmatpush.msra.mxu1 %v6369_v63  ;;  %v6680_v63 = vld [vmem:[#allocation8 + $0x58] sm:$0xff]  ;;  %8226 = vst [vmem:[#allocation21_spill] sm:$0xff] %v6762_v18 }
 0x35a   :  { %2895 = vmatpush.msra.mxu2 %v6371_v6  ;;  %2915 = vmatpush.msra.mxu3 %v6375_v7  ;;  %v6686_v6 = vld [vmem:[#allocation8 + $0x28] sm:$0xff]  ;;  %v6688_v7 = vld [vmem:[#allocation8 + $0x30] sm:$0xff]  ;;  %v6692_v51 = vld [vmem:[#allocation8 + $0x38] sm:$0xff]  ;;  %8227 = vst [vmem:[#allocation75_spill] sm:$0xff] %v6764_v9 }
 0x35b   :  { %2856 = vmatpush.msra.mxu0 %v6379_v17  ;;  %2876 = vmatpush.msra.mxu1 %v8217_v21  ;;  %v6684_v17 = vld [vmem:[#allocation8 + $0x20] sm:$0xff]  ;;  %8236 = vst [vmem:[#allocation84_spill] sm:$0xff] %v6794_v45 }
 0x35c   :  { %2896 = vmatpush.msra.mxu2 %v8218_v43  ;;  %2916 = vmatpush.msra.mxu3 %v8219_v50  ;;  %v6768_v43 = vld [vmem:[#allocation8 + $0x378] sm:$0xff]  ;;  %v6772_v50 = vld [vmem:[#allocation8 + $0x340] sm:$0xff] }
 0x35d   :  { %2857 = vmatpush.msra.mxu0 %v6672_v38  ;;  %2877 = vmatpush.msra.mxu1 %v6674_v16  ;;  %8228 = vst [vmem:[#allocation61_spill] sm:$0xff] %v6768_v43 }
 0x35e   :  { %2897 = vmatpush.msra.mxu2 %v6676_v60  ;;  %2917 = vmatpush.msra.mxu3 %v6680_v63  ;;  %8229 = vst [vmem:[#allocation26_spill] sm:$0xff] %v6772_v50 }
 0x35f   :  { %2858 = vmatpush.msra.mxu0 %v6684_v17  ;;  %2878 = vmatpush.msra.mxu1 %v6686_v6 }
 0x360   :  { %2898 = vmatpush.msra.mxu2 %v6688_v7  ;;  %2918 = vmatpush.msra.mxu3 %v6692_v51 }
 0x361   :  { %2859 = vmatpush.msra.mxu0 %v6696_v2  ;;  %2879 = vmatpush.msra.mxu1 %v6698_v15 }
 0x362   :  { %2899 = vmatpush.msra.mxu2 %v6700_v27  ;;  %2919 = vmatpush.msra.mxu3 %v6708_v46 }
 0x363   :  { %3060 = vmatpush.msrb.mxu0 %v6710_v28  ;;  %3080 = vmatpush.msrb.mxu1 %v6712_v61 }
 0x364   :  { %3100 = vmatpush.msrb.mxu2 %v6716_v48  ;;  %3120 = vmatpush.msrb.mxu3 %v6718_v8 }
 0x365   :  { %3061 = vmatpush.msrb.mxu0 %v6722_v26  ;;  %3081 = vmatpush.msrb.mxu1 %v6724_v13 }
 0x366   :  { %3101 = vmatpush.msrb.mxu2 %v6726_v25  ;;  %3121 = vmatpush.msrb.mxu3 %v6730_v62 }
 0x367   :  { %3062 = vmatpush.msrb.mxu0 %v6734_v12  ;;  %3082 = vmatpush.msrb.mxu1 %v6736_v58 }
 0x368   :  { %3102 = vmatpush.msrb.mxu2 %v6740_v37  ;;  %3122 = vmatpush.msrb.mxu3 %v6742_v22 }
 0x369   :  { %3063 = vmatpush.msrb.mxu0 %v6746_v32  ;;  %3083 = vmatpush.msrb.mxu1 %v6748_v20 }
 0x36a   :  { %3103 = vmatpush.msrb.mxu2 %v6750_v41  ;;  %3123 = vmatpush.msrb.mxu3 %v6756_v34 }
 0x36b   :  { %3064 = vmatpush.msrb.mxu0 %v6760_v4  ;;  %3084 = vmatpush.msrb.mxu1 %v6762_v18  ;;  %v6832_v18 = vld [vmem:[#allocation8 + $0x2d0] sm:$0xff]  ;;  %v8250_v4 = vld [vmem:[#allocation16_spill] sm:$0xff] }
 0x36c   :  { %3104 = vmatpush.msrb.mxu2 %v6764_v9  ;;  %3124 = vmatpush.msrb.mxu3 %v6768_v43  ;;  %v6830_v9 = vld [vmem:[#allocation8 + $0x2c8] sm:$0xff]  ;;  %8249 = vst [vmem:[#allocation12_spill] sm:$0xff] %v6832_v18 }
 0x36d   :  { %3065 = vmatpush.msrb.mxu0 %v6772_v50  ;;  %3085 = vmatpush.msrb.mxu1 %v6774_v52  ;;  %v6804_v52 = vld [vmem:[#allocation8 + $0x310] sm:$0xff]  ;;  %8248 = vst [vmem:[#allocation90_spill] sm:$0xff] %v6830_v9 }
 0x36e   :  { %8239 = vst [vmem:[#allocation64_spill] sm:$0xff] %v6804_v52 }
 0x3bc   :  { %v2425_v35 = vpop.f32.mrf.mxu0  ;;  %v2445_v24 = vpop.f32.mrf.mxu1 }
 0x3bd   :  { %v2488_v5 = vadd.f32 %v2425_v35, %v500_v44  ;;  %v2489_v56 = vadd.f32 %v2445_v24, %v501_v40  ;;  %v6776_v44 = vld [vmem:[#allocation8 + $0x350] sm:$0xff]  ;;  %v6780_v40 = vld [vmem:[#allocation8 + $0x358] sm:$0xff]  ;;  %v6784_v24 = vld [vmem:[#allocation8 + $0x320] sm:$0xff] }
 0x3be   :  { %8231 = vst [vmem:[#allocation14_spill] sm:$0xff] %v6776_v44  ;;  %3105 = vmatpush.msrb.mxu2 %v6776_v44  ;;  %3125 = vmatpush.msrb.mxu3 %v6780_v40  ;;  %v8245_v44 = vld [vmem:[#allocation51_spill] sm:$0xff] }
 0x3bf   :  { %v4208_v30 = vmul.f32 -1.442695, %v2488_v5  ;;  %v4209_v0 = vmul.f32 -1.442695, %v2489_v56  ;;  %8232 = vst [vmem:[#allocation80_spill] sm:$0xff] %v6780_v40  ;;  %v6786_v5 = vld [vmem:[#allocation8 + $0x328] sm:$0xff]  ;;  %3066 = vmatpush.msrb.mxu0 %v6784_v24 }
 0x3c0   :  { %8233 = vst [vmem:[#allocation81_spill] sm:$0xff] %v6784_v24  ;;  %v6788_v56 = vld [vmem:[#allocation8 + $0x330] sm:$0xff]  ;;  %3086 = vmatpush.msrb.mxu1 %v6786_v5  ;;  %3126 = vmatpush.msrb.mxu3 %v6794_v45  ;;  %v6822_v45 = vld [vmem:[#allocation8 + $0x2f8] sm:$0xff] }
 0x3c1   :  { %4367 = vpow2.f32 %v4208_v30  ;;  %8234 = vst [vmem:[#allocation82_spill] sm:$0xff] %v6786_v5  ;;  %3106 = vmatpush.msrb.mxu2 %v6788_v56  ;;  %v6818_v5 = vld [vmem:[#allocation8 + $0x2f0] sm:$0xff] }
 0x3c2   :  { %4369 = vpow2.f32 %v4209_v0  ;;  %8235 = vst [vmem:[#allocation83_spill] sm:$0xff] %v6788_v56 }
 0x3c3   :  { %v2485_v36 = vpop.f32.mrf.mxu3  ;;  %8243 = vst [vmem:[#allocation87_spill] sm:$0xff] %v6818_v5  ;;  %3107 = vmatpush.msrb.mxu2 %v6804_v52  ;;  %v2465_v56 = vpop.f32.mrf.mxu2 }
 0x3c4   :  { %v2491_v21 = vadd.f32 %v2485_v36, %v503_v55  ;;  %v6800_v36 = vld [vmem:[#allocation8 + $0x300] sm:$0xff]  ;;  %8244 = vst [vmem:[#allocation88_spill] sm:$0xff] %v6822_v45 }
 0x3c5   :  { %8237 = vst [vmem:[#allocation85_spill] sm:$0xff] %v6800_v36  ;;  %3067 = vmatpush.msrb.mxu0 %v6800_v36  ;;  %v8246_v36 = vld [vmem:[#allocation52_spill] sm:$0xff]  ;;  %3108 = vmatpush.msrb.mxu2 %v6818_v5  ;;  %v6878_v5 = vld [vmem:[#allocation8 + $0x270] sm:$0xff] }
 0x3c6   :  { %v4210_v47 = vmul.f32 -1.442695, %v2491_v21  ;;  %v6802_v21 = vld [vmem:[#allocation8 + $0x308] sm:$0xff] }
 0x3c7   :  { %v4368_v35 = vpop.eup %4367  ;;  %8238 = vst [vmem:[#allocation63_spill] sm:$0xff] %v6802_v21  ;;  %3087 = vmatpush.msrb.mxu1 %v6802_v21  ;;  %v6828_v21 = vld [vmem:[#allocation8 + $0x2c0] sm:$0xff]  ;;  %3109 = vmatpush.msrb.mxu2 %v6832_v18 }
 0x3c8   :  { %v4370_v30 = vpop.eup %4369  ;;  %v6790_v0 = vadd.f32 1.0, %v4368_v35  ;;  %4371 = vpow2.f32 %v4210_v47  ;;  %v6809_v47 = vld [vmem:[#allocation8 + $0x318] sm:$0xff]  ;;  %v6814_v35 = vld [vmem:[#allocation8 + $0x2e0] sm:$0xff]  ;;  %8247 = vst [vmem:[#allocation89_spill] sm:$0xff] %v6828_v21 }
 0x3c9   :  { %v6796_v55 = vadd.f32 1.0, %v4370_v30  ;;  %8240 = vst [vmem:[#allocation86_spill] sm:$0xff] %v6809_v47  ;;  %v6816_v30 = vld [vmem:[#allocation8 + $0x2e8] sm:$0xff]  ;;  %3127 = vmatpush.msrb.mxu3 %v6809_v47  ;;  %3068 = vmatpush.msrb.mxu0 %v6814_v35  ;;  %v502_v47 = vadd.f32 %v8159_v29, %v8250_v4  ;;  %v6871_v18 = vld [vmem:[#allocation8 + $0x260] sm:$0xff]  ;;  %v8257_v29 = vld [vmem:[#allocation54_spill] sm:$0xff] }
 0x3ca   :  { %4373 = vrcp.f32 %v6790_v0  ;;  %8241 = vst [vmem:[#allocation55_spill] sm:$0xff] %v6814_v35  ;;  %3088 = vmatpush.msrb.mxu1 %v6816_v30  ;;  %v6850_v4 = vld [vmem:[#allocation8 + $0x2a8] sm:$0xff]  ;;  %3110 = vmatpush.msrb.mxu2 %v6459_v59  ;;  %vm2501_vm4 = vweird.f32 %v6790_v0 }
 0x3cb   :  { %4375 = vrcp.f32 %v6796_v55  ;;  %8242 = vst [vmem:[#allocation56_spill] sm:$0xff] %v6816_v30  ;;  %3128 = vmatpush.msrb.mxu3 %v6822_v45  ;;  %3069 = vmatpush.msrb.mxu0 %v6828_v21  ;;  %v6844_v30 = vld [vmem:[#allocation8 + $0x2a0] sm:$0xff]  ;;  %v2490_v34 = vadd.f32 %v2465_v56, %v502_v47  ;;  %v6852_v45 = vld [vmem:[#allocation8 + $0x2b8] sm:$0xff]  ;;  %v6863_v56 = vld [vmem:[#allocation8 + $0x288] sm:$0xff]  ;;  %vm2520_vm3 = vweird.f32 %v6796_v55 }
 0x3cc   :  { %v2641_v24 = vpop.f32.mrf.mxu0  ;;  %v2661_v40 = vpop.f32.mrf.mxu1  ;;  %3089 = vmatpush.msrb.mxu1 %v6830_v9  ;;  %8252 = vst [vmem:[#allocation92_spill] sm:$0xff] %v6844_v30  ;;  %v6865_v47 = vld [vmem:[#allocation8 + $0x298] sm:$0xff]  ;;  %v6873_v9 = vld [vmem:[#allocation8 + $0x268] sm:$0xff]  ;;  %3111 = vmatpush.msrb.mxu2 %v6472_v14 }
 0x3cd   :  { %v2704_v50 = vadd.f32 %v2641_v24, %v8245_v44  ;;  %v2705_v43 = vadd.f32 %v2661_v40, %v8246_v36  ;;  %v6838_v44 = vld [vmem:[#allocation8 + $0x2d8] sm:$0xff]  ;;  %8253 = vst [vmem:[#allocation93_spill] sm:$0xff] %v6850_v4  ;;  %3070 = vmatpush.msrb.mxu0 %v6844_v30 }
 0x3ce   :  { %v4372_v52 = vpop.eup %4371  ;;  %8251 = vst [vmem:[#allocation91_spill] sm:$0xff] %v6838_v44  ;;  %3129 = vmatpush.msrb.mxu3 %v6838_v44  ;;  %3090 = vmatpush.msrb.mxu1 %v6850_v4  ;;  %v2505_v4 = vand.u32 2147483647, %v6790_v0 }
 0x3cf   :  { %v6840_v40 = vadd.f32 1.0, %v4372_v52  ;;  %v4211_v24 = vmul.f32 -1.442695, %v2704_v50  ;;  %v4212_v36 = vmul.f32 -1.442695, %v2705_v43  ;;  %8254 = vst [vmem:[#allocation94_spill] sm:$0xff] %v6852_v45  ;;  %3112 = vmatpush.msrb.mxu2 %v6878_v5 }
 0x3d0   :  { %v6846_v35 = vpop.eup %4373  ;;  %v6861_v50 = vld [vmem:[#allocation8 + $0x280] sm:$0xff]  ;;  %8255 = vst [vmem:[#allocation20_spill] sm:$0xff] %v6863_v56  ;;  %3130 = vmatpush.msrb.mxu3 %v6852_v45  ;;  %3091 = vmatpush.msrb.mxu1 %v6863_v56  ;;  %v2507_v45 = vand.u32 2147483648, %v6790_v0  ;;  %v2524_v56 = vand.u32 2147483647, %v6796_v55  ;;  %vm6903_vm5 = vcmp.eq.f32.partialorder %v2505_v4, 8.507059e+37 }
 0x3d1   :  { %v6854_v52 = vpop.eup %4375  ;;  %v2497_v43 = vmul.f32 %v6846_v35, %v6790_v0  ;;  %4377 = vrcp.f32 %v6840_v40  ;;  %3071 = vmatpush.msrb.mxu0 %v6861_v50  ;;  %vm2502_vm1 = vweird.f32 %v6846_v35  ;;  %3113 = vmatpush.msrb.mxu2 %v6494_v19  ;;  %vm2540_vm10 = vweird.f32 %v6840_v40 }
 0x3d2   :  { %v2516_v44 = vmul.f32 %v6854_v52, %v6796_v55  ;;  %4379 = vpow2.f32 %v4211_v24  ;;  %v6880_v24 = vld [vmem:[#allocation8 + $0x278] sm:$0xff]  ;;  %3131 = vmatpush.msrb.mxu3 %v6865_v47  ;;  %3092 = vmatpush.msrb.mxu1 %v6873_v9  ;;  %vm2521_vm2 = vweird.f32 %v6854_v52  ;;  %vm6911_vm6 = vmor %vm2501_vm4, %vm2502_vm1  ;;  %vm2525_vm8 = vcmp.eq.f32.partialorder %v2524_v56, 8.507059e+37 }
 0x3d3   :  { %v2498_v30 = vsub.f32 1.0, %v2497_v43  ;;  %4381 = vpow2.f32 %v4212_v36  ;;  %v2701_v21 = vpop.f32.mrf.mxu3  ;;  %8256 = vst [vmem:[#allocation96_spill] sm:$0xff] %v6880_v24  ;;  %v2526_v36 = vand.u32 2147483648, %v6796_v55  ;;  %3072 = vmatpush.msrb.mxu0 %v6871_v18  ;;  %vm2522_vm7 = vmor %vm2520_vm3, %vm2521_vm2  ;;  %3114 = vmatpush.msrb.mxu2 %v6514_v10  ;;  %vm4105_vm1 = vcmask 261120  }
 0x3d4   :  { %v2517_v59 = vsub.f32 1.0, %v2516_v44  ;;  %4383 = vtanh.f32 %v2490_v34  ;;  %v2707_v41 = vadd.f32 %v2701_v21, %v8257_v29  ;;  %v6892_v44 = vld [vmem:[#allocation8 + $0x258] sm:$0xff]  ;;  %3132 = vmatpush.msrb.mxu3 %v6880_v24  ;;  %3093 = vmatpush.msrb.mxu1 %v6487_v23  ;;  %v2508_v24 = vor.u32 1.1754944e-38, %v2507_v45 }
 0x3d5   :  { %v2499_v43 = vmul.f32 %v6846_v35, %v2498_v30  ;;  %8258 = vst [vmem:[#allocation66_spill] sm:$0xff] %v6892_v44  ;;  %3073 = vmatpush.msrb.mxu0 %v6485_v3  ;;  %v2527_v23 = vor.u32 1.1754944e-38, %v2526_v36  ;;  %v2681_v30 = vpop.f32.mrf.mxu2 }
 0x3d6   :  { %v2518_v29 = vmul.f32 %v6854_v52, %v2517_v59  ;;  %v4213_v14 = vmul.f32 -1.442695, %v2707_v41  ;;  %3133 = vmatpush.msrb.mxu3 %v6892_v44  ;;  %3094 = vmatpush.msrb.mxu1 %v6504_v49  ;;  %v8264_v49 = vld [vmem:[#allocation73_spill] sm:$0xff] }
 0x3d7   :  { %v6898_v34 = vpop.eup %4377  ;;  %v2500_v21 = vadd.f32 %v6846_v35, %v2499_v43  ;;  %3074 = vmatpush.msrb.mxu0 %v6502_v53  ;;  %v8263_v53 = vld [vmem:[#allocation70_spill] sm:$0xff] }
 0x3d8   :  { %v4380_v41 = vpop.eup %4379  ;;  %v2519_v43 = vadd.f32 %v6854_v52, %v2518_v29  ;;  %v2536_v0 = vmul.f32 %v6898_v34, %v6840_v40  ;;  %4385 = vpow2.f32 %v4213_v14  ;;  %3134 = vmatpush.msrb.mxu3 %v6516_v39  ;;  %3095 = vmatpush.msrb.mxu1 %v8263_v53  ;;  %vm2541_vm9 = vweird.f32 %v6898_v34 }
 0x3d9   :  { %v4382_v3 = vpop.eup %4381  ;;  %v2504_v45 = vsel %vm6911_vm6, %v6846_v35, %v2500_v21  ;;  %v6927_v4 = vadd.f32 1.0, %v4380_v41  ;;  %3075 = vmatpush.msrb.mxu0 %v6535_v42  ;;  %v8266_v21 = vld [vmem:[#allocation72_spill] sm:$0xff]  ;;  %v2546_v41 = vand.u32 2147483648, %v6840_v40  ;;  %vm6957_vm11 = vmor %vm2540_vm10, %vm2541_vm9 }
 0x3da   :  { %v4384_v19 = vpop.eup %4383  ;;  %v2509_v29 = vsel %vm6903_vm5, %v2508_v24, %v2504_v45  ;;  %v2523_v14 = vsel %vm2522_vm7, %v6854_v52, %v2519_v43  ;;  %v2537_v55 = vsub.f32 1.0, %v2536_v0  ;;  %v6934_v44 = vadd.f32 1.0, %v4382_v3  ;;  %v8265_v52 = vld [vmem:[#allocation71_spill] sm:$0xff]  ;;  %3135 = vmatpush.msrb.mxu3 %v8266_v21  ;;  %v8267_v3 = vld [vmem:[#allocation53_spill] sm:$0xff] }
 0x3db   :  { %v2528_v35 = vsel %vm2525_vm8, %v2527_v23, %v2523_v14  ;;  %v2551_v56 = vmul.f32 %v4384_v19, %v2509_v29  ;;  %4387 = vrcp.f32 %v6927_v4  ;;  %3115 = vmatpush.msrb.mxu2 %v8265_v52  ;;  %v2544_v43 = vand.u32 2147483647, %v6840_v40 }
 0x3dc   :  { %v2550_v36 = vmul.f32 %v2528_v35, %v8264_v49  ;;  %v2538_v24 = vmul.f32 %v6898_v34, %v2537_v55  ;;  %4389 = vrcp.f32 %v6934_v44  ;;  %v2706_v23 = vadd.f32 %v2681_v30, %v8267_v3  ;;  %v6977_v3 = vld [vmem:[#allocation8 + $0x1e8] sm:$0xff] }
 0x3dd   :  { %v2547_v35 = vor.u32 1.1754944e-38, %v2546_v41  ;;  %vm2545_vm12 = vcmp.eq.f32.partialorder %v2544_v43, 8.507059e+37  ;;  %v2742_v53 = vand.u32 2147483648, %v6934_v44  ;;  %v2723_v49 = vand.u32 2147483648, %v6927_v4  ;;  %v6975_v43 = vld [vmem:[#allocation8 + $0x1e0] sm:$0xff] }
 0x3de   :  { %v4386_v10 = vpop.eup %4385  ;;  %v6946_v39 = vadd.f32 %v2551_v56, %v2550_v36  ;;  %v2539_v42 = vadd.f32 %v6898_v34, %v2538_v24  ;;  %v2721_v52 = vand.u32 2147483647, %v6927_v4  ;;  %v2740_v30 = vand.u32 2147483647, %v6934_v44 }
 0x3df   :  { %v6952_v59 = vadd.f32 1.0, %v4386_v10  ;;  %vm2736_vm15 = vweird.f32 %v6934_v44  ;;  %vm2717_vm0 = vweird.f32 %v6927_v4  ;;  %v2724_v19 = vor.u32 1.1754944e-38, %v2723_v49 }
 0x3e0   :  { %4391 = vtanh.f32 %v6946_v39  ;;  %v2543_v55 = vsel %vm6957_vm11, %v6898_v34, %v2539_v42  ;;  %vm2722_vm4 = vcmp.eq.f32.partialorder %v2721_v52, 8.507059e+37  ;;  %vm2741_vm5 = vcmp.eq.f32.partialorder %v2740_v30, 8.507059e+37  ;;  %v7019_v30 = vld [vmem:[#allocation8 + $0x1a8] sm:$0xff] }
 0x3e1   :  { %v4388_v0 = vpop.eup %4387  ;;  %4393 = vrcp.f32 %v6952_v59  ;;  %v2548_v21 = vsel %vm2545_vm12, %v2547_v35, %v2543_v55  ;;  %v6986_v35 = vld [vmem:[#allocation8 + $0x1f0] sm:$0xff]  ;;  %vm2756_vm7 = vweird.f32 %v6952_v59 }
 0x3e2   :  { %v4390_v45 = vpop.eup %4389  ;;  %v2713_v29 = vmul.f32 %v4388_v0, %v6927_v4  ;;  %4395 = vtanh.f32 %v2706_v23  ;;  %vm2718_vm13 = vweird.f32 %v4388_v0  ;;  %v6988_v4 = vld [vmem:[#allocation8 + $0x1f8] sm:$0xff] }
 0x3e3   :  { %v2732_v14 = vmul.f32 %v4390_v45, %v6934_v44  ;;  %vm2737_vm14 = vweird.f32 %v4390_v45  ;;  %vm6979_vm2 = vmor %vm2717_vm0, %vm2718_vm13 }
 0x3e4   :  { %v2714_v56 = vsub.f32 1.0, %v2713_v29  ;;  %vm6993_vm3 = vmor %vm2736_vm15, %vm2737_vm14 }
 0x3e5   :  { %v2733_v40 = vsub.f32 1.0, %v2732_v14 }
 0x3e6   :  { %v4392_v36 = vpop.eup %4391  ;;  %v2715_v24 = vmul.f32 %v4388_v0, %v2714_v56 }
 0x3e7   :  { %v2734_v10 = vmul.f32 %v4390_v45, %v2733_v40  ;;  %v2554_v34 = vmul.f32 %v4392_v36, %v2548_v21  ;;  %v6971_v42 = vpop.eup %4393  ;;  %v2743_v40 = vor.u32 1.1754944e-38, %v2742_v53  ;;  %v7001_v36 = vld [vmem:[#allocation8 + $0x1c8] sm:$0xff]  ;;  %v7013_v53 = vld [vmem:[#allocation8 + $0x1d8] sm:$0xff] }
 0x3e8   :  { %v2716_v41 = vadd.f32 %v4388_v0, %v2715_v24  ;;  %v2752_v14 = vmul.f32 %v6971_v42, %v6952_v59  ;;  %v4396_v24 = vpop.eup %4395  ;;  %vm2757_vm6 = vweird.f32 %v6971_v42 }
 0x3e9   :  { %v2735_v29 = vadd.f32 %v4390_v45, %v2734_v10  ;;  %2860 = vmatmul.f32.vlgmr.msra.gmra.mxu0 %v2554_v34  ;;  %v4101_v55 = vadd.f32 %v2554_v34, %v6638_v11  ;;  %2880 = vmatmul.f32.vlgmr.msra.gmra.mxu1 %v2554_v34  ;;  %v6999_v11 = vld [vmem:[#allocation8 + $0x1c0] sm:$0xff]  ;;  %vm2758_vm8 = vmor %vm2756_vm7, %vm2757_vm6 }
 0x3ea   :  { %v2720_v49 = vsel %vm6979_vm2, %v4388_v0, %v2716_v41  ;;  %2900 = vmatmul.f32.vlgmr.msra.gmra.mxu2 %v2554_v34  ;;  %2920 = vmatmul.f32.vlgmr.msra.gmra.mxu3 %v2554_v34  ;;  %v2753_v10 = vsub.f32 1.0, %v2752_v14  ;;  %v7011_v0 = vld [vmem:[#allocation8 + $0x1d0] sm:$0xff]  ;;  %v7031_v14 = vld [vmem:[#allocation8 + $0x180] sm:$0xff] }
 0x3eb   :  { %v2725_v21 = vsel %vm2722_vm4, %v2724_v19, %v2720_v49  ;;  %v2739_v44 = vsel %vm6993_vm3, %v4390_v45, %v2735_v29  ;;  %4110 = vst.msk [vmem:[%s7622_s4 + $0x20] sm:$0xff] %vm4105_vm1, %v4101_v55  ;;  %3280 = vmatpush.msra.mxu0 %v6975_v43  ;;  %3300 = vmatpush.msra.mxu1 %v6977_v3  ;;  %v7017_v45 = vld [vmem:[#allocation8 + $0x1a0] sm:$0xff]  ;;  %v7025_v19 = vld [vmem:[#allocation8 + $0x1b0] sm:$0xff]  ;;  %v7027_v29 = vld [vmem:[#allocation8 + $0x1b8] sm:$0xff] }
 0x3ec   :  { %v2744_v52 = vsel %vm2741_vm5, %v2743_v40, %v2739_v44  ;;  %v2767_v34 = vmul.f32 %v4396_v24, %v2725_v21  ;;  %3320 = vmatpush.msra.mxu2 %v6986_v35  ;;  %3340 = vmatpush.msra.mxu3 %v6988_v4  ;;  %v2754_v23 = vmul.f32 %v6971_v42, %v2753_v10  ;;  %v7033_v55 = vld [vmem:[#allocation8 + $0x188] sm:$0xff]  ;;  %v7041_v40 = vld [vmem:[#allocation8 + $0x198] sm:$0xff]  ;;  %v7047_v24 = vld [vmem:[#allocation8 + $0x160] sm:$0xff]  ;;  %v2762_v44 = vand.u32 2147483648, %v6952_v59 }
 0x3ed   :  { %v2766_v41 = vmul.f32 %v2744_v52, %v6614_v31  ;;  %3281 = vmatpush.msra.mxu0 %v6999_v11  ;;  %3301 = vmatpush.msra.mxu1 %v7001_v36  ;;  %8274 = vst [vmem:[#allocation97_spill] sm:$0xff] %v7033_v55  ;;  %v7039_v31 = vld [vmem:[#allocation8 + $0x190] sm:$0xff]  ;;  %v7049_v21 = vld [vmem:[#allocation8 + $0x168] sm:$0xff]  ;;  %v7057_v52 = vld [vmem:[#allocation8 + $0x178] sm:$0xff] }
 0x3ee   :  { %3321 = vmatpush.msra.mxu2 %v7011_v0  ;;  %3341 = vmatpush.msra.mxu3 %v7013_v53  ;;  %8275 = vst [vmem:[#allocation98_spill] sm:$0xff] %v7039_v31  ;;  %v2755_v49 = vadd.f32 %v6971_v42, %v2754_v23  ;;  %v7055_v10 = vld [vmem:[#allocation8 + $0x170] sm:$0xff]  ;;  %v2763_v23 = vor.u32 1.1754944e-38, %v2762_v44 }
 0x3ef   :  { %v7035_v56 = vadd.f32 %v2767_v34, %v2766_v41  ;;  %3282 = vmatpush.msra.mxu0 %v7017_v45  ;;  %3302 = vmatpush.msra.mxu1 %v7019_v30  ;;  %8276 = vst [vmem:[#allocation58_spill] sm:$0xff] %v7041_v40  ;;  %v2760_v34 = vand.u32 2147483647, %v6952_v59  ;;  %v7079_v44 = vld [vmem:[#allocation8 + $0x150] sm:$0xff] }
 0x3f0   :  { %3322 = vmatpush.msra.mxu2 %v7025_v19  ;;  %3342 = vmatpush.msra.mxu3 %v7027_v29  ;;  %v2759_v41 = vsel %vm2758_vm8, %v6971_v42, %v2755_v49  ;;  %v7075_v42 = vld [vmem:[#allocation8 + $0x140] sm:$0xff]  ;;  %v7077_v49 = vld [vmem:[#allocation8 + $0x148] sm:$0xff] }
 0x3f1   :  { %4397 = vtanh.f32 %v7035_v56  ;;  %3283 = vmatpush.msra.mxu0 %v7031_v14  ;;  %3303 = vmatpush.msra.mxu1 %v7033_v55  ;;  %vm2761_vm9 = vcmp.eq.f32.partialorder %v2760_v34, 8.507059e+37  ;;  %v7095_v34 = vld [vmem:[#allocation8 + $0x138] sm:$0xff] }
 0x3f2   :  { %3323 = vmatpush.msra.mxu2 %v7039_v31  ;;  %3343 = vmatpush.msra.mxu3 %v7041_v40  ;;  %v2764_v55 = vsel %vm2761_vm9, %v2763_v23, %v2759_v41  ;;  %8281 = vst [vmem:[#allocation103_spill] sm:$0xff] %v7095_v34  ;;  %v7099_v41 = vld [vmem:[#allocation8 + $0x100] sm:$0xff]  ;;  %v7101_v23 = vld [vmem:[#allocation8 + $0x108] sm:$0xff] }
 0x3f3   :  { %3284 = vmatpush.msra.mxu0 %v7047_v24  ;;  %3304 = vmatpush.msra.mxu1 %v7049_v21  ;;  %8282 = vst [vmem:[#allocation104_spill] sm:$0xff] %v7099_v41 }
 0x3f4   :  { %3324 = vmatpush.msra.mxu2 %v7055_v10  ;;  %3344 = vmatpush.msra.mxu3 %v7057_v52  ;;  %8283 = vst [vmem:[#allocation105_spill] sm:$0xff] %v7101_v23 }
 0x3f5   :  { %3285 = vmatpush.msra.mxu0 %v7075_v42  ;;  %3305 = vmatpush.msra.mxu1 %v7077_v49 }
 0x3f6   :  { %3325 = vmatpush.msra.mxu2 %v7079_v44 }
 0x3f7   :  { %v4398_v59 = vpop.eup %4397 }
 0x3f8   :  { %v2770_v31 = vmul.f32 %v4398_v59, %v2764_v55  ;;  %v7083_v55 = vld [vmem:[#allocation8 + $0x158] sm:$0xff]  ;;  %v7103_v59 = vld [vmem:[#allocation8 + $0x110] sm:$0xff] }
 0x3f9   :  { %8277 = vst [vmem:[#allocation99_spill] sm:$0xff] %v7083_v55  ;;  %3345 = vmatpush.msra.mxu3 %v7083_v55  ;;  %v7107_v55 = vld [vmem:[#allocation8 + $0x118] sm:$0xff] }
 0x3fa   :  { %3076 = vmatmul.f32.vlgmr.msrb.gmra.mxu0 %v2770_v31  ;;  %v4100_v40 = vadd.f32 %v2770_v31, %v6600_v33  ;;  %3096 = vmatmul.f32.vlgmr.msrb.gmra.mxu1 %v2770_v31  ;;  %v7087_v33 = vld [vmem:[#allocation8 + $0x120] sm:$0xff]  ;;  %8284 = vst [vmem:[#allocation106_spill] sm:$0xff] %v7103_v59 }
 0x3fb   :  { %3116 = vmatmul.f32.vlgmr.msrb.gmra.mxu2 %v2770_v31  ;;  %3136 = vmatmul.f32.vlgmr.msrb.gmra.mxu3 %v2770_v31  ;;  %8278 = vst [vmem:[#allocation100_spill] sm:$0xff] %v7087_v33  ;;  %v7089_v31 = vld [vmem:[#allocation8 + $0x128] sm:$0xff] }
 0x3fc   :  { %4109 = vst.msk [vmem:[%s7622_s4 + $0x18] sm:$0xff] %vm4105_vm1, %v4100_v40  ;;  %v7091_v40 = vld [vmem:[#allocation8 + $0x130] sm:$0xff]  ;;  %3286 = vmatpush.msra.mxu0 %v7087_v33  ;;  %3306 = vmatpush.msra.mxu1 %v7089_v31  ;;  %v7119_v33 = vld [vmem:[#allocation8 + $0xf8] sm:$0xff] }
 0x3fd   :  { %8279 = vst [vmem:[#allocation65_spill] sm:$0xff] %v7089_v31  ;;  %3326 = vmatpush.msra.mxu2 %v7091_v40  ;;  %3346 = vmatpush.msra.mxu3 %v7095_v34  ;;  %v7111_v31 = vld [vmem:[#allocation8 + $0xe0] sm:$0xff]  ;;  %v7115_v34 = vld [vmem:[#allocation8 + $0xf0] sm:$0xff] }
 0x3fe   :  { %8280 = vst [vmem:[#allocation19_spill] sm:$0xff] %v7091_v40  ;;  %3287 = vmatpush.msra.mxu0 %v7099_v41  ;;  %3307 = vmatpush.msra.mxu1 %v7101_v23  ;;  %v7113_v40 = vld [vmem:[#allocation8 + $0xe8] sm:$0xff]  ;;  %v7123_v23 = vld [vmem:[#allocation8 + $0xc0] sm:$0xff]  ;;  %v7131_v41 = vld [vmem:[#allocation8 + $0xd8] sm:$0xff] }
 0x3ff   :  { %8285 = vst [vmem:[#allocation107_spill] sm:$0xff] %v7107_v55  ;;  %3327 = vmatpush.msra.mxu2 %v7103_v59  ;;  %3347 = vmatpush.msra.mxu3 %v7107_v55  ;;  %v7125_v59 = vld [vmem:[#allocation8 + $0xc8] sm:$0xff]  ;;  %v7127_v55 = vld [vmem:[#allocation8 + $0xd0] sm:$0xff] }
 0x400   :  { %8286 = vst [vmem:[#allocation57_spill] sm:$0xff] %v7111_v31  ;;  %3288 = vmatpush.msra.mxu0 %v7111_v31  ;;  %3308 = vmatpush.msra.mxu1 %v7113_v40  ;;  %v7143_v31 = vld [vmem:[#allocation8 + $0xb8] sm:$0xff] }
 0x401   :  { %8287 = vst [vmem:[#allocation109_spill] sm:$0xff] %v7113_v40  ;;  %3328 = vmatpush.msra.mxu2 %v7115_v34  ;;  %3348 = vmatpush.msra.mxu3 %v7119_v33  ;;  %v7135_v40 = vld [vmem:[#allocation8 + $0xa0] sm:$0xff] }
 0x402   :  { %8288 = vst [vmem:[#allocation111_spill] sm:$0xff] %v7115_v34  ;;  %3289 = vmatpush.msra.mxu0 %v7123_v23  ;;  %3309 = vmatpush.msra.mxu1 %v7125_v59  ;;  %v7137_v34 = vld [vmem:[#allocation8 + $0xa8] sm:$0xff] }
 0x403   :  { %8289 = vst [vmem:[#allocation112_spill] sm:$0xff] %v7119_v33  ;;  %3329 = vmatpush.msra.mxu2 %v7127_v55  ;;  %3349 = vmatpush.msra.mxu3 %v7131_v41  ;;  %v7139_v33 = vld [vmem:[#allocation8 + $0xb0] sm:$0xff] }
 0x404   :  { %8290 = vst [vmem:[#allocation113_spill] sm:$0xff] %v7123_v23  ;;  %3290 = vmatpush.msra.mxu0 %v7135_v40  ;;  %3310 = vmatpush.msra.mxu1 %v7137_v34  ;;  %v7155_v23 = vld [vmem:[#allocation8 + $0x98] sm:$0xff] }
 0x405   :  { %8291 = vst [vmem:[#allocation114_spill] sm:$0xff] %v7125_v59  ;;  %3330 = vmatpush.msra.mxu2 %v7139_v33  ;;  %3350 = vmatpush.msra.mxu3 %v7143_v31  ;;  %v7147_v59 = vld [vmem:[#allocation8 + $0x80] sm:$0xff] }
 0x406   :  { %8292 = vst [vmem:[#allocation115_spill] sm:$0xff] %v7127_v55  ;;  %v7149_v55 = vld [vmem:[#allocation8 + $0x88] sm:$0xff]  ;;  %3291 = vmatpush.msra.mxu0 %v7147_v59 }
 0x407   :  { %8293 = vst [vmem:[#allocation116_spill] sm:$0xff] %v7131_v41  ;;  %v7151_v41 = vld [vmem:[#allocation8 + $0x90] sm:$0xff]  ;;  %3311 = vmatpush.msra.mxu1 %v7149_v55  ;;  %3351 = vmatpush.msra.mxu3 %v7155_v23 }
 0x408   :  { %8294 = vst [vmem:[#allocation117_spill] sm:$0xff] %v7135_v40  ;;  %3331 = vmatpush.msra.mxu2 %v7151_v41  ;;  %v7167_v40 = vld [vmem:[#allocation8 + $0x78] sm:$0xff] }
 0x409   :  { %8295 = vst [vmem:[#allocation118_spill] sm:$0xff] %v7137_v34  ;;  %v7159_v34 = vld [vmem:[#allocation8 + $0x60] sm:$0xff]  ;;  %3352 = vmatpush.msra.mxu3 %v7167_v40 }
 0x40a   :  { %8296 = vst [vmem:[#allocation119_spill] sm:$0xff] %v7139_v33  ;;  %v7161_v33 = vld [vmem:[#allocation8 + $0x68] sm:$0xff]  ;;  %3292 = vmatpush.msra.mxu0 %v7159_v34 }
 0x40b   :  { %8297 = vst [vmem:[#allocation120_spill] sm:$0xff] %v7143_v31  ;;  %v7163_v31 = vld [vmem:[#allocation8 + $0x70] sm:$0xff]  ;;  %3312 = vmatpush.msra.mxu1 %v7161_v33  ;;  %3353 = vmatpush.msra.mxu3 %v6680_v63 }
 0x40c   :  { %8298 = vst [vmem:[#allocation121_spill] sm:$0xff] %v7161_v33  ;;  %3332 = vmatpush.msra.mxu2 %v7163_v31  ;;  %3293 = vmatpush.msra.mxu0 %v6672_v38  ;;  %v8301_v33 = vld [vmem:[#allocation17_spill] sm:$0xff] }
 0x40d   :  { %8299 = vst [vmem:[#allocation122_spill] sm:$0xff] %v7163_v31  ;;  %3313 = vmatpush.msra.mxu1 %v6674_v16  ;;  %3354 = vmatpush.msra.mxu3 %v6692_v51  ;;  %v508_v31 = vadd.f32 %v5222_v57, %v8301_v33  ;;  %v8303_v51 = vld [vmem:[#allocation30_spill] sm:$0xff]  ;;  %v8314_v33 = vld [vmem:[#allocation81_spill] sm:$0xff] }
 0x40e   :  { %8300 = vst [vmem:[#allocation123_spill] sm:$0xff] %v7167_v40  ;;  %3333 = vmatpush.msra.mxu2 %v6676_v60  ;;  %3294 = vmatpush.msra.mxu0 %v6684_v17  ;;  %v8302_v40 = vld [vmem:[#allocation28_spill] sm:$0xff] }
 0x40f   :  { %3314 = vmatpush.msra.mxu1 %v6686_v6  ;;  %v509_v38 = vadd.f32 %v5225_v1, %v8302_v40  ;;  %3355 = vmatpush.msra.mxu3 %v6708_v46  ;;  %v8304_v46 = vld [vmem:[#allocation74_spill] sm:$0xff]  ;;  %v8316_v40 = vld [vmem:[#allocation83_spill] sm:$0xff] }
 0x410   :  { %3334 = vmatpush.msra.mxu2 %v6688_v7  ;;  %3295 = vmatpush.msra.mxu0 %v6696_v2  ;;  %v511_v2 = vadd.f32 %v7985_v54, %v8303_v51 }
 0x411   :  { %3315 = vmatpush.msra.mxu1 %v6698_v15  ;;  %3556 = vmatpush.msrb.mxu3 %v6718_v8 }
 0x412   :  { %3335 = vmatpush.msra.mxu2 %v6700_v27  ;;  %3496 = vmatpush.msrb.mxu0 %v6710_v28  ;;  %v8305_v28 = vld [vmem:[#allocation76_spill] sm:$0xff] }
 0x413   :  { %3516 = vmatpush.msrb.mxu1 %v6712_v61  ;;  %3557 = vmatpush.msrb.mxu3 %v6730_v62  ;;  %v8306_v61 = vld [vmem:[#allocation77_spill] sm:$0xff]  ;;  %v8310_v62 = vld [vmem:[#allocation26_spill] sm:$0xff] }
 0x414   :  { %3536 = vmatpush.msrb.mxu2 %v6716_v48  ;;  %3497 = vmatpush.msrb.mxu0 %v6722_v26  ;;  %v8307_v48 = vld [vmem:[#allocation21_spill] sm:$0xff]  ;;  %v8308_v26 = vld [vmem:[#allocation75_spill] sm:$0xff] }
 0x415   :  { %3517 = vmatpush.msrb.mxu1 %v6724_v13  ;;  %3558 = vmatpush.msrb.mxu3 %v6742_v22  ;;  %v8309_v13 = vld [vmem:[#allocation61_spill] sm:$0xff]  ;;  %v8312_v22 = vld [vmem:[#allocation14_spill] sm:$0xff] }
 0x416   :  { %3537 = vmatpush.msrb.mxu2 %v6726_v25  ;;  %3498 = vmatpush.msrb.mxu0 %v6734_v12  ;;  %v8311_v12 = vld [vmem:[#allocation27_spill] sm:$0xff] }
 0x417   :  { %3518 = vmatpush.msrb.mxu1 %v6736_v58  ;;  %3559 = vmatpush.msrb.mxu3 %v8305_v28  ;;  %v8325_v28 = vld [vmem:[#allocation95_spill] sm:$0xff] }
 0x418   :  { %3538 = vmatpush.msrb.mxu2 %v6740_v37  ;;  %3499 = vmatpush.msrb.mxu0 %v6746_v32  ;;  %v8313_v32 = vld [vmem:[#allocation80_spill] sm:$0xff] }
 0x419   :  { %3519 = vmatpush.msrb.mxu1 %v6748_v20  ;;  %3560 = vmatpush.msrb.mxu3 %v8309_v13 }
 0x41a   :  { %3539 = vmatpush.msrb.mxu2 %v8304_v46  ;;  %3500 = vmatpush.msrb.mxu0 %v8306_v61  ;;  %v8324_v46 = vld [vmem:[#allocation29_spill] sm:$0xff] }
 0x41b   :  { %3520 = vmatpush.msrb.mxu1 %v8307_v48  ;;  %3561 = vmatpush.msrb.mxu3 %v8313_v32  ;;  %v510_v61 = vadd.f32 %v8325_v28, %v8324_v46  ;;  %v8326_v48 = vld [vmem:[#allocation47_spill] sm:$0xff]  ;;  %v7239_v32 = vld [vmem:[#allocation8 + $0x2b0] sm:$0xff] }
 0x41c   :  { %3540 = vmatpush.msrb.mxu2 %v8308_v26  ;;  %3501 = vmatpush.msrb.mxu0 %v8310_v62  ;;  %v8327_v26 = vld [vmem:[#allocation48_spill] sm:$0xff] }
 0x41d   :  { %3521 = vmatpush.msrb.mxu1 %v8311_v12  ;;  %v8329_v62 = vld [vmem:[#allocation88_spill] sm:$0xff] }
 0x41e   :  { %3541 = vmatpush.msrb.mxu2 %v8312_v22  ;;  %3502 = vmatpush.msrb.mxu0 %v8314_v33  ;;  %v8331_v22 = vld [vmem:[#allocation90_spill] sm:$0xff] }
 0x420   :  { %3542 = vmatpush.msrb.mxu2 %v8316_v40 }
 0x466   :  { %v2861_v16 = vpop.f32.mrf.mxu0  ;;  %v2881_v60 = vpop.f32.mrf.mxu1 }
 0x467   :  { %v2924_v63 = vadd.f32 %v2861_v16, %v508_v31  ;;  %v2925_v17 = vadd.f32 %v2881_v60, %v509_v38  ;;  %v8315_v31 = vld [vmem:[#allocation82_spill] sm:$0xff]  ;;  %v8317_v38 = vld [vmem:[#allocation84_spill] sm:$0xff]  ;;  %v8318_v16 = vld [vmem:[#allocation85_spill] sm:$0xff] }
 0x468   :  { %3522 = vmatpush.msrb.mxu1 %v8315_v31  ;;  %3562 = vmatpush.msrb.mxu3 %v8317_v38  ;;  %v8319_v60 = vld [vmem:[#allocation63_spill] sm:$0xff] }
 0x469   :  { %v4214_v6 = vmul.f32 -1.442695, %v2924_v63  ;;  %v4215_v7 = vmul.f32 -1.442695, %v2925_v17  ;;  %3503 = vmatpush.msrb.mxu0 %v8318_v16  ;;  %v8320_v17 = vld [vmem:[#allocation64_spill] sm:$0xff] }
 0x46a   :  { %3523 = vmatpush.msrb.mxu1 %v8319_v60  ;;  %3543 = vmatpush.msrb.mxu2 %v8320_v17  ;;  %v8332_v16 = vld [vmem:[#allocation12_spill] sm:$0xff]  ;;  %v8333_v60 = vld [vmem:[#allocation91_spill] sm:$0xff] }
 0x46b   :  { %4399 = vpow2.f32 %v4214_v6  ;;  %v8321_v6 = vld [vmem:[#allocation86_spill] sm:$0xff] }
 0x46c   :  { %4401 = vpow2.f32 %v4215_v7  ;;  %3563 = vmatpush.msrb.mxu3 %v8321_v6 }
 0x46d   :  { %v2921_v15 = vpop.f32.mrf.mxu3  ;;  %v2901_v63 = vpop.f32.mrf.mxu2 }
 0x46e   :  { %v2927_v27 = vadd.f32 %v2921_v15, %v511_v2  ;;  %v8322_v2 = vld [vmem:[#allocation55_spill] sm:$0xff]  ;;  %v8323_v15 = vld [vmem:[#allocation56_spill] sm:$0xff]  ;;  %3564 = vmatpush.msrb.mxu3 %v8329_v62  ;;  %v2926_v31 = vadd.f32 %v2901_v63, %v510_v61  ;;  %v7267_v62 = vld [vmem:[#allocation8 + $0x248] sm:$0xff] }
 0x46f   :  { %3504 = vmatpush.msrb.mxu0 %v8322_v2  ;;  %3524 = vmatpush.msrb.mxu1 %v8323_v15  ;;  %v7252_v2 = vld [vmem:[#allocation8 + $0x290] sm:$0xff]  ;;  %v8337_v61 = vld [vmem:[#allocation20_spill] sm:$0xff] }
 0x470   :  { %v4216_v8 = vmul.f32 -1.442695, %v2927_v27  ;;  %3565 = vmatpush.msrb.mxu3 %v8333_v60  ;;  %v8336_v15 = vld [vmem:[#allocation94_spill] sm:$0xff]  ;;  %v7284_v60 = vld [vmem:[#allocation8 + $0x228] sm:$0xff] }
 0x471   :  { %v4400_v25 = vpop.eup %4399  ;;  %3525 = vmatpush.msrb.mxu1 %v8331_v22  ;;  %v8338_v22 = vld [vmem:[#allocation50_spill] sm:$0xff] }
 0x472   :  { %v4402_v58 = vpop.eup %4401  ;;  %v7211_v37 = vadd.f32 1.0, %v4400_v25  ;;  %4403 = vpow2.f32 %v4216_v8  ;;  %v8328_v25 = vld [vmem:[#allocation87_spill] sm:$0xff]  ;;  %3566 = vmatpush.msrb.mxu3 %v8336_v15 }
 0x473   :  { %v7215_v20 = vadd.f32 1.0, %v4402_v58  ;;  %3544 = vmatpush.msrb.mxu2 %v8328_v25  ;;  %v8330_v58 = vld [vmem:[#allocation89_spill] sm:$0xff]  ;;  %v7265_v25 = vld [vmem:[#allocation8 + $0x240] sm:$0xff] }
 0x474   :  { %4405 = vrcp.f32 %v7211_v37  ;;  %3505 = vmatpush.msrb.mxu0 %v8330_v58  ;;  %v2941_v46 = vand.u32 2147483647, %v7211_v37  ;;  %3567 = vmatpush.msrb.mxu3 %v6865_v47  ;;  %vm2937_vm12 = vweird.f32 %v7211_v37 }
 0x475   :  { %4407 = vrcp.f32 %v7215_v20  ;;  %3545 = vmatpush.msrb.mxu2 %v8332_v16  ;;  %v7282_v16 = vld [vmem:[#allocation8 + $0x220] sm:$0xff]  ;;  %vm2956_vm13 = vweird.f32 %v7215_v20 }
 0x476   :  { %vm7290_vm14 = vcmp.eq.f32.partialorder %v2941_v46, 8.507059e+37 }
 0x477   :  { %v3077_v7 = vpop.f32.mrf.mxu0  ;;  %v3097_v51 = vpop.f32.mrf.mxu1  ;;  %3546 = vmatpush.msrb.mxu2 %v7239_v32 }
 0x478   :  { %v4404_v27 = vpop.eup %4403  ;;  %v3140_v8 = vadd.f32 %v3077_v7, %v8326_v48  ;;  %v3141_v13 = vadd.f32 %v3097_v51, %v8327_v26  ;;  %v8334_v7 = vld [vmem:[#allocation92_spill] sm:$0xff]  ;;  %v8335_v51 = vld [vmem:[#allocation93_spill] sm:$0xff]  ;;  %v2943_v26 = vand.u32 2147483648, %v7211_v37 }
 0x479   :  { %v7235_v12 = vadd.f32 1.0, %v4404_v27  ;;  %3506 = vmatpush.msrb.mxu0 %v8334_v7  ;;  %3526 = vmatpush.msrb.mxu1 %v8335_v51  ;;  %v7298_v51 = vld [vmem:[#allocation8 + $0x238] sm:$0xff] }
 0x47a   :  { %v7241_v33 = vpop.eup %4405  ;;  %v4217_v40 = vmul.f32 -1.442695, %v3140_v8  ;;  %v4218_v38 = vmul.f32 -1.442695, %v3141_v13  ;;  %v2962_v8 = vand.u32 2147483648, %v7215_v20  ;;  %3547 = vmatpush.msrb.mxu2 %v7252_v2  ;;  %v2944_v46 = vor.u32 1.1754944e-38, %v2943_v26 }
 0x47b   :  { %v7245_v17 = vpop.eup %4407  ;;  %v2933_v6 = vmul.f32 %v7241_v33, %v7211_v37  ;;  %4409 = vrcp.f32 %v7235_v12  ;;  %3507 = vmatpush.msrb.mxu0 %v6861_v50  ;;  %3527 = vmatpush.msrb.mxu1 %v8337_v61  ;;  %vm2938_vm10 = vweird.f32 %v7241_v33  ;;  %v2960_v50 = vand.u32 2147483647, %v7215_v20 }
 0x47c   :  { %v2952_v63 = vmul.f32 %v7245_v17, %v7215_v20  ;;  %4411 = vpow2.f32 %v4217_v40  ;;  %vm2957_vm11 = vweird.f32 %v7245_v17  ;;  %3548 = vmatpush.msrb.mxu2 %v6878_v5  ;;  %v7296_v5 = vld [vmem:[#allocation8 + $0x230] sm:$0xff]  ;;  %v2963_v15 = vor.u32 1.1754944e-38, %v2962_v8  ;;  %vm7304_vm15 = vmor %vm2937_vm12, %vm2938_vm10  ;;  %v7315_v8 = vld [vmem:[#allocation8 + $0x208] sm:$0xff] }
 0x47d   :  { %v2934_v27 = vsub.f32 1.0, %v2933_v6  ;;  %4413 = vpow2.f32 %v4218_v38  ;;  %3508 = vmatpush.msrb.mxu0 %v6871_v18  ;;  %3528 = vmatpush.msrb.mxu1 %v6873_v9  ;;  %v8339_v38 = vld [vmem:[#allocation96_spill] sm:$0xff]  ;;  %8345 = vst [vmem:[#allocation124_spill] sm:$0xff] %v7315_v8  ;;  %vm7321_vm0 = vmor %vm2956_vm13, %vm2957_vm11  ;;  %vm2961_vm2 = vcmp.eq.f32.partialorder %v2960_v50, 8.507059e+37  ;;  %vm2976_vm4 = vweird.f32 %v7235_v12 }
 0x47e   :  { %v2953_v48 = vsub.f32 1.0, %v2952_v63  ;;  %4415 = vtanh.f32 %v2926_v31  ;;  %v3137_v13 = vpop.f32.mrf.mxu3  ;;  %v7275_v31 = vld [vmem:[#allocation8 + $0x250] sm:$0xff]  ;;  %3568 = vmatpush.msrb.mxu3 %v8339_v38  ;;  %v7334_v38 = vld [vmem:[#allocation8 + $0x218] sm:$0xff] }
 0x47f   :  { %v2935_v58 = vmul.f32 %v7241_v33, %v2934_v27  ;;  %v3143_v40 = vadd.f32 %v3137_v13, %v8338_v22  ;;  %3509 = vmatpush.msrb.mxu0 %v7265_v25  ;;  %3529 = vmatpush.msrb.mxu1 %v7267_v62  ;;  %v8344_v13 = vld [vmem:[#allocation66_spill] sm:$0xff]  ;;  %8349 = vst [vmem:[#allocation126_spill] sm:$0xff] %v7334_v38 }
 0x480   :  { %v2954_v47 = vmul.f32 %v7245_v17, %v2953_v48  ;;  %3549 = vmatpush.msrb.mxu2 %v7275_v31  ;;  %3569 = vmatpush.msrb.mxu3 %v8344_v13 }
 0x481   :  { %v7286_v6 = vpop.eup %4409  ;;  %v2936_v18 = vadd.f32 %v7241_v33, %v2935_v58  ;;  %v4219_v7 = vmul.f32 -1.442695, %v3143_v40  ;;  %v7313_v58 = vld [vmem:[#allocation8 + $0x200] sm:$0xff]  ;;  %3510 = vmatpush.msrb.mxu0 %v7282_v16  ;;  %3530 = vmatpush.msrb.mxu1 %v7284_v60 }
 0x482   :  { %v4412_v63 = vpop.eup %4411  ;;  %v2955_v61 = vadd.f32 %v7245_v17, %v2954_v47  ;;  %v2972_v48 = vmul.f32 %v7286_v6, %v7235_v12  ;;  %v7332_v47 = vld [vmem:[#allocation8 + $0x210] sm:$0xff]  ;;  %3550 = vmatpush.msrb.mxu2 %v7296_v5  ;;  %3570 = vmatpush.msrb.mxu3 %v7298_v51  ;;  %vm2977_vm3 = vweird.f32 %v7286_v6 }
 0x483   :  { %v4414_v22 = vpop.eup %4413  ;;  %v2940_v26 = vsel %vm7304_vm15, %v7241_v33, %v2936_v18  ;;  %v7328_v40 = vadd.f32 1.0, %v4412_v63  ;;  %4417 = vpow2.f32 %v4219_v7  ;;  %8348 = vst [vmem:[#allocation125_spill] sm:$0xff] %v7332_v47  ;;  %3511 = vmatpush.msrb.mxu0 %v7313_v58  ;;  %3531 = vmatpush.msrb.mxu1 %v7315_v8  ;;  %vm7364_vm5 = vmor %vm2976_vm4, %vm2977_vm3 }
 0x484   :  { %v4416_v20 = vpop.eup %4415  ;;  %v2945_v13 = vsel %vm7290_vm14, %v2944_v46, %v2940_v26  ;;  %v2959_v33 = vsel %vm7321_vm0, %v7245_v17, %v2955_v61  ;;  %v2973_v50 = vsub.f32 1.0, %v2972_v48  ;;  %v7341_v18 = vadd.f32 1.0, %v4414_v22  ;;  %3551 = vmatpush.msrb.mxu2 %v7332_v47  ;;  %3571 = vmatpush.msrb.mxu3 %v7334_v38  ;;  %v8351_v26 = vld [vmem:[#allocation49_spill] sm:$0xff] }
 0x485   :  { %v2964_v7 = vsel %vm2961_vm2, %v2963_v15, %v2959_v33  ;;  %v2987_v63 = vmul.f32 %v4416_v20, %v2945_v13  ;;  %4419 = vrcp.f32 %v7328_v40  ;;  %v3117_v15 = vpop.f32.mrf.mxu2  ;;  %v2980_v22 = vand.u32 2147483647, %v7235_v12 }
 0x486   :  { %v2986_v9 = vmul.f32 %v2964_v7, %v6946_v39  ;;  %v2974_v27 = vmul.f32 %v7286_v6, %v2973_v50  ;;  %4421 = vrcp.f32 %v7341_v18  ;;  %v2982_v39 = vand.u32 2147483648, %v7235_v12 }
 0x487   :  { %v3142_v20 = vadd.f32 %v3117_v15, %v8351_v26  ;;  %vm2981_vm6 = vcmp.eq.f32.partialorder %v2980_v22, 8.507059e+37  ;;  %v3178_v15 = vand.u32 2147483648, %v7341_v18  ;;  %v3157_v47 = vand.u32 2147483647, %v7328_v40 }
 0x488   :  { %v7353_v17 = vadd.f32 %v2987_v63, %v2986_v9  ;;  %v2975_v61 = vadd.f32 %v7286_v6, %v2974_v27  ;;  %v2983_v9 = vor.u32 1.1754944e-38, %v2982_v39  ;;  %v3176_v33 = vand.u32 2147483647, %v7341_v18 }
 0x489   :  { %v4418_v46 = vpop.eup %4417  ;;  %vm3172_vm9 = vweird.f32 %v7341_v18  ;;  %vm3153_vm10 = vweird.f32 %v7328_v40  ;;  %vm3158_vm13 = vcmp.eq.f32.partialorder %v3157_v47, 8.507059e+37 }
 0x48a   :  { %8350 = vst [vmem:[#allocation127_spill] sm:$0xff] %v7353_v17  ;;  %4423 = vtanh.f32 %v7353_v17  ;;  %v7359_v48 = vadd.f32 1.0, %v4418_v46  ;;  %v2979_v63 = vsel %vm7364_vm5, %v7286_v6, %v2975_v61  ;;  %v3159_v46 = vand.u32 2147483648, %v7328_v40 }
 0x48b   :  { %v4420_v37 = vpop.eup %4419  ;;  %v2984_v17 = vsel %vm2981_vm6, %v2983_v9, %v2979_v63  ;;  %v3179_v9 = vor.u32 1.1754944e-38, %v3178_v15  ;;  %vm3177_vm14 = vcmp.eq.f32.partialorder %v3176_v33, 8.507059e+37  ;;  %v8368_v15 = vld [vmem:[#allocation57_spill] sm:$0xff]  ;;  %v8371_v33 = vld [vmem:[#allocation112_spill] sm:$0xff] }
 0x48c   :  { %v4422_v13 = vpop.eup %4421  ;;  %v3149_v50 = vmul.f32 %v4420_v37, %v7328_v40  ;;  %4425 = vrcp.f32 %v7359_v48  ;;  %vm3154_vm7 = vweird.f32 %v4420_v37  ;;  %v3160_v22 = vor.u32 1.1754944e-38, %v3159_v46  ;;  %v8369_v46 = vld [vmem:[#allocation109_spill] sm:$0xff] }
 0x48d   :  { %v3168_v7 = vmul.f32 %v4422_v13, %v7341_v18  ;;  %4427 = vtanh.f32 %v3142_v20  ;;  %vm3173_vm8 = vweird.f32 %v4422_v13  ;;  %vm3155_vm11 = vmor %vm3153_vm10, %vm3154_vm7  ;;  %vm3192_vm0 = vweird.f32 %v7359_v48 }
 0x48e   :  { %v3150_v27 = vsub.f32 1.0, %v3149_v50  ;;  %vm3174_vm12 = vmor %vm3172_vm9, %vm3173_vm8 }
 0x48f   :  { %v3169_v12 = vsub.f32 1.0, %v3168_v7  ;;  %v8354_v7 = vld [vmem:[#allocation110_spill] sm:$0xff] }
 0x490   :  { %v4424_v26 = vpop.eup %4423  ;;  %v3151_v38 = vmul.f32 %v4420_v37, %v3150_v27 }
 0x491   :  { %v3170_v8 = vmul.f32 %v4422_v13, %v3169_v12  ;;  %v2990_v6 = vmul.f32 %v4424_v26, %v2984_v17  ;;  %v8370_v26 = vld [vmem:[#allocation111_spill] sm:$0xff] }
 0x492   :  { %v7378_v61 = vpop.eup %4425  ;;  %v3152_v39 = vadd.f32 %v4420_v37, %v3151_v38 }
 0x493   :  { %v3171_v20 = vadd.f32 %v4422_v13, %v3170_v8  ;;  %v3188_v50 = vmul.f32 %v7378_v61, %v7359_v48  ;;  %3296 = vmatmul.f32.vlgmr.msra.gmra.mxu0 %v2990_v6  ;;  %v4102_v63 = vadd.f32 %v2990_v6, %v8354_v7  ;;  %3316 = vmatmul.f32.vlgmr.msra.gmra.mxu1 %v2990_v6  ;;  %v4428_v18 = vpop.eup %4427  ;;  %vm3193_vm15 = vweird.f32 %v7378_v61  ;;  %v8378_v7 = vld [vmem:[#allocation119_spill] sm:$0xff] }
 0x494   :  { %v3156_v17 = vsel %vm3155_vm11, %v4420_v37, %v3152_v39  ;;  %3336 = vmatmul.f32.vlgmr.msra.gmra.mxu2 %v2990_v6  ;;  %3356 = vmatmul.f32.vlgmr.msra.gmra.mxu3 %v2990_v6  ;;  %vm3194_vm2 = vmor %vm3192_vm0, %vm3193_vm15  ;;  %v8372_v6 = vld [vmem:[#allocation113_spill] sm:$0xff]  ;;  %v8374_v39 = vld [vmem:[#allocation115_spill] sm:$0xff] }
 0x495   :  { %v3161_v38 = vsel %vm3158_vm13, %v3160_v22, %v3156_v17  ;;  %v3175_v27 = vsel %vm3174_vm12, %v4422_v13, %v3171_v20  ;;  %v3189_v40 = vsub.f32 1.0, %v3188_v50  ;;  %4111 = vst.msk [vmem:[%s7622_s4 + $0x28] sm:$0xff] %vm4105_vm1, %v4102_v63  ;;  %3716 = vmatpush.msra.mxu0 %v6975_v43  ;;  %3736 = vmatpush.msra.mxu1 %v6977_v3  ;;  %v8367_v13 = vld [vmem:[#allocation107_spill] sm:$0xff]  ;;  %v8375_v22 = vld [vmem:[#allocation116_spill] sm:$0xff]  ;;  %v8376_v20 = vld [vmem:[#allocation117_spill] sm:$0xff] }
 0x496   :  { %v3180_v8 = vsel %vm3177_vm14, %v3179_v9, %v3175_v27  ;;  %v3203_v12 = vmul.f32 %v4428_v18, %v3161_v38  ;;  %3756 = vmatpush.msra.mxu2 %v6986_v35  ;;  %3776 = vmatpush.msra.mxu3 %v6988_v4  ;;  %v3198_v35 = vand.u32 2147483648, %v7359_v48  ;;  %v8355_v4 = vld [vmem:[#allocation97_spill] sm:$0xff]  ;;  %v8377_v50 = vld [vmem:[#allocation118_spill] sm:$0xff]  ;;  %v8379_v63 = vld [vmem:[#allocation120_spill] sm:$0xff] }
 0x497   :  { %v3202_v47 = vmul.f32 %v3180_v8, %v7035_v56  ;;  %v3190_v37 = vmul.f32 %v7378_v61, %v3189_v40  ;;  %3717 = vmatpush.msra.mxu0 %v6999_v11  ;;  %3737 = vmatpush.msra.mxu1 %v7001_v36  ;;  %v3196_v11 = vand.u32 2147483647, %v7359_v48  ;;  %v8356_v36 = vld [vmem:[#allocation98_spill] sm:$0xff]  ;;  %v8360_v56 = vld [vmem:[#allocation65_spill] sm:$0xff]  ;;  %v8382_v18 = vld [vmem:[#allocation123_spill] sm:$0xff] }
 0x498   :  { %3757 = vmatpush.msra.mxu2 %v7011_v0  ;;  %3777 = vmatpush.msra.mxu3 %v7013_v53  ;;  %v8357_v0 = vld [vmem:[#allocation58_spill] sm:$0xff]  ;;  %v8380_v9 = vld [vmem:[#allocation121_spill] sm:$0xff]  ;;  %v3660_v38 = vld [vmem:[#allocation8 + $0x40] sm:$0xff] }
 0x499   :  { %v7399_v43 = vadd.f32 %v3203_v12, %v3202_v47  ;;  %3718 = vmatpush.msra.mxu0 %v7017_v45  ;;  %3738 = vmatpush.msra.mxu1 %v7019_v30  ;;  %v3191_v3 = vadd.f32 %v7378_v61, %v3190_v37  ;;  %v3199_v45 = vor.u32 1.1754944e-38, %v3198_v35  ;;  %vm3197_vm3 = vcmp.eq.f32.partialorder %v3196_v11, 8.507059e+37  ;;  %v8358_v30 = vld [vmem:[#allocation99_spill] sm:$0xff]  ;;  %v8366_v48 = vld [vmem:[#allocation106_spill] sm:$0xff]  ;;  %v3661_v27 = vld [vmem:[#allocation8 + $0x48] sm:$0xff] }
 0x49a   :  { %3758 = vmatpush.msra.mxu2 %v7025_v19  ;;  %3778 = vmatpush.msra.mxu3 %v7027_v29  ;;  %v8381_v17 = vld [vmem:[#allocation122_spill] sm:$0xff]  ;;  %v3653_v12 = vld [vmem:[#allocation8 + $0x8] sm:$0xff]  ;;  %v8383_v37 = vld [vmem:[#allocation31_spill] sm:$0xff] }
 0x49b   :  { %4429 = vtanh.f32 %v7399_v43  ;;  %3719 = vmatpush.msra.mxu0 %v7031_v14  ;;  %3739 = vmatpush.msra.mxu1 %v8355_v4  ;;  %v3195_v53 = vsel %vm3194_vm2, %v7378_v61, %v3191_v3  ;;  %v8359_v14 = vld [vmem:[#allocation100_spill] sm:$0xff]  ;;  %v8373_v61 = vld [vmem:[#allocation114_spill] sm:$0xff]  ;;  %v516_v3 = vadd.f32 %v5222_v57, %v8383_v37  ;;  %v3655_v11 = vld [vmem:[#allocation8 + $0x18] sm:$0xff] }
 0x49c   :  { %3759 = vmatpush.msra.mxu2 %v8356_v36  ;;  %3779 = vmatpush.msra.mxu3 %v8357_v0  ;;  %v3200_v29 = vsel %vm3197_vm3, %v3199_v45, %v3195_v53  ;;  %v3662_v40 = vld [vmem:[#allocation8 + $0x50] sm:$0xff]  ;;  %v8384_v35 = vld [vmem:[#allocation32_spill] sm:$0xff]  ;;  %v3928_v0 = vld [vmem:[#allocation8 + $0x3e8] sm:$0xff] }
 0x49d   :  { %3720 = vmatpush.msra.mxu0 %v7047_v24  ;;  %3740 = vmatpush.msra.mxu1 %v7049_v21  ;;  %v8361_v21 = vld [vmem:[#allocation19_spill] sm:$0xff]  ;;  %v3658_v8 = vld [vmem:[#allocation8 + $0x30] sm:$0xff]  ;;  %v517_v4 = vadd.f32 %v5225_v1, %v8384_v35  ;;  %v3927_v36 = vld [vmem:[#allocation8 + $0x3e0] sm:$0xff] }
 0x49e   :  { %3760 = vmatpush.msra.mxu2 %v7055_v10  ;;  %3780 = vmatpush.msra.mxu3 %v7057_v52  ;;  %v8362_v10 = vld [vmem:[#allocation103_spill] sm:$0xff]  ;;  %v8363_v52 = vld [vmem:[#allocation104_spill] sm:$0xff]  ;;  %v3654_v47 = vld [vmem:[#allocation8 + $0x10] sm:$0xff] }
 0x49f   :  { %3721 = vmatpush.msra.mxu0 %v7075_v42  ;;  %3741 = vmatpush.msra.mxu1 %v7077_v49  ;;  %v8364_v42 = vld [vmem:[#allocation105_spill] sm:$0xff]  ;;  %v8365_v49 = vld [vmem:[#allocation108_spill] sm:$0xff]  ;;  %v3902_v35 = vld [vmem:[#allocation8 + $0x318] sm:$0xff] }
 0x4a0   :  { %3761 = vmatpush.msra.mxu2 %v7079_v44  ;;  %3781 = vmatpush.msra.mxu3 %v8358_v30  ;;  %v3929_v30 = vld [vmem:[#allocation8 + $0x3f0] sm:$0xff]  ;;  %v3900_v37 = vld [vmem:[#allocation8 + $0x308] sm:$0xff] }
 0x4a1   :  { %v4430_v19 = vpop.eup %4429  ;;  %3722 = vmatpush.msra.mxu0 %v8359_v14  ;;  %3742 = vmatpush.msra.mxu1 %v8360_v56  ;;  %v3923_v56 = vld [vmem:[#allocation8 + $0x3c0] sm:$0xff] }
 0x4a2   :  { %v3206_v24 = vmul.f32 %v4430_v19, %v3200_v29  ;;  %3762 = vmatpush.msra.mxu2 %v8361_v21  ;;  %3782 = vmatpush.msra.mxu3 %v8362_v10  ;;  %v3930_v19 = vld [vmem:[#allocation8 + $0x3f8] sm:$0xff]  ;;  %v3925_v21 = vld [vmem:[#allocation8 + $0x3d0] sm:$0xff] }
 0x4a3   :  { %3723 = vmatpush.msra.mxu0 %v8363_v52  ;;  %3743 = vmatpush.msra.mxu1 %v8364_v42  ;;  %v3926_v10 = vld [vmem:[#allocation8 + $0x3d8] sm:$0xff] }
 0x4a4   :  { %3512 = vmatmul.f32.vlgmr.msrb.gmra.mxu0 %v3206_v24  ;;  %v4099_v44 = vadd.f32 %v3206_v24, %v8365_v49  ;;  %3532 = vmatmul.f32.vlgmr.msrb.gmra.mxu1 %v3206_v24  ;;  %v3919_v49 = vld [vmem:[#allocation8 + $0x3a0] sm:$0xff] }
 0x4a5   :  { %3552 = vmatmul.f32.vlgmr.msrb.gmra.mxu2 %v3206_v24  ;;  %3572 = vmatmul.f32.vlgmr.msrb.gmra.mxu3 %v3206_v24  ;;  %v3924_v24 = vld [vmem:[#allocation8 + $0x3c8] sm:$0xff] }
 0x4a6   :  { %4108 = vst.msk [vmem:[%s7622_s4 + $0x10] sm:$0xff] %vm4105_vm1, %v4099_v44  ;;  %3763 = vmatpush.msra.mxu2 %v8366_v48  ;;  %3783 = vmatpush.msra.mxu3 %v8367_v13  ;;  %v3920_v44 = vld [vmem:[#allocation8 + $0x3a8] sm:$0xff]  ;;  %v3921_v48 = vld [vmem:[#allocation8 + $0x3b0] sm:$0xff]  ;;  %v3922_v13 = vld [vmem:[#allocation8 + $0x3b8] sm:$0xff] }
 0x4a7   :  { %3724 = vmatpush.msra.mxu0 %v8368_v15  ;;  %3744 = vmatpush.msra.mxu1 %v8369_v46  ;;  %v3915_v15 = vld [vmem:[#allocation8 + $0x380] sm:$0xff]  ;;  %v3916_v46 = vld [vmem:[#allocation8 + $0x388] sm:$0xff] }
 0x4a8   :  { %3764 = vmatpush.msra.mxu2 %v8370_v26  ;;  %3784 = vmatpush.msra.mxu3 %v8371_v33  ;;  %v3917_v26 = vld [vmem:[#allocation8 + $0x390] sm:$0xff] }
 0x4a9   :  { %3725 = vmatpush.msra.mxu0 %v8372_v6  ;;  %3745 = vmatpush.msra.mxu1 %v8373_v61  ;;  %v8385_v33 = vld [vmem:[#allocation34_spill] sm:$0xff]  ;;  %v3918_v61 = vld [vmem:[#allocation8 + $0x398] sm:$0xff] }
 0x4aa   :  { %3765 = vmatpush.msra.mxu2 %v8374_v39  ;;  %3785 = vmatpush.msra.mxu3 %v8375_v22  ;;  %v519_v6 = vadd.f32 %v7985_v54, %v8385_v33  ;;  %v3911_v22 = vld [vmem:[#allocation8 + $0x360] sm:$0xff] }
 0x4ab   :  { %3726 = vmatpush.msra.mxu0 %v8376_v20  ;;  %3746 = vmatpush.msra.mxu1 %v8377_v50  ;;  %v3912_v20 = vld [vmem:[#allocation8 + $0x368] sm:$0xff]  ;;  %v3913_v50 = vld [vmem:[#allocation8 + $0x370] sm:$0xff] }
 0x4ac   :  { %3766 = vmatpush.msra.mxu2 %v8378_v7  ;;  %3786 = vmatpush.msra.mxu3 %v8379_v63  ;;  %v3914_v63 = vld [vmem:[#allocation8 + $0x378] sm:$0xff] }
 0x4ad   :  { %3727 = vmatpush.msra.mxu0 %v7147_v59  ;;  %3747 = vmatpush.msra.mxu1 %v7149_v55  ;;  %v3663_v59 = vld [vmem:[#allocation8 + $0x58] sm:$0xff]  ;;  %v3656_v55 = vld [vmem:[#allocation8 + $0x20] sm:$0xff] }
 0x4ae   :  { %3767 = vmatpush.msra.mxu2 %v7151_v41  ;;  %3787 = vmatpush.msra.mxu3 %v7155_v23  ;;  %v3657_v41 = vld [vmem:[#allocation8 + $0x28] sm:$0xff]  ;;  %v3652_v23 = vld [vmem:[#allocation8] sm:$0xff] }
 0x4af   :  { %3728 = vmatpush.msra.mxu0 %v7159_v34  ;;  %3748 = vmatpush.msra.mxu1 %v8380_v9  ;;  %v3659_v34 = vld [vmem:[#allocation8 + $0x38] sm:$0xff]  ;;  %v3907_v9 = vld [vmem:[#allocation8 + $0x340] sm:$0xff] }
 0x4b0   :  { %3768 = vmatpush.msra.mxu2 %v8381_v17  ;;  %3788 = vmatpush.msra.mxu3 %v8382_v18  ;;  %v3908_v17 = vld [vmem:[#allocation8 + $0x348] sm:$0xff]  ;;  %v3909_v18 = vld [vmem:[#allocation8 + $0x350] sm:$0xff] }
 0x4b1   :  { %3729 = vmatpush.msra.mxu0 %v3660_v38  ;;  %3749 = vmatpush.msra.mxu1 %v3661_v27  ;;  %v3910_v27 = vld [vmem:[#allocation8 + $0x358] sm:$0xff] }
 0x4b2   :  { %3769 = vmatpush.msra.mxu2 %v3662_v40  ;;  %3789 = vmatpush.msra.mxu3 %v3663_v59  ;;  %v3903_v59 = vld [vmem:[#allocation8 + $0x320] sm:$0xff] }
 0x4b3   :  { %3730 = vmatpush.msra.mxu0 %v3656_v55  ;;  %3750 = vmatpush.msra.mxu1 %v3657_v41  ;;  %v3904_v55 = vld [vmem:[#allocation8 + $0x328] sm:$0xff]  ;;  %v3905_v41 = vld [vmem:[#allocation8 + $0x330] sm:$0xff] }
 0x4b4   :  { %3770 = vmatpush.msra.mxu2 %v3658_v8  ;;  %3790 = vmatpush.msra.mxu3 %v3659_v34 }
 0x4b5   :  { %3731 = vmatpush.msra.mxu0 %v3652_v23  ;;  %3751 = vmatpush.msra.mxu1 %v3653_v12  ;;  %v3906_v23 = vld [vmem:[#allocation8 + $0x338] sm:$0xff] }
 0x4b6   :  { %3771 = vmatpush.msra.mxu2 %v3654_v47  ;;  %3791 = vmatpush.msra.mxu3 %v3655_v11  ;;  %v3899_v47 = vld [vmem:[#allocation8 + $0x300] sm:$0xff]  ;;  %v3896_v11 = vld [vmem:[#allocation8 + $0x2e8] sm:$0xff] }
 0x4b7   :  { %3931 = vmatpush.msrb.mxu0 %v3927_v36  ;;  %3951 = vmatpush.msrb.mxu1 %v3928_v0  ;;  %v3897_v36 = vld [vmem:[#allocation8 + $0x2f0] sm:$0xff] }
 0x4b8   :  { %3971 = vmatpush.msrb.mxu2 %v3929_v30  ;;  %3991 = vmatpush.msrb.mxu3 %v3930_v19  ;;  %v3891_v19 = vld [vmem:[#allocation8 + $0x2c0] sm:$0xff] }
 0x4b9   :  { %3932 = vmatpush.msrb.mxu0 %v3923_v56  ;;  %3952 = vmatpush.msrb.mxu1 %v3924_v24  ;;  %v8386_v24 = vld [vmem:[#allocation33_spill] sm:$0xff] }
 0x4ba   :  { %3972 = vmatpush.msrb.mxu2 %v3925_v21  ;;  %3992 = vmatpush.msrb.mxu3 %v3926_v10  ;;  %v518_v21 = vadd.f32 %v8325_v28, %v8386_v24  ;;  %v8387_v10 = vld [vmem:[#allocation43_spill] sm:$0xff] }
 0x4bb   :  { %3933 = vmatpush.msrb.mxu0 %v3919_v49  ;;  %3953 = vmatpush.msrb.mxu1 %v3920_v44  ;;  %v3894_v44 = vld [vmem:[#allocation8 + $0x2d8] sm:$0xff] }
 0x4bc   :  { %3973 = vmatpush.msrb.mxu2 %v3921_v48  ;;  %3993 = vmatpush.msrb.mxu3 %v3922_v13  ;;  %v3887_v13 = vld [vmem:[#allocation8 + $0x2a0] sm:$0xff] }
 0x4bd   :  { %3934 = vmatpush.msrb.mxu0 %v3915_v15  ;;  %3954 = vmatpush.msrb.mxu1 %v3916_v46  ;;  %v3888_v15 = vld [vmem:[#allocation8 + $0x2a8] sm:$0xff]  ;;  %v3890_v46 = vld [vmem:[#allocation8 + $0x2b8] sm:$0xff] }
 0x4be   :  { %3974 = vmatpush.msrb.mxu2 %v3917_v26  ;;  %3994 = vmatpush.msrb.mxu3 %v3918_v61 }
 0x4bf   :  { %3935 = vmatpush.msrb.mxu0 %v3911_v22  ;;  %3955 = vmatpush.msrb.mxu1 %v3912_v20  ;;  %v3883_v20 = vld [vmem:[#allocation8 + $0x280] sm:$0xff] }
 0x4c0   :  { %3975 = vmatpush.msrb.mxu2 %v3913_v50  ;;  %3995 = vmatpush.msrb.mxu3 %v3914_v63  ;;  %v3884_v50 = vld [vmem:[#allocation8 + $0x288] sm:$0xff] }
 0x4c1   :  { %3936 = vmatpush.msrb.mxu0 %v3907_v9  ;;  %3956 = vmatpush.msrb.mxu1 %v3908_v17  ;;  %v3879_v9 = vld [vmem:[#allocation8 + $0x260] sm:$0xff]  ;;  %v3880_v17 = vld [vmem:[#allocation8 + $0x268] sm:$0xff] }
 0x4c2   :  { %3976 = vmatpush.msrb.mxu2 %v3909_v18  ;;  %3996 = vmatpush.msrb.mxu3 %v3910_v27  ;;  %v3881_v27 = vld [vmem:[#allocation8 + $0x270] sm:$0xff] }
 0x4c3   :  { %3937 = vmatpush.msrb.mxu0 %v3903_v59  ;;  %3957 = vmatpush.msrb.mxu1 %v3904_v55 }
 0x4c4   :  { %3977 = vmatpush.msrb.mxu2 %v3905_v41  ;;  %3997 = vmatpush.msrb.mxu3 %v3906_v23 }
 0x4c5   :  { %3938 = vmatpush.msrb.mxu0 %v3899_v47  ;;  %3958 = vmatpush.msrb.mxu1 %v3900_v37  ;;  %v8389_v47 = vld [vmem:[#allocation46_spill] sm:$0xff] }
 0x4c6   :  { %3998 = vmatpush.msrb.mxu3 %v3902_v35 }
 0x4c7   :  { %3959 = vmatpush.msrb.mxu1 %v3896_v11 }
 0x510   :  { %v3297_v53 = vpop.f32.mrf.mxu0  ;;  %v3317_v45 = vpop.f32.mrf.mxu1 }
 0x511   :  { %v3360_v29 = vadd.f32 %v3297_v53, %v516_v3  ;;  %v3361_v14 = vadd.f32 %v3317_v45, %v517_v4  ;;  %v3901_v3 = vld [vmem:[#allocation8 + $0x310] sm:$0xff]  ;;  %v3895_v4 = vld [vmem:[#allocation8 + $0x2e0] sm:$0xff]  ;;  %v3898_v53 = vld [vmem:[#allocation8 + $0x2f8] sm:$0xff] }
 0x512   :  { %3978 = vmatpush.msrb.mxu2 %v3901_v3  ;;  %3939 = vmatpush.msrb.mxu0 %v3895_v4  ;;  %v3878_v3 = vld [vmem:[#allocation8 + $0x258] sm:$0xff] }
 0x513   :  { %v4220_v52 = vmul.f32 -1.442695, %v3360_v29  ;;  %v4221_v42 = vmul.f32 -1.442695, %v3361_v14  ;;  %v3892_v29 = vld [vmem:[#allocation8 + $0x2c8] sm:$0xff]  ;;  %v3893_v14 = vld [vmem:[#allocation8 + $0x2d0] sm:$0xff]  ;;  %3999 = vmatpush.msrb.mxu3 %v3898_v53 }
 0x514   :  { %3979 = vmatpush.msrb.mxu2 %v3897_v36  ;;  %3940 = vmatpush.msrb.mxu0 %v3891_v19 }
 0x515   :  { %4431 = vpow2.f32 %v4220_v52  ;;  %3960 = vmatpush.msrb.mxu1 %v3892_v29  ;;  %4000 = vmatpush.msrb.mxu3 %v3894_v44  ;;  %v8397_v44 = vld [vmem:[#allocation126_spill] sm:$0xff] }
 0x516   :  { %4433 = vpow2.f32 %v4221_v42  ;;  %v8388_v42 = vld [vmem:[#allocation44_spill] sm:$0xff]  ;;  %3980 = vmatpush.msrb.mxu2 %v3893_v14  ;;  %3941 = vmatpush.msrb.mxu0 %v3887_v13 }
 0x517   :  { %v3357_v39 = vpop.f32.mrf.mxu3  ;;  %v3337_v0 = vpop.f32.mrf.mxu2  ;;  %3961 = vmatpush.msrb.mxu1 %v3888_v15  ;;  %4001 = vmatpush.msrb.mxu3 %v3890_v46 }
 0x518   :  { %v3363_v7 = vadd.f32 %v3357_v39, %v519_v6  ;;  %v3362_v33 = vadd.f32 %v3337_v0, %v518_v21  ;;  %3981 = vmatpush.msrb.mxu2 %v7239_v32  ;;  %3942 = vmatpush.msrb.mxu0 %v3883_v20 }
 0x519   :  { %3962 = vmatpush.msrb.mxu1 %v3884_v50 }
 0x51a   :  { %v4222_v38 = vmul.f32 -1.442695, %v3363_v7  ;;  %v3886_v7 = vld [vmem:[#allocation8 + $0x298] sm:$0xff]  ;;  %3982 = vmatpush.msrb.mxu2 %v7252_v2  ;;  %3943 = vmatpush.msrb.mxu0 %v3879_v9 }
 0x51b   :  { %v4432_v40 = vpop.eup %4431  ;;  %4002 = vmatpush.msrb.mxu3 %v3886_v7  ;;  %3963 = vmatpush.msrb.mxu1 %v3880_v17 }
 0x51c   :  { %v4434_v8 = vpop.eup %4433  ;;  %v7463_v34 = vadd.f32 1.0, %v4432_v40  ;;  %4435 = vpow2.f32 %v4222_v38  ;;  %v3882_v40 = vld [vmem:[#allocation8 + $0x278] sm:$0xff]  ;;  %3983 = vmatpush.msrb.mxu2 %v3881_v27  ;;  %3944 = vmatpush.msrb.mxu0 %v7265_v25 }
 0x51d   :  { %v7465_v12 = vadd.f32 1.0, %v4434_v8  ;;  %4003 = vmatpush.msrb.mxu3 %v3882_v40  ;;  %3964 = vmatpush.msrb.mxu1 %v7267_v62 }
 0x51e   :  { %4437 = vrcp.f32 %v7463_v34  ;;  %v3377_v38 = vand.u32 2147483647, %v7463_v34  ;;  %v3379_v41 = vand.u32 2147483648, %v7463_v34  ;;  %vm3373_vm6 = vweird.f32 %v7463_v34  ;;  %3984 = vmatpush.msrb.mxu2 %v7275_v31  ;;  %3945 = vmatpush.msrb.mxu0 %v7282_v16  ;;  %v8394_v16 = vld [vmem:[#allocation124_spill] sm:$0xff] }
 0x51f   :  { %4439 = vrcp.f32 %v7465_v12  ;;  %v3398_v55 = vand.u32 2147483648, %v7465_v12  ;;  %v3396_v23 = vand.u32 2147483647, %v7465_v12  ;;  %vm3392_vm7 = vweird.f32 %v7465_v12  ;;  %4004 = vmatpush.msrb.mxu3 %v3878_v3  ;;  %3965 = vmatpush.msrb.mxu1 %v7284_v60  ;;  %v8395_v60 = vld [vmem:[#allocation127_spill] sm:$0xff] }
 0x520   :  { %vm7500_vm8 = vcmp.eq.f32.partialorder %v3377_v38, 8.507059e+37  ;;  %3985 = vmatpush.msrb.mxu2 %v7296_v5  ;;  %3946 = vmatpush.msrb.mxu0 %v7313_v58 }
 0x521   :  { %v3513_v45 = vpop.f32.mrf.mxu0  ;;  %v3533_v30 = vpop.f32.mrf.mxu1  ;;  %v3399_v53 = vor.u32 1.1754944e-38, %v3398_v55  ;;  %vm3397_vm11 = vcmp.eq.f32.partialorder %v3396_v23, 8.507059e+37  ;;  %4005 = vmatpush.msrb.mxu3 %v7298_v51  ;;  %3966 = vmatpush.msrb.mxu1 %v8394_v16 }
 0x522   :  { %v4436_v56 = vpop.eup %4435  ;;  %v3576_v52 = vadd.f32 %v3513_v45, %v8387_v10  ;;  %v3577_v49 = vadd.f32 %v3533_v30, %v8388_v42  ;;  %v3380_v45 = vor.u32 1.1754944e-38, %v3379_v41 }
 0x523   :  { %v7473_v48 = vadd.f32 1.0, %v4436_v56  ;;  %4006 = vmatpush.msrb.mxu3 %v8397_v44 }
 0x524   :  { %v7475_v26 = vpop.eup %4437  ;;  %v4223_v6 = vmul.f32 -1.442695, %v3576_v52  ;;  %v4224_v61 = vmul.f32 -1.442695, %v3577_v49  ;;  %v8396_v49 = vld [vmem:[#allocation125_spill] sm:$0xff] }
 0x525   :  { %v7477_v39 = vpop.eup %4439  ;;  %v3369_v22 = vmul.f32 %v7475_v26, %v7463_v34  ;;  %4441 = vrcp.f32 %v7473_v48  ;;  %vm3374_vm4 = vweird.f32 %v7475_v26  ;;  %3986 = vmatpush.msrb.mxu2 %v8396_v49  ;;  %v3418_v15 = vand.u32 2147483648, %v7473_v48 }
 0x526   :  { %v3388_v63 = vmul.f32 %v7477_v39, %v7465_v12  ;;  %4443 = vpow2.f32 %v4223_v6  ;;  %vm3393_vm5 = vweird.f32 %v7477_v39  ;;  %vm7508_vm9 = vmor %vm3373_vm6, %vm3374_vm4  ;;  %vm3412_vm13 = vweird.f32 %v7473_v48  ;;  %v8398_v6 = vld [vmem:[#allocation45_spill] sm:$0xff] }
 0x527   :  { %v3370_v18 = vsub.f32 1.0, %v3369_v22  ;;  %4445 = vpow2.f32 %v4224_v61  ;;  %vm3394_vm10 = vmor %vm3392_vm7, %vm3393_vm5 }
 0x528   :  { %v3389_v59 = vsub.f32 1.0, %v3388_v63  ;;  %4447 = vtanh.f32 %v3362_v33  ;;  %v3573_v8 = vpop.f32.mrf.mxu3  ;;  %v3553_v51 = vpop.f32.mrf.mxu2  ;;  %v3419_v63 = vor.u32 1.1754944e-38, %v3418_v15 }
 0x529   :  { %v3371_v32 = vmul.f32 %v7475_v26, %v3370_v18  ;;  %v3579_v37 = vadd.f32 %v3573_v8, %v8389_v47  ;;  %v3578_v61 = vadd.f32 %v3553_v51, %v8398_v6 }
 0x52a   :  { %v3390_v35 = vmul.f32 %v7477_v39, %v3389_v59 }
 0x52b   :  { %v7496_v2 = vpop.eup %4441  ;;  %v3372_v4 = vadd.f32 %v7475_v26, %v3371_v32  ;;  %v4225_v36 = vmul.f32 -1.442695, %v3579_v37 }
 0x52c   :  { %v4444_v0 = vpop.eup %4443  ;;  %v3391_v30 = vadd.f32 %v7477_v39, %v3390_v35  ;;  %v3408_v19 = vmul.f32 %v7496_v2, %v7473_v48  ;;  %vm3413_vm12 = vweird.f32 %v7496_v2  ;;  %v8401_v35 = vld [vmem:[#allocation79_spill] sm:$0xff] }
 0x52d   :  { %v4446_v25 = vpop.eup %4445  ;;  %v3376_v62 = vsel %vm7508_vm9, %v7475_v26, %v3372_v4  ;;  %v7523_v29 = vadd.f32 1.0, %v4444_v0  ;;  %4449 = vpow2.f32 %v4225_v36  ;;  %v3416_v26 = vand.u32 2147483647, %v7473_v48  ;;  %vm7553_vm14 = vmor %vm3412_vm13, %vm3413_vm12 }
 0x52e   :  { %v4448_v31 = vpop.eup %4447  ;;  %v3381_v14 = vsel %vm7500_vm8, %v3380_v45, %v3376_v62  ;;  %v3395_v56 = vsel %vm3394_vm10, %v7477_v39, %v3391_v30  ;;  %v3409_v12 = vsub.f32 1.0, %v3408_v19  ;;  %v7530_v24 = vadd.f32 1.0, %v4446_v25 }
 0x52f   :  { %v3400_v21 = vsel %vm3397_vm11, %v3399_v53, %v3395_v56  ;;  %v3423_v10 = vmul.f32 %v4448_v31, %v3381_v14  ;;  %4451 = vrcp.f32 %v7523_v29  ;;  %vm3417_vm15 = vcmp.eq.f32.partialorder %v3416_v26, 8.507059e+37  ;;  %v8405_v26 = vld [vmem:[#allocation38_spill] sm:$0xff] }
 0x530   :  { %v3422_v52 = vmul.f32 %v3400_v21, %v8395_v60  ;;  %v3410_v42 = vmul.f32 %v7496_v2, %v3409_v12  ;;  %4453 = vrcp.f32 %v7530_v24  ;;  %v3614_v17 = vand.u32 2147483648, %v7530_v24  ;;  %v8403_v60 = vld [vmem:[#allocation35_spill] sm:$0xff] }
 0x531   :  { %v3595_v18 = vand.u32 2147483648, %v7523_v29  ;;  %v3593_v40 = vand.u32 2147483647, %v7523_v29  ;;  %v3612_v41 = vand.u32 2147483647, %v7530_v24  ;;  %vm3608_vm3 = vweird.f32 %v7530_v24 }
 0x532   :  { %v7542_v5 = vadd.f32 %v3423_v10, %v3422_v52  ;;  %v3411_v58 = vadd.f32 %v7496_v2, %v3410_v42  ;;  %vm3589_vm4 = vweird.f32 %v7523_v29  ;;  %v3615_v4 = vor.u32 1.1754944e-38, %v3614_v17  ;;  %v8402_v10 = vld [vmem:[#allocation78_spill] sm:$0xff]  ;;  %v8404_v42 = vld [vmem:[#allocation36_spill] sm:$0xff] }
 0x533   :  { %v4450_v13 = vpop.eup %4449  ;;  %v3596_v47 = vor.u32 1.1754944e-38, %v3595_v18  ;;  %vm3594_vm7 = vcmp.eq.f32.partialorder %v3593_v40, 8.507059e+37  ;;  %vm3613_vm8 = vcmp.eq.f32.partialorder %v3612_v41, 8.507059e+37  ;;  %v524_v52 = vadd.f32 %v5222_v57, %v8403_v60 }
 0x534   :  { %4455 = vtanh.f32 %v7542_v5  ;;  %v7548_v46 = vadd.f32 1.0, %v4450_v13  ;;  %v3415_v7 = vsel %vm7553_vm14, %v7496_v2, %v3411_v58  ;;  %v525_v49 = vadd.f32 %v5225_v1, %v8404_v42 }
 0x535   :  { %v4452_v33 = vpop.eup %4451  ;;  %v3420_v59 = vsel %vm3417_vm15, %v3419_v63, %v3415_v7  ;;  %v8406_v7 = vld [vmem:[#allocation37_spill] sm:$0xff] }
 0x536   :  { %v4454_v39 = vpop.eup %4453  ;;  %v3585_v20 = vmul.f32 %v4452_v33, %v7523_v29  ;;  %4457 = vrcp.f32 %v7548_v46  ;;  %vm3590_vm0 = vweird.f32 %v4452_v33  ;;  %v3634_v31 = vand.u32 2147483648, %v7548_v46 }
 0x537   :  { %v3604_v50 = vmul.f32 %v4454_v39, %v7530_v24  ;;  %4459 = vtanh.f32 %v3578_v61  ;;  %vm3609_vm2 = vweird.f32 %v4454_v39  ;;  %vm3591_vm5 = vmor %vm3589_vm4, %vm3590_vm0  ;;  %vm3628_vm10 = vweird.f32 %v7548_v46 }
 0x538   :  { %v3586_v9 = vsub.f32 1.0, %v3585_v20  ;;  %vm3610_vm6 = vmor %vm3608_vm3, %vm3609_vm2  ;;  %v3632_v14 = vand.u32 2147483647, %v7548_v46  ;;  %v3635_v12 = vor.u32 1.1754944e-38, %v3634_v31  ;;  %v526_v63 = vadd.f32 %v8325_v28, %v8406_v7 }
 0x539   :  { %v3605_v48 = vsub.f32 1.0, %v3604_v50 }
 0x53a   :  { %v4456_v38 = vpop.eup %4455  ;;  %v3587_v27 = vmul.f32 %v4452_v33, %v3586_v9  ;;  %vm3633_vm12 = vcmp.eq.f32.partialorder %v3632_v14, 8.507059e+37 }
 0x53b   :  { %v3606_v55 = vmul.f32 %v4454_v39, %v3605_v48  ;;  %v3426_v8 = vmul.f32 %v4456_v38, %v3420_v59 }
 0x53c   :  { %v4458_v32 = vpop.eup %4457  ;;  %v3588_v23 = vadd.f32 %v4452_v33, %v3587_v27  ;;  %v8408_v27 = vld [vmem:[#allocation40_spill] sm:$0xff] }
 0x53d   :  { %v3607_v37 = vadd.f32 %v4454_v39, %v3606_v55  ;;  %v3624_v3 = vmul.f32 %v4458_v32, %v7548_v46  ;;  %3732 = vmatmul.f32.vlgmr.msra.gmra.mxu0 %v3426_v8  ;;  %v4103_v2 = vadd.f32 %v3426_v8, %v8401_v35  ;;  %3752 = vmatmul.f32.vlgmr.msra.gmra.mxu1 %v3426_v8  ;;  %v4460_v36 = vpop.eup %4459  ;;  %vm3629_vm9 = vweird.f32 %v4458_v32 }
 0x53e   :  { %v3592_v11 = vsel %vm3591_vm5, %v4452_v33, %v3588_v23  ;;  %3772 = vmatmul.f32.vlgmr.msra.gmra.mxu2 %v3426_v8  ;;  %3792 = vmatmul.f32.vlgmr.msra.gmra.mxu3 %v3426_v8  ;;  %vm3630_vm11 = vmor %vm3628_vm10, %vm3629_vm9  ;;  %v527_v33 = vadd.f32 %v7985_v54, %v8405_v26  ;;  %v8407_v54 = vld [vmem:[#allocation39_spill] sm:$0xff] }
 0x53f   :  { %v3597_v0 = vsel %vm3594_vm7, %v3596_v47, %v3592_v11  ;;  %v3611_v53 = vsel %vm3610_vm6, %v4454_v39, %v3607_v37  ;;  %v3625_v34 = vsub.f32 1.0, %v3624_v3  ;;  %4112 = vst.msk [vmem:[%s7622_s4 + $0x30] sm:$0xff] %vm4105_vm1, %v4103_v2 }
 0x540   :  { %v3616_v45 = vsel %vm3613_vm8, %v3615_v4, %v3611_v53  ;;  %v3639_v30 = vmul.f32 %v4460_v36, %v3597_v0  ;;  %v8409_v0 = vld [vmem:[#allocation42_spill] sm:$0xff] }
 0x541   :  { %v3638_v19 = vmul.f32 %v3616_v45, %v7399_v43  ;;  %v3626_v25 = vmul.f32 %v4458_v32, %v3625_v34 }
 0x543   :  { %v7576_v62 = vadd.f32 %v3639_v30, %v3638_v19  ;;  %v3627_v29 = vadd.f32 %v4458_v32, %v3626_v25 }
 0x545   :  { %4461 = vtanh.f32 %v7576_v62  ;;  %v3631_v56 = vsel %vm3630_vm11, %v4458_v32, %v3627_v29 }
 0x546   :  { %v3636_v21 = vsel %vm3633_vm12, %v3635_v12, %v3631_v56 }
 0x54b   :  { %v4462_v24 = vpop.eup %4461 }
 0x54c   :  { %v3642_v43 = vmul.f32 %v4462_v24, %v3636_v21 }
 0x54e   :  { %3947 = vmatmul.f32.vlgmr.msrb.gmra.mxu0 %v3642_v43  ;;  %v4098_v16 = vadd.f32 %v3642_v43, %v8402_v10  ;;  %3967 = vmatmul.f32.vlgmr.msrb.gmra.mxu1 %v3642_v43 }
 0x54f   :  { %3987 = vmatmul.f32.vlgmr.msrb.gmra.mxu2 %v3642_v43  ;;  %4007 = vmatmul.f32.vlgmr.msrb.gmra.mxu3 %v3642_v43 }
 0x550   :  { %4107 = vst.msk [vmem:[%s7622_s4 + $0x8] sm:$0xff] %vm4105_vm1, %v4098_v16 }
 0x5ba   :  { %v3733_v44 = vpop.f32.mrf.mxu0  ;;  %v3753_v51 = vpop.f32.mrf.mxu1 }
 0x5bb   :  { %v3796_v13 = vadd.f32 %v3733_v44, %v524_v52  ;;  %v3797_v58 = vadd.f32 %v3753_v51, %v525_v49 }
 0x5bd   :  { %v4226_v15 = vmul.f32 -1.442695, %v3796_v13  ;;  %v4227_v46 = vmul.f32 -1.442695, %v3797_v58 }
 0x5bf   :  { %4463 = vpow2.f32 %v4226_v15 }
 0x5c0   :  { %4465 = vpow2.f32 %v4227_v46 }
 0x5c1   :  { %v3793_v6 = vpop.f32.mrf.mxu3  ;;  %v3773_v1 = vpop.f32.mrf.mxu2 }
 0x5c2   :  { %v3799_v61 = vadd.f32 %v3793_v6, %v527_v33  ;;  %v3798_v18 = vadd.f32 %v3773_v1, %v526_v63  ;;  %v8410_v6 = vld [vmem:[#allocation41_spill] sm:$0xff] }
 0x5c4   :  { %v4228_v39 = vmul.f32 -1.442695, %v3799_v61 }
 0x5c5   :  { %v4464_v22 = vpop.eup %4463 }
 0x5c6   :  { %v4466_v20 = vpop.eup %4465  ;;  %v3803_v57 = vadd.f32 1.0, %v4464_v22  ;;  %4467 = vpow2.f32 %v4228_v39 }
 0x5c7   :  { %v3822_v50 = vadd.f32 1.0, %v4466_v20 }
 0x5c8   :  { %4469 = vrcp.f32 %v3803_v57  ;;  %v3813_v37 = vand.u32 2147483647, %v3803_v57  ;;  %v3815_v2 = vand.u32 2147483648, %v3803_v57  ;;  %vm3809_vm0 = vweird.f32 %v3803_v57 }
 0x5c9   :  { %4471 = vrcp.f32 %v3822_v50  ;;  %v3834_v35 = vand.u32 2147483648, %v3822_v50  ;;  %v3832_v36 = vand.u32 2147483647, %v3822_v50  ;;  %vm3828_vm15 = vweird.f32 %v3822_v50 }
 0x5ca   :  { %vm3814_vm3 = vcmp.eq.f32.partialorder %v3813_v37, 8.507059e+37  ;;  %v3816_v29 = vor.u32 1.1754944e-38, %v3815_v2 }
 0x5cb   :  { %v3948_v9 = vpop.f32.mrf.mxu0  ;;  %v3968_v48 = vpop.f32.mrf.mxu1  ;;  %v3835_v12 = vor.u32 1.1754944e-38, %v3834_v35  ;;  %vm3833_vm5 = vcmp.eq.f32.partialorder %v3832_v36, 8.507059e+37 }
 0x5cc   :  { %v4468_v17 = vpop.eup %4467  ;;  %v4011_v38 = vadd.f32 %v3948_v9, %v8407_v54  ;;  %v4012_v40 = vadd.f32 %v3968_v48, %v8408_v27 }
 0x5cd   :  { %v7597_v59 = vadd.f32 1.0, %v4468_v17 }
 0x5ce   :  { %v4470_v55 = vpop.eup %4469  ;;  %v4229_v41 = vmul.f32 -1.442695, %v4011_v38  ;;  %v4230_v8 = vmul.f32 -1.442695, %v4012_v40 }
 0x5cf   :  { %v4472_v32 = vpop.eup %4471  ;;  %v3805_v23 = vmul.f32 %v4470_v55, %v3803_v57  ;;  %4473 = vrcp.f32 %v7597_v59  ;;  %vm3810_vm13 = vweird.f32 %v4470_v55  ;;  %v3854_v26 = vand.u32 2147483648, %v7597_v59 }
 0x5d0   :  { %v3824_v47 = vmul.f32 %v4472_v32, %v3822_v50  ;;  %4475 = vtanh.f32 %v3798_v18  ;;  %vm3829_vm14 = vweird.f32 %v4472_v32  ;;  %vm3811_vm2 = vmor %vm3809_vm0, %vm3810_vm13  ;;  %vm3848_vm7 = vweird.f32 %v7597_v59 }
 0x5d1   :  { %v3806_v28 = vsub.f32 1.0, %v3805_v23  ;;  %4477 = vpow2.f32 %v4229_v41  ;;  %vm3830_vm4 = vmor %vm3828_vm15, %vm3829_vm14  ;;  %v3852_v33 = vand.u32 2147483647, %v7597_v59  ;;  %v3855_v50 = vor.u32 1.1754944e-38, %v3854_v26  ;;  %v8411_v41 = vld [vmem:[#allocation102_spill] sm:$0xff] }
 0x5d2   :  { %v3825_v3 = vsub.f32 1.0, %v3824_v47  ;;  %4479 = vpow2.f32 %v4230_v8  ;;  %v4008_v4 = vpop.f32.mrf.mxu3  ;;  %v3988_v58 = vpop.f32.mrf.mxu2 }
 0x5d3   :  { %v3807_v11 = vmul.f32 %v4470_v55, %v3806_v28  ;;  %v4014_v53 = vadd.f32 %v4008_v4, %v8409_v0  ;;  %v4013_v61 = vadd.f32 %v3988_v58, %v8410_v6  ;;  %vm3853_vm9 = vcmp.eq.f32.partialorder %v3852_v33, 8.507059e+37 }
 0x5d4   :  { %v3826_v34 = vmul.f32 %v4472_v32, %v3825_v3 }
 0x5d5   :  { %v4474_v45 = vpop.eup %4473  ;;  %v3808_v30 = vadd.f32 %v4470_v55, %v3807_v11  ;;  %v4231_v19 = vmul.f32 -1.442695, %v4014_v53 }
 0x5d6   :  { %v4476_v25 = vpop.eup %4475  ;;  %v3827_v31 = vadd.f32 %v4472_v32, %v3826_v34  ;;  %v3844_v14 = vmul.f32 %v4474_v45, %v7597_v59  ;;  %vm3849_vm6 = vweird.f32 %v4474_v45 }
 0x5d7   :  { %v4478_v56 = vpop.eup %4477  ;;  %v3812_v24 = vsel %vm3811_vm2, %v4470_v55, %v3808_v30  ;;  %4481 = vpow2.f32 %v4231_v19  ;;  %vm3850_vm8 = vmor %vm3848_vm7, %vm3849_vm6 }
 0x5d8   :  { %v4480_v21 = vpop.eup %4479  ;;  %v3817_v43 = vsel %vm3814_vm3, %v3816_v29, %v3812_v24  ;;  %v3831_v10 = vsel %vm3830_vm4, %v4472_v32, %v3827_v31  ;;  %v3845_v16 = vsub.f32 1.0, %v3844_v14  ;;  %v4018_v60 = vadd.f32 1.0, %v4478_v56  ;;  %v8412_v24 = vld [vmem:[#allocation101_spill] sm:$0xff] }
 0x5d9   :  { %v3836_v52 = vsel %vm3833_vm5, %v3835_v12, %v3831_v10  ;;  %v3859_v42 = vmul.f32 %v4476_v25, %v3817_v43  ;;  %v4037_v49 = vadd.f32 1.0, %v4480_v21 }
 0x5da   :  { %v3858_v44 = vmul.f32 %v3836_v52, %v7542_v5  ;;  %v3846_v51 = vmul.f32 %v4474_v45, %v3845_v16  ;;  %4483 = vrcp.f32 %v4018_v60  ;;  %v4030_v18 = vand.u32 2147483648, %v4018_v60 }
 0x5db   :  { %4485 = vrcp.f32 %v4037_v49  ;;  %v4049_v17 = vand.u32 2147483648, %v4037_v49  ;;  %v4028_v27 = vand.u32 2147483647, %v4018_v60  ;;  %v4047_v59 = vand.u32 2147483647, %v4037_v49 }
 0x5dc   :  { %v3860_v13 = vadd.f32 %v3859_v42, %v3858_v44  ;;  %v3847_v46 = vadd.f32 %v4474_v45, %v3846_v51  ;;  %vm4024_vm12 = vweird.f32 %v4018_v60  ;;  %vm4043_vm13 = vweird.f32 %v4037_v49 }
 0x5dd   :  { %v4482_v15 = vpop.eup %4481  ;;  %v4031_v23 = vor.u32 1.1754944e-38, %v4030_v18  ;;  %v4050_v3 = vor.u32 1.1754944e-38, %v4049_v17  ;;  %vm4029_vm0 = vcmp.eq.f32.partialorder %v4028_v27, 8.507059e+37  ;;  %vm4048_vm2 = vcmp.eq.f32.partialorder %v4047_v59, 8.507059e+37 }
 0x5de   :  { %4487 = vtanh.f32 %v3860_v13  ;;  %v4057_v39 = vadd.f32 1.0, %v4482_v15  ;;  %v3851_v20 = vsel %vm3850_vm8, %v4474_v45, %v3847_v46 }
 0x5df   :  { %v3856_v9 = vsel %vm3853_vm9, %v3855_v50, %v3851_v20 }
 0x5e0   :  { %v4484_v22 = vpop.eup %4483  ;;  %4489 = vrcp.f32 %v4057_v39  ;;  %v4069_v19 = vand.u32 2147483648, %v4057_v39  ;;  %vm4063_vm4 = vweird.f32 %v4057_v39  ;;  %v4067_v25 = vand.u32 2147483647, %v4057_v39 }
 0x5e1   :  { %v4486_v5 = vpop.eup %4485  ;;  %v4020_v57 = vmul.f32 %v4484_v22, %v4018_v60  ;;  %4491 = vtanh.f32 %v4013_v61  ;;  %vm4025_vm10 = vweird.f32 %v4484_v22 }
 0x5e2   :  { %v4039_v1 = vmul.f32 %v4486_v5, %v4037_v49  ;;  %vm4044_vm11 = vweird.f32 %v4486_v5  ;;  %vm4026_vm14 = vmor %vm4024_vm12, %vm4025_vm10  ;;  %v4070_v31 = vor.u32 1.1754944e-38, %v4069_v19  ;;  %vm4068_vm6 = vcmp.eq.f32.partialorder %v4067_v25, 8.507059e+37 }
 0x5e3   :  { %v4021_v7 = vsub.f32 1.0, %v4020_v57  ;;  %vm4045_vm15 = vmor %vm4043_vm13, %vm4044_vm11 }
 0x5e4   :  { %v4488_v63 = vpop.eup %4487  ;;  %v4040_v48 = vsub.f32 1.0, %v4039_v1 }
 0x5e5   :  { %v3862_v54 = vmul.f32 %v4488_v63, %v3856_v9  ;;  %v4022_v38 = vmul.f32 %v4484_v22, %v4021_v7 }
 0x5e6   :  { %v4041_v40 = vmul.f32 %v4486_v5, %v4040_v48  ;;  %v4490_v55 = vpop.eup %4489 }
 0x5e7   :  { %v4104_v8 = vadd.f32 %v3862_v54, %v8411_v41  ;;  %v4023_v32 = vadd.f32 %v4484_v22, %v4022_v38  ;;  %v4059_v28 = vmul.f32 %v4490_v55, %v4057_v39  ;;  %v4492_v37 = vpop.eup %4491  ;;  %vm4064_vm3 = vweird.f32 %v4490_v55 }
 0x5e8   :  { %v4042_v47 = vadd.f32 %v4486_v5, %v4041_v40  ;;  %vm4065_vm5 = vmor %vm4063_vm4, %vm4064_vm3 }
 0x5e9   :  { %4113 = vst.msk [vmem:[%s7622_s4 + $0x38] sm:$0xff] %vm4105_vm1, %v4104_v8  ;;  %v4027_v35 = vsel %vm4026_vm14, %v4484_v22, %v4023_v32  ;;  %v4060_v11 = vsub.f32 1.0, %v4059_v28 }
 0x5ea   :  { %v4032_v2 = vsel %vm4029_vm0, %v4031_v23, %v4027_v35  ;;  %v4046_v4 = vsel %vm4045_vm15, %v4486_v5, %v4042_v47 }
 0x5eb   :  { %v4051_v36 = vsel %vm4048_vm2, %v4050_v3, %v4046_v4  ;;  %v4074_v0 = vmul.f32 %v4492_v37, %v4032_v2  ;;  %v4061_v34 = vmul.f32 %v4490_v55, %v4060_v11 }
 0x5ec   :  { %v4073_v53 = vmul.f32 %v4051_v36, %v7576_v62 }
 0x5ed   :  { %v4062_v30 = vadd.f32 %v4490_v55, %v4061_v34 }
 0x5ee   :  { %v4075_v45 = vadd.f32 %v4074_v0, %v4073_v53 }
 0x5ef   :  { %v4066_v29 = vsel %vm4065_vm5, %v4490_v55, %v4062_v30 }
 0x5f0   :  { %4493 = vtanh.f32 %v4075_v45  ;;  %v4071_v56 = vsel %vm4068_vm6, %v4070_v31, %v4066_v29 }
 0x5f6   :  { %v4494_v14 = vpop.eup %4493 }
 0x5f7   :  { %v4077_v12 = vmul.f32 %v4494_v14, %v4071_v56 }
 0x5f9   :  { %v4097_v21 = vadd.f32 %v4077_v12, %v8412_v24 }
 0x5fb   :  { %4106 = vst.msk [vmem:[%s7622_s4] sm:$0xff] %vm4105_vm1, %v4097_v21 }
 0x5fc   :  { %4118 = vsyncpa [#allocation7], 1 }
 0x5fd   :  { %4119 = vsyncpa [#allocation9], 1 }

</bundles_post_ra>
